<compile_context>
chip_gen: v5e
topology: v5e:2x2
jax: 0.10.0
libtpu: 0.0.40
codegen_flags: <defaults>
</compile_context>

<pallas_src>
import functools

import jax
import jax.numpy as jnp
from jax.experimental import pallas as pl
from jax.experimental.pallas import tpu as pltpu

EPS = 1e-5


def _round_up(v, m):
    return ((v + m - 1) // m) * m


# ----------------------------------------------------------------------------
# Fused kernel: conv1 + bn1 + relu + conv2 + bn2 + shortcut + relu, one image
# per grid step.  Activation layout: stride-parity planes, spatially flattened
# to (off + Ho*Wp + off, C) with row stride Wp = Wo+1 (one zero pad column per
# row) and a zero halo of `off` rows on each side; a 3x3 tap is then just a
# +/-1, +/-Wp shifted contiguous slice -- no edge masks needed.
# ----------------------------------------------------------------------------
def _residual_block_kernel(x_ref, w1_ref, sh1_ref, w2_ref, sh2_ref, mcol_ref,
                           wsc_ref, bsc_ref, o_ref,
                           slab1_ref, h1_ref, slab2_ref,
                           *, stride, Mp, Wp, off):
    s = stride
    cin = x_ref.shape[-1]
    cp = o_ref.shape[-1]

    # ---- conv1 (3x3, stride s, pad 1): stage 9 shifted taps -> one MXU dot ----
    for ky in range(3):
        for kx in range(3):
            ay, ax = ky - 1, kx - 1
            py, px = ay % s, ax % s                    # stride-parity plane
            qy, qx = (ay - py) // s, (ax - px) // s    # shift inside the plane
            start = off + qy * Wp + qx
            k = ky * 3 + kx
            slab1_ref[:, k * cin:(k + 1) * cin] = x_ref[py * s + px,
                                                        start:start + Mp, :]
    acc1 = jnp.dot(slab1_ref[...], w1_ref[...],
                   preferred_element_type=jnp.float32)
    # BN1 scale is folded into w1; epilogue = +shift, ReLU, then re-zero the
    # width-pad column so conv2 sees exact zero padding (1 mask mul vs 12).
    h1 = jnp.maximum(acc1 + sh1_ref[...], 0.0) * mcol_ref[...]

    # ---- h1 stays resident in VMEM (flat layout with a zero halo in H) ----
    h1_ref[0:off, :] = jnp.zeros((off, cp), h1_ref.dtype)
    h1_ref[off + Mp:off + Mp + off, :] = jnp.zeros((off, cp), h1_ref.dtype)
    h1_ref[off:off + Mp, :] = h1.astype(h1_ref.dtype)

    # ---- conv2 (3x3, stride 1, pad 1): 9 lane-aligned tap copies -> one dot ----
    for ky in range(3):
        for kx in range(3):
            start = off + (ky - 1) * Wp + (kx - 1)
            k = ky * 3 + kx
            slab2_ref[:, k * cp:(k + 1) * cp] = h1_ref[start:start + Mp, :]
    y = jnp.dot(slab2_ref[...], w2_ref[...],
                preferred_element_type=jnp.float32) + sh2_ref[...]

    # ---- shortcut: 1x1 matmul on the resident stride-sampled rows ----------
    xs = x_ref[0, off:off + Mp, :]     # parity plane (0,0) == x[:, ::s, ::s, :]
    sc = jnp.dot(xs, wsc_ref[...],
                 preferred_element_type=jnp.float32) + bsc_ref[...]

    o_ref[0] = jnp.maximum(y + sc, 0.0).astype(o_ref.dtype)


def _residual_pallas_call(xflat, w1, sh1, w2, sh2, mcol, wsc, bsc, *,
                          n, s2, stride, Mp, Wp, off, cp):
    L = xflat.shape[1]
    cin = xflat.shape[-1]
    kernel = functools.partial(_residual_block_kernel, stride=stride, Mp=Mp,
                               Wp=Wp, off=off)
    return pl.pallas_call(
        kernel,
        out_shape=jax.ShapeDtypeStruct((n, Mp, cp), jnp.bfloat16),
        grid=(n,),
        in_specs=[
            pl.BlockSpec((s2, L, cin), lambda i: (i, 0, 0)),     # activation planes
            pl.BlockSpec((9 * cin, cp), lambda i: (0, 0)),       # conv1 weights bf16
            pl.BlockSpec((1, cp), lambda i: (0, 0)),             # bn1 shift
            pl.BlockSpec((9 * cp, cp), lambda i: (0, 0)),        # conv2 weights bf16
            pl.BlockSpec((1, cp), lambda i: (0, 0)),             # bn2 shift
            pl.BlockSpec((Mp, 1), lambda i: (0, 0)),             # h1 pad-col mask
            pl.BlockSpec((cin, cp), lambda i: (0, 0)),           # shortcut weights
            pl.BlockSpec((1, cp), lambda i: (0, 0)),             # shortcut bias
        ],
        out_specs=pl.BlockSpec((1, Mp, cp), lambda i: (i, 0, 0)),
        scratch_shapes=[
            pltpu.VMEM((Mp, 9 * cin), jnp.bfloat16),             # conv1 tap slab
            pltpu.VMEM((Mp + 2 * off, cp), jnp.bfloat16),        # resident h1
            pltpu.VMEM((Mp, 9 * cp), jnp.bfloat16),              # conv2 tap slab
        ],
        compiler_params=pltpu.CompilerParams(
            dimension_semantics=("parallel",),        # megacore split on v7x
            vmem_limit_bytes=48 * 1024 * 1024),       # safe on 64 MiB v7x VMEM
    )(xflat, w1, sh1, w2, sh2, mcol, wsc, bsc)


# ----------------------------------------------------------------------------
# Module wrapper (inference-mode mirror of the PyTorch `Residual` module)
# ----------------------------------------------------------------------------
class ResidualPallas:

    def __init__(self, key, in_channels, out_channels, stride=1, conv_1x1=False):
        self.cin, self.cout = in_channels, out_channels
        self.stride = stride
        self.use_1x1 = conv_1x1
        if not conv_1x1:
            assert in_channels == out_channels and stride == 1, (
                "identity shortcut requires in_channels == out_channels and stride == 1")
        ks = list(jax.random.split(key, 16))

        def nrm(k, shape, s=0.1):
            return s * jax.random.normal(k, shape, jnp.float32)

        # conv1 (3x3, stride, pad=1) + bn1
        self.w1 = nrm(ks[0], (out_channels, in_channels, 3, 3))
        self.b1 = nrm(ks[1], (out_channels,))
        self.g1 = jax.random.uniform(ks[2], (out_channels,), jnp.float32, 0.5, 1.5)
        self.be1 = nrm(ks[3], (out_channels,))
        self.rm1 = nrm(ks[4], (out_channels,))
        self.rv1 = jax.random.uniform(ks[5], (out_channels,), jnp.float32, 0.5, 1.5)
        # conv2 (3x3, stride 1, pad=1) + bn2
        self.w2 = nrm(ks[6], (out_channels, out_channels, 3, 3))
        self.b2 = nrm(ks[7], (out_channels,))
        self.g2 = jax.random.uniform(ks[8], (out_channels,), jnp.float32, 0.5, 1.5)
        self.be2 = nrm(ks[9], (out_channels,))
        self.rm2 = nrm(ks[10], (out_channels,))
        self.rv2 = jax.random.uniform(ks[11], (out_channels,), jnp.float32, 0.5, 1.5)
        # optional 1x1 projection shortcut
        if conv_1x1:
            self.w1x1 = nrm(ks[12], (out_channels, in_channels, 1, 1))
            self.b1x1 = nrm(ks[13], (out_channels,))

    def __call__(self, x_nchw):
        x = jnp.transpose(x_nchw, (0, 2, 3, 1)).astype(jnp.float32)   # NHWC
        N, H, W, Cin = x.shape
        Cout, s = self.cout, self.stride
        Ho = (H - 1) // s + 1
        Wo = (W - 1) // s + 1
        Wp = Wo + 1                       # one explicit zero pad column per row
        Mp = Ho * Wp
        Cp = _round_up(Cout, 128)         # lane-dense channel padding
        off = _round_up(Wp + 1, 8)        # zero-halo rows (covers +/-1 row taps)
        L = Mp + 2 * off
        s2 = s * s

        # --- fold BN (inference) into weight columns + per-channel shift -----
        scale1 = self.g1 / jnp.sqrt(self.rv1 + EPS)
        shift1 = (self.b1 - self.rm1) * scale1 + self.be1
        scale2 = self.g2 / jnp.sqrt(self.rv2 + EPS)
        shift2 = (self.b2 - self.rm2) * scale2 + self.be2
        dC = Cp - Cout
        w1 = jnp.transpose(self.w1, (2, 3, 1, 0)).reshape(9, Cin, Cout) * scale1
        w1 = jnp.pad(w1, ((0, 0), (0, 0), (0, dC))).reshape(9 * Cin, Cp)
        w1 = w1.astype(jnp.bfloat16)
        w2 = jnp.transpose(self.w2, (2, 3, 1, 0)).reshape(9, Cout, Cout) * scale2
        w2 = jnp.pad(w2, ((0, 0), (0, dC), (0, dC))).reshape(9 * Cp, Cp)
        w2 = w2.astype(jnp.bfloat16)
        sh1 = jnp.pad(shift1, (0, dC))[None, :]                       # (1, Cp)
        sh2 = jnp.pad(shift2, (0, dC))[None, :]
        # shortcut as a 1x1 matmul: projection weights or exact identity
        if self.use_1x1:
            wsc = jnp.transpose(self.w1x1.reshape(Cout, Cin), (1, 0))
            bsc = self.b1x1
        else:
            wsc = jnp.eye(Cin, dtype=jnp.float32)
            bsc = jnp.zeros((Cout,), jnp.float32)
        wsc = jnp.pad(wsc, ((0, 0), (0, dC))).astype(jnp.bfloat16)    # (Cin, Cp)
        bsc = jnp.pad(bsc, (0, dC))[None, :]                          # (1, Cp)

        # --- stride-parity planes, width-padded (Wp) and zero-haloed ---------
        planes = []
        for py in range(s):
            for px in range(s):
                p = x[:, py::s, px::s, :]
                p = jnp.pad(p, ((0, 0), (0, Ho - p.shape[1]),
                                (0, Wp - p.shape[2]), (0, 0)))
                planes.append(p.reshape(N, Mp, Cin))
        xflat = jnp.stack(planes, axis=1)                     # (N, s*s, Mp, C)
        xflat = jnp.pad(xflat, ((0, 0), (0, 0), (off, off), (0, 0)))
        xflat = xflat.reshape(N * s2, L, Cin).astype(jnp.bfloat16)

        # mask that re-zeroes the pad column of h1 (index Wo in each row)
        col = jnp.arange(Mp, dtype=jnp.int32) % Wp
        mcol = (col != Wo).astype(jnp.float32)[:, None]               # (Mp, 1)

        out = _residual_pallas_call(
            xflat, w1, sh1, w2, sh2, mcol, wsc, bsc,
            n=N, s2=s2, stride=s, Mp=Mp, Wp=Wp, off=off, cp=Cp)
        out = out.reshape(N, Ho, Wp, Cp)[:, :, :Wo, :Cout].astype(jnp.float32)
        return jnp.transpose(out, (0, 3, 1, 2))               # NCHW


# ----------------------------------------------------------------------------
# Pure-JAX f32 reference (conv-bn(eval)-relu, conv-bn, +shortcut, relu)
# ----------------------------------------------------------------------------
def residual_ref(m: ResidualPallas, x):
    def conv(x, w, b, s, p):
        y = jax.lax.conv_general_dilated(
            x, w, (s, s), [(p, p), (p, p)],
            dimension_numbers=("NCHW", "OIHW", "NCHW"),
            precision=jax.lax.Precision.HIGHEST)
        return y + b[None, :, None, None]

    def bn(x, g, b, rm, rv):
        c = lambda v: v[None, :, None, None]
        return (x - c(rm)) / jnp.sqrt(c(rv) + EPS) * c(g) + c(b)

    y = conv(x, m.w1, m.b1, m.stride, 1)
    y = jnp.maximum(bn(y, m.g1, m.be1, m.rm1, m.rv1), 0.0)
    y = conv(y, m.w2, m.b2, 1, 1)
    y = bn(y, m.g2, m.be2, m.rm2, m.rv2)
    sc = conv(x, m.w1x1, m.b1x1, m.stride, 0) if m.use_1x1 else x
    return jnp.maximum(y + sc, 0.0)


if __name__ == "__main__":
    key = jax.random.PRNGKey(0)
    kx, k1, k2 = jax.random.split(key, 3)
    x = jax.random.normal(kx, (2, 4, 16, 16), jnp.float32)  # NCHW

    # bf16 operands / intermediates / output with f32 accumulation.
    # NOTE: the identity shortcut adds the bf16-quantized input; in a deep
    # stack the residual stream would prefer an f32 (or wider) path.
    TOL = 5e-2

    # Case 1: identity shortcut (in==out, stride=1, conv_1x1=False)
    blk1 = ResidualPallas(k1, in_channels=4, out_channels=4, stride=1, conv_1x1=False)
    out1 = jax.block_until_ready(blk1(x))
    ref1 = residual_ref(blk1, x)
    assert out1.shape == (2, 4, 16, 16)
    assert jnp.allclose(out1, ref1, atol=TOL, rtol=TOL), \
        float(jnp.max(jnp.abs(out1 - ref1)))

    # Case 2: projection shortcut (channel change + stride 2 + 1x1 conv)
    blk2 = ResidualPallas(k2, in_channels=4, out_channels=8, stride=2, conv_1x1=True)
    out2 = jax.block_until_ready(blk2(x))
    ref2 = residual_ref(blk2, x)
    assert out2.shape == (2, 8, 8, 8)
    assert jnp.allclose(out2, ref2, atol=TOL, rtol=TOL), \
        float(jnp.max(jnp.abs(out2 - ref2)))

    print("KERNEL_OK")
</pallas_src>

<mosaic_0001>
module attributes {stable_mosaic.version = 11 : i64} {
  func.func @_residual_block_kernel(%arg0: i32, %arg1: memref<1x320x4xbf16, #tpu.memory_space<vmem>>, %arg2: memref<36x128xbf16, #tpu.memory_space<vmem>>, %arg3: memref<1x128xf32, #tpu.memory_space<vmem>>, %arg4: memref<1152x128xbf16, #tpu.memory_space<vmem>>, %arg5: memref<1x128xf32, #tpu.memory_space<vmem>>, %arg6: memref<272x1xf32, #tpu.memory_space<vmem>>, %arg7: memref<4x128xbf16, #tpu.memory_space<vmem>>, %arg8: memref<1x128xf32, #tpu.memory_space<vmem>>, %arg9: memref<1x272x128xbf16, #tpu.memory_space<vmem>>, %arg10: memref<272x36xbf16, #tpu.memory_space<vmem>>, %arg11: memref<320x128xbf16, #tpu.memory_space<vmem>>, %arg12: memref<272x1152xbf16, #tpu.memory_space<vmem>>) attributes {dimension_semantics = [#tpu.dimension_semantics<parallel>], iteration_bounds = array<i64: 2>, scalar_prefetch = 0 : i64, scratch_operands = 3 : i64, tpu.core_type = #tpu.core_type<tc>, window_params = [{transform_indices = @transform_0, window_bounds = array<i64: 1, 320, 4>}, {pipeline_mode = #tpu.pipeline_mode<synchronous>, transform_indices = @transform_1, window_bounds = array<i64: 36, 128>}, {pipeline_mode = #tpu.pipeline_mode<synchronous>, transform_indices = @transform_2, window_bounds = array<i64: 1, 128>}, {pipeline_mode = #tpu.pipeline_mode<synchronous>, transform_indices = @transform_3, window_bounds = array<i64: 1152, 128>}, {pipeline_mode = #tpu.pipeline_mode<synchronous>, transform_indices = @transform_4, window_bounds = array<i64: 1, 128>}, {pipeline_mode = #tpu.pipeline_mode<synchronous>, transform_indices = @transform_5, window_bounds = array<i64: 272, 1>}, {pipeline_mode = #tpu.pipeline_mode<synchronous>, transform_indices = @transform_6, window_bounds = array<i64: 4, 128>}, {pipeline_mode = #tpu.pipeline_mode<synchronous>, transform_indices = @transform_7, window_bounds = array<i64: 1, 128>}, {transform_indices = @transform_8, window_bounds = array<i64: 1, 272, 128>}]} {
    %c0 = arith.constant 0 : index
    %c6 = arith.constant 6 : index
    %c0_0 = arith.constant 0 : index
    %0 = vector.load %arg1[%c0, %c6, %c0_0] : memref<1x320x4xbf16, #tpu.memory_space<vmem>>, vector<1x272x4xbf16>
    %1 = vector.shape_cast %0 : vector<1x272x4xbf16> to vector<272x4xbf16>
    %c0_1 = arith.constant 0 : index
    %c0_2 = arith.constant 0 : index
    %2 = vector.load %arg10[%c0_1, %c0_2] : memref<272x36xbf16, #tpu.memory_space<vmem>>, vector<272x4xbf16>
    tpu.vector_store %arg10[%c0_1, %c0_2], %1 {strides = array<i32>} : memref<272x36xbf16, #tpu.memory_space<vmem>>, vector<272x4xbf16>,
    %c0_3 = arith.constant 0 : index
    %c7 = arith.constant 7 : index
    %c0_4 = arith.constant 0 : index
    %3 = vector.load %arg1[%c0_3, %c7, %c0_4] : memref<1x320x4xbf16, #tpu.memory_space<vmem>>, vector<1x272x4xbf16>
    %4 = vector.shape_cast %3 : vector<1x272x4xbf16> to vector<272x4xbf16>
    %c0_5 = arith.constant 0 : index
    %c4 = arith.constant 4 : index
    %5 = vector.load %arg10[%c0_5, %c4] : memref<272x36xbf16, #tpu.memory_space<vmem>>, vector<272x4xbf16>
    tpu.vector_store %arg10[%c0_5, %c4], %4 {strides = array<i32>} : memref<272x36xbf16, #tpu.memory_space<vmem>>, vector<272x4xbf16>,
    %c0_6 = arith.constant 0 : index
    %c8 = arith.constant 8 : index
    %c0_7 = arith.constant 0 : index
    %6 = vector.load %arg1[%c0_6, %c8, %c0_7] : memref<1x320x4xbf16, #tpu.memory_space<vmem>>, vector<1x272x4xbf16>
    %7 = vector.shape_cast %6 : vector<1x272x4xbf16> to vector<272x4xbf16>
    %c0_8 = arith.constant 0 : index
    %c8_9 = arith.constant 8 : index
    %8 = vector.load %arg10[%c0_8, %c8_9] : memref<272x36xbf16, #tpu.memory_space<vmem>>, vector<272x4xbf16>
    tpu.vector_store %arg10[%c0_8, %c8_9], %7 {strides = array<i32>} : memref<272x36xbf16, #tpu.memory_space<vmem>>, vector<272x4xbf16>,
    %c0_10 = arith.constant 0 : index
    %c23 = arith.constant 23 : index
    %c0_11 = arith.constant 0 : index
    %9 = vector.load %arg1[%c0_10, %c23, %c0_11] : memref<1x320x4xbf16, #tpu.memory_space<vmem>>, vector<1x272x4xbf16>
    %10 = vector.shape_cast %9 : vector<1x272x4xbf16> to vector<272x4xbf16>
    %c0_12 = arith.constant 0 : index
    %c12 = arith.constant 12 : index
    %11 = vector.load %arg10[%c0_12, %c12] : memref<272x36xbf16, #tpu.memory_space<vmem>>, vector<272x4xbf16>
    tpu.vector_store %arg10[%c0_12, %c12], %10 {strides = array<i32>} : memref<272x36xbf16, #tpu.memory_space<vmem>>, vector<272x4xbf16>,
    %c0_13 = arith.constant 0 : index
    %c24 = arith.constant 24 : index
    %c0_14 = arith.constant 0 : index
    %12 = vector.load %arg1[%c0_13, %c24, %c0_14] : memref<1x320x4xbf16, #tpu.memory_space<vmem>>, vector<1x272x4xbf16>
    %13 = vector.shape_cast %12 : vector<1x272x4xbf16> to vector<272x4xbf16>
    %c0_15 = arith.constant 0 : index
    %c16 = arith.constant 16 : index
    %14 = vector.load %arg10[%c0_15, %c16] : memref<272x36xbf16, #tpu.memory_space<vmem>>, vector<272x4xbf16>
    tpu.vector_store %arg10[%c0_15, %c16], %13 {strides = array<i32>} : memref<272x36xbf16, #tpu.memory_space<vmem>>, vector<272x4xbf16>,
    %c0_16 = arith.constant 0 : index
    %c25 = arith.constant 25 : index
    %c0_17 = arith.constant 0 : index
    %15 = vector.load %arg1[%c0_16, %c25, %c0_17] : memref<1x320x4xbf16, #tpu.memory_space<vmem>>, vector<1x272x4xbf16>
    %16 = vector.shape_cast %15 : vector<1x272x4xbf16> to vector<272x4xbf16>
    %c0_18 = arith.constant 0 : index
    %c20 = arith.constant 20 : index
    %17 = vector.load %arg10[%c0_18, %c20] : memref<272x36xbf16, #tpu.memory_space<vmem>>, vector<272x4xbf16>
    tpu.vector_store %arg10[%c0_18, %c20], %16 {strides = array<i32>} : memref<272x36xbf16, #tpu.memory_space<vmem>>, vector<272x4xbf16>,
    %c0_19 = arith.constant 0 : index
    %c40 = arith.constant 40 : index
    %c0_20 = arith.constant 0 : index
    %18 = vector.load %arg1[%c0_19, %c40, %c0_20] : memref<1x320x4xbf16, #tpu.memory_space<vmem>>, vector<1x272x4xbf16>
    %19 = vector.shape_cast %18 : vector<1x272x4xbf16> to vector<272x4xbf16>
    %c0_21 = arith.constant 0 : index
    %c24_22 = arith.constant 24 : index
    %20 = vector.load %arg10[%c0_21, %c24_22] : memref<272x36xbf16, #tpu.memory_space<vmem>>, vector<272x4xbf16>
    tpu.vector_store %arg10[%c0_21, %c24_22], %19 {strides = array<i32>} : memref<272x36xbf16, #tpu.memory_space<vmem>>, vector<272x4xbf16>,
    %c0_23 = arith.constant 0 : index
    %c41 = arith.constant 41 : index
    %c0_24 = arith.constant 0 : index
    %21 = vector.load %arg1[%c0_23, %c41, %c0_24] : memref<1x320x4xbf16, #tpu.memory_space<vmem>>, vector<1x272x4xbf16>
    %22 = vector.shape_cast %21 : vector<1x272x4xbf16> to vector<272x4xbf16>
    %c0_25 = arith.constant 0 : index
    %c28 = arith.constant 28 : index
    %23 = vector.load %arg10[%c0_25, %c28] : memref<272x36xbf16, #tpu.memory_space<vmem>>, vector<272x4xbf16>
    tpu.vector_store %arg10[%c0_25, %c28], %22 {strides = array<i32>} : memref<272x36xbf16, #tpu.memory_space<vmem>>, vector<272x4xbf16>,
    %c0_26 = arith.constant 0 : index
    %c42 = arith.constant 42 : index
    %c0_27 = arith.constant 0 : index
    %24 = vector.load %arg1[%c0_26, %c42, %c0_27] : memref<1x320x4xbf16, #tpu.memory_space<vmem>>, vector<1x272x4xbf16>
    %25 = vector.shape_cast %24 : vector<1x272x4xbf16> to vector<272x4xbf16>
    %c0_28 = arith.constant 0 : index
    %c32 = arith.constant 32 : index
    %26 = vector.load %arg10[%c0_28, %c32] : memref<272x36xbf16, #tpu.memory_space<vmem>>, vector<272x4xbf16>
    tpu.vector_store %arg10[%c0_28, %c32], %25 {strides = array<i32>} : memref<272x36xbf16, #tpu.memory_space<vmem>>, vector<272x4xbf16>,
    %c0_29 = arith.constant 0 : index
    %c0_30 = arith.constant 0 : index
    %27 = vector.load %arg10[%c0_29, %c0_30] : memref<272x36xbf16, #tpu.memory_space<vmem>>, vector<272x36xbf16>
    %c0_31 = arith.constant 0 : index
    %c0_32 = arith.constant 0 : index
    %28 = vector.load %arg2[%c0_31, %c0_32] : memref<36x128xbf16, #tpu.memory_space<vmem>>, vector<36x128xbf16>
    %cst = arith.constant dense<0.000000e+00> : vector<272x128xf32>
    %29 = tpu.matmul %27, %28, %cst {dimension_numbers = #tpu.dot_dimension_numbers<[1], [0], [0], [1], [0, 0, 1, 1], [], []>} : vector<272x36xbf16>, vector<36x128xbf16>, vector<272x128xf32> -> vector<272x128xf32>
    %c0_33 = arith.constant 0 : index
    %c0_34 = arith.constant 0 : index
    %30 = vector.load %arg3[%c0_33, %c0_34] : memref<1x128xf32, #tpu.memory_space<vmem>>, vector<1x128xf32>
    %31 = vector.broadcast %30 : vector<1x128xf32> to vector<272x128xf32>
    %32 = arith.addf %29, %31 : vector<272x128xf32>
    %cst_35 = arith.constant 0.000000e+00 : f32
    %33 = vector.broadcast %cst_35 : f32 to vector<272x128xf32>
    %34 = arith.maximumf %32, %33 : vector<272x128xf32>
    %c0_36 = arith.constant 0 : index
    %c0_37 = arith.constant 0 : index
    %35 = vector.load %arg6[%c0_36, %c0_37] : memref<272x1xf32, #tpu.memory_space<vmem>>, vector<272x1xf32>
    %36 = vector.broadcast %35 : vector<272x1xf32> to vector<272x128xf32>
    %37 = arith.mulf %34, %36 : vector<272x128xf32>
    %cst_38 = arith.constant 0.000000e+00 : bf16
    %38 = vector.broadcast %cst_38 : bf16 to vector<24x128xbf16>
    %c0_39 = arith.constant 0 : index
    %c0_40 = arith.constant 0 : index
    %39 = vector.load %arg11[%c0_39, %c0_40] : memref<320x128xbf16, #tpu.memory_space<vmem>>, vector<24x128xbf16>
    tpu.vector_store %arg11[%c0_39, %c0_40], %38 {strides = array<i32>} : memref<320x128xbf16, #tpu.memory_space<vmem>>, vector<24x128xbf16>,
    %cst_41 = arith.constant 0.000000e+00 : bf16
    %40 = vector.broadcast %cst_41 : bf16 to vector<24x128xbf16>
    %c296 = arith.constant 296 : index
    %c0_42 = arith.constant 0 : index
    %41 = vector.load %arg11[%c296, %c0_42] : memref<320x128xbf16, #tpu.memory_space<vmem>>, vector<24x128xbf16>
    tpu.vector_store %arg11[%c296, %c0_42], %40 {strides = array<i32>} : memref<320x128xbf16, #tpu.memory_space<vmem>>, vector<24x128xbf16>,
    %42 = arith.truncf %37 : vector<272x128xf32> to vector<272x128xbf16>
    %c24_43 = arith.constant 24 : index
    %c0_44 = arith.constant 0 : index
    %43 = vector.load %arg11[%c24_43, %c0_44] : memref<320x128xbf16, #tpu.memory_space<vmem>>, vector<272x128xbf16>
    tpu.vector_store %arg11[%c24_43, %c0_44], %42 {strides = array<i32>} : memref<320x128xbf16, #tpu.memory_space<vmem>>, vector<272x128xbf16>,
    %c6_45 = arith.constant 6 : index
    %c0_46 = arith.constant 0 : index
    %44 = vector.load %arg11[%c6_45, %c0_46] : memref<320x128xbf16, #tpu.memory_space<vmem>>, vector<272x128xbf16>
    %c0_47 = arith.constant 0 : index
    %c0_48 = arith.constant 0 : index
    %45 = vector.load %arg12[%c0_47, %c0_48] : memref<272x1152xbf16, #tpu.memory_space<vmem>>, vector<272x128xbf16>
    tpu.vector_store %arg12[%c0_47, %c0_48], %44 {strides = array<i32>} : memref<272x1152xbf16, #tpu.memory_space<vmem>>, vector<272x128xbf16>,
    %c7_49 = arith.constant 7 : index
    %c0_50 = arith.constant 0 : index
    %46 = vector.load %arg11[%c7_49, %c0_50] : memref<320x128xbf16, #tpu.memory_space<vmem>>, vector<272x128xbf16>
    %c0_51 = arith.constant 0 : index
    %c128 = arith.constant 128 : index
    %47 = vector.load %arg12[%c0_51, %c128] : memref<272x1152xbf16, #tpu.memory_space<vmem>>, vector<272x128xbf16>
    tpu.vector_store %arg12[%c0_51, %c128], %46 {strides = array<i32>} : memref<272x1152xbf16, #tpu.memory_space<vmem>>, vector<272x128xbf16>,
    %c8_52 = arith.constant 8 : index
    %c0_53 = arith.constant 0 : index
    %48 = vector.load %arg11[%c8_52, %c0_53] : memref<320x128xbf16, #tpu.memory_space<vmem>>, vector<272x128xbf16>
    %c0_54 = arith.constant 0 : index
    %c256 = arith.constant 256 : index
    %49 = vector.load %arg12[%c0_54, %c256] : memref<272x1152xbf16, #tpu.memory_space<vmem>>, vector<272x128xbf16>
    tpu.vector_store %arg12[%c0_54, %c256], %48 {strides = array<i32>} : memref<272x1152xbf16, #tpu.memory_space<vmem>>, vector<272x128xbf16>,
    %c23_55 = arith.constant 23 : index
    %c0_56 = arith.constant 0 : index
    %50 = vector.load %arg11[%c23_55, %c0_56] : memref<320x128xbf16, #tpu.memory_space<vmem>>, vector<272x128xbf16>
    %c0_57 = arith.constant 0 : index
    %c384 = arith.constant 384 : index
    %51 = vector.load %arg12[%c0_57, %c384] : memref<272x1152xbf16, #tpu.memory_space<vmem>>, vector<272x128xbf16>
    tpu.vector_store %arg12[%c0_57, %c384], %50 {strides = array<i32>} : memref<272x1152xbf16, #tpu.memory_space<vmem>>, vector<272x128xbf16>,
    %c24_58 = arith.constant 24 : index
    %c0_59 = arith.constant 0 : index
    %52 = vector.load %arg11[%c24_58, %c0_59] : memref<320x128xbf16, #tpu.memory_space<vmem>>, vector<272x128xbf16>
    %c0_60 = arith.constant 0 : index
    %c512 = arith.constant 512 : index
    %53 = vector.load %arg12[%c0_60, %c512] : memref<272x1152xbf16, #tpu.memory_space<vmem>>, vector<272x128xbf16>
    tpu.vector_store %arg12[%c0_60, %c512], %52 {strides = array<i32>} : memref<272x1152xbf16, #tpu.memory_space<vmem>>, vector<272x128xbf16>,
    %c25_61 = arith.constant 25 : index
    %c0_62 = arith.constant 0 : index
    %54 = vector.load %arg11[%c25_61, %c0_62] : memref<320x128xbf16, #tpu.memory_space<vmem>>, vector<272x128xbf16>
    %c0_63 = arith.constant 0 : index
    %c640 = arith.constant 640 : index
    %55 = vector.load %arg12[%c0_63, %c640] : memref<272x1152xbf16, #tpu.memory_space<vmem>>, vector<272x128xbf16>
    tpu.vector_store %arg12[%c0_63, %c640], %54 {strides = array<i32>} : memref<272x1152xbf16, #tpu.memory_space<vmem>>, vector<272x128xbf16>,
    %c40_64 = arith.constant 40 : index
    %c0_65 = arith.constant 0 : index
    %56 = vector.load %arg11[%c40_64, %c0_65] : memref<320x128xbf16, #tpu.memory_space<vmem>>, vector<272x128xbf16>
    %c0_66 = arith.constant 0 : index
    %c768 = arith.constant 768 : index
    %57 = vector.load %arg12[%c0_66, %c768] : memref<272x1152xbf16, #tpu.memory_space<vmem>>, vector<272x128xbf16>
    tpu.vector_store %arg12[%c0_66, %c768], %56 {strides = array<i32>} : memref<272x1152xbf16, #tpu.memory_space<vmem>>, vector<272x128xbf16>,
    %c41_67 = arith.constant 41 : index
    %c0_68 = arith.constant 0 : index
    %58 = vector.load %arg11[%c41_67, %c0_68] : memref<320x128xbf16, #tpu.memory_space<vmem>>, vector<272x128xbf16>
    %c0_69 = arith.constant 0 : index
    %c896 = arith.constant 896 : index
    %59 = vector.load %arg12[%c0_69, %c896] : memref<272x1152xbf16, #tpu.memory_space<vmem>>, vector<272x128xbf16>
    tpu.vector_store %arg12[%c0_69, %c896], %58 {strides = array<i32>} : memref<272x1152xbf16, #tpu.memory_space<vmem>>, vector<272x128xbf16>,
    %c42_70 = arith.constant 42 : index
    %c0_71 = arith.constant 0 : index
    %60 = vector.load %arg11[%c42_70, %c0_71] : memref<320x128xbf16, #tpu.memory_space<vmem>>, vector<272x128xbf16>
    %c0_72 = arith.constant 0 : index
    %c1024 = arith.constant 1024 : index
    %61 = vector.load %arg12[%c0_72, %c1024] : memref<272x1152xbf16, #tpu.memory_space<vmem>>, vector<272x128xbf16>
    tpu.vector_store %arg12[%c0_72, %c1024], %60 {strides = array<i32>} : memref<272x1152xbf16, #tpu.memory_space<vmem>>, vector<272x128xbf16>,
    %c0_73 = arith.constant 0 : index
    %c0_74 = arith.constant 0 : index
    %62 = vector.load %arg12[%c0_73, %c0_74] : memref<272x1152xbf16, #tpu.memory_space<vmem>>, vector<272x1152xbf16>
    %c0_75 = arith.constant 0 : index
    %c0_76 = arith.constant 0 : index
    %63 = vector.load %arg4[%c0_75, %c0_76] : memref<1152x128xbf16, #tpu.memory_space<vmem>>, vector<1152x128xbf16>
    %cst_77 = arith.constant dense<0.000000e+00> : vector<272x128xf32>
    %64 = tpu.matmul %62, %63, %cst_77 {dimension_numbers = #tpu.dot_dimension_numbers<[1], [0], [0], [1], [0, 0, 1, 1], [], []>} : vector<272x1152xbf16>, vector<1152x128xbf16>, vector<272x128xf32> -> vector<272x128xf32>
    %c0_78 = arith.constant 0 : index
    %c0_79 = arith.constant 0 : index
    %65 = vector.load %arg5[%c0_78, %c0_79] : memref<1x128xf32, #tpu.memory_space<vmem>>, vector<1x128xf32>
    %66 = vector.broadcast %65 : vector<1x128xf32> to vector<272x128xf32>
    %67 = arith.addf %64, %66 : vector<272x128xf32>
    %c0_80 = arith.constant 0 : index
    %c24_81 = arith.constant 24 : index
    %c0_82 = arith.constant 0 : index
    %68 = vector.load %arg1[%c0_80, %c24_81, %c0_82] : memref<1x320x4xbf16, #tpu.memory_space<vmem>>, vector<1x272x4xbf16>
    %69 = vector.shape_cast %68 : vector<1x272x4xbf16> to vector<272x4xbf16>
    %c0_83 = arith.constant 0 : index
    %c0_84 = arith.constant 0 : index
    %70 = vector.load %arg7[%c0_83, %c0_84] : memref<4x128xbf16, #tpu.memory_space<vmem>>, vector<4x128xbf16>
    %cst_85 = arith.constant dense<0.000000e+00> : vector<272x128xf32>
    %71 = tpu.matmul %69, %70, %cst_85 {dimension_numbers = #tpu.dot_dimension_numbers<[1], [0], [0], [1], [0, 0, 1, 1], [], []>} : vector<272x4xbf16>, vector<4x128xbf16>, vector<272x128xf32> -> vector<272x128xf32>
    %c0_86 = arith.constant 0 : index
    %c0_87 = arith.constant 0 : index
    %72 = vector.load %arg8[%c0_86, %c0_87] : memref<1x128xf32, #tpu.memory_space<vmem>>, vector<1x128xf32>
    %73 = vector.broadcast %72 : vector<1x128xf32> to vector<272x128xf32>
    %74 = arith.addf %71, %73 : vector<272x128xf32>
    %75 = arith.addf %67, %74 : vector<272x128xf32>
    %cst_88 = arith.constant 0.000000e+00 : f32
    %76 = vector.broadcast %cst_88 : f32 to vector<272x128xf32>
    %77 = arith.maximumf %75, %76 : vector<272x128xf32>
    %78 = arith.truncf %77 : vector<272x128xf32> to vector<272x128xbf16>
    %c0_89 = arith.constant 0 : index
    %c0_90 = arith.constant 0 : index
    %c0_91 = arith.constant 0 : index
    %79 = vector.load %arg9[%c0_89, %c0_90, %c0_91] : memref<1x272x128xbf16, #tpu.memory_space<vmem>>, vector<1x272x128xbf16>
    %80 = vector.shape_cast %79 : vector<1x272x128xbf16> to vector<272x128xbf16>
    %81 = vector.shape_cast %78 : vector<272x128xbf16> to vector<1x272x128xbf16>
    tpu.vector_store %arg9[%c0_89, %c0_90, %c0_91], %81 {strides = array<i32>} : memref<1x272x128xbf16, #tpu.memory_space<vmem>>, vector<1x272x128xbf16>,
    return
  }
  func.func @transform_0(%arg0: i32) -> (i32, i32, i32) {
    %c0_i32 = arith.constant 0 : i32
    %c0_i32_0 = arith.constant 0 : i32
    %c0_i32_1 = arith.constant 0 : i32
    return %arg0, %c0_i32, %c0_i32_0 : i32, i32, i32
  }
  func.func @transform_1(%arg0: i32) -> (i32, i32) {
    %c0_i32 = arith.constant 0 : i32
    %c0_i32_0 = arith.constant 0 : i32
    %c0_i32_1 = arith.constant 0 : i32
    return %c0_i32, %c0_i32_0 : i32, i32
  }
  func.func @transform_2(%arg0: i32) -> (i32, i32) {
    %c0_i32 = arith.constant 0 : i32
    %c0_i32_0 = arith.constant 0 : i32
    %c0_i32_1 = arith.constant 0 : i32
    return %c0_i32, %c0_i32_0 : i32, i32
  }
  func.func @transform_3(%arg0: i32) -> (i32, i32) {
    %c0_i32 = arith.constant 0 : i32
    %c0_i32_0 = arith.constant 0 : i32
    %c0_i32_1 = arith.constant 0 : i32
    return %c0_i32, %c0_i32_0 : i32, i32
  }
  func.func @transform_4(%arg0: i32) -> (i32, i32) {
    %c0_i32 = arith.constant 0 : i32
    %c0_i32_0 = arith.constant 0 : i32
    %c0_i32_1 = arith.constant 0 : i32
    return %c0_i32, %c0_i32_0 : i32, i32
  }
  func.func @transform_5(%arg0: i32) -> (i32, i32) {
    %c0_i32 = arith.constant 0 : i32
    %c0_i32_0 = arith.constant 0 : i32
    %c0_i32_1 = arith.constant 0 : i32
    return %c0_i32, %c0_i32_0 : i32, i32
  }
  func.func @transform_6(%arg0: i32) -> (i32, i32) {
    %c0_i32 = arith.constant 0 : i32
    %c0_i32_0 = arith.constant 0 : i32
    %c0_i32_1 = arith.constant 0 : i32
    return %c0_i32, %c0_i32_0 : i32, i32
  }
  func.func @transform_7(%arg0: i32) -> (i32, i32) {
    %c0_i32 = arith.constant 0 : i32
    %c0_i32_0 = arith.constant 0 : i32
    %c0_i32_1 = arith.constant 0 : i32
    return %c0_i32, %c0_i32_0 : i32, i32
  }
  func.func @transform_8(%arg0: i32) -> (i32, i32, i32) {
    %c0_i32 = arith.constant 0 : i32
    %c0_i32_0 = arith.constant 0 : i32
    %c0_i32_1 = arith.constant 0 : i32
    return %arg0, %c0_i32, %c0_i32_0 : i32, i32, i32
  }
}

</mosaic_0001>

<bundles_post_ra>
// kernel: tpu_custom_call.1
= control target key start
LH: loop header
LB: loop body
LE: loop exit
PB: predicated region body
PF: predicated region fallthrough
CT: control target
= control target key end

     0   :  { %13 = vsyncpa [#allocation6], 0  ;;  %s16779_s0 = inlined_call_operand.vmem [shape: bf16[2,320,4], index: 0, kind: input, shape index: {}]   ;;  %s16780_s1 = inlined_call_operand.hbm [shape: bf16[36,128], index: 1, kind: input, shape index: {}]   ;;  %s16781_s2 = inlined_call_operand.vmem [shape: f32[1,128], index: 2, kind: input, shape index: {}]   ;;  %s16782_s3 = inlined_call_operand.vmem [shape: bf16[1152,128], index: 3, kind: input, shape index: {}]   ;;  %s16783_s4 = inlined_call_operand.vmem [shape: f32[1,128], index: 4, kind: input, shape index: {}]   ;;  %s16784_s5 = inlined_call_operand.vmem [shape: f32[272,1], index: 5, kind: input, shape index: {}]   ;;  %s16785_s6 = inlined_call_operand.vmem [shape: bf16[4,128], index: 6, kind: input, shape index: {}]   ;;  %s16786_s7 = inlined_call_operand.vmem [shape: f32[1,128], index: 7, kind: input, shape index: {}]   ;;  %s16787_s8 = inlined_call_operand.hbm [shape: bf16[2,272,128], index: 8, kind: output, shape index: {}]  }
   0x1   :  { %14 = vsyncpa [#allocation7], 0 }
   0x2   :  { %16 = vsyncpa [#allocation7 + $0x1], 0  ;;  %s11226_s27 = smov 0   ;;  %s11228_s28 = smov 0  }
   0x3   :  { %s11230_s29 = smov 0   ;;  %s11232_s30 = smov 0  }
   0x4 LB: > { %s11247_s9 = sadd.s32 4294967295, %s11166_s30   ;;  %s9419_s10 = sadd.s32 4294967294, %s11166_s30   ;;  %s11166_s30 = sphi %s11232_s30, %s17398_s30   ;;  %s11162_s29 = sphi %s11230_s29, %s17397_s29   ;;  %s11158_s28 = sphi %s11228_s28, %s17396_s28   ;;  %s11154_s27 = sphi %s11226_s27, %s17395_s27  }
   0x5   : > { %s11251_s11 = sadd.s32 1, %s11166_s30   ;;  %s202_s12 = sadd.s32 1, %s11162_s29 }
   0x6   : > { %s199_s13 = ssub.s32 %s11166_s30, %s11251_s11  ;;  %p212_p0 = scmp.ne.s32.totalorder %s11162_s29, %s11158_s28 }
   0x7   : > { %p200_p1 = scmp.eq.s32.totalorder %s199_s13, 0  ;;  %p213_p2 = scmp.eq.s32.totalorder %s11247_s9, 1 }
   0x8   : > { %p218_p3 = scmp.ne.s32.totalorder %s11158_s28, %s11154_s27  ;;  %p219_p4 = scmp.eq.s32.totalorder %s9419_s10, 1 }
   0x9   : > { %s11262_s14 = scalar_select %p200_p1, %s11162_s29, %s202_s12  }
   0xa   : > { %p11264_p5 = por %p213_p2, %p212_p0  ;;  %p11268_p6 = por %p219_p4, %p218_p3 }
   0xb   : > { %p9420_p7 = scmp.ge.s32.totalorder %s11166_s30, 1  ;;  %p226_p8 = scmp.lt.s32.totalorder %s11166_s30, 3 }
   0xc   : > { %p11009_p9 = scmp.eq.s32.totalorder %s11247_s9, 0  ;;  %s237_s19 = sshll.u32 %s16780_s1, 4  ;;  %s238_s19 = int_to_ptr.hbm [resolvable:$true] %s237_s19 }
   0xd   : > { %p227_p10 = pnand %p9420_p7, %p226_p8  ;;  %s11168_s20 = smov [#allocation5]  }
   0xe   : > { %s239_s21 = sshll.u32 %s11168_s20, 4  ;;  %s11169_s22 = smov 64   ;;  %s240_s21 = int_to_ptr.vmem [resolvable:$true] %s239_s21 }
   0xf   : > { %p11001_p11 = pneg %p227_p10  ;;  %s11170_s23 = smov 4  }
  0x10   : > { %281 = sbr.rel (%p227_p10) target bundleno = 1959 (0x7a7), region = 52 }
  0x11   : > { %p11002_p12 = pnand %p11009_p9, %p11001_p11 }
  0x13   : > { %11004 = dma.hbm_to_vmem [thread:$0]  (!%p11002_p12), %s238_s19, 320, %s240_s21, [#allocation6], %s11169_s22, %s11169_s22, %s11170_s23  }
  0x15   : > { %11145 = dma.done.wait (%p11009_p9), [#allocation6], 320  }
  0x16   : > { %11147 = vsyncadd (%p11009_p9), [#allocation6], 4294966976  ;;  %p316_p13 = scmp.lt.s32.totalorder %s11247_s9, 1  ;;  %vm602_vm0 = vsmask.f32 256  ;;  %s11171_s13 = smov 8  }
  0x17   : > { %vm603_vm1 = vsmask.f32 4368  ;;  %s11172_s17 = smov 12   ;;  %s11173_s18 = smov 4   ;;  %vm1979_vm3 = vsmask.f32 3328 }
  0x18   : > { %s317_s24 = scalar_select %p316_p13, %s11247_s9, 1  ;;  %vm11300_vm2 = vmor %vm602_vm0, %vm603_vm1  ;;  %vm1980_vm4 = vsmask.f32 7440  ;;  %v16873_v50 = vmov 0  ;;  %vm3254_vm6 = vcmask 1042432   ;;  %vm3255_vm7 = vcmask 1046532  }
  0x19   : > { %s11174_s19 = smov 16   ;;  %vm11330_vm5 = vmor %vm1979_vm3, %vm1980_vm4  ;;  %s11175_s20 = smov 20   ;;  %vm392_vm9 = vcmask 1040384   ;;  %vm393_vm10 = vcmask 1044484   ;;  %vm532_vm12 = vcmask 27648   ;;  %vm1017_vm13 = vcmask 60448  }
  0x1a   : > { %s10993_s25 = smul.u32 160, %s317_s24  ;;  %v16874_v50 = vsel %vm11330_vm5, 4294967295, %v16873_v50  ;;  %s11176_s21 = smov 24   ;;  %vm11371_vm8 = vmor %vm3254_vm6, %vm3255_vm7  ;;  %vm1222_vm14 = vcmask 93248   ;;  %vm1704_vm15 = vcmask 126048   ;;  %vm3692_vm0 = vcmask 1041408  }
  0x1b   : > { %16875 = vst [vmem:[#allocation11_spill] sm:$0xff] %v16874_v50  ;;  %s11177_s22 = smov 28   ;;  %s11178_s23 = smov 32   ;;  %vm11490_vm11 = vmor %vm392_vm9, %vm393_vm10  ;;  %vm1909_vm1 = vcmask 158848   ;;  %vm2428_vm3 = vcmask 191648   ;;  %vm2633_vm4 = vcmask 224448  }
  0x1c   : > { %s11289_s12 = scalar_lea.vmem %s16779_s0, %s10993_s25  ;;  %vm3149_vm6 = vcmask 257248   ;;  %vm3462_vm7 = vcmask 290048   ;;  %vm3640_vm9 = vcmask 293888   ;;  %s10994_s25 = smul.u32 136, %s11247_s9 }
  0x1d   : > { %v1052_v0 = vld [vmem:[%s11289_s12 + $0x4] sm:$0xf]  ;;  %v1257_v1 = vld [vmem:[%s11289_s12 + $0x8] sm:$0x8]  ;;  %v1258_v2 = vld [vmem:[%s11289_s12 + $0xc] sm:$0xf] }
  0x1e   : > { %1120 = vrot.lane.b32.xlu1 %v1052_v0, %s11171_s13  ;;  %v1293_v3 = vshrl.u32 %v1257_v1, 16  ;;  %v1298_v4 = vshrl.u32 %v1258_v2, 16  ;;  %v1301_v5 = vshll.u32 %v1258_v2, 16  ;;  %v567_v6 = vld [vmem:[%s11289_s12] sm:$0x8] }
  0x1f   : > { %v568_v7 = vld [vmem:[%s11289_s12 + $0x4] sm:$0xf]  ;;  %v606_v8 = vshrl.u32 %v567_v6, 16  ;;  %v1259_v13 = vld [vmem:[%s11289_s12 + $0x10] sm:$0xf] }
  0x20   : > { %v9428_v9 = vrot.slane %v1293_v3, 11  ;;  %v1300_v10 = vrot.slane %v1298_v4, 7  ;;  %v611_v11 = vshrl.u32 %v568_v7, 16  ;;  %v614_v12 = vshll.u32 %v568_v7, 16  ;;  %v569_v17 = vld [vmem:[%s11289_s12 + $0x8] sm:$0xf] }
  0x21   : > { %v9427_v15 = vrot.slane %v606_v8, 11  ;;  %v1307_v16 = vshrl.u32 %v1259_v13, 16  ;;  %v1310_v20 = vshll.u32 %v1259_v13, 16  ;;  %v620_v21 = vshrl.u32 %v569_v17, 16  ;;  %v1053_v22 = vld [vmem:[%s11289_s12 + $0x8] sm:$0xf] }
  0x22   : > { %v1303_v18 = vor.u32 %v1301_v5, %v1300_v10  ;;  %v613_v19 = vrot.slane %v611_v11, 7  ;;  %v1944_v24 = vld [vmem:[%s11289_s12 + $0xc] sm:$0xf]  ;;  %v623_v28 = vshll.u32 %v569_v17, 16  ;;  %v1305_v32 = vrot.slane %v1300_v10, 4 }
  0x23   : > { %v11306_v23 = vrot.slane %v1307_v16, 7  ;;  %v11311_v27 = vrot.slane %v620_v21, 7  ;;  %v1983_v29 = vshrl.u32 %v1944_v24, 16  ;;  %v1986_v30 = vshll.u32 %v1944_v24, 16  ;;  %v1945_v34 = vld [vmem:[%s11289_s12 + $0x10] sm:$0xf] }
  0x24   : > { %v1304_v25 = vsel %vm11300_vm2, %v9428_v9, %v1303_v18  ;;  %v616_v26 = vor.u32 %v614_v12, %v613_v19  ;;  %v618_v37 = vrot.slane %v613_v19, 4  ;;  %v2669_v39 = vld [vmem:[%s11289_s12 + $0x18] sm:$0xf]  ;;  %v1992_v42 = vshll.u32 %v1945_v34, 16  ;;  %v1740_v43 = vld [vmem:[%s11289_s12 + $0x10] sm:$0xf] }
  0x25   : > { %1602 = vrot.lane.b32.xlu2 %v1304_v25, %s11172_s17  ;;  %v1312_v33 = vor.u32 %v1310_v20, %v11306_v23  ;;  %v1985_v35 = vrot.slane %v1983_v29, 4  ;;  %v1988_v36 = vrot.slane %v1986_v30, 5  ;;  %v625_v38 = vor.u32 %v623_v28, %v11311_v27  ;;  %v11337_v54 = vld [vmem:[%s11289_s12 + $0x1c] sm:$0xf]  ;;  %v11340_v55 = vld [vmem:[%s11289_s12 + $0x14] sm:$0xf] }
  0x26   : > { %v617_v31 = vsel %vm11300_vm2, %v9427_v15, %v616_v26  ;;  %1122 = vrot.lane.b32.xlu1 %v1053_v22, %s11171_s13  ;;  %v2713_v44 = vshll.u32 %v2669_v39, 16  ;;  %v2717_v45 = vshrl.u32 %v2669_v39, 16  ;;  %v1996_v47 = vshrl.u32 %v1945_v34, 16  ;;  %v2668_v56 = vld [vmem:[%s11289_s12 + $0x14] sm:$0xf] }
  0x27   : > { %915 = vrot.lane.b32.xlu0 %v617_v31, %s11173_s18  ;;  %v1313_v40 = vsel %vm11300_vm2, %v1305_v32, %v1312_v33  ;;  %v1989_v41 = vor.u32 %v1988_v36, %v1985_v35  ;;  %v626_v46 = vsel %vm11300_vm2, %v618_v37, %v625_v38  ;;  %v1994_v49 = vrot.slane %v1992_v42, 5  ;;  %v1739_v58 = vld [vmem:[%s11289_s12 + $0xc] sm:$0xf]  ;;  %v2463_v59 = vld [vmem:[%s11289_s12 + $0x14] sm:$0xf] }
  0x28   : > { %v11334_v51 = vrot.slane %v2713_v44, 5  ;;  %v2719_v52 = vrot.slane %v2717_v45, 4  ;;  %v1998_v53 = vrot.slane %v1996_v47, 4  ;;  %v2723_v61 = vshll.u32 %v11337_v54, 16  ;;  %v570_v2 = vld [vmem:[%s11289_s12 + $0xc] sm:$0xf] }
  0x29   : > { %v1990_v48 = vrot.slane %v1989_v41, 4  ;;  %v2002_v63 = vshll.u32 %v11340_v55, 16  ;;  %v2704_v0 = vshrl.u32 %v2668_v56, 16  ;;  %v2707_v1 = vshll.u32 %v2668_v56, 16  ;;  %v2464_v10 = vld [vmem:[%s11289_s12 + $0x18] sm:$0xf] }
  0x2a   : > { %v2720_v60 = vor.u32 %v2719_v52, %v11334_v51  ;;  %v1999_v62 = vor.u32 %v1998_v53, %v1994_v49  ;;  %v11354_v4 = vrot.slane %v2723_v61, 5  ;;  %v629_v5 = vshrl.u32 %v570_v2, 16  ;;  %v3184_v11 = vld [vmem:[%s11289_s12 + $0x14] sm:$0xe]  ;;  %v3185_v13 = vld [vmem:[%s11289_s12 + $0x18] sm:$0xf] }
  0x2b   : > { %v1995_v57 = vsel %vm11330_vm5, %v1990_v48, %v1994_v49  ;;  %v11356_v7 = vrot.slane %v2002_v63, 5  ;;  %v2706_v8 = vrot.slane %v2704_v0, 4  ;;  %v2709_v9 = vrot.slane %v2707_v1, 5  ;;  %v571_v17 = vld [vmem:[%s11289_s12 + $0x10] sm:$0xf] }
  0x2c   : > { %v2721_v3 = vrot.slane %v2720_v60, 4  ;;  %v2000_v6 = vrot.slane %v1999_v62, 4  ;;  %v631_v15 = vrot.slane %v629_v5, 7  ;;  %v632_v16 = vshll.u32 %v570_v2, 16  ;;  %v1260_v33 = vld [vmem:[%s11289_s12 + $0x14] sm:$0xf] }
  0x2d   : > { %1604 = vrot.lane.b32.xlu2 %v1313_v40, %s11172_s17  ;;  %v2710_v19 = vor.u32 %v2709_v9, %v2706_v8  ;;  %v9429_v20 = vrot.slane %v3184_v11, 9  ;;  %v3259_v21 = vrot.slane %v3185_v13, 5  ;;  %v638_v22 = vshrl.u32 %v571_v17, 16  ;;  %v1947_v40 = vld [vmem:[%s11289_s12 + $0x18] sm:$0xf] }
  0x2e   : > { %1809 = vrot.lane.b32.xlu1 %v1740_v43, %s11174_s19  ;;  %v2726_v12 = vsel %vm11330_vm5, %v2721_v3, %v11354_v4  ;;  %v2005_v18 = vsel %vm11330_vm5, %v2000_v6, %v11356_v7  ;;  %v16876_v24 = vmov 0  ;;  %v627_v25 = vrot.slane %v11311_v27, 4  ;;  %v11388_v27 = vld [vmem:[%s11289_s12 + $0x1c] sm:$0xf]  ;;  %v1055_v44 = vld [vmem:[%s11289_s12 + $0x10] sm:$0xf] }
  0x2f   : > { %917 = vrot.lane.b32.xlu0 %v626_v46, %s11173_s18  ;;  %v16877_v24 = vsel %vm11371_vm8, 4294967295, %v16876_v24  ;;  %v634_v26 = vor.u32 %v632_v16, %v631_v15  ;;  %v2711_v28 = vrot.slane %v2710_v19, 4  ;;  %v3260_v29 = vsel %vm11371_vm8, %v9429_v20, %v3259_v21  ;;  %v1261_v48 = vld [vmem:[%s11289_s12 + $0x18] sm:$0xf]  ;;  %v1741_v60 = vld [vmem:[%s11289_s12 + $0x14] sm:$0xf] }
  0x30   : > { %16878 = vst [vmem:[#allocation12_spill] sm:$0xff] %v16877_v24  ;;  %v11378_v30 = vrot.slane %v638_v22, 7  ;;  %v641_v31 = vshll.u32 %v571_v17, 16  ;;  %v636_v35 = vrot.slane %v631_v15, 4  ;;  %v1316_v37 = vshrl.u32 %v1260_v33, 16 }
  0x31   : > { %v635_v32 = vsel %vm11300_vm2, %v627_v25, %v634_v26  ;;  %v2716_v34 = vsel %vm11330_vm5, %v2711_v28, %v11334_v51  ;;  %v3261_v38 = vrot.slane %v3259_v21, 4  ;;  %v3262_v39 = vrot.slane %v11388_v27, 5  ;;  %v1054_v63 = vld [vmem:[%s11289_s12 + $0xc] sm:$0xf]  ;;  %v1742_v9 = vld [vmem:[%s11289_s12 + $0x18] sm:$0xf] }
  0x32   : > { %v643_v36 = vor.u32 %v641_v31, %v11378_v30  ;;  %v1318_v42 = vrot.slane %v1316_v37, 7  ;;  %v1319_v43 = vshll.u32 %v1260_v33, 16  ;;  %v2012_v45 = vshll.u32 %v1947_v40, 16  ;;  %v11438_v20 = vld [vmem:[%s11289_s12 + $0x24] sm:$0xf] }
  0x33   : > { %v2016_v46 = vshrl.u32 %v1947_v40, 16  ;;  %v3263_v47 = vsel %vm11371_vm8, %v3261_v38, %v3262_v39  ;;  %v1314_v49 = vrot.slane %v11306_v23, 4  ;;  %v1325_v56 = vshrl.u32 %v1261_v48, 16  ;;  %v3187_v21 = vld [vmem:[%s11289_s12 + $0x20] sm:$0xf] }
  0x34   : > { %v644_v41 = vsel %vm11300_vm2, %v636_v35, %v643_v36  ;;  %v1321_v51 = vor.u32 %v1319_v43, %v1318_v42  ;;  %v2014_v52 = vrot.slane %v2012_v45, 5  ;;  %v2006_v23 = vshrl.u32 %v11340_v55, 16  ;;  %v2671_v55 = vld [vmem:[%s11289_s12 + $0x20] sm:$0xf]  ;;  %v2465_v22 = vld [vmem:[%s11289_s12 + $0x1c] sm:$0xf] }
  0x35   : > { %2326 = vrot.lane.b32.xlu2 %v1995_v57, %s11175_s20  ;;  %v2018_v53 = vrot.slane %v2016_v46, 4  ;;  %v11408_v57 = vld [vmem:[%s11289_s12 + $0x1c] sm:$0xf]  ;;  %v11417_v0 = vrot.slane %v1325_v56, 7  ;;  %v1328_v1 = vshll.u32 %v1261_v48, 16  ;;  %v1323_v5 = vrot.slane %v1318_v42, 4 }
  0x36   : > { %2531 = vrot.lane.b32.xlu1 %v2463_v59, %s11176_s21  ;;  %v2727_v59 = vshrl.u32 %v11337_v54, 16  ;;  %v2022_v62 = vshll.u32 %v11408_v57, 16  ;;  %v2008_v8 = vrot.slane %v2006_v23, 4  ;;  %v2733_v13 = vshll.u32 %v2671_v55, 16  ;;  %v2466_v43 = vld [vmem:[%s11289_s12 + $0x20] sm:$0xf] }
  0x37   : > { %1807 = vrot.lane.b32.xlu0 %v1739_v58, %s11174_s19  ;;  %v1322_v58 = vsel %vm11300_vm2, %v1314_v49, %v1321_v51  ;;  %v2019_v61 = vor.u32 %v2018_v53, %v2014_v52  ;;  %v1330_v6 = vor.u32 %v1328_v1, %v11417_v0  ;;  %v2743_v26 = vshll.u32 %v11438_v20, 16  ;;  %v1263_v45 = vld [vmem:[%s11289_s12 + $0x20] sm:$0xf]  ;;  %v573_v46 = vld [vmem:[%s11289_s12 + $0x18] sm:$0xf] }
  0x38   : > { %v11422_v54 = vrot.slane %v2022_v62, 5  ;;  %v2729_v3 = vrot.slane %v2727_v59, 4  ;;  %v2009_v16 = vor.u32 %v2008_v8, %v11356_v7  ;;  %v2735_v19 = vrot.slane %v2733_v13, 5  ;;  %v1056_v59 = vld [vmem:[%s11289_s12 + $0x14] sm:$0xf] }
  0x39   : > { %v2020_v2 = vrot.slane %v2019_v61, 4  ;;  %v1331_v15 = vsel %vm11300_vm2, %v1323_v5, %v1330_v6  ;;  %v3265_v28 = vrot.slane %v3187_v21, 5  ;;  %v1343_v51 = vshrl.u32 %v1263_v45, 16 }
  0x3a   : > { %v656_v53 = vshrl.u32 %v573_v46, 16  ;;  %v659_v27 = vshll.u32 %v573_v46, 16  ;;  %v11542_v46 = vld [vmem:[%s11289_s12 + $0x10] sm:$0xf] }
  0x3b   : > { %v2025_v11 = vsel %vm11330_vm5, %v2020_v2, %v11422_v54  ;;  %v3267_v36 = vrot.slane %v3265_v28, 4  ;;  %v11478_v61 = vrot.slane %v1343_v51, 7 }
  0x3c   : > { %v11482_v23 = vrot.slane %v656_v53, 7 }
  0x3d   : > { %2533 = vrot.lane.b32.xlu2 %v2464_v10, %s11176_s21  ;;  %v2737_v10 = vshrl.u32 %v2671_v55, 16  ;;  %v1949_v55 = vld [vmem:[%s11289_s12 + $0x20] sm:$0xf] }
  0x3e   : > { %3049 = vrot.lane.b32.xlu1 %v2726_v12, %s11177_s22  ;;  %v2730_v12 = vor.u32 %v2729_v3, %v11354_v4  ;;  %v2010_v4 = vrot.slane %v2009_v16, 4  ;;  %v661_v8 = vor.u32 %v659_v27, %v11482_v23  ;;  %v2032_v16 = vshll.u32 %v1949_v55, 16 }
  0x3f   : > { %2328 = vrot.lane.b32.xlu0 %v2005_v18, %s11175_s20  ;;  %v2739_v17 = vrot.slane %v2737_v10, 4  ;;  %v1057_v10 = vld [vmem:[%s11289_s12 + $0x18] sm:$0xf] }
  0x40   : > { %v2731_v18 = vrot.slane %v2730_v12, 4  ;;  %v2015_v31 = vsel %vm11330_vm5, %v2010_v4, %v2014_v52  ;;  %v3264_v52 = vrot.slane %v3262_v39, 4  ;;  %v322_v39 = vld [vmem:[%s11289_s12] sm:$0x8] }
  0x41   : > { %v2740_v25 = vor.u32 %v2739_v17, %v2735_v19 }
  0x42   : > { %v2736_v7 = vsel %vm11330_vm5, %v2731_v18, %v2735_v19  ;;  %v3266_v62 = vsel %vm11371_vm8, %v3264_v52, %v3265_v28  ;;  %v11507_v19 = vld [vmem:[%s11289_s12 + $0x8] sm:$0xf]  ;;  %v1332_v28 = vrot.slane %v11417_v0, 4 }
  0x43   : > { %v2741_v33 = vrot.slane %v2740_v25, 4 }
  0x45   : > { %3360 = vrot.lane.b32.xlu2 %v3260_v29, %s11178_s23  ;;  %v572_v29 = vld [vmem:[%s11289_s12 + $0x14] sm:$0xf] }
  0x46   : > { %919 = vrot.lane.b32.xlu1 %v635_v32, %s11173_s18  ;;  %v11449_v32 = vld [vmem:[%s11289_s12 + $0x24] sm:$0xf]  ;;  %v647_v35 = vshrl.u32 %v572_v29, 16 }
  0x47   : > { %3047 = vrot.lane.b32.xlu0 %v2716_v34, %s11177_s22  ;;  %v11453_v34 = vrot.slane %v2743_v26, 5  ;;  %v3268_v37 = vrot.slane %v11449_v32, 5  ;;  %v2034_v26 = vrot.slane %v2032_v16, 5 }
  0x48   : > { %v649_v40 = vrot.slane %v647_v35, 7  ;;  %v1743_v35 = vld [vmem:[%s11289_s12 + $0x1c] sm:$0xf] }
  0x49   : > { %v2746_v38 = vsel %vm11330_vm5, %v2741_v33, %v11453_v34  ;;  %v3269_v42 = vsel %vm11371_vm8, %v3267_v36, %v3268_v37  ;;  %v2747_v33 = vshrl.u32 %v11438_v20, 16 }
  0x4a   : > { %v654_v6 = vrot.slane %v649_v40, 4 }
  0x4b   : > { %v2749_v20 = vrot.slane %v2747_v33, 4 }
  0x4c   : > { %v662_v17 = vsel %vm11300_vm2, %v654_v6, %v661_v8 }
  0x4d   : > { %921 = vrot.lane.b32.xlu2 %v644_v41, %s11173_s18  ;;  %v650_v41 = vshll.u32 %v572_v29, 16  ;;  %v2750_v51 = vor.u32 %v2749_v20, %v11453_v34 }
  0x4e   : > { %1126 = vrot.lane.b32.xlu1 %v1055_v44, %s11171_s13  ;;  %v1262_v44 = vld [vmem:[%s11289_s12 + $0x1c] sm:$0xf] }
  0x4f   : > { %3362 = vrot.lane.b32.xlu0 %v3263_v47, %s11178_s23  ;;  %v645_v47 = vrot.slane %v11378_v30, 4  ;;  %v652_v48 = vor.u32 %v650_v41, %v649_v40  ;;  %v1334_v49 = vshrl.u32 %v1262_v44, 16  ;;  %v1346_v30 = vshll.u32 %v1263_v45, 16  ;;  %v11539_v45 = vld [vmem:[%s11289_s12 + $0xc] sm:$0xf] }
  0x50   : > { %v1337_v18 = vshll.u32 %v1262_v44, 16  ;;  %v2673_v44 = vld [vmem:[%s11289_s12 + $0x28] sm:$0xf]  ;;  %v2751_v34 = vrot.slane %v2750_v51, 4  ;;  %v3535_v51 = vld [vmem:[#allocation5 + $0x10] sm:$0x3] }
  0x51   : > { %v653_v56 = vsel %vm11300_vm2, %v645_v47, %v652_v48  ;;  %v1348_v2 = vor.u32 %v1346_v30, %v11478_v61  ;;  %v403_v47 = vrot.slane %v11539_v45, 7  ;;  %v406_v48 = vrot.slane %v11542_v46, 7  ;;  %v11556_v30 = vld [vmem:[%s11289_s12 + $0x1c] sm:$0xf] }
  0x52   : > { %v2753_v52 = vshll.u32 %v2673_v44, 16  ;;  %v663_v45 = vrot.slane %v11482_v23, 4  ;;  %v10533_v23 = vld [vmem:[#allocation5 + $0x8] sm:$0xff] }
  0x53   : > { %v405_v53 = vrot.slane %v403_v47, 4 }
  0x55   : > { %1606 = vrot.lane.b32.xlu2 %v1322_v58, %s11172_s17  ;;  %v2026_v58 = vshrl.u32 %v11408_v57, 16  ;;  %v323_v57 = vld [vmem:[%s11289_s12 + $0x4] sm:$0xf]  ;;  %v407_v27 = vsel %vm11490_vm11, %v405_v53, %v406_v48  ;;  %v1350_v53 = vrot.slane %v11478_v61, 4 }
  0x56   : > { %1811 = vrot.lane.b32.xlu1 %v1741_v60, %s11174_s19  ;;  %v1336_v60 = vrot.slane %v1334_v49, 7  ;;  %536 = vst.msk [vmem:[#allocation2 + $0xc] sm:$0xf] %vm532_vm12, %v407_v27 }
  0x57   : > { %1124 = vrot.lane.b32.xlu0 %v1054_v63, %s11171_s13  ;;  %v9426_v63 = vrot.slane %v322_v39, 11  ;;  %v2028_v3 = vrot.slane %v2026_v58, 4  ;;  %v2468_v58 = vld [vmem:[%s11289_s12 + $0x28] sm:$0xf]  ;;  %v2755_v39 = vrot.slane %v2753_v52, 5 }
  0x58   : > { %v1341_v1 = vrot.slane %v1336_v60, 4  ;;  %v1339_v29 = vor.u32 %v1337_v18, %v1336_v60  ;;  %v3189_v60 = vld [vmem:[%s11289_s12 + $0x28] sm:$0xf] }
  0x5a   : > { %v1349_v13 = vsel %vm11300_vm2, %v1341_v1, %v1348_v2  ;;  %v1340_v40 = vsel %vm11300_vm2, %v1332_v28, %v1339_v29  ;;  %v3271_v1 = vrot.slane %v3189_v60, 5  ;;  %v665_v2 = vshrl.u32 %v11556_v30, 16 }
  0x5c   : > { %v3273_v18 = vrot.slane %v3271_v1, 4 }
  0x5d   : > { %1813 = vrot.lane.b32.xlu2 %v1742_v9, %s11174_s19  ;;  %v397_v9 = vrot.slane %v323_v57, 7 }
  0x5e   : > { %2332 = vrot.lane.b32.xlu1 %v2025_v11, %s11175_s20  ;;  %v2036_v11 = vshrl.u32 %v1949_v55, 16  ;;  %v11573_v55 = vld [vmem:[%s11289_s12 + $0x2c] sm:$0xf] }
  0x5f   : > { %1608 = vrot.lane.b32.xlu0 %v1331_v15, %s11172_s17  ;;  %v398_v12 = vsel %vm11490_vm11, %v9426_v63, %v397_v9  ;;  %v2029_v15 = vor.u32 %v2028_v3, %v11422_v54  ;;  %v399_v21 = vrot.slane %v397_v9, 4  ;;  %v3270_v63 = vrot.slane %v3268_v37, 4  ;;  %v1264_v37 = vld [vmem:[%s11289_s12 + $0x24] sm:$0xf] }
  0x60   : > { %533 = vst.msk [vmem:[#allocation2] sm:$0xf] %vm532_vm12, %v398_v12  ;;  %v2038_v4 = vrot.slane %v2036_v11, 4  ;;  %v2756_v9 = vsel %vm11330_vm5, %v2751_v34, %v2755_v39  ;;  %v667_v12 = vrot.slane %v665_v2, 7 }
  0x61   : > { %v2030_v25 = vrot.slane %v2029_v15, 4  ;;  %v3272_v11 = vsel %vm11371_vm8, %v3270_v63, %v3271_v1  ;;  %v2467_v15 = vld [vmem:[%s11289_s12 + $0x24] sm:$0xf] }
  0x62   : > { %v2039_v36 = vor.u32 %v2038_v4, %v2034_v26 }
  0x63   : > { %v2035_v0 = vsel %vm11330_vm5, %v2030_v25, %v2034_v26  ;;  %v672_v26 = vrot.slane %v667_v12, 4 }
  0x64   : > { %v2040_v41 = vrot.slane %v2039_v36, 4 }
  0x65   : > { %2535 = vrot.lane.b32.xlu2 %v2465_v22, %s11176_s21  ;;  %v400_v22 = vrot.slane %v11507_v19, 7 }
  0x66   : > { %3051 = vrot.lane.b32.xlu1 %v2736_v7, %s11177_s22  ;;  %v11515_v7 = vld [vmem:[%s11289_s12 + $0x24] sm:$0xf] }
  0x67   : > { %2330 = vrot.lane.b32.xlu0 %v2015_v31, %s11175_s20  ;;  %v401_v31 = vsel %vm11490_vm11, %v399_v21, %v400_v22  ;;  %v1352_v21 = vshrl.u32 %v1264_v37, 16  ;;  %v402_v20 = vrot.slane %v400_v22, 4  ;;  %v3634_v22 = vunpack.c.l.b16 %v3535_v51 }
  0x68   : > { %534 = vst.msk [vmem:[#allocation2 + $0x4] sm:$0xf] %vm532_vm12, %v401_v31  ;;  %v2046_v60 = vshrl.u32 %v11515_v7, 16 }
  0x69   : > { %v404_v52 = vsel %vm11490_vm11, %v402_v20, %v403_v47  ;;  %v3637_v47 = vpack.c.b16 %v3634_v22, %v3634_v22  ;;  %v11672_v20 = vld [vmem:[%s11289_s12 + $0x2c] sm:$0xf] }
  0x6a   : > { %535 = vst.msk [vmem:[#allocation2 + $0x8] sm:$0xf] %vm532_vm12, %v404_v52  ;;  %v2048_v2 = vrot.slane %v2046_v60, 4 }
  0x6d   : > { %3053 = vrot.lane.b32.xlu2 %v2746_v38, %s11177_s22  ;;  %v2042_v38 = vshll.u32 %v11515_v7, 16 }
  0x6e   : > { %3366 = vrot.lane.b32.xlu1 %v3269_v42, %s11178_s23 }
  0x6f   : > { %2537 = vrot.lane.b32.xlu0 %v2466_v43, %s11176_s21  ;;  %v11532_v42 = vrot.slane %v2042_v38, 5  ;;  %v1354_v38 = vrot.slane %v1352_v21, 7 }
  0x71   : > { %v2045_v49 = vsel %vm11330_vm5, %v2040_v41, %v11532_v42  ;;  %v1265_v41 = vld [vmem:[%s11289_s12 + $0x28] sm:$0xf]  ;;  %v1359_v63 = vrot.slane %v1354_v38, 4 }
  0x72   : > { %v1361_v19 = vshrl.u32 %v1265_v41, 16  ;;  %v1364_v34 = vshll.u32 %v1265_v41, 16 }
  0x74   : > { %v11628_v27 = vrot.slane %v1361_v19, 7  ;;  %v2767_v19 = vshrl.u32 %v11573_v55, 16 }
  0x75   : > { %923 = vrot.lane.b32.xlu2 %v653_v56, %s11173_s18  ;;  %v1744_v56 = vld [vmem:[%s11289_s12 + $0x20] sm:$0xf] }
  0x76   : > { %1128 = vrot.lane.b32.xlu1 %v1056_v59, %s11171_s13  ;;  %v2757_v59 = vshrl.u32 %v2673_v44, 16  ;;  %v1366_v1 = vor.u32 %v1364_v34, %v11628_v27  ;;  %v2470_v34 = vld [vmem:[%s11289_s12 + $0x30] sm:$0xf] }
  0x77   : > { %3364 = vrot.lane.b32.xlu0 %v3266_v62, %s11178_s23  ;;  %v575_v62 = vld [vmem:[%s11289_s12 + $0x20] sm:$0xf] }
  0x78   : > { %v674_v3 = vshrl.u32 %v575_v62, 16  ;;  %v2759_v8 = vrot.slane %v2757_v59, 4  ;;  %v677_v32 = vshll.u32 %v575_v62, 16  ;;  %v1058_v62 = vld [vmem:[%s11289_s12 + $0x1c] sm:$0xf] }
  0x7a   : > { %v2760_v16 = vor.u32 %v2759_v8, %v2755_v39  ;;  %v3694_v39 = vsel %vm3692_vm0, %v3637_v47, 0 }
  0x7b   : > { %3701 = vmatpush.bf16.msra.mxu0 %v3694_v39  ;;  %10973 = vmatpush.bf16.msra.mxu3 %v3694_v39  ;;  %v3191_v39 = vld [vmem:[%s11289_s12 + $0x30] sm:$0xf] }
  0x7c   : > { %v2761_v31 = vrot.slane %v2760_v16, 4 }
  0x7d   : > { %1130 = vrot.lane.b32.xlu2 %v1057_v10, %s11171_s13  ;;  %v11578_v10 = vld [vmem:[%s11289_s12 + $0x2c] sm:$0xf] }
  0x7e   : > { %1612 = vrot.lane.b32.xlu1 %v1349_v13, %s11172_s17  ;;  %v11582_v13 = vrot.slane %v674_v3, 7  ;;  %v3274_v4 = vrot.slane %v11578_v10, 5 }
  0x7f   : > { %925 = vrot.lane.b32.xlu0 %v662_v17, %s11173_s18  ;;  %v11512_v54 = vpop.permute.xlu2 %1602  ;;  %v2763_v17 = vshll.u32 %v11573_v55, 16  ;;  %3702 = vmatpush.bf16.msra.mxu0 %v10533_v23 }
  0x80   : > { %v679_v28 = vor.u32 %v677_v32, %v11582_v13  ;;  %v3275_v36 = vsel %vm11371_vm8, %v3273_v18, %v3274_v4  ;;  %10974 = vmatpush.bf16.msra.mxu3 %v10533_v23  ;;  %v2049_v32 = vor.u32 %v2048_v2, %v11532_v42  ;;  %v1059_v18 = vld [vmem:[%s11289_s12 + $0x20] sm:$0xf] }
  0x81   : > { %v11594_v33 = vrot.slane %v2763_v17, 5 }
  0x82   : > { %v2050_v42 = vrot.slane %v2049_v32, 4 }
  0x83   : > { %v2766_v44 = vsel %vm11330_vm5, %v2761_v31, %v11594_v33  ;;  %v11663_v31 = vld [vmem:[%s11289_s12 + $0x14] sm:$0xf] }
  0x85   : > { %1815 = vrot.lane.b32.xlu2 %v1743_v35, %s11174_s19 }
  0x86   : > { %2334 = vrot.lane.b32.xlu1 %v2035_v0, %s11175_s20  ;;  %v680_v0 = vsel %vm11300_vm2, %v672_v26, %v679_v28 }
  0x87   : > { %1610 = vrot.lane.b32.xlu0 %v1340_v40, %s11172_s17  ;;  %v11535_v43 = vpop.permute.xlu2 %1604  ;;  %v1355_v40 = vshll.u32 %v1264_v37, 16 }
  0x8d   : > { %2336 = vrot.lane.b32.xlu2 %v2045_v49, %s11175_s20  ;;  %v668_v49 = vshll.u32 %v11556_v30, 16 }
  0x8e   : > { %2541 = vrot.lane.b32.xlu1 %v2468_v58, %s11176_s21 }
  0x8f   : > { %1817 = vrot.lane.b32.xlu0 %v1744_v56, %s11174_s19  ;;  %v11567_v57 = vpop.permute.xlu2 %2326  ;;  %v1357_v56 = vor.u32 %v1355_v40, %v1354_v38  ;;  %v670_v59 = vor.u32 %v668_v49, %v667_v12  ;;  %v1367_v12 = vsel %vm11300_vm2, %v1359_v63, %v1366_v1  ;;  %v409_v40 = vrot.slane %v11663_v31, 7  ;;  %v1745_v49 = vld [vmem:[%s11289_s12 + $0x24] sm:$0xf]  ;;  %v577_v63 = vld [vmem:[%s11289_s12 + $0x28] sm:$0xf] }
  0x90   : > { %v1121_v6 = vpop.permute.xlu1 %1120  ;;  %v695_v32 = vshll.u32 %v577_v63, 16 }
  0x91   : > { %v1358_v61 = vsel %vm11300_vm2, %v1350_v53, %v1357_v56  ;;  %v671_v7 = vsel %vm11300_vm2, %v663_v45, %v670_v59  ;;  %v2062_v53 = vshll.u32 %v11672_v20, 16  ;;  %v576_v56 = vld [vmem:[%s11289_s12 + $0x24] sm:$0xf] }
  0x92   : > { %v683_v45 = vshrl.u32 %v576_v56, 16 }
  0x93   : > { %v11699_v60 = vrot.slane %v2062_v53, 5 }
  0x94   : > { %v685_v23 = vrot.slane %v683_v45, 7 }
  0x95   : > { %3055 = vrot.lane.b32.xlu2 %v2756_v9, %s11177_s22  ;;  %v2675_v9 = vld [vmem:[%s11289_s12 + $0x30] sm:$0xf] }
  0x96   : > { %3368 = vrot.lane.b32.xlu1 %v3272_v11, %s11178_s23  ;;  %v2773_v16 = vshll.u32 %v2675_v9, 16  ;;  %v2777_v17 = vshrl.u32 %v2675_v9, 16 }
  0x97   : > { %2539 = vrot.lane.b32.xlu0 %v2467_v15, %s11176_s21  ;;  %v11591_v25 = vpop.permute.xlu2 %2533  ;;  %v1746_v15 = vld [vmem:[%s11289_s12 + $0x28] sm:$0xf] }
  0x98   : > { %v1123_v29 = vpop.permute.xlu1 %1122  ;;  %v11660_v28 = vrot.slane %v2773_v16, 5  ;;  %v11737_v16 = vld [vmem:[%s11289_s12 + $0x34] sm:$0xf] }
  0x99   : > { %v916_v35 = vpop.permute.xlu0 %915 }
  0x9a   : > { %1018 = vst.msk [vmem:[#allocation2] sm:$0xf] %vm1017_vm13, %v916_v35  ;;  %v408_v35 = vrot.slane %v406_v48, 4  ;;  %v2469_v48 = vld [vmem:[%s11289_s12 + $0x2c] sm:$0xf] }
  0x9b   : > { %1223 = vst.msk [vmem:[#allocation2] sm:$0xf] %vm1222_vm14, %v1121_v6  ;;  %v1951_v6 = vld [vmem:[%s11289_s12 + $0x28] sm:$0xf] }
  0x9c   : > { %1705 = vst.msk [vmem:[#allocation2] sm:$0xf] %vm1704_vm15, %v11512_v54  ;;  %v2052_v37 = vshll.u32 %v1951_v6, 16  ;;  %v2056_v21 = vshrl.u32 %v1951_v6, 16  ;;  %v410_v46 = vsel %vm11490_vm11, %v408_v35, %v409_v40  ;;  %v692_v6 = vshrl.u32 %v577_v63, 16 }
  0x9d   : > { %3370 = vrot.lane.b32.xlu2 %v3275_v36, %s11178_s23  ;;  %537 = vst.msk [vmem:[#allocation2 + $0x10] sm:$0xf] %vm532_vm12, %v410_v46  ;;  %v1953_v35 = vld [vmem:[%s11289_s12 + $0x30] sm:$0xf]  ;;  %v1061_v46 = vld [vmem:[%s11289_s12 + $0x28] sm:$0xf] }
  0x9e   : > { %929 = vrot.lane.b32.xlu1 %v680_v0, %s11173_s18  ;;  %v2054_v26 = vrot.slane %v2052_v37, 5  ;;  %v2058_v38 = vrot.slane %v2056_v21, 4  ;;  %v11668_v0 = vld [vmem:[%s11289_s12 + $0x34] sm:$0xf] }
  0x9f   : > { %3057 = vrot.lane.b32.xlu0 %v2766_v44, %s11177_s22  ;;  %v11621_v54 = vpop.permute.xlu2 %3360  ;;  %v2783_v52 = vshll.u32 %v11668_v0, 16 }
  0xa0   : > { %v1810_v58 = vpop.permute.xlu1 %1809  ;;  %v2055_v44 = vsel %vm11330_vm5, %v2050_v42, %v2054_v26  ;;  %v2059_v22 = vor.u32 %v2058_v38, %v2054_v26 }
  0xa1   : > { %v918_v30 = vpop.permute.xlu0 %917  ;;  %v11697_v55 = vrot.slane %v2783_v52, 5 }
  0xa2   : > { %1019 = vst.msk [vmem:[#allocation2 + $0x4] sm:$0xf] %vm1017_vm13, %v918_v30  ;;  %v2060_v47 = vrot.slane %v2059_v22, 4  ;;  %v2769_v30 = vrot.slane %v2767_v19, 4  ;;  %v1267_v19 = vld [vmem:[%s11289_s12 + $0x30] sm:$0xf] }
  0xa3   : > { %1224 = vst.msk [vmem:[#allocation2 + $0x4] sm:$0xf] %vm1222_vm14, %v1123_v29  ;;  %v2779_v29 = vrot.slane %v2777_v17, 4  ;;  %v690_v17 = vrot.slane %v685_v23, 4  ;;  %v11763_v22 = vld [vmem:[%s11289_s12 + $0x18] sm:$0xf] }
  0xa4   : > { %1706 = vst.msk [vmem:[#allocation2 + $0x4] sm:$0xf] %vm1704_vm15, %v11535_v43  ;;  %v10532_v43 = vld [vmem:[#allocation5] sm:$0xff]  ;;  %v2065_v1 = vsel %vm11330_vm5, %v2060_v47, %v11699_v60  ;;  %v2770_v2 = vor.u32 %v2769_v30, %v11594_v33 }
  0xa5   : > { %1911 = vst.msk [vmem:[#allocation2 + $0x4] sm:$0xf] %vm1909_vm1, %v1810_v58  ;;  %1132 = vrot.lane.b32.xlu2 %v1058_v62, %s11171_s13  ;;  %3703 = vmatpush.bf16.msra.mxu0 %v10532_v43  ;;  %v2780_v51 = vor.u32 %v2779_v29, %v11660_v28 }
  0xa6   : > { %1614 = vrot.lane.b32.xlu1 %v1358_v61, %s11172_s17  ;;  %10975 = vmatpush.bf16.msra.mxu3 %v10532_v43  ;;  %v2771_v33 = vrot.slane %v2770_v2, 4  ;;  %v1382_v2 = vshll.u32 %v1267_v19, 16 }
  0xa7   : > { %927 = vrot.lane.b32.xlu0 %v671_v7, %s11173_s18  ;;  %v922_v3 = vpop.permute.xlu2 %921  ;;  %v2781_v58 = vrot.slane %v2780_v51, 4  ;;  %v686_v7 = vshll.u32 %v576_v56, 16  ;;  %v2076_v51 = vshrl.u32 %v1953_v35, 16  ;;  %v411_v56 = vrot.slane %v409_v40, 4 }
  0xa8   : > { %1021 = vst.msk [vmem:[#allocation2 + $0xc] sm:$0xf] %vm1017_vm13, %v922_v3  ;;  %v2532_v8 = vpop.permute.xlu1 %2531  ;;  %v3277_v3 = vrot.slane %v3191_v39, 5 }
  0xa9   : > { %v1808_v11 = vpop.permute.xlu0 %1807  ;;  %v2786_v61 = vsel %vm11330_vm5, %v2781_v58, %v11697_v55  ;;  %v688_v9 = vor.u32 %v686_v7, %v685_v23  ;;  %v412_v58 = vrot.slane %v11763_v22, 7  ;;  %v2078_v47 = vrot.slane %v2076_v51, 4  ;;  %v1747_v23 = vld [vmem:[%s11289_s12 + $0x2c] sm:$0xf] }
  0xaa   : > { %1910 = vst.msk [vmem:[#allocation2] sm:$0xf] %vm1909_vm1, %v1808_v11  ;;  %v3279_v29 = vrot.slane %v3277_v3, 4  ;;  %v578_v51 = vld [vmem:[%s11289_s12 + $0x2c] sm:$0xf] }
  0xab   : > { %2429 = vst.msk [vmem:[#allocation2] sm:$0xf] %vm2428_vm3, %v11567_v57  ;;  %v413_v31 = vsel %vm11490_vm11, %v411_v56, %v412_v58 }
  0xac   : > { %2634 = vst.msk [vmem:[#allocation2] sm:$0xf] %vm2633_vm4, %v2532_v8  ;;  %v681_v8 = vrot.slane %v11582_v13, 4  ;;  %v2776_v13 = vsel %vm11330_vm5, %v2771_v33, %v11660_v28  ;;  %v3280_v28 = vrot.slane %v11737_v16, 5  ;;  %v2677_v33 = vld [vmem:[%s11289_s12 + $0x38] sm:$0xf] }
  0xad   : > { %1616 = vrot.lane.b32.xlu2 %v1367_v12, %s11172_s17  ;;  %538 = vst.msk [vmem:[#allocation2 + $0x14] sm:$0xf] %vm532_vm12, %v413_v31 }
  0xae   : > { %1821 = vrot.lane.b32.xlu1 %v1746_v15, %s11174_s19  ;;  %v689_v37 = vsel %vm11300_vm2, %v681_v8, %v688_v9  ;;  %v1266_v15 = vld [vmem:[%s11289_s12 + $0x2c] sm:$0xf]  ;;  %v3281_v52 = vsel %vm11371_vm8, %v3279_v29, %v3280_v28  ;;  %v11825_v29 = vld [vmem:[%s11289_s12 + $0x3c] sm:$0xf] }
  0xaf   : > { %1134 = vrot.lane.b32.xlu0 %v1059_v18, %s11171_s13  ;;  %v11658_v57 = vpop.permute.xlu2 %1606  ;;  %v1370_v21 = vshrl.u32 %v1266_v15, 16 }
  0xb0   : > { %v3050_v36 = vpop.permute.xlu1 %3049 }
  0xb1   : > { %v2329_v41 = vpop.permute.xlu0 %2328 }
  0xb2   : > { %2430 = vst.msk [vmem:[#allocation2 + $0x4] sm:$0xf] %vm2428_vm3, %v2329_v41 }
  0xb3   : > { %2635 = vst.msk [vmem:[#allocation2 + $0x4] sm:$0xf] %vm2633_vm4, %v11591_v25 }
  0xb4   : > { %3151 = vst.msk [vmem:[#allocation2 + $0x4] sm:$0xf] %vm3149_vm6, %v3050_v36 }
  0xb5   : > { %2338 = vrot.lane.b32.xlu2 %v2055_v44, %s11175_s20  ;;  %v11749_v44 = vrot.slane %v1370_v21, 7 }
  0xb6   : > { %2543 = vrot.lane.b32.xlu1 %v2469_v48, %s11176_s21  ;;  %v2072_v48 = vshll.u32 %v1953_v35, 16 }
  0xb7   : > { %1819 = vrot.lane.b32.xlu0 %v1745_v49, %s11174_s19  ;;  %v11695_v25 = vpop.permute.xlu2 %1813  ;;  %v1373_v49 = vshll.u32 %v1266_v15, 16  ;;  %v1377_v8 = vrot.slane %v11749_v44, 4 }
  0xb8   : > { %v920_v59 = vpop.permute.xlu1 %919 }
  0xb9   : > { %v3048_v62 = vpop.permute.xlu0 %3047  ;;  %1020 = vst.msk [vmem:[#allocation2 + $0x8] sm:$0xf] %vm1017_vm13, %v920_v59  ;;  %v1375_v53 = vor.u32 %v1373_v49, %v11749_v44  ;;  %v11772_v59 = vrot.slane %v2072_v48, 5  ;;  %v2803_v49 = vshll.u32 %v11825_v29, 16 }
  0xba   : > { %3150 = vst.msk [vmem:[#allocation2] sm:$0xf] %vm3149_vm6, %v3048_v62  ;;  %v1379_v62 = vshrl.u32 %v1267_v19, 16  ;;  %v11841_v19 = vld [vmem:[%s11289_s12 + $0x3c] sm:$0xf] }
  0xbb   : > { %3463 = vst.msk [vmem:[#allocation2] sm:$0xf] %vm3462_vm7, %v11621_v54  ;;  %v3276_v54 = vrot.slane %v3274_v4, 4  ;;  %v11727_v4 = vrot.slane %v692_v6, 7  ;;  %v2079_v7 = vor.u32 %v2078_v47, %v11772_v59 }
  0xbd   : > { %2545 = vrot.lane.b32.xlu2 %v2470_v34, %s11176_s21  ;;  %v3278_v10 = vsel %vm11371_vm8, %v3276_v54, %v3277_v3  ;;  %v697_v18 = vor.u32 %v695_v32, %v11727_v4  ;;  %v2066_v34 = vshrl.u32 %v11672_v20, 16  ;;  %v11795_v20 = vrot.slane %v1379_v62, 7 }
  0xbe   : > { %3061 = vrot.lane.b32.xlu1 %v2786_v61, %s11177_s22  ;;  %v2787_v61 = vshrl.u32 %v11668_v0, 16  ;;  %v2797_v32 = vshrl.u32 %v2677_v33, 16 }
  0xbf   : > { %2340 = vrot.lane.b32.xlu0 %v2065_v1, %s11175_s20  ;;  %v11720_v43 = vpop.permute.xlu2 %2535  ;;  %v698_v41 = vsel %vm11300_vm2, %v690_v17, %v697_v18  ;;  %v1060_v1 = vld [vmem:[%s11289_s12 + $0x24] sm:$0xf]  ;;  %v1384_v9 = vor.u32 %v1382_v2, %v11795_v20 }
  0xc0   : > { %v1127_v11 = vpop.permute.xlu1 %1126  ;;  %v2789_v3 = vrot.slane %v2787_v61, 4  ;;  %v1269_v61 = vld [vmem:[%s11289_s12 + $0x38] sm:$0xf] }
  0xc1   : > { %v3363_v12 = vpop.permute.xlu0 %3362  ;;  %1226 = vst.msk [vmem:[#allocation2 + $0xc] sm:$0xf] %vm1222_vm14, %v1127_v11  ;;  %v2068_v11 = vrot.slane %v2066_v34, 4  ;;  %v1385_v17 = vsel %vm11300_vm2, %v1377_v8, %v1384_v9 }
  0xc2   : > { %3464 = vst.msk [vmem:[#allocation2 + $0x4] sm:$0xf] %vm3462_vm7, %v3363_v12  ;;  %v2790_v15 = vor.u32 %v2789_v3, %v11697_v55 }
  0xc3   : > { %v2069_v18 = vor.u32 %v2068_v11, %v11699_v60  ;;  %v2471_v60 = vld [vmem:[%s11289_s12 + $0x34] sm:$0xf] }
  0xc4   : > { %v2791_v55 = vrot.slane %v2790_v15, 4  ;;  %v1400_v15 = vshll.u32 %v1269_v61, 16 }
  0xc5   : > { %3372 = vrot.lane.b32.xlu2 %v3278_v10, %s11178_s23  ;;  %v1748_v10 = vld [vmem:[%s11289_s12 + $0x30] sm:$0xf] }
  0xc6   : > { %931 = vrot.lane.b32.xlu1 %v689_v37, %s11173_s18 }
  0xc7   : > { %3059 = vrot.lane.b32.xlu0 %v2776_v13, %s11177_s22  ;;  %v11742_v42 = vpop.permute.xlu2 %3053  ;;  %v2793_v13 = vshll.u32 %v2677_v33, 16 }
  0xc8   : > { %v1812_v26 = vpop.permute.xlu1 %1811 }
  0xc9   : > { %v1125_v36 = vpop.permute.xlu0 %1124  ;;  %v10515_v38 = vld [vmem:[#allocation2] sm:$0xff] }
  0xca   : > { %1225 = vst.msk [vmem:[#allocation2 + $0x8] sm:$0xf] %vm1222_vm14, %v1125_v36  ;;  %9506 = vmatmul.msk.bf16.vlgmr.msra.gmra.mxu0 %vm3640_vm9, %v10515_v38  ;;  %v2070_v36 = vrot.slane %v2069_v18, 4  ;;  %v3193_v38 = vld [vmem:[%s11289_s12 + $0x38] sm:$0xf] }
  0xcb   : > { %1707 = vst.msk [vmem:[#allocation2 + $0x8] sm:$0xf] %vm1704_vm15, %v11658_v57  ;;  %v1368_v57 = vrot.slane %v11628_v27, 4  ;;  %v11776_v27 = vld [vmem:[%s11289_s12 + $0x34] sm:$0xf]  ;;  %v3283_v48 = vrot.slane %v3193_v38, 5 }
  0xcc   : > { %1912 = vst.msk [vmem:[#allocation2 + $0x8] sm:$0xf] %vm1909_vm1, %v1812_v26  ;;  %v2082_v63 = vshll.u32 %v11776_v27, 16  ;;  %v2795_v26 = vrot.slane %v2793_v13, 5  ;;  %v2086_v11 = vshrl.u32 %v11776_v27, 16 }
  0xcd   : > { %933 = vrot.lane.b32.xlu2 %v698_v41, %s11173_s18  ;;  %v1376_v39 = vsel %vm11300_vm2, %v1368_v57, %v1375_v53  ;;  %v701_v53 = vshrl.u32 %v578_v51, 16  ;;  %v11892_v27 = vld [vmem:[%s11289_s12 + $0x20] sm:$0xf] }
  0xce   : > { %1138 = vrot.lane.b32.xlu1 %v1061_v46, %s11171_s13  ;;  %v11802_v54 = vrot.slane %v2082_v63, 5  ;;  %v2796_v46 = vsel %vm11330_vm5, %v2791_v55, %v2795_v26  ;;  %v699_v63 = vrot.slane %v11727_v4, 4  ;;  %v414_v55 = vrot.slane %v412_v58, 4 }
  0xcf   : > { %3374 = vrot.lane.b32.xlu0 %v3281_v52, %s11178_s23  ;;  %v924_v45 = vpop.permute.xlu2 %923  ;;  %v2075_v52 = vsel %vm11330_vm5, %v2070_v36, %v11772_v59  ;;  %v3286_v59 = vrot.slane %v11841_v19, 5  ;;  %v11856_v31 = vrot.slane %v701_v53, 7  ;;  %v2088_v38 = vrot.slane %v2086_v11, 4  ;;  %v11960_v11 = vld [vmem:[%s11289_s12 + $0x28] sm:$0xf] }
  0xd0   : > { %1022 = vst.msk [vmem:[#allocation2 + $0x10] sm:$0xf] %vm1017_vm13, %v924_v45  ;;  %v2333_v30 = vpop.permute.xlu1 %2332  ;;  %v3285_v45 = vrot.slane %v3283_v48, 4 }
  0xd1   : > { %v1609_v40 = vpop.permute.xlu0 %1608 }
  0xd2   : > { %1708 = vst.msk [vmem:[#allocation2 + $0xc] sm:$0xf] %vm1704_vm15, %v1609_v40  ;;  %v704_v40 = vshll.u32 %v578_v51, 16  ;;  %v3287_v34 = vsel %vm11371_vm8, %v3285_v45, %v3286_v59 }
  0xd3   : > { %1913 = vst.msk [vmem:[#allocation2 + $0xc] sm:$0xf] %vm1909_vm1, %v11695_v25  ;;  %v2080_v25 = vrot.slane %v2079_v7, 4  ;;  %v579_v7 = vld [vmem:[%s11289_s12 + $0x30] sm:$0xf] }
  0xd4   : > { %2432 = vst.msk [vmem:[#allocation2 + $0xc] sm:$0xf] %vm2428_vm3, %v2333_v30  ;;  %v710_v9 = vshrl.u32 %v579_v7, 16 }
  0xd5   : > { %1618 = vrot.lane.b32.xlu2 %v1376_v39, %s11172_s17  ;;  %v2085_v37 = vsel %vm11330_vm5, %v2080_v25, %v11802_v54  ;;  %v11863_v39 = vld [vmem:[%s11289_s12 + $0x34] sm:$0xf]  ;;  %v1397_v25 = vshrl.u32 %v1269_v61, 16 }
  0xd6   : > { %1823 = vrot.lane.b32.xlu1 %v1747_v23, %s11174_s19  ;;  %v2472_v23 = vld [vmem:[%s11289_s12 + $0x38] sm:$0xf]  ;;  %v1388_v2 = vshrl.u32 %v11863_v39, 16  ;;  %v11895_v13 = vrot.slane %v710_v9, 7  ;;  %v11957_v9 = vld [vmem:[%s11289_s12 + $0x24] sm:$0xf] }
  0xd7   : > { %1136 = vrot.lane.b32.xlu0 %v1060_v1, %s11171_s13  ;;  %v11800_v0 = vpop.permute.xlu2 %1130  ;;  %v706_v1 = vor.u32 %v704_v40, %v11856_v31 }
  0xd8   : > { %v3052_v6 = vpop.permute.xlu1 %3051 }
  0xd9   : > { %v2331_v12 = vpop.permute.xlu0 %2330 }
  0xda   : > { %2431 = vst.msk [vmem:[#allocation2 + $0x8] sm:$0xf] %vm2428_vm3, %v2331_v12  ;;  %v1062_v12 = vld [vmem:[%s11289_s12 + $0x2c] sm:$0xf] }
  0xdb   : > { %2636 = vst.msk [vmem:[#allocation2 + $0x8] sm:$0xf] %vm2633_vm4, %v11720_v43  ;;  %v2799_v43 = vrot.slane %v2797_v32, 4  ;;  %v1390_v32 = vrot.slane %v1388_v2, 7 }
  0xdc   : > { %3152 = vst.msk [vmem:[#allocation2 + $0x8] sm:$0xf] %vm3149_vm6, %v3052_v6  ;;  %v3282_v6 = vrot.slane %v3280_v28, 4  ;;  %v329_v28 = vld [vmem:[%s11289_s12 + $0x1c] sm:$0xf] }
  0xdd   : > { %1825 = vrot.lane.b32.xlu2 %v1748_v10, %s11174_s19  ;;  %v2800_v44 = vor.u32 %v2799_v43, %v2795_v26  ;;  %v707_v10 = vsel %vm11300_vm2, %v699_v63, %v706_v1  ;;  %v415_v18 = vrot.slane %v329_v28, 7  ;;  %v418_v43 = vrot.slane %v11892_v27, 7 }
  0xde   : > { %2344 = vrot.lane.b32.xlu1 %v2085_v37, %s11175_s20  ;;  %v11883_v37 = vrot.slane %v1397_v25, 7  ;;  %v3284_v16 = vsel %vm11371_vm8, %v3282_v6, %v3283_v48 }
  0xdf   : > { %1620 = vrot.lane.b32.xlu0 %v1385_v17, %s11172_s17  ;;  %v11822_v21 = vpop.permute.xlu2 %1815  ;;  %v2801_v57 = vrot.slane %v2800_v44, 4  ;;  %v713_v17 = vshll.u32 %v579_v7, 16  ;;  %v416_v51 = vsel %vm11490_vm11, %v414_v55, %v415_v18  ;;  %v1749_v7 = vld [vmem:[%s11289_s12 + $0x34] sm:$0xf] }
  0xe0   : > { %v3367_v35 = vpop.permute.xlu1 %3366  ;;  %v1402_v36 = vor.u32 %v1400_v15, %v11883_v37  ;;  %539 = vst.msk [vmem:[#allocation2 + $0x18] sm:$0xf] %vm532_vm12, %v416_v51  ;;  %v1750_v15 = vld [vmem:[%s11289_s12 + $0x38] sm:$0xf]  ;;  %v11976_v55 = vld [vmem:[%s11289_s12 + $0x34] sm:$0xf] }
  0xe1   : > { %v2538_v41 = vpop.permute.xlu0 %2537  ;;  %v715_v44 = vor.u32 %v713_v17, %v11895_v13  ;;  %v11996_v51 = vld [vmem:[%s11289_s12 + $0x44] sm:$0xf] }
  0xe2   : > { %2637 = vst.msk [vmem:[#allocation2 + $0xc] sm:$0xf] %vm2633_vm4, %v2538_v41 }
  0xe3   : > { %3153 = vst.msk [vmem:[#allocation2 + $0xc] sm:$0xf] %vm3149_vm6, %v11742_v42  ;;  %v11845_v42 = vrot.slane %v2803_v49, 5  ;;  %v1955_v49 = vld [vmem:[%s11289_s12 + $0x38] sm:$0xf] }
  0xe4   : > { %3466 = vst.msk [vmem:[#allocation2 + $0xc] sm:$0xf] %vm3462_vm7, %v3367_v35  ;;  %v1395_v35 = vrot.slane %v1390_v32, 4  ;;  %v2096_v48 = vshrl.u32 %v1955_v49, 16  ;;  %v2092_v53 = vshll.u32 %v1955_v49, 16 }
  0xe5   : > { %2547 = vrot.lane.b32.xlu2 %v2471_v60, %s11176_s21  ;;  %v2806_v62 = vsel %vm11330_vm5, %v2801_v57, %v11845_v42  ;;  %v708_v60 = vrot.slane %v11856_v31, 4  ;;  %v2089_v57 = vor.u32 %v2088_v38, %v11802_v54  ;;  %v11934_v31 = vld [vmem:[%s11289_s12 + $0x3c] sm:$0xf] }
  0xe6   : > { %3063 = vrot.lane.b32.xlu1 %v2796_v46, %s11177_s22  ;;  %v1063_v46 = vld [vmem:[%s11289_s12 + $0x30] sm:$0xf]  ;;  %v2102_v1 = vshll.u32 %v11934_v31, 16 }
  0xe7   : > { %2342 = vrot.lane.b32.xlu0 %v2075_v52, %s11175_s20  ;;  %v11848_v56 = vpop.permute.xlu2 %2336  ;;  %v1403_v52 = vsel %vm11300_vm2, %v1395_v35, %v1402_v36  ;;  %v716_v45 = vsel %vm11300_vm2, %v708_v60, %v715_v44  ;;  %v2090_v54 = vrot.slane %v2089_v57, 4  ;;  %v3195_v35 = vld [vmem:[%s11289_s12 + $0x40] sm:$0xf]  ;;  %v581_v36 = vld [vmem:[%s11289_s12 + $0x38] sm:$0xf]  ;;  %v3288_v44 = vrot.slane %v3286_v59, 4 }
  0xe8   : > { %v1129_v47 = vpop.permute.xlu1 %1128  ;;  %v11950_v25 = vrot.slane %v2102_v1, 5  ;;  %v3289_v49 = vrot.slane %v3195_v35, 5  ;;  %v12002_v57 = vld [vmem:[%s11289_s12 + $0x44] sm:$0xf] }
  0xe9   : > { %v3365_v30 = vpop.permute.xlu0 %3364  ;;  %1227 = vst.msk [vmem:[#allocation2 + $0x10] sm:$0xf] %vm1222_vm14, %v1129_v47  ;;  %v1391_v47 = vshll.u32 %v11863_v39, 16 }
  0xea   : > { %3465 = vst.msk [vmem:[#allocation2 + $0x8] sm:$0xf] %vm3462_vm7, %v3365_v30  ;;  %v3290_v59 = vsel %vm11371_vm8, %v3288_v44, %v3289_v49 }
  0xeb   : > { %v1393_v39 = vor.u32 %v1391_v47, %v1390_v32  ;;  %v1270_v47 = vld [vmem:[%s11289_s12 + $0x3c] sm:$0xf] }
  0xed   : > { %3065 = vrot.lane.b32.xlu2 %v2806_v62, %s11177_s22  ;;  %v2094_v62 = vrot.slane %v2092_v53, 5 }
  0xee   : > { %3378 = vrot.lane.b32.xlu1 %v3287_v34, %s11178_s23  ;;  %v1386_v34 = vrot.slane %v11795_v20, 4 }
  0xef   : > { %2549 = vrot.lane.b32.xlu0 %v2472_v23, %s11176_s21  ;;  %v11874_v3 = vpop.permute.xlu2 %3055  ;;  %v2807_v23 = vshrl.u32 %v11825_v29, 16  ;;  %v2095_v2 = vsel %vm11330_vm5, %v2090_v54, %v2094_v62 }
  0xf0   : > { %v1613_v8 = vpop.permute.xlu1 %1612  ;;  %v1394_v20 = vsel %vm11300_vm2, %v1386_v34, %v1393_v39  ;;  %v3292_v34 = vrot.slane %v12002_v57, 5  ;;  %v1406_v39 = vshrl.u32 %v1270_v47, 16 }
  0xf1   : > { %v926_v33 = vpop.permute.xlu0 %925  ;;  %v10516_v4 = vld [vmem:[#allocation2 + $0x8] sm:$0xff]  ;;  %v2809_v6 = vrot.slane %v2807_v23, 4 }
  0xf2   : > { %1023 = vst.msk [vmem:[#allocation2 + $0x14] sm:$0xf] %vm1017_vm13, %v926_v33  ;;  %9507 = vmatmul.msk.bf16.gmra.mxu0 %vm3640_vm9, %v10516_v4  ;;  %v421_v4 = vrot.slane %v11957_v9, 7  ;;  %v2106_v9 = vshrl.u32 %v11934_v31, 16 }
  0xf3   : > { %1228 = vst.msk [vmem:[#allocation2 + $0x14] sm:$0xf] %vm1222_vm14, %v11800_v0  ;;  %v417_v0 = vrot.slane %v415_v18, 4  ;;  %v2810_v28 = vor.u32 %v2809_v6, %v11845_v42  ;;  %v1408_v6 = vrot.slane %v1406_v39, 7 }
  0xf4   : > { %1710 = vst.msk [vmem:[#allocation2 + $0x14] sm:$0xf] %vm1704_vm15, %v1613_v8  ;;  %v2679_v8 = vld [vmem:[%s11289_s12 + $0x40] sm:$0xf]  ;;  %v423_v18 = vrot.slane %v421_v4, 4 }
  0xf5   : > { %935 = vrot.lane.b32.xlu2 %v707_v10, %s11173_s18  ;;  %v419_v22 = vsel %vm11490_vm11, %v417_v0, %v418_v43  ;;  %v2813_v17 = vshll.u32 %v2679_v8, 16  ;;  %v2817_v0 = vshrl.u32 %v2679_v8, 16  ;;  %v2811_v42 = vrot.slane %v2810_v28, 4 }
  0xf6   : > { %1140 = vrot.lane.b32.xlu1 %v1062_v12, %s11171_s13  ;;  %540 = vst.msk [vmem:[#allocation2 + $0x1c] sm:$0xf] %vm532_vm12, %v419_v22  ;;  %v424_v12 = vrot.slane %v11960_v11, 7  ;;  %v728_v22 = vshrl.u32 %v581_v36, 16  ;;  %v1404_v28 = vrot.slane %v11883_v37, 4  ;;  %v1413_v31 = vrot.slane %v1408_v6, 4 }
  0xf7   : > { %3376 = vrot.lane.b32.xlu0 %v3284_v16, %s11178_s23  ;;  %v11903_v26 = vpop.permute.xlu2 %3370  ;;  %v2474_v16 = vld [vmem:[%s11289_s12 + $0x40] sm:$0xf] }
  0xf8   : > { %v2335_v41 = vpop.permute.xlu1 %2334  ;;  %v425_v38 = vsel %vm11490_vm11, %v423_v18, %v424_v12  ;;  %v12008_v53 = vrot.slane %v728_v22, 7  ;;  %v426_v39 = vrot.slane %v424_v12, 4  ;;  %v2475_v12 = vld [vmem:[%s11289_s12 + $0x44] sm:$0xf] }
  0xf9   : > { %v1611_v58 = vpop.permute.xlu0 %1610  ;;  %542 = vst.msk [vmem:[#allocation2 + $0x24] sm:$0xf] %vm532_vm12, %v425_v38 }
  0xfa   : > { %1709 = vst.msk [vmem:[#allocation2 + $0x10] sm:$0xf] %vm1704_vm15, %v1611_v58 }
  0xfb   : > { %1914 = vst.msk [vmem:[#allocation2 + $0x10] sm:$0xf] %vm1909_vm1, %v11822_v21  ;;  %v2098_v21 = vrot.slane %v2096_v48, 4 }
  0xfc   : > { %2433 = vst.msk [vmem:[#allocation2 + $0x10] sm:$0xf] %vm2428_vm3, %v2335_v41  ;;  %v719_v41 = vshrl.u32 %v11976_v55, 16 }
  0xfd   : > { %1142 = vrot.lane.b32.xlu2 %v1063_v46, %s11171_s13  ;;  %v2099_v63 = vor.u32 %v2098_v21, %v2094_v62  ;;  %v2819_v46 = vrot.slane %v2817_v0, 4  ;;  %v2473_v21 = vld [vmem:[%s11289_s12 + $0x3c] sm:$0xf]  ;;  %v2823_v62 = vshll.u32 %v11996_v51, 16  ;;  %v717_v0 = vrot.slane %v11895_v13, 4 }
  0xfe   : > { %1624 = vrot.lane.b32.xlu1 %v1403_v52, %s11172_s17  ;;  %v721_v19 = vrot.slane %v719_v41, 7  ;;  %v1957_v41 = vld [vmem:[%s11289_s12 + $0x40] sm:$0xf] }
  0xff   : > { %937 = vrot.lane.b32.xlu0 %v716_v45, %s11173_s18  ;;  %v11931_v30 = vpop.permute.xlu2 %1132  ;;  %v2100_v29 = vrot.slane %v2099_v63, 4  ;;  %v731_v45 = vshll.u32 %v581_v36, 16  ;;  %v12020_v1 = vrot.slane %v2823_v62, 5 }
 0x100   : > { %v2542_v40 = vpop.permute.xlu1 %2541 }
 0x101   : > { %v1818_v61 = vpop.permute.xlu0 %1817  ;;  %v2105_v32 = vsel %vm11330_vm5, %v2100_v29, %v11950_v25  ;;  %v733_v23 = vor.u32 %v731_v45, %v12008_v53  ;;  %v1065_v45 = vld [vmem:[%s11289_s12 + $0x38] sm:$0xf] }
 0x102   : > { %1915 = vst.msk [vmem:[#allocation2 + $0x14] sm:$0xf] %vm1909_vm1, %v1818_v61  ;;  %v726_v61 = vrot.slane %v721_v19, 4 }
 0x103   : > { %2434 = vst.msk [vmem:[#allocation2 + $0x14] sm:$0xf] %vm2428_vm3, %v11848_v56 }
 0x104   : > { %2639 = vst.msk [vmem:[#allocation2 + $0x14] sm:$0xf] %vm2633_vm4, %v2542_v40  ;;  %v3291_v40 = vrot.slane %v3289_v49, 4  ;;  %v734_v8 = vsel %vm11300_vm2, %v726_v61, %v733_v23  ;;  %v2681_v49 = vld [vmem:[%s11289_s12 + $0x48] sm:$0xf] }
 0x105   : > { %1827 = vrot.lane.b32.xlu2 %v1749_v7, %s11174_s19 }
 0x106   : > { %2346 = vrot.lane.b32.xlu1 %v2095_v2, %s11175_s20  ;;  %v3293_v29 = vsel %vm11371_vm8, %v3291_v40, %v3292_v34  ;;  %v12088_v40 = vld [vmem:[%s11289_s12 + $0x2c] sm:$0xf] }
 0x107   : > { %1622 = vrot.lane.b32.xlu0 %v1394_v20, %s11172_s17  ;;  %v11953_v56 = vpop.permute.xlu2 %1616 }
 0x108   : > { %v3369_v33 = vpop.permute.xlu1 %3368 }
 0x109   : > { %v2540_v10 = vpop.permute.xlu0 %2539 }
 0x10a   : > { %2638 = vst.msk [vmem:[#allocation2 + $0x10] sm:$0xf] %vm2633_vm4, %v2540_v10  ;;  %v1271_v10 = vld [vmem:[%s11289_s12 + $0x40] sm:$0xf] }
 0x10b   : > { %3154 = vst.msk [vmem:[#allocation2 + $0x10] sm:$0xf] %vm3149_vm6, %v11874_v3  ;;  %v2815_v3 = vrot.slane %v2813_v17, 5  ;;  %v1415_v27 = vshrl.u32 %v1271_v10, 16  ;;  %v1418_v38 = vshll.u32 %v1271_v10, 16  ;;  %v2827_v10 = vshrl.u32 %v11996_v51, 16 }
 0x10c   : > { %3467 = vst.msk [vmem:[#allocation2 + $0x10] sm:$0xf] %vm3462_vm7, %v3369_v33  ;;  %v1409_v33 = vshll.u32 %v1270_v47, 16  ;;  %v2116_v47 = vshrl.u32 %v1957_v41, 16 }
 0x10d   : > { %2348 = vrot.lane.b32.xlu2 %v2105_v32, %s11175_s20  ;;  %v2816_v52 = vsel %vm11330_vm5, %v2811_v42, %v2815_v3  ;;  %v2820_v54 = vor.u32 %v2819_v46, %v2815_v3  ;;  %v420_v32 = vrot.slane %v418_v43, 4  ;;  %v12055_v36 = vrot.slane %v1415_v27, 7 }
 0x10e   : > { %2553 = vrot.lane.b32.xlu1 %v2474_v16, %s11176_s21  ;;  %v722_v16 = vshll.u32 %v11976_v55, 16  ;;  %v1411_v17 = vor.u32 %v1409_v33, %v1408_v6  ;;  %v2108_v3 = vrot.slane %v2106_v9, 4  ;;  %v2118_v23 = vrot.slane %v2116_v47, 4  ;;  %v1751_v6 = vld [vmem:[%s11289_s12 + $0x3c] sm:$0xf] }
 0x10f   : > { %1829 = vrot.lane.b32.xlu0 %v1750_v15, %s11174_s19  ;;  %v11990_v60 = vpop.permute.xlu2 %2338  ;;  %v2821_v63 = vrot.slane %v2820_v54, 4  ;;  %v1420_v42 = vor.u32 %v1418_v38, %v12055_v36  ;;  %v2476_v9 = vld [vmem:[%s11289_s12 + $0x48] sm:$0xf] }
 0x110   : > { %v930_v58 = vpop.permute.xlu1 %929  ;;  %v724_v55 = vor.u32 %v722_v16, %v721_v19  ;;  %v1412_v37 = vsel %vm11300_vm2, %v1404_v28, %v1411_v17  ;;  %v2109_v46 = vor.u32 %v2108_v3, %v11950_v25  ;;  %v2833_v19 = vshll.u32 %v2681_v49, 16  ;;  %v582_v16 = vld [vmem:[%s11289_s12 + $0x3c] sm:$0xf] }
 0x111   : > { %v3058_v48 = vpop.permute.xlu0 %3057  ;;  %1025 = vst.msk [vmem:[#allocation2 + $0x1c] sm:$0xf] %vm1017_vm13, %v930_v58  ;;  %v2826_v15 = vsel %vm11330_vm5, %v2821_v63, %v12020_v1  ;;  %v1421_v58 = vsel %vm11300_vm2, %v1413_v31, %v1420_v42  ;;  %v427_v63 = vrot.slane %v12088_v40, 7  ;;  %v737_v27 = vshrl.u32 %v582_v16, 16 }
 0x112   : > { %3155 = vst.msk [vmem:[#allocation2 + $0x14] sm:$0xf] %vm3149_vm6, %v3058_v48  ;;  %v725_v13 = vsel %vm11300_vm2, %v717_v0, %v724_v55  ;;  %v2112_v48 = vshll.u32 %v1957_v41, 16  ;;  %v2829_v0 = vrot.slane %v2827_v10, 4  ;;  %v1273_v10 = vld [vmem:[%s11289_s12 + $0x48] sm:$0xf] }
 0x113   : > { %3468 = vst.msk [vmem:[#allocation2 + $0x14] sm:$0xf] %vm3462_vm7, %v11903_v26  ;;  %v428_v11 = vsel %vm11490_vm11, %v426_v39, %v427_v63  ;;  %v739_v38 = vrot.slane %v737_v27, 7 }
 0x114   : > { %v2114_v25 = vrot.slane %v2112_v48, 5  ;;  %543 = vst.msk [vmem:[#allocation2 + $0x28] sm:$0xf] %vm532_vm12, %v428_v11  ;;  %v2830_v42 = vor.u32 %v2829_v0, %v12020_v1  ;;  %v1067_v11 = vld [vmem:[%s11289_s12 + $0x40] sm:$0xf] }
 0x115   : > { %3067 = vrot.lane.b32.xlu2 %v2816_v52, %s11177_s22  ;;  %v1752_v52 = vld [vmem:[%s11289_s12 + $0x40] sm:$0xf] }
 0x116   : > { %3380 = vrot.lane.b32.xlu1 %v3290_v59, %s11178_s23  ;;  %v2837_v59 = vshrl.u32 %v2681_v49, 16  ;;  %v2831_v1 = vrot.slane %v2830_v42, 4  ;;  %v1436_v42 = vshll.u32 %v1273_v10, 16 }
 0x117   : > { %2551 = vrot.lane.b32.xlu0 %v2473_v21, %s11176_s21  ;;  %v12017_v26 = vpop.permute.xlu2 %2545  ;;  %v2110_v21 = vrot.slane %v2109_v46, 4 }
 0x118   : > { %v1615_v7 = vpop.permute.xlu1 %1614  ;;  %v2839_v62 = vrot.slane %v2837_v59, 4  ;;  %v744_v59 = vrot.slane %v739_v38, 4 }
 0x119   : > { %v928_v2 = vpop.permute.xlu0 %927 }
 0x11a   : > { %1024 = vst.msk [vmem:[#allocation2 + $0x18] sm:$0xf] %vm1017_vm13, %v928_v2  ;;  %v10517_v20 = vld [vmem:[#allocation2 + $0x10] sm:$0xff] }
 0x11b   : > { %1229 = vst.msk [vmem:[#allocation2 + $0x18] sm:$0xf] %vm1222_vm14, %v11931_v30  ;;  %9508 = vmatmul.msk.bf16.gmra.mxu0 %vm3640_vm9, %v10517_v20  ;;  %v422_v30 = vsel %vm11490_vm11, %v420_v32, %v421_v4  ;;  %v1064_v4 = vld [vmem:[%s11289_s12 + $0x34] sm:$0xf]  ;;  %v12097_v20 = vld [vmem:[%s11289_s12 + $0x44] sm:$0xf]  ;;  %v2119_v32 = vor.u32 %v2118_v23, %v2114_v25 }
 0x11c   : > { %1711 = vst.msk [vmem:[#allocation2 + $0x18] sm:$0xf] %vm1704_vm15, %v1615_v7  ;;  %v12093_v7 = vld [vmem:[%s11289_s12 + $0x4c] sm:$0xf] }
 0x11d   : > { %3382 = vrot.lane.b32.xlu2 %v3293_v29, %s11178_s23  ;;  %541 = vst.msk [vmem:[#allocation2 + $0x20] sm:$0xf] %vm532_vm12, %v422_v30  ;;  %v2115_v29 = vsel %vm11330_vm5, %v2110_v21, %v2114_v25  ;;  %v2843_v33 = vshll.u32 %v12093_v7, 16  ;;  %v2120_v17 = vrot.slane %v2119_v32, 4  ;;  %v12188_v32 = vld [vmem:[%s11289_s12 + $0x30] sm:$0xf] }
 0x11e   : > { %941 = vrot.lane.b32.xlu1 %v734_v8, %s11173_s18 }
 0x11f   : > { %3069 = vrot.lane.b32.xlu0 %v2826_v15, %s11177_s22  ;;  %v12048_v43 = vpop.permute.xlu2 %3372  ;;  %v2122_v15 = vshll.u32 %v12097_v20, 16  ;;  %v12122_v51 = vrot.slane %v2843_v33, 5 }
 0x120   : > { %v1822_v18 = vpop.permute.xlu1 %1821 }
 0x121   : > { %v1135_v35 = vpop.permute.xlu0 %1134 }
 0x122   : > { %1230 = vst.msk [vmem:[#allocation2 + $0x1c] sm:$0xf] %vm1222_vm14, %v1135_v35  ;;  %v3197_v35 = vld [vmem:[%s11289_s12 + $0x48] sm:$0xf] }
 0x123   : > { %1712 = vst.msk [vmem:[#allocation2 + $0x1c] sm:$0xf] %vm1704_vm15, %v11953_v56  ;;  %v3295_v3 = vrot.slane %v3197_v35, 5 }
 0x124   : > { %1917 = vst.msk [vmem:[#allocation2 + $0x1c] sm:$0xf] %vm1909_vm1, %v1822_v18  ;;  %v12124_v18 = vrot.slane %v2122_v15, 5 }
 0x125   : > { %1144 = vrot.lane.b32.xlu2 %v1064_v4, %s11171_s13 }
 0x126   : > { %1626 = vrot.lane.b32.xlu1 %v1412_v37, %s11172_s17  ;;  %v740_v37 = vshll.u32 %v582_v16, 16  ;;  %v2125_v31 = vsel %vm11330_vm5, %v2120_v17, %v12124_v18  ;;  %v429_v16 = vrot.slane %v427_v63, 4 }
 0x127   : > { %939 = vrot.lane.b32.xlu0 %v725_v13, %s11173_s18  ;;  %v934_v56 = vpop.permute.xlu2 %933  ;;  %v583_v13 = vld [vmem:[%s11289_s12 + $0x40] sm:$0xf] }
 0x128   : > { %1027 = vst.msk [vmem:[#allocation2 + $0x24] sm:$0xf] %vm1017_vm13, %v934_v56  ;;  %v2544_v44 = vpop.permute.xlu1 %2543  ;;  %v746_v56 = vshrl.u32 %v583_v13, 16  ;;  %v742_v49 = vor.u32 %v740_v37, %v739_v38  ;;  %v749_v46 = vshll.u32 %v583_v13, 16  ;;  %v1753_v38 = vld [vmem:[%s11289_s12 + $0x44] sm:$0xf] }
 0x129   : > { %v1820_v22 = vpop.permute.xlu0 %1819 }
 0x12a   : > { %1916 = vst.msk [vmem:[#allocation2 + $0x18] sm:$0xf] %vm1909_vm1, %v1820_v22 }
 0x12b   : > { %2435 = vst.msk [vmem:[#allocation2 + $0x18] sm:$0xf] %vm2428_vm3, %v11990_v60  ;;  %v12085_v60 = vrot.slane %v2833_v19, 5  ;;  %v12162_v19 = vld [vmem:[%s11289_s12 + $0x4c] sm:$0xf] }
 0x12c   : > { %2640 = vst.msk [vmem:[#allocation2 + $0x18] sm:$0xf] %vm2633_vm4, %v2544_v44  ;;  %v735_v44 = vrot.slane %v12008_v53, 4  ;;  %v3298_v39 = vrot.slane %v12162_v19, 5 }
 0x12d   : > { %1628 = vrot.lane.b32.xlu2 %v1421_v58, %s11172_s17  ;;  %v2840_v8 = vor.u32 %v2839_v62, %v12085_v60  ;;  %v2836_v53 = vsel %vm11330_vm5, %v2831_v1, %v12085_v60  ;;  %v3297_v62 = vrot.slane %v3295_v3, 4  ;;  %v1959_v60 = vld [vmem:[%s11289_s12 + $0x48] sm:$0xf]  ;;  %v2683_v1 = vld [vmem:[%s11289_s12 + $0x50] sm:$0xf] }
 0x12e   : > { %1833 = vrot.lane.b32.xlu1 %v1752_v52, %s11174_s19  ;;  %v743_v48 = vsel %vm11300_vm2, %v735_v44, %v742_v49  ;;  %v1272_v52 = vld [vmem:[%s11289_s12 + $0x44] sm:$0xf] }
 0x12f   : > { %1146 = vrot.lane.b32.xlu0 %v1065_v45, %s11171_s13  ;;  %v12083_v54 = vpop.permute.xlu2 %1618  ;;  %v2841_v30 = vrot.slane %v2840_v8, 4  ;;  %v1424_v47 = vshrl.u32 %v1272_v52, 16  ;;  %v2136_v8 = vshrl.u32 %v1959_v60, 16  ;;  %v3299_v33 = vsel %vm11371_vm8, %v3297_v62, %v3298_v39  ;;  %v12250_v62 = vld [vmem:[%s11289_s12 + $0x54] sm:$0xf] }
 0x130   : > { %v3062_v61 = vpop.permute.xlu1 %3061 }
 0x131   : > { %v2341_v2 = vpop.permute.xlu0 %2340  ;;  %v2846_v4 = vsel %vm11330_vm5, %v2841_v30, %v12122_v51  ;;  %v430_v30 = vrot.slane %v12188_v32, 7  ;;  %v2138_v17 = vrot.slane %v2136_v8, 4  ;;  %v584_v8 = vld [vmem:[%s11289_s12 + $0x44] sm:$0xf] }
 0x132   : > { %2436 = vst.msk [vmem:[#allocation2 + $0x1c] sm:$0xf] %vm2428_vm3, %v2341_v2 }
 0x133   : > { %2641 = vst.msk [vmem:[#allocation2 + $0x1c] sm:$0xf] %vm2633_vm4, %v12017_v26  ;;  %v431_v40 = vsel %vm11490_vm11, %v429_v16, %v430_v30 }
 0x134   : > { %3157 = vst.msk [vmem:[#allocation2 + $0x1c] sm:$0xf] %vm3149_vm6, %v3062_v61 }
 0x135   : > { %2350 = vrot.lane.b32.xlu2 %v2115_v29, %s11175_s20  ;;  %v12174_v29 = vrot.slane %v1424_v47, 7  ;;  %544 = vst.msk [vmem:[#allocation2 + $0x2c] sm:$0xf] %vm532_vm12, %v431_v40 }
 0x136   : > { %2555 = vrot.lane.b32.xlu1 %v2475_v12, %s11176_s21  ;;  %v2132_v12 = vshll.u32 %v1959_v60, 16 }
 0x137   : > { %1831 = vrot.lane.b32.xlu0 %v1751_v6, %s11174_s19  ;;  %v12120_v26 = vpop.permute.xlu2 %1825  ;;  %v1427_v6 = vshll.u32 %v1272_v52, 16  ;;  %v1431_v44 = vrot.slane %v12174_v29, 4 }
 0x138   : > { %v932_v28 = vpop.permute.xlu1 %931 }
 0x139   : > { %v3060_v55 = vpop.permute.xlu0 %3059  ;;  %1026 = vst.msk [vmem:[#allocation2 + $0x20] sm:$0xf] %vm1017_vm13, %v932_v28  ;;  %v1429_v15 = vor.u32 %v1427_v6, %v12174_v29  ;;  %v12197_v28 = vrot.slane %v2132_v12, 5  ;;  %v2863_v6 = vshll.u32 %v12250_v62, 16 }
 0x13a   : > { %3156 = vst.msk [vmem:[#allocation2 + $0x18] sm:$0xf] %vm3149_vm6, %v3060_v55  ;;  %v1433_v55 = vshrl.u32 %v1273_v10, 16  ;;  %v12266_v10 = vld [vmem:[%s11289_s12 + $0x54] sm:$0xf] }
 0x13b   : > { %3469 = vst.msk [vmem:[#allocation2 + $0x18] sm:$0xf] %vm3462_vm7, %v12048_v43  ;;  %v3294_v43 = vrot.slane %v3292_v34, 4  ;;  %v12152_v34 = vrot.slane %v746_v56, 7  ;;  %v2139_v37 = vor.u32 %v2138_v17, %v12197_v28 }
 0x13d   : > { %2557 = vrot.lane.b32.xlu2 %v2476_v9, %s11176_s21  ;;  %v3296_v57 = vsel %vm11371_vm8, %v3294_v43, %v3295_v3  ;;  %v751_v45 = vor.u32 %v749_v46, %v12152_v34  ;;  %v2126_v9 = vshrl.u32 %v12097_v20, 16  ;;  %v12220_v20 = vrot.slane %v1433_v55, 7 }
 0x13e   : > { %3073 = vrot.lane.b32.xlu1 %v2846_v4, %s11177_s22  ;;  %v2847_v4 = vshrl.u32 %v12093_v7, 16  ;;  %v2857_v46 = vshrl.u32 %v2683_v1, 16 }
 0x13f   : > { %2352 = vrot.lane.b32.xlu0 %v2125_v31, %s11175_s20  ;;  %v12145_v41 = vpop.permute.xlu2 %2547  ;;  %v752_v2 = vsel %vm11300_vm2, %v744_v59, %v751_v45  ;;  %v1066_v31 = vld [vmem:[%s11289_s12 + $0x3c] sm:$0xf]  ;;  %v1438_v49 = vor.u32 %v1436_v42, %v12220_v20 }
 0x140   : > { %v1139_v22 = vpop.permute.xlu1 %1138  ;;  %v2849_v3 = vrot.slane %v2847_v4, 4  ;;  %v12289_v4 = vld [vmem:[%s11289_s12 + $0x4c] sm:$0xf] }
 0x141   : > { %v3375_v58 = vpop.permute.xlu0 %3374  ;;  %1232 = vst.msk [vmem:[#allocation2 + $0x24] sm:$0xf] %vm1222_vm14, %v1139_v22  ;;  %v2128_v22 = vrot.slane %v2126_v9, 4  ;;  %v1439_v59 = vsel %vm11300_vm2, %v1431_v44, %v1438_v49  ;;  %v3300_v49 = vrot.slane %v3298_v39, 4 }
 0x142   : > { %3470 = vst.msk [vmem:[#allocation2 + $0x1c] sm:$0xf] %vm3462_vm7, %v3375_v58  ;;  %v2850_v52 = vor.u32 %v2849_v3, %v12122_v51 }
 0x143   : > { %v2129_v45 = vor.u32 %v2128_v22, %v12124_v18  ;;  %v2477_v18 = vld [vmem:[%s11289_s12 + $0x4c] sm:$0xf] }
 0x144   : > { %v2851_v51 = vrot.slane %v2850_v52, 4 }
 0x145   : > { %3384 = vrot.lane.b32.xlu2 %v3296_v57, %s11178_s23  ;;  %v1754_v57 = vld [vmem:[%s11289_s12 + $0x48] sm:$0xf] }
 0x146   : > { %943 = vrot.lane.b32.xlu1 %v743_v48, %s11173_s18 }
 0x147   : > { %3071 = vrot.lane.b32.xlu0 %v2836_v53, %s11177_s22  ;;  %v12167_v21 = vpop.permute.xlu2 %3065  ;;  %v2853_v53 = vshll.u32 %v2683_v1, 16 }
 0x148   : > { %v1824_v25 = vpop.permute.xlu1 %1823 }
 0x149   : > { %v1137_v61 = vpop.permute.xlu0 %1136  ;;  %v10518_v23 = vld [vmem:[#allocation2 + $0x18] sm:$0xff] }
 0x14a   : > { %1231 = vst.msk [vmem:[#allocation2 + $0x20] sm:$0xf] %vm1222_vm14, %v1137_v61  ;;  %9509 = vmatmul.msk.bf16.gmra.mxu0 %vm3640_vm9, %v10518_v23  ;;  %v2130_v61 = vrot.slane %v2129_v45, 4  ;;  %v3199_v23 = vld [vmem:[%s11289_s12 + $0x50] sm:$0xf] }
 0x14b   : > { %1713 = vst.msk [vmem:[#allocation2 + $0x20] sm:$0xf] %vm1704_vm15, %v12083_v54  ;;  %v1422_v54 = vrot.slane %v12055_v36, 4  ;;  %v12201_v36 = vld [vmem:[%s11289_s12 + $0x4c] sm:$0xf]  ;;  %v3301_v12 = vrot.slane %v3199_v23, 5 }
 0x14c   : > { %1918 = vst.msk [vmem:[#allocation2 + $0x20] sm:$0xf] %vm1909_vm1, %v1824_v25  ;;  %v2142_v13 = vshll.u32 %v12201_v36, 16  ;;  %v2855_v25 = vrot.slane %v2853_v53, 5  ;;  %v2146_v22 = vshrl.u32 %v12201_v36, 16 }
 0x14d   : > { %945 = vrot.lane.b32.xlu2 %v752_v2, %s11173_s18  ;;  %v1430_v35 = vsel %vm11300_vm2, %v1422_v54, %v1429_v15  ;;  %v755_v15 = vshrl.u32 %v584_v8, 16  ;;  %v335_v36 = vld [vmem:[%s11289_s12 + $0x34] sm:$0xf]  ;;  %v3302_v52 = vsel %vm11371_vm8, %v3300_v49, %v3301_v12  ;;  %v12382_v49 = vld [vmem:[%s11289_s12 + $0x3c] sm:$0xf] }
 0x14e   : > { %1150 = vrot.lane.b32.xlu1 %v1067_v11, %s11171_s13  ;;  %v12227_v43 = vrot.slane %v2142_v13, 5  ;;  %v2856_v11 = vsel %vm11330_vm5, %v2851_v51, %v2855_v25  ;;  %v753_v13 = vrot.slane %v12152_v34, 4  ;;  %v433_v45 = vrot.slane %v335_v36, 7  ;;  %v2480_v36 = vld [vmem:[%s11289_s12 + $0x58] sm:$0xf] }
 0x14f   : > { %3386 = vrot.lane.b32.xlu0 %v3299_v33, %s11178_s23  ;;  %v936_v27 = vpop.permute.xlu2 %935  ;;  %v2135_v33 = vsel %vm11330_vm5, %v2130_v61, %v12197_v28  ;;  %v3304_v28 = vrot.slane %v12266_v10, 5  ;;  %v12281_v40 = vrot.slane %v755_v15, 7  ;;  %v432_v51 = vrot.slane %v430_v30, 4 }
 0x150   : > { %1028 = vst.msk [vmem:[#allocation2 + $0x28] sm:$0xf] %vm1017_vm13, %v936_v27  ;;  %v2345_v0 = vpop.permute.xlu1 %2344  ;;  %v3303_v27 = vrot.slane %v3301_v12, 4  ;;  %v2148_v23 = vrot.slane %v2146_v22, 4  ;;  %v12385_v22 = vld [vmem:[%s11289_s12 + $0x40] sm:$0xf] }
 0x151   : > { %v1621_v63 = vpop.permute.xlu0 %1620 }
 0x152   : > { %1714 = vst.msk [vmem:[#allocation2 + $0x24] sm:$0xf] %vm1704_vm15, %v1621_v63  ;;  %v758_v63 = vshll.u32 %v584_v8, 16  ;;  %v3305_v9 = vsel %vm11371_vm8, %v3303_v27, %v3304_v28  ;;  %v434_v8 = vsel %vm11490_vm11, %v432_v51, %v433_v45  ;;  %v12401_v51 = vld [vmem:[%s11289_s12 + $0x4c] sm:$0xf] }
 0x153   : > { %1919 = vst.msk [vmem:[#allocation2 + $0x24] sm:$0xf] %vm1909_vm1, %v12120_v26  ;;  %v2140_v26 = vrot.slane %v2139_v37, 4  ;;  %v1275_v37 = vld [vmem:[%s11289_s12 + $0x50] sm:$0xf] }
 0x154   : > { %2438 = vst.msk [vmem:[#allocation2 + $0x24] sm:$0xf] %vm2428_vm3, %v2345_v0  ;;  %v1454_v39 = vshll.u32 %v1275_v37, 16 }
 0x155   : > { %1630 = vrot.lane.b32.xlu2 %v1430_v35, %s11172_s17  ;;  %v2145_v48 = vsel %vm11330_vm5, %v2140_v26, %v12227_v43  ;;  %v585_v35 = vld [vmem:[%s11289_s12 + $0x48] sm:$0xf]  ;;  %v1442_v26 = vshrl.u32 %v12289_v4, 16  ;;  %545 = vst.msk [vmem:[#allocation2 + $0x30] sm:$0xf] %vm532_vm12, %v434_v8 }
 0x156   : > { %1835 = vrot.lane.b32.xlu1 %v1753_v38, %s11174_s19  ;;  %v2478_v38 = vld [vmem:[%s11289_s12 + $0x50] sm:$0xf]  ;;  %v764_v42 = vshrl.u32 %v585_v35, 16  ;;  %v767_v53 = vshll.u32 %v585_v35, 16  ;;  %v12421_v8 = vld [vmem:[%s11289_s12 + $0x5c] sm:$0xf] }
 0x157   : > { %1148 = vrot.lane.b32.xlu0 %v1066_v31, %s11171_s13  ;;  %v12225_v7 = vpop.permute.xlu2 %1142  ;;  %v760_v31 = vor.u32 %v758_v63, %v12281_v40 }
 0x158   : > { %v3064_v56 = vpop.permute.xlu1 %3063 }
 0x159   : > { %v2343_v58 = vpop.permute.xlu0 %2342 }
 0x15a   : > { %2437 = vst.msk [vmem:[#allocation2 + $0x20] sm:$0xf] %vm2428_vm3, %v2343_v58  ;;  %v761_v58 = vsel %vm11300_vm2, %v753_v13, %v760_v31 }
 0x15b   : > { %2642 = vst.msk [vmem:[#allocation2 + $0x20] sm:$0xf] %vm2633_vm4, %v12145_v41  ;;  %v2859_v41 = vrot.slane %v2857_v46, 4  ;;  %v12308_v46 = vrot.slane %v764_v42, 7 }
 0x15c   : > { %3158 = vst.msk [vmem:[#allocation2 + $0x20] sm:$0xf] %vm3149_vm6, %v3064_v56  ;;  %v1451_v56 = vshrl.u32 %v1275_v37, 16  ;;  %v1755_v37 = vld [vmem:[%s11289_s12 + $0x4c] sm:$0xf] }
 0x15d   : > { %1837 = vrot.lane.b32.xlu2 %v1754_v57, %s11174_s19  ;;  %v2860_v29 = vor.u32 %v2859_v41, %v2855_v25  ;;  %v1068_v57 = vld [vmem:[%s11289_s12 + $0x44] sm:$0xf]  ;;  %v435_v41 = vrot.slane %v433_v45, 4 }
 0x15e   : > { %2356 = vrot.lane.b32.xlu1 %v2145_v48, %s11175_s20  ;;  %v1444_v48 = vrot.slane %v1442_v26, 7  ;;  %v12313_v19 = vrot.slane %v1451_v56, 7 }
 0x15f   : > { %1632 = vrot.lane.b32.xlu0 %v1439_v59, %s11172_s17  ;;  %v12247_v47 = vpop.permute.xlu2 %1827  ;;  %v2861_v54 = vrot.slane %v2860_v29, 4  ;;  %v12320_v59 = vld [vmem:[%s11289_s12 + $0x38] sm:$0xf]  ;;  %v769_v29 = vor.u32 %v767_v53, %v12308_v46 }
 0x160   : > { %v3379_v60 = vpop.permute.xlu1 %3378  ;;  %v1456_v61 = vor.u32 %v1454_v39, %v12313_v19  ;;  %v1756_v39 = vld [vmem:[%s11289_s12 + $0x50] sm:$0xf] }
 0x161   : > { %v2550_v2 = vpop.permute.xlu0 %2549 }
 0x162   : > { %2643 = vst.msk [vmem:[#allocation2 + $0x24] sm:$0xf] %vm2633_vm4, %v2550_v2 }
 0x163   : > { %3159 = vst.msk [vmem:[#allocation2 + $0x24] sm:$0xf] %vm3149_vm6, %v12167_v21  ;;  %v12270_v21 = vrot.slane %v2863_v6, 5  ;;  %v1961_v6 = vld [vmem:[%s11289_s12 + $0x50] sm:$0xf] }
 0x164   : > { %3472 = vst.msk [vmem:[#allocation2 + $0x24] sm:$0xf] %vm3462_vm7, %v3379_v60  ;;  %v1449_v60 = vrot.slane %v1444_v48, 4  ;;  %v2156_v12 = vshrl.u32 %v1961_v6, 16  ;;  %v2152_v15 = vshll.u32 %v1961_v6, 16 }
 0x165   : > { %2559 = vrot.lane.b32.xlu2 %v2477_v18, %s11176_s21  ;;  %v2866_v55 = vsel %vm11330_vm5, %v2861_v54, %v12270_v21  ;;  %v762_v18 = vrot.slane %v12281_v40, 4  ;;  %v2149_v54 = vor.u32 %v2148_v23, %v12227_v43  ;;  %v12359_v40 = vld [vmem:[%s11289_s12 + $0x54] sm:$0xf] }
 0x166   : > { %3075 = vrot.lane.b32.xlu1 %v2856_v11, %s11177_s22  ;;  %v1069_v11 = vld [vmem:[%s11289_s12 + $0x48] sm:$0xf]  ;;  %v2162_v31 = vshll.u32 %v12359_v40, 16 }
 0x167   : > { %2354 = vrot.lane.b32.xlu0 %v2135_v33, %s11175_s20  ;;  %v12273_v16 = vpop.permute.xlu2 %2348  ;;  %v1457_v33 = vsel %vm11300_vm2, %v1449_v60, %v1456_v61  ;;  %v770_v27 = vsel %vm11300_vm2, %v762_v18, %v769_v29  ;;  %v2150_v43 = vrot.slane %v2149_v54, 4  ;;  %v3201_v60 = vld [vmem:[%s11289_s12 + $0x58] sm:$0xf]  ;;  %v587_v61 = vld [vmem:[%s11289_s12 + $0x50] sm:$0xf]  ;;  %v3306_v29 = vrot.slane %v3304_v28, 4 }
 0x168   : > { %v1141_v17 = vpop.permute.xlu1 %1140  ;;  %v12375_v26 = vrot.slane %v2162_v31, 5  ;;  %v3307_v6 = vrot.slane %v3201_v60, 5  ;;  %v12427_v54 = vld [vmem:[%s11289_s12 + $0x5c] sm:$0xf] }
 0x169   : > { %v3377_v0 = vpop.permute.xlu0 %3376  ;;  %1233 = vst.msk [vmem:[#allocation2 + $0x28] sm:$0xf] %vm1222_vm14, %v1141_v17  ;;  %v1445_v17 = vshll.u32 %v12289_v4, 16 }
 0x16a   : > { %3471 = vst.msk [vmem:[#allocation2 + $0x20] sm:$0xf] %vm3462_vm7, %v3377_v0  ;;  %v3308_v28 = vsel %vm11371_vm8, %v3306_v29, %v3307_v6 }
 0x16b   : > { %v1447_v35 = vor.u32 %v1445_v17, %v1444_v48  ;;  %v1276_v17 = vld [vmem:[%s11289_s12 + $0x54] sm:$0xf] }
 0x16d   : > { %3077 = vrot.lane.b32.xlu2 %v2866_v55, %s11177_s22  ;;  %v2154_v55 = vrot.slane %v2152_v15, 5 }
 0x16e   : > { %3390 = vrot.lane.b32.xlu1 %v3305_v9, %s11178_s23  ;;  %v1440_v9 = vrot.slane %v12220_v20, 4 }
 0x16f   : > { %2561 = vrot.lane.b32.xlu0 %v2478_v38, %s11176_s21  ;;  %v12299_v3 = vpop.permute.xlu2 %3067  ;;  %v2867_v38 = vshrl.u32 %v12250_v62, 16  ;;  %v2155_v42 = vsel %vm11330_vm5, %v2150_v43, %v2154_v55 }
 0x170   : > { %v1625_v44 = vpop.permute.xlu1 %1624  ;;  %v1448_v20 = vsel %vm11300_vm2, %v1440_v9, %v1447_v35  ;;  %v3310_v9 = vrot.slane %v12427_v54, 5  ;;  %v1460_v35 = vshrl.u32 %v1276_v17, 16 }
 0x171   : > { %v938_v1 = vpop.permute.xlu0 %937  ;;  %v10519_v34 = vld [vmem:[#allocation2 + $0x20] sm:$0xff]  ;;  %v2869_v56 = vrot.slane %v2867_v38, 4 }
 0x172   : > { %1029 = vst.msk [vmem:[#allocation2 + $0x2c] sm:$0xf] %vm1017_vm13, %v938_v1  ;;  %9510 = vmatmul.msk.bf16.gmra.mxu0 %vm3640_vm9, %v10519_v34  ;;  %v439_v34 = vrot.slane %v12382_v49, 7  ;;  %v2166_v49 = vshrl.u32 %v12359_v40, 16 }
 0x173   : > { %1234 = vst.msk [vmem:[#allocation2 + $0x2c] sm:$0xf] %vm1222_vm14, %v12225_v7  ;;  %v436_v7 = vrot.slane %v12320_v59, 7 }
 0x174   : > { %1716 = vst.msk [vmem:[#allocation2 + $0x2c] sm:$0xf] %vm1704_vm15, %v1625_v44  ;;  %v2685_v44 = vld [vmem:[%s11289_s12 + $0x58] sm:$0xf]  ;;  %v441_v45 = vrot.slane %v439_v34, 4  ;;  %v2168_v40 = vrot.slane %v2166_v49, 4 }
 0x175   : > { %947 = vrot.lane.b32.xlu2 %v761_v58, %s11173_s18  ;;  %v437_v32 = vsel %vm11490_vm11, %v435_v41, %v436_v7  ;;  %v442_v58 = vrot.slane %v12385_v22, 7  ;;  %v2873_v53 = vshll.u32 %v2685_v44, 16  ;;  %v2877_v41 = vshrl.u32 %v2685_v44, 16  ;;  %v2482_v49 = vld [vmem:[%s11289_s12 + $0x60] sm:$0xf] }
 0x176   : > { %1152 = vrot.lane.b32.xlu1 %v1068_v57, %s11171_s13  ;;  %546 = vst.msk [vmem:[#allocation2 + $0x34] sm:$0xf] %vm532_vm12, %v437_v32  ;;  %v782_v32 = vshrl.u32 %v587_v61, 16 }
 0x177   : > { %3388 = vrot.lane.b32.xlu0 %v3302_v52, %s11178_s23  ;;  %v12328_v25 = vpop.permute.xlu2 %3382  ;;  %v2870_v52 = vor.u32 %v2869_v56, %v12270_v21  ;;  %v443_v23 = vsel %vm11490_vm11, %v441_v45, %v442_v58  ;;  %v1462_v56 = vrot.slane %v1460_v35, 7  ;;  %v444_v35 = vrot.slane %v442_v58, 4  ;;  %v2481_v58 = vld [vmem:[%s11289_s12 + $0x5c] sm:$0xf] }
 0x178   : > { %v2347_v2 = vpop.permute.xlu1 %2346  ;;  %548 = vst.msk [vmem:[#allocation2 + $0x3c] sm:$0xf] %vm532_vm12, %v443_v23  ;;  %v12433_v15 = vrot.slane %v782_v32, 7 }
 0x179   : > { %v1623_v30 = vpop.permute.xlu0 %1622  ;;  %v2871_v21 = vrot.slane %v2870_v52, 4  ;;  %v1458_v52 = vrot.slane %v12313_v19, 4 }
 0x17a   : > { %1715 = vst.msk [vmem:[#allocation2 + $0x28] sm:$0xf] %vm1704_vm15, %v1623_v30 }
 0x17b   : > { %1920 = vst.msk [vmem:[#allocation2 + $0x28] sm:$0xf] %vm1909_vm1, %v12247_v47  ;;  %v2158_v47 = vrot.slane %v2156_v12, 4 }
 0x17c   : > { %2439 = vst.msk [vmem:[#allocation2 + $0x28] sm:$0xf] %vm2428_vm3, %v2347_v2  ;;  %v773_v2 = vshrl.u32 %v12401_v51, 16 }
 0x17d   : > { %1154 = vrot.lane.b32.xlu2 %v1069_v11, %s11171_s13  ;;  %v2159_v13 = vor.u32 %v2158_v47, %v2154_v55  ;;  %v2879_v11 = vrot.slane %v2877_v41, 4  ;;  %v2479_v47 = vld [vmem:[%s11289_s12 + $0x54] sm:$0xf]  ;;  %v2883_v55 = vshll.u32 %v12421_v8, 16  ;;  %v771_v41 = vrot.slane %v12308_v46, 4 }
 0x17e   : > { %1636 = vrot.lane.b32.xlu1 %v1457_v33, %s11172_s17  ;;  %v775_v10 = vrot.slane %v773_v2, 7  ;;  %v1963_v2 = vld [vmem:[%s11289_s12 + $0x58] sm:$0xf] }
 0x17f   : > { %949 = vrot.lane.b32.xlu0 %v770_v27, %s11173_s18  ;;  %v12356_v0 = vpop.permute.xlu2 %1144  ;;  %v2160_v62 = vrot.slane %v2159_v13, 4  ;;  %v785_v27 = vshll.u32 %v587_v61, 16  ;;  %v12445_v31 = vrot.slane %v2883_v55, 5 }
 0x180   : > { %v2554_v63 = vpop.permute.xlu1 %2553 }
 0x181   : > { %v1830_v4 = vpop.permute.xlu0 %1829  ;;  %v2165_v48 = vsel %vm11330_vm5, %v2160_v62, %v12375_v26  ;;  %v787_v38 = vor.u32 %v785_v27, %v12433_v15  ;;  %v1071_v27 = vld [vmem:[%s11289_s12 + $0x50] sm:$0xf] }
 0x182   : > { %1921 = vst.msk [vmem:[#allocation2 + $0x2c] sm:$0xf] %vm1909_vm1, %v1830_v4  ;;  %v780_v4 = vrot.slane %v775_v10, 4 }
 0x183   : > { %2440 = vst.msk [vmem:[#allocation2 + $0x2c] sm:$0xf] %vm2428_vm3, %v12273_v16 }
 0x184   : > { %2645 = vst.msk [vmem:[#allocation2 + $0x2c] sm:$0xf] %vm2633_vm4, %v2554_v63  ;;  %v3309_v63 = vrot.slane %v3307_v6, 4  ;;  %v788_v44 = vsel %vm11300_vm2, %v780_v4, %v787_v38  ;;  %v2687_v6 = vld [vmem:[%s11289_s12 + $0x60] sm:$0xf] }
 0x185   : > { %1839 = vrot.lane.b32.xlu2 %v1755_v37, %s11174_s19 }
 0x186   : > { %2358 = vrot.lane.b32.xlu1 %v2155_v42, %s11175_s20  ;;  %v3311_v62 = vsel %vm11371_vm8, %v3309_v63, %v3310_v9  ;;  %v12513_v63 = vld [vmem:[%s11289_s12 + $0x44] sm:$0xf] }
 0x187   : > { %1634 = vrot.lane.b32.xlu0 %v1448_v20, %s11172_s17  ;;  %v12378_v16 = vpop.permute.xlu2 %1628 }
 0x188   : > { %v3381_v1 = vpop.permute.xlu1 %3380 }
 0x189   : > { %v2552_v57 = vpop.permute.xlu0 %2551 }
 0x18a   : > { %2644 = vst.msk [vmem:[#allocation2 + $0x28] sm:$0xf] %vm2633_vm4, %v2552_v57  ;;  %v1277_v57 = vld [vmem:[%s11289_s12 + $0x58] sm:$0xf] }
 0x18b   : > { %3160 = vst.msk [vmem:[#allocation2 + $0x28] sm:$0xf] %vm3149_vm6, %v12299_v3  ;;  %v2875_v3 = vrot.slane %v2873_v53, 5  ;;  %v1469_v59 = vshrl.u32 %v1277_v57, 16  ;;  %v1472_v23 = vshll.u32 %v1277_v57, 16  ;;  %v2887_v57 = vshrl.u32 %v12421_v8, 16 }
 0x18c   : > { %3473 = vst.msk [vmem:[#allocation2 + $0x28] sm:$0xf] %vm3462_vm7, %v3381_v1  ;;  %v1463_v1 = vshll.u32 %v1276_v17, 16  ;;  %v2176_v17 = vshrl.u32 %v1963_v2, 16 }
 0x18d   : > { %2360 = vrot.lane.b32.xlu2 %v2165_v48, %s11175_s20  ;;  %v2876_v33 = vsel %vm11330_vm5, %v2871_v21, %v2875_v3  ;;  %v2880_v43 = vor.u32 %v2879_v11, %v2875_v3  ;;  %v438_v48 = vrot.slane %v436_v7, 4  ;;  %v12480_v61 = vrot.slane %v1469_v59, 7 }
 0x18e   : > { %2565 = vrot.lane.b32.xlu1 %v2480_v36, %s11176_s21  ;;  %v776_v36 = vshll.u32 %v12401_v51, 16  ;;  %v1465_v53 = vor.u32 %v1463_v1, %v1462_v56  ;;  %v1467_v21 = vrot.slane %v1462_v56, 4  ;;  %v2178_v38 = vrot.slane %v2176_v17, 4  ;;  %v1757_v56 = vld [vmem:[%s11289_s12 + $0x54] sm:$0xf] }
 0x18f   : > { %1841 = vrot.lane.b32.xlu0 %v1756_v39, %s11174_s19  ;;  %v12415_v18 = vpop.permute.xlu2 %2350  ;;  %v2881_v13 = vrot.slane %v2880_v43, 4  ;;  %v1474_v3 = vor.u32 %v1472_v23, %v12480_v61 }
 0x190   : > { %v942_v30 = vpop.permute.xlu1 %941  ;;  %v778_v51 = vor.u32 %v776_v36, %v775_v10  ;;  %v1466_v19 = vsel %vm11300_vm2, %v1458_v52, %v1465_v53  ;;  %v2893_v10 = vshll.u32 %v2687_v6, 16  ;;  %v588_v36 = vld [vmem:[%s11289_s12 + $0x54] sm:$0xf]  ;;  %v2889_v52 = vrot.slane %v2887_v57, 4  ;;  %v1279_v57 = vld [vmem:[%s11289_s12 + $0x60] sm:$0xf] }
 0x191   : > { %v3070_v12 = vpop.permute.xlu0 %3069  ;;  %1031 = vst.msk [vmem:[#allocation2 + $0x34] sm:$0xf] %vm1017_vm13, %v942_v30  ;;  %v2886_v39 = vsel %vm11330_vm5, %v2881_v13, %v12445_v31  ;;  %v2169_v30 = vor.u32 %v2168_v40, %v12375_v26  ;;  %v1475_v11 = vsel %vm11300_vm2, %v1467_v21, %v1474_v3  ;;  %v445_v13 = vrot.slane %v12513_v63, 7 }
 0x192   : > { %3161 = vst.msk [vmem:[#allocation2 + $0x2c] sm:$0xf] %vm3149_vm6, %v3070_v12  ;;  %v779_v46 = vsel %vm11300_vm2, %v771_v41, %v778_v51  ;;  %v2172_v12 = vshll.u32 %v1963_v2, 16  ;;  %v791_v59 = vshrl.u32 %v588_v36, 16  ;;  %v2890_v40 = vor.u32 %v2889_v52, %v12445_v31 }
 0x193   : > { %3474 = vst.msk [vmem:[#allocation2 + $0x2c] sm:$0xf] %vm3462_vm7, %v12328_v25  ;;  %v2170_v26 = vrot.slane %v2169_v30, 4  ;;  %v446_v22 = vsel %vm11490_vm11, %v444_v35, %v445_v13  ;;  %v789_v31 = vrot.slane %v12433_v15, 4 }
 0x194   : > { %549 = vst.msk [vmem:[#allocation2 + $0x40] sm:$0xf] %vm532_vm12, %v446_v22  ;;  %v793_v23 = vrot.slane %v791_v59, 7  ;;  %v1073_v22 = vld [vmem:[%s11289_s12 + $0x58] sm:$0xf] }
 0x195   : > { %3079 = vrot.lane.b32.xlu2 %v2876_v33, %s11177_s22  ;;  %v1758_v33 = vld [vmem:[%s11289_s12 + $0x58] sm:$0xf] }
 0x196   : > { %3392 = vrot.lane.b32.xlu1 %v3308_v28, %s11178_s23  ;;  %v2897_v28 = vshrl.u32 %v2687_v6, 16 }
 0x197   : > { %2563 = vrot.lane.b32.xlu0 %v2479_v47, %s11176_s21  ;;  %v12442_v25 = vpop.permute.xlu2 %2557  ;;  %v2174_v47 = vrot.slane %v2172_v12, 5 }
 0x198   : > { %v1627_v37 = vpop.permute.xlu1 %1626  ;;  %v2899_v55 = vrot.slane %v2897_v28, 4  ;;  %v798_v28 = vrot.slane %v793_v23, 4 }
 0x199   : > { %v940_v42 = vpop.permute.xlu0 %939 }
 0x19a   : > { %1030 = vst.msk [vmem:[#allocation2 + $0x30] sm:$0xf] %vm1017_vm13, %v940_v42  ;;  %v10520_v20 = vld [vmem:[#allocation2 + $0x28] sm:$0xff] }
 0x19b   : > { %1235 = vst.msk [vmem:[#allocation2 + $0x30] sm:$0xf] %vm1222_vm14, %v12356_v0  ;;  %9511 = vmatmul.msk.bf16.gmra.mxu0 %vm3640_vm9, %v10520_v20  ;;  %v440_v0 = vsel %vm11490_vm11, %v438_v48, %v439_v34  ;;  %v1070_v34 = vld [vmem:[%s11289_s12 + $0x4c] sm:$0xf]  ;;  %v12522_v20 = vld [vmem:[%s11289_s12 + $0x5c] sm:$0xf]  ;;  %v2179_v48 = vor.u32 %v2178_v38, %v2174_v47 }
 0x19c   : > { %1717 = vst.msk [vmem:[#allocation2 + $0x30] sm:$0xf] %vm1704_vm15, %v1627_v37  ;;  %v12518_v37 = vld [vmem:[%s11289_s12 + $0x64] sm:$0xf] }
 0x19d   : > { %3394 = vrot.lane.b32.xlu2 %v3311_v62, %s11178_s23  ;;  %547 = vst.msk [vmem:[#allocation2 + $0x38] sm:$0xf] %vm532_vm12, %v440_v0  ;;  %v2175_v62 = vsel %vm11330_vm5, %v2170_v26, %v2174_v47  ;;  %v2903_v1 = vshll.u32 %v12518_v37, 16 }
 0x19e   : > { %953 = vrot.lane.b32.xlu1 %v788_v44, %s11173_s18 }
 0x19f   : > { %3081 = vrot.lane.b32.xlu0 %v2886_v39, %s11177_s22  ;;  %v12473_v7 = vpop.permute.xlu2 %3384  ;;  %v2182_v39 = vshll.u32 %v12522_v20, 16  ;;  %v12547_v8 = vrot.slane %v2903_v1, 5 }
 0x1a0   : > { %v1834_v45 = vpop.permute.xlu1 %1833 }
 0x1a1   : > { %v1147_v60 = vpop.permute.xlu0 %1146  ;;  %v12549_v41 = vrot.slane %v2182_v39, 5 }
 0x1a2   : > { %1236 = vst.msk [vmem:[#allocation2 + $0x34] sm:$0xf] %vm1222_vm14, %v1147_v60  ;;  %v3203_v60 = vld [vmem:[%s11289_s12 + $0x60] sm:$0xf] }
 0x1a3   : > { %1718 = vst.msk [vmem:[#allocation2 + $0x34] sm:$0xf] %vm1704_vm15, %v12378_v16  ;;  %v3313_v3 = vrot.slane %v3203_v60, 5 }
 0x1a4   : > { %1923 = vst.msk [vmem:[#allocation2 + $0x34] sm:$0xf] %vm1909_vm1, %v1834_v45  ;;  %v2180_v45 = vrot.slane %v2179_v48, 4  ;;  %v12613_v48 = vld [vmem:[%s11289_s12 + $0x48] sm:$0xf] }
 0x1a5   : > { %1156 = vrot.lane.b32.xlu2 %v1070_v34, %s11171_s13 }
 0x1a6   : > { %1638 = vrot.lane.b32.xlu1 %v1466_v19, %s11172_s17  ;;  %v794_v19 = vshll.u32 %v588_v36, 16  ;;  %v2185_v21 = vsel %vm11330_vm5, %v2180_v45, %v12549_v41  ;;  %v447_v36 = vrot.slane %v445_v13, 4 }
 0x1a7   : > { %951 = vrot.lane.b32.xlu0 %v779_v46, %s11173_s18  ;;  %v946_v16 = vpop.permute.xlu2 %945  ;;  %v589_v46 = vld [vmem:[%s11289_s12 + $0x58] sm:$0xf] }
 0x1a8   : > { %1033 = vst.msk [vmem:[#allocation2 + $0x3c] sm:$0xf] %vm1017_vm13, %v946_v16  ;;  %v2556_v29 = vpop.permute.xlu1 %2555  ;;  %v800_v16 = vshrl.u32 %v589_v46, 16 }
 0x1a9   : > { %v1832_v32 = vpop.permute.xlu0 %1831 }
 0x1aa   : > { %1922 = vst.msk [vmem:[#allocation2 + $0x30] sm:$0xf] %vm1909_vm1, %v1832_v32  ;;  %v2891_v32 = vrot.slane %v2890_v40, 4  ;;  %v1072_v40 = vld [vmem:[%s11289_s12 + $0x54] sm:$0xf] }
 0x1ab   : > { %2441 = vst.msk [vmem:[#allocation2 + $0x30] sm:$0xf] %vm2428_vm3, %v12415_v18  ;;  %v12510_v18 = vrot.slane %v2893_v10, 5  ;;  %v12587_v10 = vld [vmem:[%s11289_s12 + $0x64] sm:$0xf] }
 0x1ac   : > { %2646 = vst.msk [vmem:[#allocation2 + $0x30] sm:$0xf] %vm2633_vm4, %v2556_v29  ;;  %v796_v29 = vor.u32 %v794_v19, %v793_v23  ;;  %v3316_v35 = vrot.slane %v12587_v10, 5  ;;  %v1759_v23 = vld [vmem:[%s11289_s12 + $0x5c] sm:$0xf] }
 0x1ad   : > { %1640 = vrot.lane.b32.xlu2 %v1475_v11, %s11172_s17  ;;  %v2900_v44 = vor.u32 %v2899_v55, %v12510_v18  ;;  %v803_v11 = vshll.u32 %v589_v46, 16  ;;  %v2896_v15 = vsel %vm11330_vm5, %v2891_v32, %v12510_v18  ;;  %v3315_v55 = vrot.slane %v3313_v3, 4  ;;  %v1965_v18 = vld [vmem:[%s11289_s12 + $0x60] sm:$0xf]  ;;  %v2689_v32 = vld [vmem:[%s11289_s12 + $0x68] sm:$0xf] }
 0x1ae   : > { %1845 = vrot.lane.b32.xlu1 %v1758_v33, %s11174_s19  ;;  %v797_v12 = vsel %vm11300_vm2, %v789_v31, %v796_v29  ;;  %v1278_v33 = vld [vmem:[%s11289_s12 + $0x5c] sm:$0xf] }
 0x1af   : > { %1158 = vrot.lane.b32.xlu0 %v1071_v27, %s11171_s13  ;;  %v12508_v43 = vpop.permute.xlu2 %1630  ;;  %v2901_v0 = vrot.slane %v2900_v44, 4  ;;  %v1478_v17 = vshrl.u32 %v1278_v33, 16  ;;  %v2196_v44 = vshrl.u32 %v1965_v18, 16  ;;  %v3317_v1 = vsel %vm11371_vm8, %v3315_v55, %v3316_v35  ;;  %v12675_v55 = vld [vmem:[%s11289_s12 + $0x6c] sm:$0xf] }
 0x1b0   : > { %v3074_v4 = vpop.permute.xlu1 %3073 }
 0x1b1   : > { %v2353_v42 = vpop.permute.xlu0 %2352  ;;  %v2906_v34 = vsel %vm11330_vm5, %v2901_v0, %v12547_v8  ;;  %v448_v0 = vrot.slane %v12613_v48, 7 }
 0x1b2   : > { %2442 = vst.msk [vmem:[#allocation2 + $0x34] sm:$0xf] %vm2428_vm3, %v2353_v42 }
 0x1b3   : > { %2647 = vst.msk [vmem:[#allocation2 + $0x34] sm:$0xf] %vm2633_vm4, %v12442_v25  ;;  %v449_v63 = vsel %vm11490_vm11, %v447_v36, %v448_v0 }
 0x1b4   : > { %3163 = vst.msk [vmem:[#allocation2 + $0x34] sm:$0xf] %vm3149_vm6, %v3074_v4 }
 0x1b5   : > { %2362 = vrot.lane.b32.xlu2 %v2175_v62, %s11175_s20  ;;  %v12599_v62 = vrot.slane %v1478_v17, 7  ;;  %550 = vst.msk [vmem:[#allocation2 + $0x44] sm:$0xf] %vm532_vm12, %v449_v63 }
 0x1b6   : > { %2567 = vrot.lane.b32.xlu1 %v2481_v58, %s11176_s21  ;;  %v2192_v58 = vshll.u32 %v1965_v18, 16 }
 0x1b7   : > { %1843 = vrot.lane.b32.xlu0 %v1757_v56, %s11174_s19  ;;  %v12545_v25 = vpop.permute.xlu2 %1837  ;;  %v1481_v56 = vshll.u32 %v1278_v33, 16  ;;  %v1485_v31 = vrot.slane %v12599_v62, 4 }
 0x1b8   : > { %v944_v53 = vpop.permute.xlu1 %943  ;;  %v12622_v52 = vrot.slane %v2192_v58, 5 }
 0x1b9   : > { %v3072_v51 = vpop.permute.xlu0 %3071  ;;  %1032 = vst.msk [vmem:[#allocation2 + $0x38] sm:$0xf] %vm1017_vm13, %v944_v53  ;;  %v1483_v39 = vor.u32 %v1481_v56, %v12599_v62  ;;  %v2198_v53 = vrot.slane %v2196_v44, 4  ;;  %v2923_v56 = vshll.u32 %v12675_v55, 16  ;;  %v590_v44 = vld [vmem:[%s11289_s12 + $0x5c] sm:$0xf] }
 0x1ba   : > { %3162 = vst.msk [vmem:[#allocation2 + $0x30] sm:$0xf] %vm3149_vm6, %v3072_v51  ;;  %v1487_v51 = vshrl.u32 %v1279_v57, 16 }
 0x1bb   : > { %3475 = vst.msk [vmem:[#allocation2 + $0x30] sm:$0xf] %vm3462_vm7, %v12473_v7  ;;  %v3312_v7 = vrot.slane %v3310_v9, 4  ;;  %v12577_v9 = vrot.slane %v800_v16, 7  ;;  %v2199_v19 = vor.u32 %v2198_v53, %v12622_v52 }
 0x1bd   : > { %2569 = vrot.lane.b32.xlu2 %v2482_v49, %s11176_s21  ;;  %v3314_v54 = vsel %vm11371_vm8, %v3312_v7, %v3313_v3  ;;  %v805_v27 = vor.u32 %v803_v11, %v12577_v9  ;;  %v2186_v49 = vshrl.u32 %v12522_v20, 16  ;;  %v12645_v20 = vrot.slane %v1487_v51, 7 }
 0x1be   : > { %3085 = vrot.lane.b32.xlu1 %v2906_v34, %s11177_s22  ;;  %v2907_v34 = vshrl.u32 %v12518_v37, 16  ;;  %v2917_v11 = vshrl.u32 %v2689_v32, 16 }
 0x1bf   : > { %2364 = vrot.lane.b32.xlu0 %v2185_v21, %s11175_s20  ;;  %v12570_v2 = vpop.permute.xlu2 %2559  ;;  %v806_v42 = vsel %vm11300_vm2, %v798_v28, %v805_v27  ;;  %v1490_v21 = vshll.u32 %v1279_v57, 16  ;;  %v12691_v57 = vld [vmem:[%s11289_s12 + $0x6c] sm:$0xf] }
 0x1c0   : > { %v1151_v6 = vpop.permute.xlu1 %1150  ;;  %v2909_v3 = vrot.slane %v2907_v34, 4  ;;  %v12714_v34 = vld [vmem:[%s11289_s12 + $0x64] sm:$0xf] }
 0x1c1   : > { %v3387_v30 = vpop.permute.xlu0 %3386  ;;  %1238 = vst.msk [vmem:[#allocation2 + $0x3c] sm:$0xf] %vm1222_vm14, %v1151_v6  ;;  %v1492_v29 = vor.u32 %v1490_v21, %v12645_v20  ;;  %v2188_v6 = vrot.slane %v2186_v49, 4 }
 0x1c2   : > { %3476 = vst.msk [vmem:[#allocation2 + $0x34] sm:$0xf] %vm3462_vm7, %v3387_v30  ;;  %v2910_v33 = vor.u32 %v2909_v3, %v12547_v8 }
 0x1c3   : > { %v1493_v28 = vsel %vm11300_vm2, %v1485_v31, %v1492_v29  ;;  %v2189_v27 = vor.u32 %v2188_v6, %v12549_v41  ;;  %v2483_v41 = vld [vmem:[%s11289_s12 + $0x64] sm:$0xf]  ;;  %v3318_v29 = vrot.slane %v3316_v35, 4 }
 0x1c4   : > { %v2911_v8 = vrot.slane %v2910_v33, 4 }
 0x1c5   : > { %3396 = vrot.lane.b32.xlu2 %v3314_v54, %s11178_s23  ;;  %v1760_v54 = vld [vmem:[%s11289_s12 + $0x60] sm:$0xf] }
 0x1c6   : > { %955 = vrot.lane.b32.xlu1 %v797_v12, %s11173_s18 }
 0x1c7   : > { %3083 = vrot.lane.b32.xlu0 %v2896_v15, %s11177_s22  ;;  %v12592_v26 = vpop.permute.xlu2 %3077  ;;  %v2913_v15 = vshll.u32 %v2689_v32, 16 }
 0x1c8   : > { %v1836_v47 = vpop.permute.xlu1 %1835 }
 0x1c9   : > { %v1149_v4 = vpop.permute.xlu0 %1148  ;;  %v10521_v38 = vld [vmem:[#allocation2 + $0x30] sm:$0xff] }
 0x1ca   : > { %1237 = vst.msk [vmem:[#allocation2 + $0x38] sm:$0xf] %vm1222_vm14, %v1149_v4  ;;  %9512 = vmatmul.msk.bf16.gmra.mxu0 %vm3640_vm9, %v10521_v38  ;;  %v2190_v4 = vrot.slane %v2189_v27, 4  ;;  %v3205_v38 = vld [vmem:[%s11289_s12 + $0x68] sm:$0xf] }
 0x1cb   : > { %1719 = vst.msk [vmem:[#allocation2 + $0x38] sm:$0xf] %vm1704_vm15, %v12508_v43  ;;  %v1476_v43 = vrot.slane %v12480_v61, 4  ;;  %v12626_v61 = vld [vmem:[%s11289_s12 + $0x64] sm:$0xf]  ;;  %v3319_v58 = vrot.slane %v3205_v38, 5 }
 0x1cc   : > { %1924 = vst.msk [vmem:[#allocation2 + $0x38] sm:$0xf] %vm1909_vm1, %v1836_v47  ;;  %v2202_v46 = vshll.u32 %v12626_v61, 16  ;;  %v2915_v47 = vrot.slane %v2913_v15, 5  ;;  %v2206_v6 = vshrl.u32 %v12626_v61, 16 }
 0x1cd   : > { %957 = vrot.lane.b32.xlu2 %v806_v42, %s11173_s18  ;;  %v1484_v60 = vsel %vm11300_vm2, %v1476_v43, %v1483_v39  ;;  %v809_v39 = vshrl.u32 %v590_v44, 16  ;;  %v341_v61 = vld [vmem:[%s11289_s12 + $0x4c] sm:$0xf]  ;;  %v3320_v33 = vsel %vm11371_vm8, %v3318_v29, %v3319_v58  ;;  %v12807_v29 = vld [vmem:[%s11289_s12 + $0x54] sm:$0xf] }
 0x1ce   : > { %1162 = vrot.lane.b32.xlu1 %v1073_v22, %s11171_s13  ;;  %v12652_v7 = vrot.slane %v2202_v46, 5  ;;  %v2916_v22 = vsel %vm11330_vm5, %v2911_v8, %v2915_v47  ;;  %v807_v46 = vrot.slane %v12577_v9, 4  ;;  %v451_v27 = vrot.slane %v341_v61, 7  ;;  %v2486_v61 = vld [vmem:[%s11289_s12 + $0x70] sm:$0xf] }
 0x1cf   : > { %3398 = vrot.lane.b32.xlu0 %v3317_v1, %s11178_s23  ;;  %v948_v59 = vpop.permute.xlu2 %947  ;;  %v2195_v1 = vsel %vm11330_vm5, %v2190_v4, %v12622_v52  ;;  %v3322_v52 = vrot.slane %v12691_v57, 5  ;;  %v12706_v63 = vrot.slane %v809_v39, 7  ;;  %v450_v8 = vrot.slane %v448_v0, 4 }
 0x1d0   : > { %1034 = vst.msk [vmem:[#allocation2 + $0x40] sm:$0xf] %vm1017_vm13, %v948_v59  ;;  %v2357_v45 = vpop.permute.xlu1 %2356  ;;  %v3321_v59 = vrot.slane %v3319_v58, 4  ;;  %v2208_v38 = vrot.slane %v2206_v6, 4  ;;  %v12810_v6 = vld [vmem:[%s11289_s12 + $0x58] sm:$0xf] }
 0x1d1   : > { %v1633_v13 = vpop.permute.xlu0 %1632 }
 0x1d2   : > { %1720 = vst.msk [vmem:[#allocation2 + $0x3c] sm:$0xf] %vm1704_vm15, %v1633_v13  ;;  %v812_v13 = vshll.u32 %v590_v44, 16  ;;  %v3323_v49 = vsel %vm11371_vm8, %v3321_v59, %v3322_v52  ;;  %v452_v44 = vsel %vm11490_vm11, %v450_v8, %v451_v27  ;;  %v12826_v8 = vld [vmem:[%s11289_s12 + $0x64] sm:$0xf] }
 0x1d3   : > { %1925 = vst.msk [vmem:[#allocation2 + $0x3c] sm:$0xf] %vm1909_vm1, %v12545_v25  ;;  %v2200_v25 = vrot.slane %v2199_v19, 4  ;;  %v1281_v19 = vld [vmem:[%s11289_s12 + $0x68] sm:$0xf] }
 0x1d4   : > { %2444 = vst.msk [vmem:[#allocation2 + $0x3c] sm:$0xf] %vm2428_vm3, %v2357_v45  ;;  %v1508_v35 = vshll.u32 %v1281_v19, 16 }
 0x1d5   : > { %1642 = vrot.lane.b32.xlu2 %v1484_v60, %s11172_s17  ;;  %v2205_v12 = vsel %vm11330_vm5, %v2200_v25, %v12652_v7  ;;  %v591_v60 = vld [vmem:[%s11289_s12 + $0x60] sm:$0xf]  ;;  %v1496_v25 = vshrl.u32 %v12714_v34, 16  ;;  %551 = vst.msk [vmem:[#allocation2 + $0x48] sm:$0xf] %vm532_vm12, %v452_v44 }
 0x1d6   : > { %1847 = vrot.lane.b32.xlu1 %v1759_v23, %s11174_s19  ;;  %v2484_v23 = vld [vmem:[%s11289_s12 + $0x68] sm:$0xf]  ;;  %v818_v21 = vshrl.u32 %v591_v60, 16  ;;  %v821_v15 = vshll.u32 %v591_v60, 16  ;;  %v12846_v44 = vld [vmem:[%s11289_s12 + $0x74] sm:$0xf] }
 0x1d7   : > { %1160 = vrot.lane.b32.xlu0 %v1072_v40, %s11171_s13  ;;  %v12650_v37 = vpop.permute.xlu2 %1154  ;;  %v814_v40 = vor.u32 %v812_v13, %v12706_v63 }
 0x1d8   : > { %v3076_v16 = vpop.permute.xlu1 %3075 }
 0x1d9   : > { %v2355_v30 = vpop.permute.xlu0 %2354 }
 0x1da   : > { %2443 = vst.msk [vmem:[#allocation2 + $0x38] sm:$0xf] %vm2428_vm3, %v2355_v30  ;;  %v815_v30 = vsel %vm11300_vm2, %v807_v46, %v814_v40 }
 0x1db   : > { %2648 = vst.msk [vmem:[#allocation2 + $0x38] sm:$0xf] %vm2633_vm4, %v12570_v2  ;;  %v2919_v2 = vrot.slane %v2917_v11, 4  ;;  %v12733_v11 = vrot.slane %v818_v21, 7 }
 0x1dc   : > { %3164 = vst.msk [vmem:[#allocation2 + $0x38] sm:$0xf] %vm3149_vm6, %v3076_v16  ;;  %v1505_v16 = vshrl.u32 %v1281_v19, 16  ;;  %v1761_v19 = vld [vmem:[%s11289_s12 + $0x64] sm:$0xf] }
 0x1dd   : > { %1849 = vrot.lane.b32.xlu2 %v1760_v54, %s11174_s19  ;;  %v2920_v62 = vor.u32 %v2919_v2, %v2915_v47  ;;  %v1074_v54 = vld [vmem:[%s11289_s12 + $0x5c] sm:$0xf]  ;;  %v453_v2 = vrot.slane %v451_v27, 4 }
 0x1de   : > { %2368 = vrot.lane.b32.xlu1 %v2205_v12, %s11175_s20  ;;  %v1498_v12 = vrot.slane %v1496_v25, 7  ;;  %v12738_v10 = vrot.slane %v1505_v16, 7 }
 0x1df   : > { %1644 = vrot.lane.b32.xlu0 %v1493_v28, %s11172_s17  ;;  %v12672_v17 = vpop.permute.xlu2 %1839  ;;  %v2921_v43 = vrot.slane %v2920_v62, 4  ;;  %v12745_v28 = vld [vmem:[%s11289_s12 + $0x50] sm:$0xf]  ;;  %v823_v62 = vor.u32 %v821_v15, %v12733_v11 }
 0x1e0   : > { %v3391_v18 = vpop.permute.xlu1 %3390  ;;  %v1510_v4 = vor.u32 %v1508_v35, %v12738_v10  ;;  %v1762_v35 = vld [vmem:[%s11289_s12 + $0x68] sm:$0xf] }
 0x1e1   : > { %v2562_v42 = vpop.permute.xlu0 %2561 }
 0x1e2   : > { %2649 = vst.msk [vmem:[#allocation2 + $0x3c] sm:$0xf] %vm2633_vm4, %v2562_v42 }
 0x1e3   : > { %3165 = vst.msk [vmem:[#allocation2 + $0x3c] sm:$0xf] %vm3149_vm6, %v12592_v26  ;;  %v12695_v26 = vrot.slane %v2923_v56, 5  ;;  %v1967_v56 = vld [vmem:[%s11289_s12 + $0x68] sm:$0xf] }
 0x1e4   : > { %3478 = vst.msk [vmem:[#allocation2 + $0x3c] sm:$0xf] %vm3462_vm7, %v3391_v18  ;;  %v1503_v18 = vrot.slane %v1498_v12, 4  ;;  %v2216_v58 = vshrl.u32 %v1967_v56, 16  ;;  %v2212_v39 = vshll.u32 %v1967_v56, 16 }
 0x1e5   : > { %2571 = vrot.lane.b32.xlu2 %v2483_v41, %s11176_s21  ;;  %v2926_v51 = vsel %vm11330_vm5, %v2921_v43, %v12695_v26  ;;  %v816_v41 = vrot.slane %v12706_v63, 4  ;;  %v2209_v43 = vor.u32 %v2208_v38, %v12652_v7  ;;  %v12784_v63 = vld [vmem:[%s11289_s12 + $0x6c] sm:$0xf] }
 0x1e6   : > { %3087 = vrot.lane.b32.xlu1 %v2916_v22, %s11177_s22  ;;  %v1075_v22 = vld [vmem:[%s11289_s12 + $0x60] sm:$0xf]  ;;  %v2222_v40 = vshll.u32 %v12784_v63, 16 }
 0x1e7   : > { %2366 = vrot.lane.b32.xlu0 %v2195_v1, %s11175_s20  ;;  %v12698_v36 = vpop.permute.xlu2 %2360  ;;  %v1511_v1 = vsel %vm11300_vm2, %v1503_v18, %v1510_v4  ;;  %v824_v59 = vsel %vm11300_vm2, %v816_v41, %v823_v62  ;;  %v2210_v7 = vrot.slane %v2209_v43, 4  ;;  %v3207_v18 = vld [vmem:[%s11289_s12 + $0x70] sm:$0xf]  ;;  %v593_v4 = vld [vmem:[%s11289_s12 + $0x68] sm:$0xf]  ;;  %v3324_v62 = vrot.slane %v3322_v52, 4 }
 0x1e8   : > { %v1153_v53 = vpop.permute.xlu1 %1152  ;;  %v12800_v25 = vrot.slane %v2222_v40, 5  ;;  %v3325_v56 = vrot.slane %v3207_v18, 5  ;;  %v12852_v43 = vld [vmem:[%s11289_s12 + $0x74] sm:$0xf] }
 0x1e9   : > { %v3389_v45 = vpop.permute.xlu0 %3388  ;;  %1239 = vst.msk [vmem:[#allocation2 + $0x40] sm:$0xf] %vm1222_vm14, %v1153_v53  ;;  %v1499_v53 = vshll.u32 %v12714_v34, 16 }
 0x1ea   : > { %3477 = vst.msk [vmem:[#allocation2 + $0x38] sm:$0xf] %vm3462_vm7, %v3389_v45  ;;  %v3326_v52 = vsel %vm11371_vm8, %v3324_v62, %v3325_v56 }
 0x1eb   : > { %v1501_v60 = vor.u32 %v1499_v53, %v1498_v12  ;;  %v1282_v53 = vld [vmem:[%s11289_s12 + $0x6c] sm:$0xf] }
 0x1ed   : > { %3089 = vrot.lane.b32.xlu2 %v2926_v51, %s11177_s22  ;;  %v2214_v51 = vrot.slane %v2212_v39, 5 }
 0x1ee   : > { %3402 = vrot.lane.b32.xlu1 %v3323_v49, %s11178_s23  ;;  %v1494_v49 = vrot.slane %v12645_v20, 4 }
 0x1ef   : > { %2573 = vrot.lane.b32.xlu0 %v2484_v23, %s11176_s21  ;;  %v12724_v3 = vpop.permute.xlu2 %3079  ;;  %v2927_v23 = vshrl.u32 %v12675_v55, 16  ;;  %v2215_v21 = vsel %vm11330_vm5, %v2210_v7, %v2214_v51 }
 0x1f0   : > { %v1637_v31 = vpop.permute.xlu1 %1636  ;;  %v1502_v20 = vsel %vm11300_vm2, %v1494_v49, %v1501_v60  ;;  %v3328_v49 = vrot.slane %v12852_v43, 5  ;;  %v1514_v60 = vshrl.u32 %v1282_v53, 16 }
 0x1f1   : > { %v950_v32 = vpop.permute.xlu0 %949  ;;  %v10522_v9 = vld [vmem:[#allocation2 + $0x38] sm:$0xff]  ;;  %v2929_v16 = vrot.slane %v2927_v23, 4 }
 0x1f2   : > { %1035 = vst.msk [vmem:[#allocation2 + $0x44] sm:$0xf] %vm1017_vm13, %v950_v32  ;;  %9513 = vmatmul.msk.bf16.gmra.mxu0 %vm3640_vm9, %v10522_v9  ;;  %v457_v9 = vrot.slane %v12807_v29, 7  ;;  %v2226_v29 = vshrl.u32 %v12784_v63, 16 }
 0x1f3   : > { %1240 = vst.msk [vmem:[#allocation2 + $0x44] sm:$0xf] %vm1222_vm14, %v12650_v37  ;;  %v454_v37 = vrot.slane %v12745_v28, 7 }
 0x1f4   : > { %1722 = vst.msk [vmem:[#allocation2 + $0x44] sm:$0xf] %vm1704_vm15, %v1637_v31  ;;  %v2691_v31 = vld [vmem:[%s11289_s12 + $0x70] sm:$0xf]  ;;  %v459_v27 = vrot.slane %v457_v9, 4 }
 0x1f5   : > { %959 = vrot.lane.b32.xlu2 %v815_v30, %s11173_s18  ;;  %v455_v48 = vsel %vm11490_vm11, %v453_v2, %v454_v37  ;;  %v460_v30 = vrot.slane %v12810_v6, 7  ;;  %v2933_v15 = vshll.u32 %v2691_v31, 16  ;;  %v2937_v2 = vshrl.u32 %v2691_v31, 16 }
 0x1f6   : > { %1164 = vrot.lane.b32.xlu1 %v1074_v54, %s11171_s13  ;;  %552 = vst.msk [vmem:[#allocation2 + $0x4c] sm:$0xf] %vm532_vm12, %v455_v48  ;;  %v836_v48 = vshrl.u32 %v593_v4, 16 }
 0x1f7   : > { %3400 = vrot.lane.b32.xlu0 %v3320_v33, %s11178_s23  ;;  %v12753_v47 = vpop.permute.xlu2 %3394  ;;  %v2930_v33 = vor.u32 %v2929_v16, %v12695_v26  ;;  %v461_v38 = vsel %vm11490_vm11, %v459_v27, %v460_v30  ;;  %v1516_v16 = vrot.slane %v1514_v60, 7  ;;  %v462_v60 = vrot.slane %v460_v30, 4  ;;  %v2487_v30 = vld [vmem:[%s11289_s12 + $0x74] sm:$0xf] }
 0x1f8   : > { %v2359_v42 = vpop.permute.xlu1 %2358  ;;  %554 = vst.msk [vmem:[#allocation2 + $0x54] sm:$0xf] %vm532_vm12, %v461_v38  ;;  %v12858_v39 = vrot.slane %v836_v48, 7 }
 0x1f9   : > { %v1635_v0 = vpop.permute.xlu0 %1634  ;;  %v2931_v26 = vrot.slane %v2930_v33, 4  ;;  %v1512_v33 = vrot.slane %v12738_v10, 4  ;;  %v1521_v63 = vrot.slane %v1516_v16, 4 }
 0x1fa   : > { %1721 = vst.msk [vmem:[#allocation2 + $0x40] sm:$0xf] %vm1704_vm15, %v1635_v0 }
 0x1fb   : > { %1926 = vst.msk [vmem:[#allocation2 + $0x40] sm:$0xf] %vm1909_vm1, %v12672_v17  ;;  %v2218_v17 = vrot.slane %v2216_v58, 4 }
 0x1fc   : > { %2445 = vst.msk [vmem:[#allocation2 + $0x40] sm:$0xf] %vm2428_vm3, %v2359_v42  ;;  %v827_v42 = vshrl.u32 %v12826_v8, 16 }
 0x1fd   : > { %1166 = vrot.lane.b32.xlu2 %v1075_v22, %s11171_s13  ;;  %v2219_v46 = vor.u32 %v2218_v17, %v2214_v51  ;;  %v2939_v22 = vrot.slane %v2937_v2, 4  ;;  %v2485_v17 = vld [vmem:[%s11289_s12 + $0x6c] sm:$0xf]  ;;  %v2943_v51 = vshll.u32 %v12846_v44, 16  ;;  %v825_v2 = vrot.slane %v12733_v11, 4 }
 0x1fe   : > { %1648 = vrot.lane.b32.xlu1 %v1511_v1, %s11172_s17  ;;  %v829_v57 = vrot.slane %v827_v42, 7  ;;  %v1969_v42 = vld [vmem:[%s11289_s12 + $0x70] sm:$0xf] }
 0x1ff   : > { %961 = vrot.lane.b32.xlu0 %v824_v59, %s11173_s18  ;;  %v12781_v45 = vpop.permute.xlu2 %1156  ;;  %v2220_v55 = vrot.slane %v2219_v46, 4  ;;  %v839_v59 = vshll.u32 %v593_v4, 16  ;;  %v12870_v40 = vrot.slane %v2943_v51, 5 }
 0x200   : > { %v2566_v13 = vpop.permute.xlu1 %2565 }
 0x201   : > { %v1842_v34 = vpop.permute.xlu0 %1841  ;;  %v2225_v12 = vsel %vm11330_vm5, %v2220_v55, %v12800_v25  ;;  %v841_v23 = vor.u32 %v839_v59, %v12858_v39  ;;  %v1077_v59 = vld [vmem:[%s11289_s12 + $0x68] sm:$0xf] }
 0x202   : > { %1927 = vst.msk [vmem:[#allocation2 + $0x44] sm:$0xf] %vm1909_vm1, %v1842_v34  ;;  %v834_v34 = vrot.slane %v829_v57, 4 }
 0x203   : > { %2446 = vst.msk [vmem:[#allocation2 + $0x44] sm:$0xf] %vm2428_vm3, %v12698_v36 }
 0x204   : > { %2651 = vst.msk [vmem:[#allocation2 + $0x44] sm:$0xf] %vm2633_vm4, %v2566_v13  ;;  %v3327_v13 = vrot.slane %v3325_v56, 4  ;;  %v842_v31 = vsel %vm11300_vm2, %v834_v34, %v841_v23  ;;  %v2693_v56 = vld [vmem:[%s11289_s12 + $0x78] sm:$0xf] }
 0x205   : > { %1851 = vrot.lane.b32.xlu2 %v1761_v19, %s11174_s19 }
 0x206   : > { %2370 = vrot.lane.b32.xlu1 %v2215_v21, %s11175_s20  ;;  %v3329_v55 = vsel %vm11371_vm8, %v3327_v13, %v3328_v49  ;;  %v12938_v13 = vld [vmem:[%s11289_s12 + $0x5c] sm:$0xf] }
 0x207   : > { %1646 = vrot.lane.b32.xlu0 %v1502_v20, %s11172_s17  ;;  %v12803_v36 = vpop.permute.xlu2 %1640 }
 0x208   : > { %v3393_v32 = vpop.permute.xlu1 %3392 }
 0x209   : > { %v2564_v54 = vpop.permute.xlu0 %2563 }
 0x20a   : > { %2650 = vst.msk [vmem:[#allocation2 + $0x40] sm:$0xf] %vm2633_vm4, %v2564_v54  ;;  %v1283_v54 = vld [vmem:[%s11289_s12 + $0x70] sm:$0xf] }
 0x20b   : > { %3166 = vst.msk [vmem:[#allocation2 + $0x40] sm:$0xf] %vm3149_vm6, %v12724_v3  ;;  %v2935_v3 = vrot.slane %v2933_v15, 5  ;;  %v1523_v28 = vshrl.u32 %v1283_v54, 16  ;;  %v1526_v38 = vshll.u32 %v1283_v54, 16  ;;  %v2947_v54 = vshrl.u32 %v12846_v44, 16 }
 0x20c   : > { %3479 = vst.msk [vmem:[#allocation2 + $0x40] sm:$0xf] %vm3462_vm7, %v3393_v32  ;;  %v1517_v32 = vshll.u32 %v1282_v53, 16  ;;  %v2236_v53 = vshrl.u32 %v1969_v42, 16 }
 0x20d   : > { %2372 = vrot.lane.b32.xlu2 %v2225_v12, %s11175_s20  ;;  %v2936_v1 = vsel %vm11330_vm5, %v2931_v26, %v2935_v3  ;;  %v2940_v7 = vor.u32 %v2939_v22, %v2935_v3  ;;  %v456_v12 = vrot.slane %v454_v37, 4  ;;  %v12905_v4 = vrot.slane %v1523_v28, 7 }
 0x20e   : > { %2577 = vrot.lane.b32.xlu1 %v2486_v61, %s11176_s21  ;;  %v830_v61 = vshll.u32 %v12826_v8, 16  ;;  %v1519_v15 = vor.u32 %v1517_v32, %v1516_v16  ;;  %v2228_v3 = vrot.slane %v2226_v29, 4  ;;  %v2238_v23 = vrot.slane %v2236_v53, 4  ;;  %v1763_v16 = vld [vmem:[%s11289_s12 + $0x6c] sm:$0xf] }
 0x20f   : > { %1853 = vrot.lane.b32.xlu0 %v1762_v35, %s11174_s19  ;;  %v12840_v41 = vpop.permute.xlu2 %2362  ;;  %v2941_v46 = vrot.slane %v2940_v7, 4  ;;  %v1528_v26 = vor.u32 %v1526_v38, %v12905_v4  ;;  %v2488_v29 = vld [vmem:[%s11289_s12 + $0x78] sm:$0xf] }
 0x210   : > { %v954_v0 = vpop.permute.xlu1 %953  ;;  %v832_v8 = vor.u32 %v830_v61, %v829_v57  ;;  %v1520_v10 = vsel %vm11300_vm2, %v1512_v33, %v1519_v15  ;;  %v2229_v22 = vor.u32 %v2228_v3, %v12800_v25  ;;  %v2953_v57 = vshll.u32 %v2693_v56, 16  ;;  %v594_v61 = vld [vmem:[%s11289_s12 + $0x6c] sm:$0xf] }
 0x211   : > { %v3082_v58 = vpop.permute.xlu0 %3081  ;;  %1037 = vst.msk [vmem:[#allocation2 + $0x4c] sm:$0xf] %vm1017_vm13, %v954_v0  ;;  %v2946_v35 = vsel %vm11330_vm5, %v2941_v46, %v12870_v40  ;;  %v1529_v0 = vsel %vm11300_vm2, %v1521_v63, %v1528_v26  ;;  %v463_v46 = vrot.slane %v12938_v13, 7  ;;  %v845_v28 = vshrl.u32 %v594_v61, 16 }
 0x212   : > { %3167 = vst.msk [vmem:[#allocation2 + $0x44] sm:$0xf] %vm3149_vm6, %v3082_v58  ;;  %v833_v11 = vsel %vm11300_vm2, %v825_v2, %v832_v8  ;;  %v2232_v58 = vshll.u32 %v1969_v42, 16  ;;  %v2949_v2 = vrot.slane %v2947_v54, 4  ;;  %v1285_v54 = vld [vmem:[%s11289_s12 + $0x78] sm:$0xf] }
 0x213   : > { %3480 = vst.msk [vmem:[#allocation2 + $0x44] sm:$0xf] %vm3462_vm7, %v12753_v47  ;;  %v464_v6 = vsel %vm11490_vm11, %v462_v60, %v463_v46  ;;  %v847_v38 = vrot.slane %v845_v28, 7 }
 0x214   : > { %v2234_v25 = vrot.slane %v2232_v58, 5  ;;  %555 = vst.msk [vmem:[#allocation2 + $0x58] sm:$0xf] %vm532_vm12, %v464_v6  ;;  %v2950_v26 = vor.u32 %v2949_v2, %v12870_v40  ;;  %v1079_v6 = vld [vmem:[%s11289_s12 + $0x70] sm:$0xf] }
 0x215   : > { %3091 = vrot.lane.b32.xlu2 %v2936_v1, %s11177_s22  ;;  %v1764_v1 = vld [vmem:[%s11289_s12 + $0x70] sm:$0xf] }
 0x216   : > { %3404 = vrot.lane.b32.xlu1 %v3326_v52, %s11178_s23  ;;  %v2957_v52 = vshrl.u32 %v2693_v56, 16  ;;  %v2951_v40 = vrot.slane %v2950_v26, 4  ;;  %v1544_v26 = vshll.u32 %v1285_v54, 16 }
 0x217   : > { %2575 = vrot.lane.b32.xlu0 %v2485_v17, %s11176_s21  ;;  %v12867_v47 = vpop.permute.xlu2 %2569  ;;  %v2230_v17 = vrot.slane %v2229_v22, 4 }
 0x218   : > { %v1639_v19 = vpop.permute.xlu1 %1638  ;;  %v2959_v51 = vrot.slane %v2957_v52, 4  ;;  %v852_v52 = vrot.slane %v847_v38, 4 }
 0x219   : > { %v952_v21 = vpop.permute.xlu0 %951 }
 0x21a   : > { %1036 = vst.msk [vmem:[#allocation2 + $0x48] sm:$0xf] %vm1017_vm13, %v952_v21  ;;  %v10523_v20 = vld [vmem:[#allocation2 + $0x40] sm:$0xff] }
 0x21b   : > { %1241 = vst.msk [vmem:[#allocation2 + $0x48] sm:$0xf] %vm1222_vm14, %v12781_v45  ;;  %9514 = vmatmul.msk.bf16.gmra.mxu0 %vm3640_vm9, %v10523_v20  ;;  %v458_v45 = vsel %vm11490_vm11, %v456_v12, %v457_v9  ;;  %v1076_v9 = vld [vmem:[%s11289_s12 + $0x64] sm:$0xf]  ;;  %v12947_v20 = vld [vmem:[%s11289_s12 + $0x74] sm:$0xf]  ;;  %v2239_v12 = vor.u32 %v2238_v23, %v2234_v25 }
 0x21c   : > { %1723 = vst.msk [vmem:[#allocation2 + $0x48] sm:$0xf] %vm1704_vm15, %v1639_v19  ;;  %v12943_v19 = vld [vmem:[%s11289_s12 + $0x7c] sm:$0xf] }
 0x21d   : > { %3406 = vrot.lane.b32.xlu2 %v3329_v55, %s11178_s23  ;;  %553 = vst.msk [vmem:[#allocation2 + $0x50] sm:$0xf] %vm532_vm12, %v458_v45  ;;  %v2235_v55 = vsel %vm11330_vm5, %v2230_v17, %v2234_v25  ;;  %v2963_v32 = vshll.u32 %v12943_v19, 16  ;;  %v2240_v15 = vrot.slane %v2239_v12, 4  ;;  %v13038_v12 = vld [vmem:[%s11289_s12 + $0x60] sm:$0xf] }
 0x21e   : > { %965 = vrot.lane.b32.xlu1 %v842_v31, %s11173_s18 }
 0x21f   : > { %3093 = vrot.lane.b32.xlu0 %v2946_v35, %s11177_s22  ;;  %v12898_v37 = vpop.permute.xlu2 %3396  ;;  %v2242_v35 = vshll.u32 %v12947_v20, 16  ;;  %v12972_v44 = vrot.slane %v2963_v32, 5 }
 0x220   : > { %v1846_v27 = vpop.permute.xlu1 %1845 }
 0x221   : > { %v1159_v18 = vpop.permute.xlu0 %1158 }
 0x222   : > { %1242 = vst.msk [vmem:[#allocation2 + $0x4c] sm:$0xf] %vm1222_vm14, %v1159_v18  ;;  %v3209_v18 = vld [vmem:[%s11289_s12 + $0x78] sm:$0xf] }
 0x223   : > { %1724 = vst.msk [vmem:[#allocation2 + $0x4c] sm:$0xf] %vm1704_vm15, %v12803_v36  ;;  %v3331_v3 = vrot.slane %v3209_v18, 5 }
 0x224   : > { %1929 = vst.msk [vmem:[#allocation2 + $0x4c] sm:$0xf] %vm1909_vm1, %v1846_v27  ;;  %v12974_v27 = vrot.slane %v2242_v35, 5 }
 0x225   : > { %1168 = vrot.lane.b32.xlu2 %v1076_v9, %s11171_s13 }
 0x226   : > { %1650 = vrot.lane.b32.xlu1 %v1520_v10, %s11172_s17  ;;  %v848_v10 = vshll.u32 %v594_v61, 16  ;;  %v2245_v63 = vsel %vm11330_vm5, %v2240_v15, %v12974_v27  ;;  %v465_v61 = vrot.slane %v463_v46, 4 }
 0x227   : > { %963 = vrot.lane.b32.xlu0 %v833_v11, %s11173_s18  ;;  %v958_v36 = vpop.permute.xlu2 %957  ;;  %v595_v11 = vld [vmem:[%s11289_s12 + $0x70] sm:$0xf] }
 0x228   : > { %1039 = vst.msk [vmem:[#allocation2 + $0x54] sm:$0xf] %vm1017_vm13, %v958_v36  ;;  %v2568_v62 = vpop.permute.xlu1 %2567  ;;  %v854_v36 = vshrl.u32 %v595_v11, 16  ;;  %v850_v56 = vor.u32 %v848_v10, %v847_v38  ;;  %v857_v22 = vshll.u32 %v595_v11, 16  ;;  %v1765_v38 = vld [vmem:[%s11289_s12 + $0x74] sm:$0xf] }
 0x229   : > { %v1844_v48 = vpop.permute.xlu0 %1843 }
 0x22a   : > { %1928 = vst.msk [vmem:[#allocation2 + $0x48] sm:$0xf] %vm1909_vm1, %v1844_v48 }
 0x22b   : > { %2447 = vst.msk [vmem:[#allocation2 + $0x48] sm:$0xf] %vm2428_vm3, %v12840_v41  ;;  %v12935_v41 = vrot.slane %v2953_v57, 5  ;;  %v13012_v57 = vld [vmem:[%s11289_s12 + $0x7c] sm:$0xf] }
 0x22c   : > { %2652 = vst.msk [vmem:[#allocation2 + $0x48] sm:$0xf] %vm2633_vm4, %v2568_v62  ;;  %v843_v62 = vrot.slane %v12858_v39, 4  ;;  %v3334_v60 = vrot.slane %v13012_v57, 5 }
 0x22d   : > { %1652 = vrot.lane.b32.xlu2 %v1529_v0, %s11172_s17  ;;  %v2960_v31 = vor.u32 %v2959_v51, %v12935_v41  ;;  %v2956_v39 = vsel %vm11330_vm5, %v2951_v40, %v12935_v41  ;;  %v3333_v51 = vrot.slane %v3331_v3, 4  ;;  %v1971_v41 = vld [vmem:[%s11289_s12 + $0x78] sm:$0xf]  ;;  %v2695_v40 = vld [vmem:[%s11289_s12 + $0x80] sm:$0xf] }
 0x22e   : > { %1857 = vrot.lane.b32.xlu1 %v1764_v1, %s11174_s19  ;;  %v851_v58 = vsel %vm11300_vm2, %v843_v62, %v850_v56  ;;  %v1284_v1 = vld [vmem:[%s11289_s12 + $0x74] sm:$0xf] }
 0x22f   : > { %1170 = vrot.lane.b32.xlu0 %v1077_v59, %s11171_s13  ;;  %v12933_v7 = vpop.permute.xlu2 %1642  ;;  %v2961_v45 = vrot.slane %v2960_v31, 4  ;;  %v1532_v53 = vshrl.u32 %v1284_v1, 16  ;;  %v2256_v31 = vshrl.u32 %v1971_v41, 16  ;;  %v3335_v32 = vsel %vm11371_vm8, %v3333_v51, %v3334_v60  ;;  %v13100_v51 = vld [vmem:[%s11289_s12 + $0x84] sm:$0xf] }
 0x230   : > { %v3086_v34 = vpop.permute.xlu1 %3085 }
 0x231   : > { %v2365_v21 = vpop.permute.xlu0 %2364  ;;  %v2966_v9 = vsel %vm11330_vm5, %v2961_v45, %v12972_v44  ;;  %v466_v45 = vrot.slane %v13038_v12, 7  ;;  %v2258_v15 = vrot.slane %v2256_v31, 4  ;;  %v596_v31 = vld [vmem:[%s11289_s12 + $0x74] sm:$0xf] }
 0x232   : > { %2448 = vst.msk [vmem:[#allocation2 + $0x4c] sm:$0xf] %vm2428_vm3, %v2365_v21 }
 0x233   : > { %2653 = vst.msk [vmem:[#allocation2 + $0x4c] sm:$0xf] %vm2633_vm4, %v12867_v47  ;;  %v467_v13 = vsel %vm11490_vm11, %v465_v61, %v466_v45 }
 0x234   : > { %3169 = vst.msk [vmem:[#allocation2 + $0x4c] sm:$0xf] %vm3149_vm6, %v3086_v34 }
 0x235   : > { %2374 = vrot.lane.b32.xlu2 %v2235_v55, %s11175_s20  ;;  %v13024_v55 = vrot.slane %v1532_v53, 7  ;;  %556 = vst.msk [vmem:[#allocation2 + $0x5c] sm:$0xf] %vm532_vm12, %v467_v13 }
 0x236   : > { %2579 = vrot.lane.b32.xlu1 %v2487_v30, %s11176_s21  ;;  %v2252_v30 = vshll.u32 %v1971_v41, 16 }
 0x237   : > { %1855 = vrot.lane.b32.xlu0 %v1763_v16, %s11174_s19  ;;  %v12970_v47 = vpop.permute.xlu2 %1849  ;;  %v1535_v16 = vshll.u32 %v1284_v1, 16  ;;  %v1539_v62 = vrot.slane %v13024_v55, 4 }
 0x238   : > { %v956_v33 = vpop.permute.xlu1 %955 }
 0x239   : > { %v3084_v8 = vpop.permute.xlu0 %3083  ;;  %1038 = vst.msk [vmem:[#allocation2 + $0x50] sm:$0xf] %vm1017_vm13, %v956_v33  ;;  %v1537_v35 = vor.u32 %v1535_v16, %v13024_v55  ;;  %v13047_v33 = vrot.slane %v2252_v30, 5  ;;  %v2983_v16 = vshll.u32 %v13100_v51, 16 }
 0x23a   : > { %3168 = vst.msk [vmem:[#allocation2 + $0x48] sm:$0xf] %vm3149_vm6, %v3084_v8  ;;  %v1541_v8 = vshrl.u32 %v1285_v54, 16  ;;  %v13116_v54 = vld [vmem:[%s11289_s12 + $0x84] sm:$0xf] }
 0x23b   : > { %3481 = vst.msk [vmem:[#allocation2 + $0x48] sm:$0xf] %vm3462_vm7, %v12898_v37  ;;  %v3330_v37 = vrot.slane %v3328_v49, 4  ;;  %v13002_v49 = vrot.slane %v854_v36, 7  ;;  %v2259_v10 = vor.u32 %v2258_v15, %v13047_v33 }
 0x23d   : > { %2581 = vrot.lane.b32.xlu2 %v2488_v29, %s11176_s21  ;;  %v3332_v43 = vsel %vm11371_vm8, %v3330_v37, %v3331_v3  ;;  %v859_v59 = vor.u32 %v857_v22, %v13002_v49  ;;  %v2246_v29 = vshrl.u32 %v12947_v20, 16  ;;  %v13070_v20 = vrot.slane %v1541_v8, 7 }
 0x23e   : > { %3097 = vrot.lane.b32.xlu1 %v2966_v9, %s11177_s22  ;;  %v2967_v9 = vshrl.u32 %v12943_v19, 16  ;;  %v2977_v22 = vshrl.u32 %v2695_v40, 16 }
 0x23f   : > { %2376 = vrot.lane.b32.xlu0 %v2245_v63, %s11175_s20  ;;  %v12995_v42 = vpop.permute.xlu2 %2571  ;;  %v860_v21 = vsel %vm11300_vm2, %v852_v52, %v859_v59  ;;  %v1078_v63 = vld [vmem:[%s11289_s12 + $0x6c] sm:$0xf]  ;;  %v1546_v56 = vor.u32 %v1544_v26, %v13070_v20 }
 0x240   : > { %v1163_v48 = vpop.permute.xlu1 %1162  ;;  %v2969_v3 = vrot.slane %v2967_v9, 4  ;;  %v13139_v9 = vld [vmem:[%s11289_s12 + $0x7c] sm:$0xf] }
 0x241   : > { %v3399_v0 = vpop.permute.xlu0 %3398  ;;  %1244 = vst.msk [vmem:[#allocation2 + $0x54] sm:$0xf] %vm1222_vm14, %v1163_v48  ;;  %v2248_v48 = vrot.slane %v2246_v29, 4  ;;  %v1547_v52 = vsel %vm11300_vm2, %v1539_v62, %v1546_v56  ;;  %v3336_v56 = vrot.slane %v3334_v60, 4 }
 0x242   : > { %3482 = vst.msk [vmem:[#allocation2 + $0x4c] sm:$0xf] %vm3462_vm7, %v3399_v0  ;;  %v2970_v1 = vor.u32 %v2969_v3, %v12972_v44 }
 0x243   : > { %v2249_v59 = vor.u32 %v2248_v48, %v12974_v27  ;;  %v2489_v27 = vld [vmem:[%s11289_s12 + $0x7c] sm:$0xf] }
 0x244   : > { %v2971_v44 = vrot.slane %v2970_v1, 4 }
 0x245   : > { %3408 = vrot.lane.b32.xlu2 %v3332_v43, %s11178_s23  ;;  %v1766_v43 = vld [vmem:[%s11289_s12 + $0x78] sm:$0xf] }
 0x246   : > { %967 = vrot.lane.b32.xlu1 %v851_v58, %s11173_s18 }
 0x247   : > { %3095 = vrot.lane.b32.xlu0 %v2956_v39, %s11177_s22  ;;  %v13017_v17 = vpop.permute.xlu2 %3089  ;;  %v2973_v39 = vshll.u32 %v2695_v40, 16 }
 0x248   : > { %v1848_v25 = vpop.permute.xlu1 %1847 }
 0x249   : > { %v1161_v34 = vpop.permute.xlu0 %1160  ;;  %v10524_v23 = vld [vmem:[#allocation2 + $0x48] sm:$0xff] }
 0x24a   : > { %1243 = vst.msk [vmem:[#allocation2 + $0x50] sm:$0xf] %vm1222_vm14, %v1161_v34  ;;  %9515 = vmatmul.msk.bf16.gmra.mxu0 %vm3640_vm9, %v10524_v23  ;;  %v2250_v34 = vrot.slane %v2249_v59, 4  ;;  %v3211_v23 = vld [vmem:[%s11289_s12 + $0x80] sm:$0xf] }
 0x24b   : > { %1725 = vst.msk [vmem:[#allocation2 + $0x50] sm:$0xf] %vm1704_vm15, %v12933_v7  ;;  %v1530_v7 = vrot.slane %v12905_v4, 4  ;;  %v13051_v4 = vld [vmem:[%s11289_s12 + $0x7c] sm:$0xf]  ;;  %v3337_v30 = vrot.slane %v3211_v23, 5 }
 0x24c   : > { %1930 = vst.msk [vmem:[#allocation2 + $0x50] sm:$0xf] %vm1909_vm1, %v1848_v25  ;;  %v2262_v11 = vshll.u32 %v13051_v4, 16  ;;  %v2975_v25 = vrot.slane %v2973_v39, 5  ;;  %v2266_v48 = vshrl.u32 %v13051_v4, 16 }
 0x24d   : > { %969 = vrot.lane.b32.xlu2 %v860_v21, %s11173_s18  ;;  %v1538_v18 = vsel %vm11300_vm2, %v1530_v7, %v1537_v35  ;;  %v863_v35 = vshrl.u32 %v596_v31, 16  ;;  %v347_v4 = vld [vmem:[%s11289_s12 + $0x64] sm:$0xf]  ;;  %v3338_v1 = vsel %vm11371_vm8, %v3336_v56, %v3337_v30  ;;  %v13232_v56 = vld [vmem:[%s11289_s12 + $0x6c] sm:$0xf] }
 0x24e   : > { %1174 = vrot.lane.b32.xlu1 %v1079_v6, %s11171_s13  ;;  %v13077_v37 = vrot.slane %v2262_v11, 5  ;;  %v2976_v6 = vsel %vm11330_vm5, %v2971_v44, %v2975_v25  ;;  %v861_v11 = vrot.slane %v13002_v49, 4  ;;  %v469_v59 = vrot.slane %v347_v4, 7  ;;  %v2492_v4 = vld [vmem:[%s11289_s12 + $0x88] sm:$0xf] }
 0x24f   : > { %3410 = vrot.lane.b32.xlu0 %v3335_v32, %s11178_s23  ;;  %v960_v28 = vpop.permute.xlu2 %959  ;;  %v2255_v32 = vsel %vm11330_vm5, %v2250_v34, %v13047_v33  ;;  %v3340_v33 = vrot.slane %v13116_v54, 5  ;;  %v13131_v13 = vrot.slane %v863_v35, 7  ;;  %v468_v44 = vrot.slane %v466_v45, 4 }
 0x250   : > { %1040 = vst.msk [vmem:[#allocation2 + $0x58] sm:$0xf] %vm1017_vm13, %v960_v28  ;;  %v2369_v2 = vpop.permute.xlu1 %2368  ;;  %v3339_v28 = vrot.slane %v3337_v30, 4  ;;  %v2268_v23 = vrot.slane %v2266_v48, 4  ;;  %v13235_v48 = vld [vmem:[%s11289_s12 + $0x70] sm:$0xf] }
 0x251   : > { %v1645_v46 = vpop.permute.xlu0 %1644 }
 0x252   : > { %1726 = vst.msk [vmem:[#allocation2 + $0x54] sm:$0xf] %vm1704_vm15, %v1645_v46  ;;  %v866_v46 = vshll.u32 %v596_v31, 16  ;;  %v3341_v29 = vsel %vm11371_vm8, %v3339_v28, %v3340_v33  ;;  %v470_v31 = vsel %vm11490_vm11, %v468_v44, %v469_v59  ;;  %v13251_v44 = vld [vmem:[%s11289_s12 + $0x7c] sm:$0xf] }
 0x253   : > { %1931 = vst.msk [vmem:[#allocation2 + $0x54] sm:$0xf] %vm1909_vm1, %v12970_v47  ;;  %v2260_v47 = vrot.slane %v2259_v10, 4  ;;  %v1287_v10 = vld [vmem:[%s11289_s12 + $0x80] sm:$0xf] }
 0x254   : > { %2450 = vst.msk [vmem:[#allocation2 + $0x54] sm:$0xf] %vm2428_vm3, %v2369_v2  ;;  %v1562_v60 = vshll.u32 %v1287_v10, 16 }
 0x255   : > { %1654 = vrot.lane.b32.xlu2 %v1538_v18, %s11172_s17  ;;  %v2265_v58 = vsel %vm11330_vm5, %v2260_v47, %v13077_v37  ;;  %v597_v18 = vld [vmem:[%s11289_s12 + $0x78] sm:$0xf]  ;;  %v1550_v47 = vshrl.u32 %v13139_v9, 16  ;;  %557 = vst.msk [vmem:[#allocation2 + $0x60] sm:$0xf] %vm532_vm12, %v470_v31 }
 0x256   : > { %1859 = vrot.lane.b32.xlu1 %v1765_v38, %s11174_s19  ;;  %v2490_v38 = vld [vmem:[%s11289_s12 + $0x80] sm:$0xf]  ;;  %v872_v26 = vshrl.u32 %v597_v18, 16  ;;  %v875_v39 = vshll.u32 %v597_v18, 16  ;;  %v13271_v31 = vld [vmem:[%s11289_s12 + $0x8c] sm:$0xf] }
 0x257   : > { %1172 = vrot.lane.b32.xlu0 %v1078_v63, %s11171_s13  ;;  %v13075_v19 = vpop.permute.xlu2 %1166  ;;  %v868_v63 = vor.u32 %v866_v46, %v13131_v13 }
 0x258   : > { %v3088_v36 = vpop.permute.xlu1 %3087 }
 0x259   : > { %v2367_v0 = vpop.permute.xlu0 %2366 }
 0x25a   : > { %2449 = vst.msk [vmem:[#allocation2 + $0x50] sm:$0xf] %vm2428_vm3, %v2367_v0  ;;  %v869_v0 = vsel %vm11300_vm2, %v861_v11, %v868_v63 }
 0x25b   : > { %2654 = vst.msk [vmem:[#allocation2 + $0x50] sm:$0xf] %vm2633_vm4, %v12995_v42  ;;  %v2979_v42 = vrot.slane %v2977_v22, 4  ;;  %v13158_v22 = vrot.slane %v872_v26, 7 }
 0x25c   : > { %3170 = vst.msk [vmem:[#allocation2 + $0x50] sm:$0xf] %vm3149_vm6, %v3088_v36  ;;  %v1559_v36 = vshrl.u32 %v1287_v10, 16  ;;  %v1767_v10 = vld [vmem:[%s11289_s12 + $0x7c] sm:$0xf] }
 0x25d   : > { %1861 = vrot.lane.b32.xlu2 %v1766_v43, %s11174_s19  ;;  %v2980_v55 = vor.u32 %v2979_v42, %v2975_v25  ;;  %v1080_v43 = vld [vmem:[%s11289_s12 + $0x74] sm:$0xf]  ;;  %v471_v42 = vrot.slane %v469_v59, 4 }
 0x25e   : > { %2380 = vrot.lane.b32.xlu1 %v2265_v58, %s11175_s20  ;;  %v1552_v58 = vrot.slane %v1550_v47, 7  ;;  %v13163_v57 = vrot.slane %v1559_v36, 7 }
 0x25f   : > { %1656 = vrot.lane.b32.xlu0 %v1547_v52, %s11172_s17  ;;  %v13097_v53 = vpop.permute.xlu2 %1851  ;;  %v2981_v7 = vrot.slane %v2980_v55, 4  ;;  %v13170_v52 = vld [vmem:[%s11289_s12 + $0x68] sm:$0xf]  ;;  %v877_v55 = vor.u32 %v875_v39, %v13158_v22 }
 0x260   : > { %v3403_v41 = vpop.permute.xlu1 %3402  ;;  %v1564_v34 = vor.u32 %v1562_v60, %v13163_v57  ;;  %v1768_v60 = vld [vmem:[%s11289_s12 + $0x80] sm:$0xf] }
 0x261   : > { %v2574_v21 = vpop.permute.xlu0 %2573 }
 0x262   : > { %2655 = vst.msk [vmem:[#allocation2 + $0x54] sm:$0xf] %vm2633_vm4, %v2574_v21 }
 0x263   : > { %3171 = vst.msk [vmem:[#allocation2 + $0x54] sm:$0xf] %vm3149_vm6, %v13017_v17  ;;  %v13120_v17 = vrot.slane %v2983_v16, 5  ;;  %v1973_v16 = vld [vmem:[%s11289_s12 + $0x80] sm:$0xf] }
 0x264   : > { %3484 = vst.msk [vmem:[#allocation2 + $0x54] sm:$0xf] %vm3462_vm7, %v3403_v41  ;;  %v1557_v41 = vrot.slane %v1552_v58, 4  ;;  %v2276_v30 = vshrl.u32 %v1973_v16, 16  ;;  %v2272_v35 = vshll.u32 %v1973_v16, 16 }
 0x265   : > { %2583 = vrot.lane.b32.xlu2 %v2489_v27, %s11176_s21  ;;  %v2986_v8 = vsel %vm11330_vm5, %v2981_v7, %v13120_v17  ;;  %v870_v27 = vrot.slane %v13131_v13, 4  ;;  %v2269_v7 = vor.u32 %v2268_v23, %v13077_v37  ;;  %v13209_v13 = vld [vmem:[%s11289_s12 + $0x84] sm:$0xf] }
 0x266   : > { %3099 = vrot.lane.b32.xlu1 %v2976_v6, %s11177_s22  ;;  %v1081_v6 = vld [vmem:[%s11289_s12 + $0x78] sm:$0xf]  ;;  %v2282_v63 = vshll.u32 %v13209_v13, 16 }
 0x267   : > { %2378 = vrot.lane.b32.xlu0 %v2255_v32, %s11175_s20  ;;  %v13123_v61 = vpop.permute.xlu2 %2372  ;;  %v1565_v32 = vsel %vm11300_vm2, %v1557_v41, %v1564_v34  ;;  %v878_v28 = vsel %vm11300_vm2, %v870_v27, %v877_v55  ;;  %v2270_v37 = vrot.slane %v2269_v7, 4  ;;  %v3213_v41 = vld [vmem:[%s11289_s12 + $0x88] sm:$0xf]  ;;  %v599_v34 = vld [vmem:[%s11289_s12 + $0x80] sm:$0xf]  ;;  %v3342_v55 = vrot.slane %v3340_v33, 4 }
 0x268   : > { %v1165_v15 = vpop.permute.xlu1 %1164  ;;  %v13225_v47 = vrot.slane %v2282_v63, 5  ;;  %v3343_v16 = vrot.slane %v3213_v41, 5  ;;  %v13277_v7 = vld [vmem:[%s11289_s12 + $0x8c] sm:$0xf] }
 0x269   : > { %v3401_v2 = vpop.permute.xlu0 %3400  ;;  %1245 = vst.msk [vmem:[#allocation2 + $0x58] sm:$0xf] %vm1222_vm14, %v1165_v15  ;;  %v1553_v15 = vshll.u32 %v13139_v9, 16 }
 0x26a   : > { %3483 = vst.msk [vmem:[#allocation2 + $0x50] sm:$0xf] %vm3462_vm7, %v3401_v2  ;;  %v3344_v33 = vsel %vm11371_vm8, %v3342_v55, %v3343_v16 }
 0x26b   : > { %v1555_v18 = vor.u32 %v1553_v15, %v1552_v58  ;;  %v1288_v15 = vld [vmem:[%s11289_s12 + $0x84] sm:$0xf] }
 0x26d   : > { %3101 = vrot.lane.b32.xlu2 %v2986_v8, %s11177_s22  ;;  %v2274_v8 = vrot.slane %v2272_v35, 5 }
 0x26e   : > { %3414 = vrot.lane.b32.xlu1 %v3341_v29, %s11178_s23  ;;  %v1548_v29 = vrot.slane %v13070_v20, 4 }
 0x26f   : > { %2585 = vrot.lane.b32.xlu0 %v2490_v38, %s11176_s21  ;;  %v13149_v3 = vpop.permute.xlu2 %3091  ;;  %v2987_v38 = vshrl.u32 %v13100_v51, 16  ;;  %v2275_v26 = vsel %vm11330_vm5, %v2270_v37, %v2274_v8 }
 0x270   : > { %v1649_v62 = vpop.permute.xlu1 %1648  ;;  %v1556_v20 = vsel %vm11300_vm2, %v1548_v29, %v1555_v18  ;;  %v3346_v29 = vrot.slane %v13277_v7, 5  ;;  %v1568_v18 = vshrl.u32 %v1288_v15, 16 }
 0x271   : > { %v962_v40 = vpop.permute.xlu0 %961  ;;  %v10525_v49 = vld [vmem:[#allocation2 + $0x50] sm:$0xff]  ;;  %v2989_v36 = vrot.slane %v2987_v38, 4 }
 0x272   : > { %1041 = vst.msk [vmem:[#allocation2 + $0x5c] sm:$0xf] %vm1017_vm13, %v962_v40  ;;  %9516 = vmatmul.msk.bf16.gmra.mxu0 %vm3640_vm9, %v10525_v49  ;;  %v475_v49 = vrot.slane %v13232_v56, 7  ;;  %v2286_v56 = vshrl.u32 %v13209_v13, 16 }
 0x273   : > { %1246 = vst.msk [vmem:[#allocation2 + $0x5c] sm:$0xf] %vm1222_vm14, %v13075_v19  ;;  %v472_v19 = vrot.slane %v13170_v52, 7 }
 0x274   : > { %1728 = vst.msk [vmem:[#allocation2 + $0x5c] sm:$0xf] %vm1704_vm15, %v1649_v62  ;;  %v2697_v62 = vld [vmem:[%s11289_s12 + $0x88] sm:$0xf]  ;;  %v477_v59 = vrot.slane %v475_v49, 4 }
 0x275   : > { %971 = vrot.lane.b32.xlu2 %v869_v0, %s11173_s18  ;;  %v473_v12 = vsel %vm11490_vm11, %v471_v42, %v472_v19  ;;  %v478_v0 = vrot.slane %v13235_v48, 7  ;;  %v2993_v39 = vshll.u32 %v2697_v62, 16  ;;  %v2997_v42 = vshrl.u32 %v2697_v62, 16 }
 0x276   : > { %1176 = vrot.lane.b32.xlu1 %v1080_v43, %s11171_s13  ;;  %558 = vst.msk [vmem:[#allocation2 + $0x64] sm:$0xf] %vm532_vm12, %v473_v12  ;;  %v890_v12 = vshrl.u32 %v599_v34, 16 }
 0x277   : > { %3412 = vrot.lane.b32.xlu0 %v3338_v1, %s11178_s23  ;;  %v13178_v25 = vpop.permute.xlu2 %3406  ;;  %v2990_v1 = vor.u32 %v2989_v36, %v13120_v17  ;;  %v479_v23 = vsel %vm11490_vm11, %v477_v59, %v478_v0  ;;  %v1570_v36 = vrot.slane %v1568_v18, 7  ;;  %v480_v18 = vrot.slane %v478_v0, 4  ;;  %v2493_v0 = vld [vmem:[%s11289_s12 + $0x8c] sm:$0xf] }
 0x278   : > { %v2371_v21 = vpop.permute.xlu1 %2370  ;;  %560 = vst.msk [vmem:[#allocation2 + $0x6c] sm:$0xf] %vm532_vm12, %v479_v23  ;;  %v13283_v35 = vrot.slane %v890_v12, 7 }
 0x279   : > { %v1647_v45 = vpop.permute.xlu0 %1646  ;;  %v2991_v17 = vrot.slane %v2990_v1, 4  ;;  %v1566_v1 = vrot.slane %v13163_v57, 4  ;;  %v1575_v13 = vrot.slane %v1570_v36, 4 }
 0x27a   : > { %1727 = vst.msk [vmem:[#allocation2 + $0x58] sm:$0xf] %vm1704_vm15, %v1647_v45 }
 0x27b   : > { %1932 = vst.msk [vmem:[#allocation2 + $0x58] sm:$0xf] %vm1909_vm1, %v13097_v53  ;;  %v2278_v53 = vrot.slane %v2276_v30, 4 }
 0x27c   : > { %2451 = vst.msk [vmem:[#allocation2 + $0x58] sm:$0xf] %vm2428_vm3, %v2371_v21  ;;  %v881_v21 = vshrl.u32 %v13251_v44, 16 }
 0x27d   : > { %1178 = vrot.lane.b32.xlu2 %v1081_v6, %s11171_s13  ;;  %v2279_v11 = vor.u32 %v2278_v53, %v2274_v8  ;;  %v2999_v6 = vrot.slane %v2997_v42, 4  ;;  %v2491_v53 = vld [vmem:[%s11289_s12 + $0x84] sm:$0xf]  ;;  %v3003_v8 = vshll.u32 %v13271_v31, 16  ;;  %v879_v42 = vrot.slane %v13158_v22, 4 }
 0x27e   : > { %1660 = vrot.lane.b32.xlu1 %v1565_v32, %s11172_s17  ;;  %v883_v54 = vrot.slane %v881_v21, 7  ;;  %v1975_v21 = vld [vmem:[%s11289_s12 + $0x88] sm:$0xf] }
 0x27f   : > { %973 = vrot.lane.b32.xlu0 %v878_v28, %s11173_s18  ;;  %v13206_v2 = vpop.permute.xlu2 %1168  ;;  %v2280_v51 = vrot.slane %v2279_v11, 4  ;;  %v893_v28 = vshll.u32 %v599_v34, 16  ;;  %v13295_v63 = vrot.slane %v3003_v8, 5 }
 0x280   : > { %v2578_v46 = vpop.permute.xlu1 %2577 }
 0x281   : > { %v1854_v9 = vpop.permute.xlu0 %1853  ;;  %v2285_v58 = vsel %vm11330_vm5, %v2280_v51, %v13225_v47  ;;  %v895_v38 = vor.u32 %v893_v28, %v13283_v35  ;;  %v1083_v28 = vld [vmem:[%s11289_s12 + $0x80] sm:$0xf] }
 0x282   : > { %1933 = vst.msk [vmem:[#allocation2 + $0x5c] sm:$0xf] %vm1909_vm1, %v1854_v9  ;;  %v888_v9 = vrot.slane %v883_v54, 4 }
 0x283   : > { %2452 = vst.msk [vmem:[#allocation2 + $0x5c] sm:$0xf] %vm2428_vm3, %v13123_v61 }
 0x284   : > { %2657 = vst.msk [vmem:[#allocation2 + $0x5c] sm:$0xf] %vm2633_vm4, %v2578_v46  ;;  %v3345_v46 = vrot.slane %v3343_v16, 4  ;;  %v896_v62 = vsel %vm11300_vm2, %v888_v9, %v895_v38  ;;  %v2699_v16 = vld [vmem:[%s11289_s12 + $0x90] sm:$0xf] }
 0x285   : > { %1863 = vrot.lane.b32.xlu2 %v1767_v10, %s11174_s19 }
 0x286   : > { %2382 = vrot.lane.b32.xlu1 %v2275_v26, %s11175_s20  ;;  %v3347_v51 = vsel %vm11371_vm8, %v3345_v46, %v3346_v29  ;;  %v13363_v46 = vld [vmem:[%s11289_s12 + $0x74] sm:$0xf] }
 0x287   : > { %1658 = vrot.lane.b32.xlu0 %v1556_v20, %s11172_s17  ;;  %v13228_v61 = vpop.permute.xlu2 %1652 }
 0x288   : > { %v3405_v40 = vpop.permute.xlu1 %3404 }
 0x289   : > { %v2576_v43 = vpop.permute.xlu0 %2575 }
 0x28a   : > { %2656 = vst.msk [vmem:[#allocation2 + $0x58] sm:$0xf] %vm2633_vm4, %v2576_v43  ;;  %v1289_v43 = vld [vmem:[%s11289_s12 + $0x88] sm:$0xf] }
 0x28b   : > { %3172 = vst.msk [vmem:[#allocation2 + $0x58] sm:$0xf] %vm3149_vm6, %v13149_v3  ;;  %v2995_v3 = vrot.slane %v2993_v39, 5  ;;  %v1577_v52 = vshrl.u32 %v1289_v43, 16  ;;  %v1580_v23 = vshll.u32 %v1289_v43, 16  ;;  %v3007_v43 = vshrl.u32 %v13271_v31, 16 }
 0x28c   : > { %3485 = vst.msk [vmem:[#allocation2 + $0x58] sm:$0xf] %vm3462_vm7, %v3405_v40  ;;  %v1571_v40 = vshll.u32 %v1288_v15, 16  ;;  %v2296_v15 = vshrl.u32 %v1975_v21, 16 }
 0x28d   : > { %2384 = vrot.lane.b32.xlu2 %v2285_v58, %s11175_s20  ;;  %v2996_v32 = vsel %vm11330_vm5, %v2991_v17, %v2995_v3  ;;  %v3000_v37 = vor.u32 %v2999_v6, %v2995_v3  ;;  %v474_v58 = vrot.slane %v472_v19, 4  ;;  %v13330_v34 = vrot.slane %v1577_v52, 7 }
 0x28e   : > { %2589 = vrot.lane.b32.xlu1 %v2492_v4, %s11176_s21  ;;  %v884_v4 = vshll.u32 %v13251_v44, 16  ;;  %v1573_v39 = vor.u32 %v1571_v40, %v1570_v36  ;;  %v2288_v3 = vrot.slane %v2286_v56, 4  ;;  %v2298_v38 = vrot.slane %v2296_v15, 4  ;;  %v1769_v36 = vld [vmem:[%s11289_s12 + $0x84] sm:$0xf] }
 0x28f   : > { %1865 = vrot.lane.b32.xlu0 %v1768_v60, %s11174_s19  ;;  %v13265_v27 = vpop.permute.xlu2 %2374  ;;  %v3001_v11 = vrot.slane %v3000_v37, 4  ;;  %v1582_v17 = vor.u32 %v1580_v23, %v13330_v34  ;;  %v2494_v56 = vld [vmem:[%s11289_s12 + $0x90] sm:$0xf] }
 0x290   : > { %v966_v45 = vpop.permute.xlu1 %965  ;;  %v886_v44 = vor.u32 %v884_v4, %v883_v54  ;;  %v1574_v57 = vsel %vm11300_vm2, %v1566_v1, %v1573_v39  ;;  %v2289_v6 = vor.u32 %v2288_v3, %v13225_v47  ;;  %v3013_v54 = vshll.u32 %v2699_v16, 16  ;;  %v600_v4 = vld [vmem:[%s11289_s12 + $0x84] sm:$0xf] }
 0x291   : > { %v3094_v30 = vpop.permute.xlu0 %3093  ;;  %1043 = vst.msk [vmem:[#allocation2 + $0x64] sm:$0xf] %vm1017_vm13, %v966_v45  ;;  %v3006_v60 = vsel %vm11330_vm5, %v3001_v11, %v13295_v63  ;;  %v1583_v45 = vsel %vm11300_vm2, %v1575_v13, %v1582_v17  ;;  %v481_v11 = vrot.slane %v13363_v46, 7  ;;  %v899_v52 = vshrl.u32 %v600_v4, 16 }
 0x292   : > { %3173 = vst.msk [vmem:[#allocation2 + $0x5c] sm:$0xf] %vm3149_vm6, %v3094_v30  ;;  %v887_v22 = vsel %vm11300_vm2, %v879_v42, %v886_v44  ;;  %v2292_v30 = vshll.u32 %v1975_v21, 16  ;;  %v3009_v42 = vrot.slane %v3007_v43, 4 }
 0x293   : > { %3486 = vst.msk [vmem:[#allocation2 + $0x5c] sm:$0xf] %vm3462_vm7, %v13178_v25  ;;  %v482_v48 = vsel %vm11490_vm11, %v480_v18, %v481_v11  ;;  %v901_v23 = vrot.slane %v899_v52, 7  ;;  %v483_v52 = vrot.slane %v481_v11, 4 }
 0x294   : > { %v2294_v47 = vrot.slane %v2292_v30, 5  ;;  %561 = vst.msk [vmem:[#allocation2 + $0x70] sm:$0xf] %vm532_vm12, %v482_v48  ;;  %v3010_v17 = vor.u32 %v3009_v42, %v13295_v63 }
 0x295   : > { %3103 = vrot.lane.b32.xlu2 %v2996_v32, %s11177_s22  ;;  %v1770_v32 = vld [vmem:[%s11289_s12 + $0x88] sm:$0xf] }
 0x296   : > { %3416 = vrot.lane.b32.xlu1 %v3344_v33, %s11178_s23  ;;  %v3017_v33 = vshrl.u32 %v2699_v16, 16  ;;  %v3011_v63 = vrot.slane %v3010_v17, 4 }
 0x297   : > { %2587 = vrot.lane.b32.xlu0 %v2491_v53, %s11176_s21  ;;  %v13292_v25 = vpop.permute.xlu2 %2581  ;;  %v2290_v53 = vrot.slane %v2289_v6, 4 }
 0x298   : > { %v1651_v10 = vpop.permute.xlu1 %1650  ;;  %v3019_v8 = vrot.slane %v3017_v33, 4  ;;  %v13437_v33 = vld [vmem:[%s11289_s12 + $0x94] sm:$0xf] }
 0x299   : > { %v964_v26 = vpop.permute.xlu0 %963 }
 0x29a   : > { %1042 = vst.msk [vmem:[#allocation2 + $0x60] sm:$0xf] %vm1017_vm13, %v964_v26  ;;  %v10526_v20 = vld [vmem:[#allocation2 + $0x58] sm:$0xff] }
 0x29b   : > { %1247 = vst.msk [vmem:[#allocation2 + $0x60] sm:$0xf] %vm1222_vm14, %v13206_v2  ;;  %9517 = vmatmul.msk.bf16.gmra.mxu0 %vm3640_vm9, %v10526_v20  ;;  %v476_v2 = vsel %vm11490_vm11, %v474_v58, %v475_v49  ;;  %v1082_v49 = vld [vmem:[%s11289_s12 + $0x7c] sm:$0xf]  ;;  %v13372_v20 = vld [vmem:[%s11289_s12 + $0x8c] sm:$0xf]  ;;  %v2299_v58 = vor.u32 %v2298_v38, %v2294_v47 }
 0x29c   : > { %1729 = vst.msk [vmem:[#allocation2 + $0x60] sm:$0xf] %vm1704_vm15, %v1651_v10  ;;  %v13368_v10 = vld [vmem:[%s11289_s12 + $0x94] sm:$0xf]  ;;  %v1977_v38 = vld [vmem:[%s11289_s12 + $0x90] sm:$0xf] }
 0x29d   : > { %3418 = vrot.lane.b32.xlu2 %v3347_v51, %s11178_s23  ;;  %559 = vst.msk [vmem:[#allocation2 + $0x68] sm:$0xf] %vm532_vm12, %v476_v2  ;;  %v2295_v51 = vsel %vm11330_vm5, %v2290_v53, %v2294_v47  ;;  %v3023_v40 = vshll.u32 %v13368_v10, 16  ;;  %v2300_v39 = vrot.slane %v2299_v58, 4  ;;  %v2316_v43 = vshrl.u32 %v1977_v38, 16 }
 0x29e   : > { %977 = vrot.lane.b32.xlu1 %v896_v62, %s11173_s18 }
 0x29f   : > { %3105 = vrot.lane.b32.xlu0 %v3006_v60, %s11177_s22  ;;  %v13323_v19 = vpop.permute.xlu2 %3408  ;;  %v2302_v60 = vshll.u32 %v13372_v20, 16  ;;  %v13397_v31 = vrot.slane %v3023_v40, 5  ;;  %v2312_v40 = vshll.u32 %v1977_v38, 16 }
 0x2a0   : > { %v1858_v59 = vpop.permute.xlu1 %1857 }
 0x2a1   : > { %v1171_v41 = vpop.permute.xlu0 %1170  ;;  %v13473_v42 = vrot.slane %v2312_v40, 5 }
 0x2a2   : > { %1248 = vst.msk [vmem:[#allocation2 + $0x64] sm:$0xf] %vm1222_vm14, %v1171_v41  ;;  %v3215_v41 = vld [vmem:[%s11289_s12 + $0x90] sm:$0xf] }
 0x2a3   : > { %1730 = vst.msk [vmem:[#allocation2 + $0x64] sm:$0xf] %vm1704_vm15, %v13228_v61  ;;  %v3349_v3 = vrot.slane %v3215_v41, 5 }
 0x2a4   : > { %1935 = vst.msk [vmem:[#allocation2 + $0x64] sm:$0xf] %vm1909_vm1, %v1858_v59  ;;  %v13399_v59 = vrot.slane %v2302_v60, 5  ;;  %v1291_v60 = vld [vmem:[%s11289_s12 + $0x90] sm:$0xf] }
 0x2a5   : > { %1180 = vrot.lane.b32.xlu2 %v1082_v49, %s11171_s13  ;;  %v3351_v18 = vrot.slane %v3349_v3, 4  ;;  %v1595_v41 = vshrl.u32 %v1291_v60, 16 }
 0x2a6   : > { %1662 = vrot.lane.b32.xlu1 %v1574_v57, %s11172_s17  ;;  %v902_v57 = vshll.u32 %v600_v4, 16  ;;  %v2305_v13 = vsel %vm11330_vm5, %v2300_v39, %v13399_v59  ;;  %v13464_v4 = vld [vmem:[%s11289_s12 + $0x78] sm:$0xf] }
 0x2a7   : > { %975 = vrot.lane.b32.xlu0 %v887_v22, %s11173_s18  ;;  %v970_v61 = vpop.permute.xlu2 %969  ;;  %v601_v22 = vld [vmem:[%s11289_s12 + $0x88] sm:$0xf] }
 0x2a8   : > { %1045 = vst.msk [vmem:[#allocation2 + $0x6c] sm:$0xf] %vm1017_vm13, %v970_v61  ;;  %v2580_v55 = vpop.permute.xlu1 %2579  ;;  %v908_v61 = vshrl.u32 %v601_v22, 16  ;;  %v904_v16 = vor.u32 %v902_v57, %v901_v23  ;;  %v911_v30 = vshll.u32 %v601_v22, 16  ;;  %v3027_v57 = vshrl.u32 %v13368_v10, 16 }
 0x2a9   : > { %v1856_v12 = vpop.permute.xlu0 %1855  ;;  %v1771_v22 = vld [vmem:[%s11289_s12 + $0x8c] sm:$0xf] }
 0x2aa   : > { %1934 = vst.msk [vmem:[#allocation2 + $0x60] sm:$0xf] %vm1909_vm1, %v1856_v12 }
 0x2ab   : > { %2453 = vst.msk [vmem:[#allocation2 + $0x60] sm:$0xf] %vm2428_vm3, %v13265_v27  ;;  %v13360_v27 = vrot.slane %v3013_v54, 5 }
 0x2ac   : > { %2658 = vst.msk [vmem:[#allocation2 + $0x60] sm:$0xf] %vm2633_vm4, %v2580_v55  ;;  %v897_v55 = vrot.slane %v13283_v35, 4  ;;  %v1290_v35 = vld [vmem:[%s11289_s12 + $0x8c] sm:$0xf] }
 0x2ad   : > { %1664 = vrot.lane.b32.xlu2 %v1583_v45, %s11172_s17  ;;  %v3020_v62 = vor.u32 %v3019_v8, %v13360_v27  ;;  %v13423_v45 = vpop.f32.mrf.mxu0  ;;  %v3016_v54 = vsel %vm11330_vm5, %v3011_v63, %v13360_v27  ;;  %v1586_v53 = vshrl.u32 %v1290_v35, 16  ;;  %v1589_v48 = vshll.u32 %v1290_v35, 16 }
 0x2ae   : > { %1869 = vrot.lane.b32.xlu1 %v1770_v32, %s11174_s19  ;;  %v905_v32 = vsel %vm11300_vm2, %v897_v55, %v904_v16  ;;  %v11179_v55 = vmov 0   ;;  %v3029_v16 = vrot.slane %v3027_v57, 4 }
 0x2af   : > { %1182 = vrot.lane.b32.xlu0 %v1083_v28, %s11171_s13  ;;  %v13358_v37 = vpop.permute.xlu2 %1654  ;;  %v3021_v2 = vrot.slane %v3020_v62, 4  ;;  %v906_v28 = vrot.slane %v901_v23, 4  ;;  %v1085_v62 = vld [vmem:[%s11289_s12 + $0x88] sm:$0xf]  ;;  %v1084_v23 = vld [vmem:[%s11289_s12 + $0x84] sm:$0xf]  ;;  %11059 = vset.pattern.permute.xlu1 %v11179_v55 }
 0x2b0   : > { %v3098_v9 = vpop.permute.xlu1 %3097  ;;  %4062 = vst [vmem:[#allocation3] sm:$0xf] %v11179_v55  ;;  %11057 = vset.pattern.permute.xlu2 %v11179_v55  ;;  %11058 = vset.pattern.permute.xlu0 %v11179_v55 }
 0x2b1   : > { %v2377_v26 = vpop.permute.xlu0 %2376  ;;  %v3026_v49 = vsel %vm11330_vm5, %v3021_v2, %v13397_v31  ;;  %4063 = vst [vmem:[#allocation3 + $0x4] sm:$0xf] %v11179_v55 }
 0x2b2   : > { %2454 = vst.msk [vmem:[#allocation2 + $0x64] sm:$0xf] %vm2428_vm3, %v2377_v26 }
 0x2b3   : > { %2659 = vst.msk [vmem:[#allocation2 + $0x64] sm:$0xf] %vm2633_vm4, %v13292_v25 }
 0x2b4   : > { %3175 = vst.msk [vmem:[#allocation2 + $0x64] sm:$0xf] %vm3149_vm6, %v3098_v9  ;;  %v3352_v9 = vrot.slane %v13437_v33, 5  ;;  %v3826_v33 = vld [vmem:[%s16784_s5 + $0x10] sm:$0xff] }
 0x2b5   : > { %2386 = vrot.lane.b32.xlu2 %v2295_v51, %s11175_s20  ;;  %4064 = vst [vmem:[#allocation3 + $0x8] sm:$0xf] %v11179_v55 }
 0x2b6   : > { %2591 = vrot.lane.b32.xlu1 %v2493_v0, %s11176_s21  ;;  %v13450_v0 = vpop.f32.mrf.mxu0  ;;  %v3353_v58 = vsel %vm11371_vm8, %v3351_v18, %v3352_v9  ;;  %4065 = vst [vmem:[#allocation3 + $0x94] sm:$0xf] %v11179_v55  ;;  %v3354_v57 = vrot.slane %v3352_v9, 4  ;;  %v353_v9 = vld [vmem:[%s11289_s12 + $0x7c] sm:$0xf] }
 0x2b7   : > { %1867 = vrot.lane.b32.xlu0 %v1769_v36, %s11174_s19  ;;  %v13395_v25 = vpop.permute.xlu2 %1861  ;;  %v13448_v36 = vrot.slane %v1586_v53, 7  ;;  %4066 = vst [vmem:[#allocation3 + $0x98] sm:$0xf] %v11179_v55 }
 0x2b8   : > { %v968_v1 = vpop.permute.xlu1 %967  ;;  %4067 = vst [vmem:[#allocation3 + $0x9c] sm:$0xf] %v11179_v55  ;;  %v487_v55 = vrot.slane %v353_v9, 7  ;;  %v3851_v9 = vld [vmem:[%s16784_s5 + $0xd8] sm:$0xff] }
 0x2b9   : > { %v3096_v44 = vpop.permute.xlu0 %3095  ;;  %1044 = vst.msk [vmem:[#allocation2 + $0x68] sm:$0xf] %vm1017_vm13, %v968_v1  ;;  %v1591_v2 = vor.u32 %v1589_v48, %v13448_v36  ;;  %v484_v1 = vrot.slane %v13464_v4, 7  ;;  %v1593_v63 = vrot.slane %v13448_v36, 4  ;;  %v3217_v36 = vld [vmem:[%s11289_s12 + $0x98] sm:$0xf] }
 0x2ba   : > { %3174 = vst.msk [vmem:[#allocation2 + $0x60] sm:$0xf] %vm3149_vm6, %v3096_v44  ;;  %v2318_v44 = vrot.slane %v2316_v43, 4  ;;  %v3827_v4 = vld [vmem:[%s16784_s5 + $0x18] sm:$0xff] }
 0x2bb   : > { %3487 = vst.msk [vmem:[#allocation2 + $0x60] sm:$0xf] %vm3462_vm7, %v13323_v19  ;;  %v3348_v19 = vrot.slane %v3346_v29, 4  ;;  %v910_v29 = vrot.slane %v908_v61, 7  ;;  %v485_v46 = vsel %vm11490_vm11, %v483_v52, %v484_v1  ;;  %v1598_v61 = vshll.u32 %v1291_v60, 16 }
 0x2bc   : > { %562 = vst.msk [vmem:[#allocation2 + $0x74] sm:$0xf] %vm532_vm12, %v485_v46 }
 0x2bd   : > { %2593 = vrot.lane.b32.xlu2 %v2494_v56, %s11176_s21  ;;  %v3350_v7 = vsel %vm11371_vm8, %v3348_v19, %v3349_v3  ;;  %v913_v15 = vor.u32 %v911_v30, %v910_v29  ;;  %v2306_v19 = vshrl.u32 %v13372_v20, 16  ;;  %v1597_v3 = vrot.slane %v1595_v41, 7  ;;  %v2701_v29 = vld [vmem:[%s11289_s12 + $0x98] sm:$0xf] }
 0x2be   : > { %3109 = vrot.lane.b32.xlu1 %v3026_v49, %s11177_s22  ;;  %v3037_v35 = vshrl.u32 %v2701_v29, 16 }
 0x2bf   : > { %2388 = vrot.lane.b32.xlu0 %v2305_v13, %s11175_s20  ;;  %v13420_v21 = vpop.permute.xlu2 %2583  ;;  %v914_v51 = vsel %vm11300_vm2, %v906_v28, %v913_v15  ;;  %v2319_v13 = vor.u32 %v2318_v44, %v13473_v42  ;;  %v3030_v28 = vor.u32 %v3029_v16, %v13397_v31  ;;  %v3033_v15 = vshll.u32 %v2701_v29, 16  ;;  %v3828_v29 = vld [vmem:[%s16784_s5 + $0x20] sm:$0xff] }
 0x2c0   : > { %v1175_v12 = vpop.permute.xlu1 %1174 }
 0x2c1   : > { %v3411_v6 = vpop.permute.xlu0 %3410  ;;  %1250 = vst.msk [vmem:[#allocation2 + $0x6c] sm:$0xf] %vm1222_vm14, %v1175_v12  ;;  %v2320_v20 = vrot.slane %v2319_v13, 4  ;;  %v3031_v31 = vrot.slane %v3030_v28, 4  ;;  %v3035_v38 = vrot.slane %v3033_v15, 5  ;;  %v3829_v28 = vld [vmem:[%s16784_s5 + $0x28] sm:$0xff] }
 0x2c2   : > { %3488 = vst.msk [vmem:[#allocation2 + $0x64] sm:$0xf] %vm3462_vm7, %v3411_v6  ;;  %v1600_v6 = vor.u32 %v1598_v61, %v1597_v3  ;;  %v13565_v61 = vld [vmem:[%s11289_s12 + $0x80] sm:$0xf] }
 0x2c3   : > { %v3036_v43 = vsel %vm11330_vm5, %v3031_v31, %v3035_v38  ;;  %v356_v31 = vld [vmem:[%s11289_s12 + $0x88] sm:$0x7] }
 0x2c4   : > { %v1601_v53 = vsel %vm11300_vm2, %v1593_v63, %v1600_v6 }
 0x2c5   : > { %3420 = vrot.lane.b32.xlu2 %v3350_v7, %s11178_s23  ;;  %v2308_v7 = vrot.slane %v2306_v19, 4  ;;  %v3824_v19 = vld [vmem:[%s16784_s5] sm:$0xff] }
 0x2c6   : > { %979 = vrot.lane.b32.xlu1 %v905_v32, %s11173_s18  ;;  %v1772_v32 = vld [vmem:[%s11289_s12 + $0x90] sm:$0xf] }
 0x2c7   : > { %3107 = vrot.lane.b32.xlu0 %v3016_v54, %s11177_s22  ;;  %v13441_v47 = vpop.permute.xlu2 %3101 }
 0x2c8   : > { %v1860_v8 = vpop.permute.xlu1 %1859 }
 0x2c9   : > { %v1173_v27 = vpop.permute.xlu0 %1172  ;;  %v10527_v26 = vld [vmem:[#allocation2 + $0x60] sm:$0xff] }
 0x2ca   : > { %1249 = vst.msk [vmem:[#allocation2 + $0x68] sm:$0xf] %vm1222_vm14, %v1173_v27  ;;  %9518 = vmatmul.msk.bf16.gmra.mxu0 %vm3640_vm9, %v10527_v26  ;;  %v2702_v27 = vld [vmem:[%s11289_s12 + $0x9c] sm:$0x1] }
 0x2cb   : > { %1731 = vst.msk [vmem:[#allocation2 + $0x68] sm:$0xf] %vm1704_vm15, %v13358_v37  ;;  %v1584_v37 = vrot.slane %v13330_v34, 4  ;;  %v1978_v34 = vld [vmem:[%s11289_s12 + $0x94] sm:$0x1]  ;;  %v3043_v40 = vshll.u32 %v2702_v27, 16 }
 0x2cc   : > { %1936 = vst.msk [vmem:[#allocation2 + $0x68] sm:$0xf] %vm1909_vm1, %v1860_v8  ;;  %v2322_v17 = vshll.u32 %v1978_v34, 16  ;;  %v2309_v8 = vor.u32 %v2308_v7, %v13399_v59  ;;  %v2495_v59 = vld [vmem:[%s11289_s12 + $0x94] sm:$0xf] }
 0x2cd   : > { %981 = vrot.lane.b32.xlu2 %v914_v51, %s11173_s18  ;;  %v1592_v49 = vsel %vm11300_vm2, %v1584_v37, %v1591_v2  ;;  %v3218_v37 = vld [vmem:[%s11289_s12 + $0x9c] sm:$0x1]  ;;  %v3045_v52 = vrot.slane %v3043_v40, 5 }
 0x2ce   : > { %1186 = vrot.lane.b32.xlu1 %v1085_v62, %s11171_s13  ;;  %v2310_v51 = vrot.slane %v2309_v8, 4  ;;  %v3830_v8 = vld [vmem:[%s16784_s5 + $0x30] sm:$0xff]  ;;  %v3847_v40 = vld [vmem:[%s16784_s5 + $0xb8] sm:$0xff] }
 0x2cf   : > { %3422 = vrot.lane.b32.xlu0 %v3353_v58, %s11178_s23  ;;  %v972_v39 = vpop.permute.xlu2 %971  ;;  %v3355_v58 = vrot.slane %v3217_v36, 5  ;;  %v3832_v36 = vld [vmem:[%s16784_s5 + $0x40] sm:$0xff] }
 0x2d0   : > { %1046 = vst.msk [vmem:[#allocation2 + $0x70] sm:$0xf] %vm1017_vm13, %v972_v39  ;;  %v2381_v56 = vpop.permute.xlu1 %2380  ;;  %v2315_v60 = vsel %vm11330_vm5, %v2310_v51, %v13473_v42  ;;  %v13531_v39 = vpop.f32.mrf.mxu0 }
 0x2d1   : > { %v1657_v11 = vpop.permute.xlu0 %1656  ;;  %v3357_v44 = vrot.slane %v3355_v58, 4  ;;  %v3356_v3 = vsel %vm11371_vm8, %v3354_v57, %v3355_v58 }
 0x2d2   : > { %1732 = vst.msk [vmem:[#allocation2 + $0x6c] sm:$0xf] %vm1704_vm15, %v1657_v11  ;;  %v2496_v11 = vld [vmem:[%s11289_s12 + $0x98] sm:$0xf] }
 0x2d3   : > { %1937 = vst.msk [vmem:[#allocation2 + $0x6c] sm:$0xf] %vm1909_vm1, %v13395_v25  ;;  %v2324_v25 = vrot.slane %v2322_v17, 5 }
 0x2d4   : > { %2456 = vst.msk [vmem:[#allocation2 + $0x6c] sm:$0xf] %vm2428_vm3, %v2381_v56  ;;  %v3358_v56 = vrot.slane %v3218_v37, 5 }
 0x2d5   : > { %1666 = vrot.lane.b32.xlu2 %v1592_v49, %s11172_s17  ;;  %v2325_v54 = vsel %vm11330_vm5, %v2320_v20, %v2324_v25  ;;  %v490_v20 = vrot.slane %v13565_v61, 7  ;;  %v486_v25 = vrot.slane %v484_v1, 4  ;;  %v3852_v61 = vld [vmem:[%s16784_s5 + $0xe0] sm:$0xff] }
 0x2d6   : > { %1871 = vrot.lane.b32.xlu1 %v1771_v22, %s11174_s19  ;;  %v3359_v46 = vsel %vm11371_vm8, %v3357_v44, %v3358_v56 }
 0x2d7   : > { %1184 = vrot.lane.b32.xlu0 %v1084_v23, %s11171_s13  ;;  %v13496_v10 = vpop.permute.xlu2 %1178  ;;  %v488_v1 = vsel %vm11490_vm11, %v486_v25, %v487_v55  ;;  %s9341_s13 = scalar_lea.hbm %s16787_s8, %s10994_s25  ;;  %s11120_s25 = scalar_lea.hbm %s16787_s8, 272 }
 0x2d8   : > { %v3100_v12 = vpop.permute.xlu1 %3099  ;;  %v13548_v22 = vpop.f32.mrf.mxu0  ;;  %563 = vst.msk [vmem:[#allocation2 + $0x78] sm:$0xf] %vm532_vm12, %v488_v1 }
 0x2d9   : > { %v2379_v30 = vpop.permute.xlu0 %2378 }
 0x2da   : > { %2455 = vst.msk [vmem:[#allocation2 + $0x68] sm:$0xf] %vm2428_vm3, %v2379_v30  ;;  %v3825_v30 = vld [vmem:[%s16784_s5 + $0x8] sm:$0xff] }
 0x2db   : > { %2660 = vst.msk [vmem:[#allocation2 + $0x68] sm:$0xf] %vm2633_vm4, %v13420_v21  ;;  %v3039_v21 = vrot.slane %v3037_v35, 4 }
 0x2dc   : > { %3176 = vst.msk [vmem:[#allocation2 + $0x68] sm:$0xf] %vm3149_vm6, %v3100_v12 }
 0x2dd   : > { %1873 = vrot.lane.b32.xlu2 %v1772_v32, %s11174_s19  ;;  %v3040_v62 = vor.u32 %v3039_v21, %v3035_v38  ;;  %s9344_s19 = sshll.u32 %s9341_s13, 4  ;;  %s9345_s19 = int_to_ptr.hbm [resolvable:$true] %s9344_s19 }
 0x2de   : > { %2392 = vrot.lane.b32.xlu1 %v2325_v54, %s11175_s20 }
 0x2df   : > { %1668 = vrot.lane.b32.xlu0 %v1601_v53, %s11172_s17  ;;  %v13514_v18 = vpop.permute.xlu2 %1863  ;;  %v3041_v2 = vrot.slane %v3040_v62, 4  ;;  %v3831_v53 = vld [vmem:[%s16784_s5 + $0x38] sm:$0xff]  ;;  %v3848_v62 = vld [vmem:[%s16784_s5 + $0xc0] sm:$0xff] }
 0x2e0   : > { %v3415_v26 = vpop.permute.xlu1 %3414  ;;  %v13575_v6 = vpop.f32.mrf.mxu0 }
 0x2e1   : > { %v2586_v48 = vpop.permute.xlu0 %2585  ;;  %v3046_v42 = vsel %vm11330_vm5, %v3041_v2, %v3045_v52  ;;  %v3833_v2 = vld [vmem:[%s16784_s5 + $0x48] sm:$0xff] }
 0x2e2   : > { %2661 = vst.msk [vmem:[#allocation2 + $0x6c] sm:$0xf] %vm2633_vm4, %v2586_v48  ;;  %v3849_v52 = vld [vmem:[%s16784_s5 + $0xc8] sm:$0xff] }
 0x2e3   : > { %3177 = vst.msk [vmem:[#allocation2 + $0x6c] sm:$0xf] %vm3149_vm6, %v13441_v47 }
 0x2e4   : > { %3490 = vst.msk [vmem:[#allocation2 + $0x6c] sm:$0xf] %vm3462_vm7, %v3415_v26  ;;  %v496_v26 = vrot.slane %v356_v31, 7  ;;  %v10694_v31 = vld [vmem:[%s16782_s3 + $0x38] sm:$0xff] }
 0x2e5   : > { %2595 = vrot.lane.b32.xlu2 %v2495_v59, %s11176_s21  ;;  %8074 = vmatpush.bf16.msra.mxu1 %v10694_v31 }
 0x2e6   : > { %3111 = vrot.lane.b32.xlu1 %v3036_v43, %s11177_s22  ;;  %10976 = vmatpush.bf16.msrb.mxu3 %v10694_v31 }
 0x2e7   : > { %2390 = vrot.lane.b32.xlu0 %v2315_v60, %s11175_s20  ;;  %v2385_v47 = vpop.permute.xlu2 %2384  ;;  %s11114_s20 = sshra.s32 %s9345_s19, 4  ;;  %s11115_s20 = int_to_ptr.hbm [resolvable:$true] %s11114_s20 }
 0x2e8   : > { %v1177_v41 = vpop.permute.xlu1 %1176  ;;  %v13598_v15 = vpop.f32.mrf.mxu0  ;;  %p11121_p3 = scmp.lt.s32.totalorder %s11115_s20, %s16787_s8 }
 0x2e9   : > { %v3413_v34 = vpop.permute.xlu0 %3412  ;;  %1251 = vst.msk [vmem:[#allocation2 + $0x70] sm:$0xf] %vm1222_vm14, %v1177_v41 }
 0x2ea   : > { %3489 = vst.msk [vmem:[#allocation2 + $0x68] sm:$0xf] %vm3462_vm7, %v3413_v34 }
 0x2ed   : > { %3113 = vrot.lane.b32.xlu2 %v3046_v42, %s11177_s22 }
 0x2ee   : > { %3426 = vrot.lane.b32.xlu1 %v3359_v46, %s11178_s23  ;;  %v3850_v46 = vld [vmem:[%s16784_s5 + $0xd0] sm:$0xff] }
 0x2ef   : > { %2597 = vrot.lane.b32.xlu0 %v2496_v11, %s11176_s21  ;;  %v13544_v49 = vpop.permute.xlu2 %3103  ;;  %v3836_v11 = vld [vmem:[%s16784_s5 + $0x60] sm:$0xff]  ;;  %s313_s21 = sand.u32 1, %s11158_s28  }
 0x2f0   : > { %v1661_v23 = vpop.permute.xlu1 %1660  ;;  %v13614_v59 = vpop.f32.mrf.mxu0  ;;  %s10992_s22 = smul.u32 136, %s313_s21  ;;  %s9330_s9 = scalar_lea.sflag [#allocation7], %s313_s21 }
 0x2f1   : > { %v974_v13 = vpop.permute.xlu0 %973  ;;  %v10528_v17 = vld [vmem:[#allocation2 + $0x68] sm:$0xff] }
 0x2f2   : > { %1047 = vst.msk [vmem:[#allocation2 + $0x74] sm:$0xf] %vm1017_vm13, %v974_v13  ;;  %9519 = vmatmul.msk.bf16.gmra.mxu0 %vm3640_vm9, %v10528_v17 }
 0x2f3   : > { %1252 = vst.msk [vmem:[#allocation2 + $0x74] sm:$0xf] %vm1222_vm14, %v13496_v10  ;;  %v489_v10 = vrot.slane %v487_v55, 4 }
 0x2f4   : > { %1734 = vst.msk [vmem:[#allocation2 + $0x74] sm:$0xf] %vm1704_vm15, %v1661_v23  ;;  %v3835_v23 = vld [vmem:[%s16784_s5 + $0x58] sm:$0xff] }
 0x2f5   : > { %3860 = vperm.xlu2 %11057, %v3824_v19   ;;  %v491_v63 = vsel %vm11490_vm11, %v489_v10, %v490_v20 }
 0x2f6   : > { %3870 = vperm.xlu1 %11059, %v3826_v33   ;;  %564 = vst.msk [vmem:[#allocation2 + $0x7c] sm:$0xf] %vm532_vm12, %v491_v63  ;;  %v3853_v63 = vld [vmem:[%s16784_s5 + $0xe8] sm:$0xff] }
 0x2f7   : > { %3424 = vrot.lane.b32.xlu0 %v3356_v3, %s11178_s23  ;;  %v3419_v16 = vpop.permute.xlu2 %3418  ;;  %v3837_v3 = vld [vmem:[%s16784_s5 + $0x68] sm:$0xff]  ;;  %s16495_s23 = scalar_lea.vmem [#allocation8], %s10992_s22  ;;  %s11116_s22 = scalar_lea.hbm %s11115_s20, 136 }
 0x2f8   : > { %v2383_v12 = vpop.permute.xlu1 %2382  ;;  %v13640_v44 = vpop.f32.mrf.mxu0  ;;  %s9342_s17 = sshll.u32 %s16495_s23, 4  ;;  %p11117_p0 = scmp.ne.s32.totalorder %s11115_s20, %s11116_s22  ;;  %s9343_s17 = int_to_ptr.vmem [resolvable:$true] %s9342_s17 }
 0x2f9   : > { %v1659_v7 = vpop.permute.xlu0 %1658  ;;  %p11122_p4 = scmp.lt.s32.totalorder %s11120_s25, %s11116_s22 }
 0x2fa   : > { %1733 = vst.msk [vmem:[#allocation2 + $0x70] sm:$0xf] %vm1704_vm15, %v1659_v7  ;;  %p11118_p1 = pnand %p11117_p0, %p11264_p5 }
 0x2fb   : > { %1938 = vst.msk [vmem:[#allocation2 + $0x70] sm:$0xf] %vm1909_vm1, %v13514_v18  ;;  %v355_v18 = vld [vmem:[%s11289_s12 + $0x84] sm:$0xf]  ;;  %p11123_p7 = por %p11122_p4, %p11121_p3 }
 0x2fc   : > { %2457 = vst.msk [vmem:[#allocation2 + $0x70] sm:$0xf] %vm2428_vm3, %v2383_v12  ;;  %v493_v27 = vrot.slane %v355_v18, 7  ;;  %v3854_v12 = vld [vmem:[%s16784_s5 + $0xf0] sm:$0xff]  ;;  %p11119_p2 = pneg %p11118_p1 }
 0x2fd   : > { %3875 = vperm.xlu2 %11057, %v3827_v4   ;;  %v3842_v18 = vld [vmem:[%s16784_s5 + $0x90] sm:$0xff] }
 0x2fe   : > { %3880 = vperm.xlu1 %11059, %v3828_v29   ;;  %v495_v48 = vrot.slane %v493_v27, 4  ;;  %p11124_p8 = pnand %p11123_p7, %p11119_p2 }
 0x2ff   : > { %3865 = vperm.xlu0 %11058, %v3825_v30   ;;  %v1181_v32 = vpop.permute.xlu2 %1180  ;;  %v3839_v30 = vld [vmem:[%s16784_s5 + $0x78] sm:$0xff] }
 0x300   : > { %v2590_v35 = vpop.permute.xlu1 %2589  ;;  %v497_v43 = vsel %vm11490_vm11, %v495_v48, %v496_v26  ;;  %v13657_v57 = vpop.f32.mrf.mxu0  ;;  %v10693_v26 = vld [vmem:[%s16782_s3 + $0x30] sm:$0xff] }
 0x301   : > { %v1866_v54 = vpop.permute.xlu0 %1865  ;;  %566 = vst.msk [vmem:[#allocation2 + $0x84] sm:$0xf] %vm532_vm12, %v497_v43  ;;  %8075 = vmatpush.bf16.msra.mxu1 %v10693_v26  ;;  %10977 = vmatpush.bf16.msrb.mxu3 %v10693_v26  ;;  %v3845_v43 = vld [vmem:[%s16784_s5 + $0xa8] sm:$0xff] }
 0x302   : > { %1939 = vst.msk [vmem:[#allocation2 + $0x74] sm:$0xf] %vm1909_vm1, %v1866_v54 }
 0x303   : > { %2458 = vst.msk [vmem:[#allocation2 + $0x74] sm:$0xf] %vm2428_vm3, %v2385_v47  ;;  %v3834_v47 = vld [vmem:[%s16784_s5 + $0x50] sm:$0xff] }
 0x304   : > { %2663 = vst.msk [vmem:[#allocation2 + $0x74] sm:$0xf] %vm2633_vm4, %v2590_v35  ;;  %v3840_v35 = vld [vmem:[%s16784_s5 + $0x80] sm:$0xff] }
 0x305   : > { %3885 = vperm.xlu2 %11057, %v3829_v28  }
 0x306   : > { %3895 = vperm.xlu1 %11059, %v3831_v53  }
 0x307   : > { %3890 = vperm.xlu0 %11058, %v3830_v8   ;;  %v1665_v21 = vpop.permute.xlu2 %1664 }
 0x308   : > { %v3417_v38 = vpop.permute.xlu1 %3416  ;;  %v13674_v55 = vpop.f32.mrf.mxu0 }
 0x309   : > { %v2588_v51 = vpop.permute.xlu0 %2587 }
 0x30a   : > { %2662 = vst.msk [vmem:[#allocation2 + $0x70] sm:$0xf] %vm2633_vm4, %v2588_v51  ;;  %v13732_v51 = vld [vmem:[%s16782_s3 + $0x78] sm:$0xff] }
 0x30b   : > { %3178 = vst.msk [vmem:[#allocation2 + $0x70] sm:$0xf] %vm3149_vm6, %v13544_v49  ;;  %v492_v49 = vrot.slane %v490_v20, 4  ;;  %8168 = vmatpush.bf16.msra.mxu2 %v13732_v51 }
 0x30c   : > { %3491 = vst.msk [vmem:[#allocation2 + $0x70] sm:$0xf] %vm3462_vm7, %v3417_v38  ;;  %v3841_v38 = vld [vmem:[%s16784_s5 + $0x88] sm:$0xff] }
 0x30d   : > { %3900 = vperm.xlu2 %11057, %v3832_v36   ;;  %v494_v13 = vsel %vm11490_vm11, %v492_v49, %v493_v27  ;;  %v10690_v49 = vld [vmem:[%s16782_s3 + $0x18] sm:$0xff] }
 0x30e   : > { %3980 = vperm.xlu1 %11059, %v3848_v62   ;;  %565 = vst.msk [vmem:[#allocation2 + $0x80] sm:$0xf] %vm532_vm12, %v494_v13 }
 0x30f   : > { %3975 = vperm.xlu0 %11058, %v3847_v40   ;;  %v2387_v58 = vpop.permute.xlu2 %2386  ;;  %v3843_v40 = vld [vmem:[%s16784_s5 + $0x98] sm:$0xff] }
 0x310   : > { %v978_v60 = vpop.permute.xlu1 %977  ;;  %v13689_v7 = vpop.f32.mrf.mxu0 }
 0x311   : > { %v3106_v37 = vpop.permute.xlu0 %3105  ;;  %1049 = vst.msk [vmem:[#allocation2 + $0x7c] sm:$0xf] %vm1017_vm13, %v978_v60  ;;  %v13751_v60 = vld [vmem:[%s16782_s3 + $0x70] sm:$0xff] }
 0x312   : > { %3179 = vst.msk [vmem:[#allocation2 + $0x74] sm:$0xf] %vm3149_vm6, %v3106_v37  ;;  %v3844_v37 = vld [vmem:[%s16784_s5 + $0xa0] sm:$0xff]  ;;  %8169 = vmatpush.bf16.msra.mxu2 %v13751_v60 }
 0x313   : > { %3492 = vst.msk [vmem:[#allocation2 + $0x74] sm:$0xf] %vm3462_vm7, %v3419_v16  ;;  %v3838_v16 = vld [vmem:[%s16784_s5 + $0x70] sm:$0xff] }
 0x315   : > { %3905 = vperm.xlu2 %11057, %v3833_v2   ;;  %v10691_v2 = vld [vmem:[%s16782_s3 + $0x20] sm:$0xff] }
 0x316   : > { %3985 = vperm.xlu1 %11059, %v3849_v52   ;;  %v13762_v52 = vld [vmem:[%s16781_s2] ss:$0 sm:$0xff] }
 0x317   : > { %3910 = vperm.xlu0 %11058, %v3834_v47   ;;  %v2594_v56 = vpop.permute.xlu2 %2593  ;;  %v13768_v47 = vld [vmem:[%s16782_s3 + $0x68] sm:$0xff]  ;;  %v3711_v31 = vadd.f32 %v13762_v52, %v13531_v39 }
 0x318   : > { %v1663_v41 = vpop.permute.xlu1 %1662  ;;  %v13707_v53 = vpop.f32.mrf.mxu0  ;;  %8170 = vmatpush.bf16.msra.mxu2 %v13768_v47 }
 0x319   : > { %v976_v34 = vpop.permute.xlu0 %975 }
 0x31a   : > { %1048 = vst.msk [vmem:[#allocation2 + $0x78] sm:$0xf] %vm1017_vm13, %v976_v34  ;;  %v10529_v42 = vld [vmem:[#allocation2 + $0x70] sm:$0xff] }
 0x31b   : > { %1253 = vst.msk [vmem:[#allocation2 + $0x78] sm:$0xf] %vm1222_vm14, %v1181_v32  ;;  %9520 = vmatmul.msk.bf16.vlgmr.msra.gmra.mxu3 %vm3640_vm9, %v10529_v42  ;;  %v3855_v32 = vld [vmem:[%s16784_s5 + $0xf8] sm:$0xff] }
 0x31c   : > { %1735 = vst.msk [vmem:[#allocation2 + $0x78] sm:$0xf] %vm1704_vm15, %v1663_v41 }
 0x31d   : > { %3990 = vperm.xlu2 %11057, %v3850_v46   ;;  %v3706_v46 = vadd.f32 %v13762_v52, %v13423_v45  ;;  %v10718_v45 = vld [vmem:[%s16782_s3 + $0xf8] sm:$0xff] }
 0x31e   : > { %3920 = vperm.xlu1 %11059, %v3836_v11   ;;  %v3846_v11 = vld [vmem:[%s16784_s5 + $0xb0] sm:$0xff]  ;;  %8356 = vmatpush.bf16.msrb.mxu0 %v10718_v45  ;;  %v3721_v45 = vadd.f32 %v13762_v52, %v13614_v59 }
 0x31f   : > { %3915 = vperm.xlu0 %11058, %v3835_v23   ;;  %v3421_v17 = vpop.permute.xlu2 %3420  ;;  %v13783_v23 = vld [vmem:[%s16782_s3 + $0x60] sm:$0xff] }
 0x320   : > { %v1870_v19 = vpop.permute.xlu1 %1869  ;;  %v13734_v48 = vpop.f32.mrf.mxu0  ;;  %8171 = vmatpush.bf16.msra.mxu2 %v13783_v23 }
 0x321   : > { %v1183_v33 = vpop.permute.xlu0 %1182 }
 0x322   : > { %1254 = vst.msk [vmem:[#allocation2 + $0x7c] sm:$0xf] %vm1222_vm14, %v1183_v33  ;;  %v3790_v33 = vmax.f32 %v3706_v46, 0.0  ;;  %v10687_v46 = vld [vmem:[%s16782_s3] sm:$0xff] }
 0x323   : > { %1736 = vst.msk [vmem:[#allocation2 + $0x7c] sm:$0xf] %vm1704_vm15, %v1665_v21  ;;  %v3856_v21 = vld [vmem:[%s16784_s5 + $0x100] sm:$0xff] }
 0x324   : > { %1941 = vst.msk [vmem:[#allocation2 + $0x7c] sm:$0xf] %vm1909_vm1, %v1870_v19  ;;  %v10689_v19 = vld [vmem:[%s16782_s3 + $0x10] sm:$0xff] }
 0x325   : > { %3995 = vperm.xlu2 %11057, %v3851_v9   ;;  %v13804_v9 = vld [vmem:[%s16782_s3 + $0x58] sm:$0xff] }
 0x326   : > { %3925 = vperm.xlu1 %11059, %v3837_v3   ;;  %8172 = vmatpush.bf16.msra.mxu2 %v13804_v9 }
 0x327   : > { %4000 = vperm.xlu0 %11058, %v3852_v61   ;;  %v982_v20 = vpop.permute.xlu2 %981 }
 0x328   : > { %1051 = vst.msk [vmem:[#allocation2 + $0x84] sm:$0xf] %vm1017_vm13, %v982_v20  ;;  %v2592_v10 = vpop.permute.xlu1 %2591  ;;  %v13785_v13 = vpop.f32.mrf.mxu0 }
 0x329   : > { %v1868_v25 = vpop.permute.xlu0 %1867 }
 0x32a   : > { %1940 = vst.msk [vmem:[#allocation2 + $0x78] sm:$0xf] %vm1909_vm1, %v1868_v25 }
 0x32b   : > { %2459 = vst.msk [vmem:[#allocation2 + $0x78] sm:$0xf] %vm2428_vm3, %v2387_v58  ;;  %v10692_v58 = vld [vmem:[%s16782_s3 + $0x28] sm:$0xff] }
 0x32c   : > { %2664 = vst.msk [vmem:[#allocation2 + $0x78] sm:$0xf] %vm2633_vm4, %v2592_v10  ;;  %8076 = vmatpush.bf16.msra.mxu1 %v10692_v58  ;;  %10978 = vmatpush.bf16.msrb.mxu3 %v10692_v58 }
 0x32d   : > { %3930 = vperm.xlu2 %11057, %v3838_v16  }
 0x32e   : > { %4010 = vperm.xlu1 %11059, %v3854_v12  }
 0x32f   : > { %4005 = vperm.xlu0 %11058, %v3853_v63   ;;  %v13691_v4 = vpop.permute.xlu2 %1666 }
 0x330   : > { %v3110_v1 = vpop.permute.xlu1 %3109  ;;  %8077 = vmatpush.bf16.msra.mxu1 %v10691_v2  ;;  %10979 = vmatpush.bf16.msrb.mxu3 %v10691_v2  ;;  %v13808_v16 = vpop.f32.mrf.mxu0 }
 0x331   : > { %v2389_v29 = vpop.permute.xlu0 %2388 }
 0x332   : > { %2460 = vst.msk [vmem:[#allocation2 + $0x7c] sm:$0xf] %vm2428_vm3, %v2389_v29 }
 0x333   : > { %2665 = vst.msk [vmem:[#allocation2 + $0x7c] sm:$0xf] %vm2633_vm4, %v2594_v56 }
 0x334   : > { %3181 = vst.msk [vmem:[#allocation2 + $0x7c] sm:$0xf] %vm3149_vm6, %v3110_v1  ;;  %8078 = vmatpush.bf16.msra.mxu1 %v10690_v49  ;;  %10980 = vmatpush.bf16.msrb.mxu3 %v10690_v49  ;;  %v10716_v49 = vld [vmem:[%s16782_s3 + $0xe8] sm:$0xff] }
 0x335   : > { %3935 = vperm.xlu2 %11057, %v3839_v30  }
 0x336   : > { %4015 = vperm.xlu1 %11059, %v3855_v32  }
 0x337   : > { %3940 = vperm.xlu0 %11058, %v3840_v35   ;;  %v13705_v54 = vpop.permute.xlu2 %1873 }
 0x338   : > { %v980_v28 = vpop.permute.xlu1 %979  ;;  %8079 = vmatpush.bf16.msra.mxu1 %v10689_v19  ;;  %10981 = vmatpush.bf16.msrb.mxu3 %v10689_v19  ;;  %v13814_v1 = vpop.f32.mrf.mxu0  ;;  %v3718_v19 = vadd.f32 %v13762_v52, %v13598_v15 }
 0x339   : > { %v3108_v8 = vpop.permute.xlu0 %3107  ;;  %1050 = vst.msk [vmem:[#allocation2 + $0x80] sm:$0xf] %vm1017_vm13, %v980_v28 }
 0x33a   : > { %3180 = vst.msk [vmem:[#allocation2 + $0x78] sm:$0xf] %vm3149_vm6, %v3108_v8  ;;  %v3713_v8 = vadd.f32 %v13762_v52, %v13548_v22  ;;  %v10688_v22 = vld [vmem:[%s16782_s3 + $0x8] sm:$0xff] }
 0x33b   : > { %3493 = vst.msk [vmem:[#allocation2 + $0x78] sm:$0xf] %vm3462_vm7, %v3421_v17  ;;  %v3857_v17 = vld [vmem:[%s16784_s5 + $0x108] sm:$0xff] }
 0x33c   : > { %8080 = vmatpush.bf16.msra.mxu1 %v10688_v22  ;;  %10982 = vmatpush.bf16.msrb.mxu3 %v10688_v22 }
 0x33d   : > { %4020 = vperm.xlu2 %11057, %v3856_v21   ;;  %v3716_v21 = vadd.f32 %v13762_v52, %v13575_v6  ;;  %v13841_v6 = vld [vmem:[%s16782_s3 + $0x50] sm:$0xff] }
 0x33e   : > { %3950 = vperm.xlu1 %11059, %v3842_v18   ;;  %v3708_v18 = vadd.f32 %v13762_v52, %v13450_v0  ;;  %v10717_v0 = vld [vmem:[%s16782_s3 + $0xf0] sm:$0xff]  ;;  %8173 = vmatpush.bf16.msra.mxu2 %v13841_v6 }
 0x33f   : > { %3945 = vperm.xlu0 %11058, %v3841_v38   ;;  %v13724_v27 = vpop.permute.xlu2 %2595  ;;  %v3794_v26 = vmax.f32 %v3716_v21, 0.0  ;;  %8357 = vmatpush.bf16.msrb.mxu0 %v10717_v0 }
 0x340   : > { %v1187_v36 = vpop.permute.xlu1 %1186  ;;  %v13822_v35 = vpop.f32.mrf.mxu0  ;;  %8081 = vmatpush.bf16.msra.mxu1 %v10687_v46  ;;  %10983 = vmatpush.bf16.msrb.mxu3 %v10687_v46 }
 0x341   : > { %v3423_v62 = vpop.permute.xlu0 %3422  ;;  %1256 = vst.msk [vmem:[#allocation2 + $0x84] sm:$0xf] %vm1222_vm14, %v1187_v36 }
 0x342   : > { %3494 = vst.msk [vmem:[#allocation2 + $0x7c] sm:$0xf] %vm3462_vm7, %v3423_v62  ;;  %v3791_v62 = vmax.f32 %v3708_v18, 0.0 }
 0x343   : > { %8358 = vmatpush.bf16.msrb.mxu0 %v10716_v49 }
 0x344   : > { %10984 = vmatpush.bf16.msra.mxu3 %v13732_v51 }
 0x345   : > { %3955 = vperm.xlu2 %11057, %v3843_v40   ;;  %v3792_v40 = vmax.f32 %v3711_v31, 0.0 }
 0x346   : > { %3965 = vperm.xlu1 %11059, %v3845_v43  }
 0x347   : > { %3960 = vperm.xlu0 %11058, %v3844_v37   ;;  %v3114_v56 = vpop.permute.xlu2 %3113 }
 0x348   : > { %v1872_v41 = vpop.permute.xlu1 %1871  ;;  %v13833_v36 = vpop.f32.mrf.mxu0  ;;  %10985 = vmatpush.bf16.msra.mxu3 %v13751_v60 }
 0x349   : > { %v1185_v34 = vpop.permute.xlu0 %1184  ;;  %v10530_v42 = vld [vmem:[#allocation2 + $0x78] sm:$0xff] }
 0x34a   : > { %1255 = vst.msk [vmem:[#allocation2 + $0x80] sm:$0xf] %vm1222_vm14, %v1185_v34  ;;  %9521 = vmatmul.msk.bf16.gmra.mxu3 %vm3640_vm9, %v10530_v42 }
 0x34b   : > { %1737 = vst.msk [vmem:[#allocation2 + $0x80] sm:$0xf] %vm1704_vm15, %v13691_v4 }
 0x34c   : > { %1942 = vst.msk [vmem:[#allocation2 + $0x80] sm:$0xf] %vm1909_vm1, %v1872_v41  ;;  %10986 = vmatpush.bf16.msra.mxu3 %v13768_v47 }
 0x34d   : > { %3970 = vperm.xlu2 %11057, %v3846_v11   ;;  %v10696_v11 = vld [vmem:[%s16782_s3 + $0x48] sm:$0xff] }
 0x34e   : > { %8174 = vmatpush.bf16.msra.mxu2 %v10696_v11 }
 0x34f   : > { %4025 = vperm.xlu0 %11058, %v3857_v17   ;;  %v3861_v3 = vpop.permute.xlu2 %3860 }
 0x350   : > { %v4028_v61 = vmul.f32 %v3861_v3, %v3790_v33  ;;  %v2393_v20 = vpop.permute.xlu1 %2392  ;;  %v13859_v17 = vpop.f32.mrf.mxu0  ;;  %10987 = vmatpush.bf16.msra.mxu3 %v13783_v23 }
 0x351   : > { %v1669_v10 = vpop.permute.xlu0 %1668 }
 0x352   : > { %v4068_v25 = vpack.c.bf16 %v4028_v61, %v4028_v61  ;;  %1738 = vst.msk [vmem:[#allocation2 + $0x84] sm:$0xf] %vm1704_vm15, %v1669_v10  ;;  %v3796_v61 = vmax.f32 %v3721_v45, 0.0 }
 0x353   : > { %1943 = vst.msk [vmem:[#allocation2 + $0x84] sm:$0xf] %vm1909_vm1, %v13705_v54 }
 0x354   : > { %4102 = vst [vmem:[#allocation3 + $0xc] sm:$0xf] %v4068_v25  ;;  %v3723_v25 = vadd.f32 %v13762_v52, %v13640_v44  ;;  %10988 = vmatpush.bf16.msra.mxu3 %v13804_v9 }
 0x355   : > { %2462 = vst.msk [vmem:[#allocation2 + $0x84] sm:$0xf] %vm2428_vm3, %v2393_v20  ;;  %v3795_v20 = vmax.f32 %v3718_v19, 0.0 }
 0x356   : > { %v3797_v51 = vmax.f32 %v3723_v25, 0.0 }
 0x357   : > { %v3876_v38 = vpop.permute.xlu2 %3875 }
 0x358   : > { %v3112_v12 = vpop.permute.xlu1 %3111  ;;  %10989 = vmatpush.bf16.msra.mxu3 %v13841_v6 }
 0x359   : > { %v2391_v63 = vpop.permute.xlu0 %2390 }
 0x35a   : > { %2461 = vst.msk [vmem:[#allocation2 + $0x80] sm:$0xf] %vm2428_vm3, %v2391_v63  ;;  %v13869_v63 = vpop.f32.mrf.mxu0 }
 0x35b   : > { %v4792_v4 = vld [vmem:[#allocation3 + $0xc] sm:$0xf]  ;;  %2666 = vst.msk [vmem:[#allocation2 + $0x80] sm:$0xf] %vm2633_vm4, %v13724_v27  ;;  %v3793_v27 = vmax.f32 %v3713_v8, 0.0 }
 0x35c   : > { %4826 = vst [vmem:[#allocation4 + $0x50] sm:$0xf] %v4792_v4  ;;  %v5271_v29 = vld [vmem:[#allocation3 + $0xc] sm:$0xf]  ;;  %10990 = vmatpush.bf16.msra.mxu3 %v10696_v11 }
 0x35d   : > { %5305 = vst [vmem:[#allocation4 + $0x10] sm:$0xf] %v5271_v29  ;;  %v4031_v39 = vmul.f32 %v3876_v38, %v3793_v27 }
 0x35e   : > { %3182 = vst.msk [vmem:[#allocation2 + $0x80] sm:$0xf] %vm3149_vm6, %v3112_v12  ;;  %v3726_v12 = vadd.f32 %v13762_v52, %v13657_v57 }
 0x35f   : > { %v3886_v33 = vpop.permute.xlu2 %3885 }
 0x360   : > { %v3427_v30 = vpop.permute.xlu1 %3426  ;;  %v4033_v59 = vmul.f32 %v3886_v33, %v3795_v20 }
 0x361   : > { %v2598_v32 = vpop.permute.xlu0 %2597 }
 0x362   : > { %2667 = vst.msk [vmem:[#allocation2 + $0x84] sm:$0xf] %vm2633_vm4, %v2598_v32  ;;  %v3798_v32 = vmax.f32 %v3726_v12, 0.0  ;;  %v13873_v38 = vpop.f32.mrf.mxu0 }
 0x363   : > { %3183 = vst.msk [vmem:[#allocation2 + $0x84] sm:$0xf] %vm3149_vm6, %v3114_v56 }
 0x364   : > { %3496 = vst.msk [vmem:[#allocation2 + $0x84] sm:$0xf] %vm3462_vm7, %v3427_v30 }
 0x367   : > { %v3901_v30 = vpop.permute.xlu2 %3900 }
 0x368   : > { %v3871_v54 = vpop.permute.xlu1 %3870  ;;  %v4036_v44 = vmul.f32 %v3901_v30, %v3798_v32 }
 0x369   : > { %v3425_v28 = vpop.permute.xlu0 %3424  ;;  %v4030_v56 = vmul.f32 %v3871_v54, %v3792_v40 }
 0x36a   : > { %3495 = vst.msk [vmem:[#allocation2 + $0x80] sm:$0xf] %vm3462_vm7, %v3425_v28 }
 0x370   : > { %v3881_v43 = vpop.permute.xlu1 %3880 }
 0x371   : > { %v3866_v58 = vpop.permute.xlu0 %3865  ;;  %v4032_v37 = vmul.f32 %v3881_v43, %v3794_v26  ;;  %v10531_v2 = vld [vmem:[#allocation2 + $0x80] sm:$0xff] }
 0x372   : > { %v4029_v41 = vmul.f32 %v3866_v58, %v3791_v62  ;;  %9522 = vmatmul.msk.bf16.gmra.mxu3 %vm3640_vm9, %v10531_v2  ;;  %v13877_v58 = vpop.f32.mrf.mxu0 }
 0x373   : > { %v10784_v34 = vpack.c.bf16 %v4032_v37, %v4031_v39 }
 0x374   : > { %v10779_v42 = vpack.c.bf16 %v4030_v56, %v4029_v41 }
 0x375   : > { %10942 = vst [vmem:[#allocation3 + $0x18] sm:$0xff] %v10784_v34  }
 0x376   : > { %10941 = vst [vmem:[#allocation3 + $0x10] sm:$0xff] %v10779_v42  }
 0x378   : > { %v3896_v15 = vpop.permute.xlu1 %3895 }
 0x379   : > { %v3891_v3 = vpop.permute.xlu0 %3890  ;;  %v4035_v54 = vmul.f32 %v3896_v15, %v3797_v51 }
 0x37a   : > { %v4034_v10 = vmul.f32 %v3891_v3, %v3796_v61 }
 0x37b   : > { %v10794_v47 = vpack.c.bf16 %v4036_v44, %v4035_v54 }
 0x37c   : > { %v10789_v4 = vpack.c.bf16 %v4034_v10, %v4033_v59  ;;  %v5787_v40 = vld [vmem:[#allocation3 + $0x18] sm:$0xf]  ;;  %v4796_v22 = vld [vmem:[#allocation3 + $0x1c] sm:$0xf] }
 0x37d   : > { %v5272_v29 = vld [vmem:[#allocation3 + $0x10] sm:$0xf]  ;;  %v5786_v28 = vld [vmem:[#allocation3 + $0x14] sm:$0xf]  ;;  %10944 = vst [vmem:[#allocation3 + $0x28] sm:$0xff] %v10794_v47  }
 0x37e   : > { %5306 = vst [vmem:[#allocation4 + $0x34] sm:$0xf] %v5272_v29  ;;  %v4793_v60 = vld [vmem:[#allocation3 + $0x10] sm:$0xf]  ;;  %v4794_v8 = vld [vmem:[#allocation3 + $0x14] sm:$0xf]  ;;  %v13896_v29 = vpop.f32.mrf.mxu0 }
 0x37f   : > { %10943 = vst [vmem:[#allocation3 + $0x20] sm:$0xff] %v10789_v4   ;;  %v5273_v57 = vld [vmem:[#allocation3 + $0x14] sm:$0xf]  ;;  %v4795_v43 = vld [vmem:[#allocation3 + $0x18] sm:$0xf] }
 0x380   : > { %5820 = vst [vmem:[#allocation4 + $0x18] sm:$0xf] %v5786_v28  ;;  %v5854_v21 = vld [vmem:[#allocation3 + $0x14] sm:$0xf]  ;;  %v5274_v0 = vld [vmem:[#allocation3 + $0x18] sm:$0xf] }
 0x381   : > { %v5890_v18 = vshrl.u32 %v5854_v21, 16  ;;  %v5893_v31 = vshll.u32 %v5854_v21, 16  ;;  %4827 = vst [vmem:[#allocation4 + $0x74] sm:$0xf] %v4793_v60  ;;  %v6301_v62 = vld [vmem:[#allocation3 + $0x14] sm:$0xe]  ;;  %v3976_v47 = vpop.permute.xlu0 %3975 }
 0x382   : > { %4828 = vst [vmem:[#allocation4 + $0x98] sm:$0xf] %v4794_v8  ;;  %v5855_v39 = vld [vmem:[#allocation3 + $0x18] sm:$0xf]  ;;  %v9526_v2 = vrot.slane %v6301_v62, 9  ;;  %v3728_v62 = vadd.f32 %v13762_v52, %v13674_v55 }
 0x383   : > { %5307 = vst [vmem:[#allocation4 + $0x58] sm:$0xf] %v5273_v57  ;;  %v5892_v27 = vrot.slane %v5890_v18, 4  ;;  %v5895_v26 = vrot.slane %v5893_v31, 5  ;;  %v5856_v9 = vld [vmem:[#allocation3 + $0x1c] sm:$0xf] }
 0x384   : > { %5821 = vst [vmem:[#allocation4 + $0x3c] sm:$0xf] %v5787_v40  ;;  %v5899_v56 = vshll.u32 %v5855_v39, 16  ;;  %v5903_v41 = vshrl.u32 %v5855_v39, 16  ;;  %v5909_v34 = vshll.u32 %v5856_v9, 16  ;;  %v5913_v42 = vshrl.u32 %v5856_v9, 16 }
 0x385   : > { %v5896_v23 = vor.u32 %v5895_v26, %v5892_v27  ;;  %v6302_v46 = vld [vmem:[#allocation3 + $0x18] sm:$0xf]  ;;  %v13879_v6 = vld [vmem:[#allocation3 + $0x1c] sm:$0xf]  ;;  %4829 = vst [vmem:[#allocation4 + $0xbc] sm:$0xf] %v4795_v43  ;;  %v3731_v40 = vadd.f32 %v13762_v52, %v13689_v7 }
 0x386   : > { %v5901_v49 = vrot.slane %v5899_v56, 5  ;;  %v5905_v45 = vrot.slane %v5903_v41, 4  ;;  %v6373_v19 = vrot.slane %v6302_v46, 5  ;;  %v13881_v11 = vrot.slane %v5909_v34, 5  ;;  %4830 = vst [vmem:[#allocation4 + $0xe0] sm:$0xf] %v4796_v22  ;;  %v3762_v28 = vpop.f32.mrf.mxu0 }
 0x387   : > { %v5897_v37 = vrot.slane %v5896_v23, 4  ;;  %v13883_v33 = vrot.slane %v5913_v42, 4  ;;  %v5275_v3 = vld [vmem:[#allocation3 + $0x1c] sm:$0xf]  ;;  %5308 = vst [vmem:[#allocation4 + $0x7c] sm:$0xf] %v5274_v0  ;;  %v3763_v27 = vadd.f32 %v13762_v52, %v3762_v28  ;;  %v3981_v0 = vpop.permute.xlu1 %3980  ;;  %v3906_v42 = vpop.permute.xlu2 %3905 }
 0x388   : > { %v5906_v20 = vor.u32 %v5905_v45, %v5901_v49  ;;  %v6374_v10 = vsel %vm11371_vm8, %v9526_v2, %v6373_v19  ;;  %v6375_v59 = vrot.slane %v6373_v19, 4  ;;  %v16789_v12 = vrot.slane %v13879_v6, 5  ;;  %v5788_v15 = vld [vmem:[#allocation3 + $0x1c] sm:$0xf]  ;;  %5309 = vst [vmem:[#allocation4 + $0xa0] sm:$0xf] %v5275_v3 }
 0x389   : > { %v5902_v61 = vsel %vm11330_vm5, %v5897_v37, %v5901_v49  ;;  %6508 = vst [vmem:[#allocation4 + $0x20] sm:$0xf] %v6374_v10  ;;  %v4797_v32 = vld [vmem:[#allocation3 + $0x20] sm:$0xf]  ;;  %v4798_v54 = vld [vmem:[#allocation3 + $0x24] sm:$0xf]  ;;  %v3911_v7 = vpop.permute.xlu0 %3910 }
 0x38a   : > { %6267 = vst [vmem:[#allocation4 + $0x1c] sm:$0xf] %v5902_v61  ;;  %v5907_v4 = vrot.slane %v5906_v20, 4  ;;  %v6377_v51 = vsel %vm11371_vm8, %v6375_v59, %v16789_v12  ;;  %v5276_v60 = vld [vmem:[#allocation3 + $0x20] sm:$0xf]  ;;  %v10695_v21 = vld [vmem:[%s16782_s3 + $0x40] sm:$0xff] }
 0x38b   : > { %6509 = vst [vmem:[#allocation4 + $0x44] sm:$0xf] %v6377_v51  ;;  %v5277_v44 = vld [vmem:[#allocation3 + $0x24] sm:$0xf]  ;;  %v5789_v8 = vld [vmem:[#allocation3 + $0x20] sm:$0xf]  ;;  %8175 = vmatpush.bf16.msra.mxu2 %v10695_v21  ;;  %10991 = vmatpush.bf16.msra.mxu3 %v10695_v21 }
 0x38c   : > { %v5912_v30 = vsel %vm11330_vm5, %v5907_v4, %v13881_v11  ;;  %5822 = vst [vmem:[#allocation4 + $0x60] sm:$0xf] %v5788_v15  ;;  %v5790_v57 = vld [vmem:[#allocation3 + $0x24] sm:$0xf]  ;;  %v10715_v18 = vld [vmem:[%s16782_s3 + $0xe0] sm:$0xff]  ;;  %v10714_v23 = vld [vmem:[%s16782_s3 + $0xd8] sm:$0xff] }
 0x38d   : > { %6268 = vst [vmem:[#allocation4 + $0x40] sm:$0xf] %v5912_v30  ;;  %8359 = vmatpush.bf16.msrb.mxu0 %v10715_v18  ;;  %v4139_v43 = vld [vmem:[#allocation3 + $0xc] sm:$0xf]  ;;  %v4799_v22 = vld [vmem:[#allocation3 + $0x28] sm:$0xf] }
 0x38e   : > { %4831 = vst [vmem:[#allocation4 + $0x104] sm:$0xf] %v4797_v32  ;;  %v3765_v31 = vpop.f32.mrf.mxu0  ;;  %v3813_v39 = vmax.f32 %v3763_v27, 0.0  ;;  %v4800_v2 = vld [vmem:[#allocation3 + $0x2c] sm:$0xf]  ;;  %v3799_v9 = vmax.f32 %v3728_v62, 0.0 }
 0x38f   : > { %4832 = vst [vmem:[#allocation4 + $0x128] sm:$0xf] %v4798_v54  ;;  %v3766_v26 = vadd.f32 %v13762_v52, %v3765_v31  ;;  %v5278_v56 = vld [vmem:[#allocation3 + $0x28] sm:$0xf]  ;;  %v3800_v41 = vmax.f32 %v3731_v40, 0.0  ;;  %v4214_v34 = vrot.slane %v4139_v43, 7 }
 0x390   : > { %5310 = vst [vmem:[#allocation4 + $0xc4] sm:$0xf] %v5276_v60  ;;  %v5279_v46 = vld [vmem:[#allocation3 + $0x2c] sm:$0xf]  ;;  %v4051_v49 = vmul.f32 %v3976_v47, %v3813_v39  ;;  %v13916_v55 = vld [vmem:[#allocation3 + $0x10] sm:$0xf]  ;;  %v4037_v20 = vmul.f32 %v3906_v42, %v3799_v9 }
 0x391   : > { %5311 = vst [vmem:[#allocation4 + $0xe8] sm:$0xf] %v5277_v44  ;;  %8360 = vmatpush.bf16.msrb.mxu0 %v10714_v23  ;;  %v3814_v37 = vmax.f32 %v3766_v26, 0.0  ;;  %v5791_v19 = vld [vmem:[#allocation3 + $0x28] sm:$0xf]  ;;  %v4038_v4 = vmul.f32 %v3911_v7, %v3800_v41  ;;  %v4217_v54 = vrot.slane %v13916_v55, 7 }
 0x392   : > { %5823 = vst [vmem:[#allocation4 + $0x84] sm:$0xf] %v5789_v8  ;;  %v5792_v3 = vld [vmem:[#allocation3 + $0x2c] sm:$0xf]  ;;  %v4136_v61 = vld [vmem:[#allocation3] sm:$0x8] }
 0x393   : > { %5824 = vst [vmem:[#allocation4 + $0xa8] sm:$0xf] %v5790_v57  ;;  %v4052_v45 = vmul.f32 %v3981_v0, %v3814_v37  ;;  %v4137_v10 = vld [vmem:[#allocation3 + $0x4] sm:$0xf]  ;;  %v4138_v59 = vld [vmem:[#allocation3 + $0x8] sm:$0xf]  ;;  %v10799_v31 = vpack.c.bf16 %v4038_v4, %v4037_v20 }
 0x394   : > { %4833 = vst [vmem:[#allocation4 + $0x14c] sm:$0xf] %v4799_v22  ;;  %v9523_v15 = vrot.slane %v4136_v61, 11  ;;  %v4208_v51 = vrot.slane %v4137_v10, 7  ;;  %v4211_v30 = vrot.slane %v4138_v59, 7  ;;  %v10713_v28 = vld [vmem:[%s16782_s3 + $0xd0] sm:$0xff] }
 0x395   : > { %4834 = vst [vmem:[#allocation4 + $0x170] sm:$0xf] %v4800_v2  ;;  %v10834_v32 = vpack.c.bf16 %v4052_v45, %v4051_v49  ;;  %v4377_v60 = vld [vmem:[#allocation3] sm:$0x8]  ;;  %v4378_v57 = vld [vmem:[#allocation3 + $0x4] sm:$0xf]  ;;  %8361 = vmatpush.bf16.msrb.mxu0 %v10713_v28 }
 0x396   : > { %5312 = vst [vmem:[#allocation4 + $0x10c] sm:$0xf] %v5278_v56  ;;  %v4209_v44 = vsel %vm11490_vm11, %v9523_v15, %v4208_v51  ;;  %v4210_v8 = vrot.slane %v4208_v51, 4  ;;  %v4379_v21 = vld [vmem:[#allocation3 + $0x8] sm:$0xf]  ;;  %v4413_v18 = vshrl.u32 %v4377_v60, 16  ;;  %v3986_v15 = vpop.permute.xlu1 %3985 }
 0x397   : > { %5313 = vst [vmem:[#allocation4 + $0x130] sm:$0xf] %v5279_v46  ;;  %v4418_v47 = vshrl.u32 %v4378_v57, 16  ;;  %v4421_v27 = vshll.u32 %v4378_v57, 16  ;;  %v4427_v26 = vshrl.u32 %v4379_v21, 16  ;;  %v4430_v23 = vshll.u32 %v4379_v21, 16  ;;  %v3767_v46 = vpop.f32.mrf.mxu0 }
 0x398   : > { %5825 = vst [vmem:[#allocation4 + $0xcc] sm:$0xf] %v5791_v19  ;;  %v4216_v62 = vrot.slane %v4214_v34, 4  ;;  %v4212_v40 = vsel %vm11490_vm11, %v4210_v8, %v4211_v30  ;;  %v10712_v43 = vld [vmem:[%s16782_s3 + $0xc8] sm:$0xff]  ;;  %v4213_v22 = vrot.slane %v4211_v30, 4  ;;  %v9524_v0 = vrot.slane %v4413_v18, 11 }
 0x399   : > { %5826 = vst [vmem:[#allocation4 + $0xf0] sm:$0xf] %v5792_v3  ;;  %v4420_v39 = vrot.slane %v4418_v47, 7  ;;  %v13929_v37 = vrot.slane %v4427_v26, 7  ;;  %8362 = vmatpush.bf16.msrb.mxu0 %v10712_v43  ;;  %v3768_v61 = vadd.f32 %v13762_v52, %v3767_v46  ;;  %v14064_v55 = vld [vmem:[#allocation3 + $0x1c] sm:$0xf] }
 0x39a   : > { %4343 = vst [vmem:[#allocation4] sm:$0xf] %v4209_v44  ;;  %v4215_v2 = vsel %vm11490_vm11, %v4213_v22, %v4214_v34  ;;  %v4218_v9 = vsel %vm11490_vm11, %v4216_v62, %v4217_v54 }
 0x39b   : > { %10952 = vst [vmem:[#allocation3 + $0x68] sm:$0xff] %v10834_v32   ;;  %v4423_v56 = vor.u32 %v4421_v27, %v4420_v39  ;;  %v4425_v41 = vrot.slane %v4420_v39, 4  ;;  %v4432_v42 = vor.u32 %v4430_v23, %v13929_v37  ;;  %v3815_v51 = vmax.f32 %v3768_v61, 0.0  ;;  %v3991_v32 = vpop.permute.xlu2 %3990  ;;  %v10711_v27 = vld [vmem:[%s16782_s3 + $0xc0] sm:$0xff] }
 0x39c   : > { %4344 = vst [vmem:[#allocation4 + $0x24] sm:$0xf] %v4212_v40  ;;  %v3733_v23 = vadd.f32 %v13762_v52, %v13707_v53  ;;  %v3736_v40 = vadd.f32 %v13762_v52, %v13734_v48  ;;  %v4381_v53 = vld [vmem:[#allocation3 + $0x10] sm:$0xf] }
 0x39d   : > { %10945 = vst [vmem:[#allocation3 + $0x30] sm:$0xff] %v10799_v31   ;;  %v4424_v49 = vsel %vm11300_vm2, %v9524_v0, %v4423_v56  ;;  %v4433_v45 = vsel %vm11300_vm2, %v4425_v41, %v4432_v42  ;;  %v4053_v8 = vmul.f32 %v3986_v15, %v3815_v51  ;;  %8363 = vmatpush.bf16.msrb.mxu0 %v10711_v27  ;;  %v3916_v56 = vpop.permute.xlu0 %3915  ;;  %v4380_v41 = vld [vmem:[#allocation3 + $0xc] sm:$0xf]  ;;  %v4860_v48 = vld [vmem:[#allocation3 + $0x10] sm:$0xf] }
 0x39e   : > { %4345 = vst [vmem:[#allocation4 + $0x48] sm:$0xf] %v4215_v2  ;;  %v3801_v39 = vmax.f32 %v3733_v23, 0.0  ;;  %v3921_v46 = vpop.permute.xlu1 %3920  ;;  %v4439_v51 = vshll.u32 %v4380_v41, 16 }
 0x39f   : > { %4346 = vst [vmem:[#allocation4 + $0x6c] sm:$0xf] %v4218_v9  ;;  %v3770_v3 = vpop.f32.mrf.mxu0  ;;  %v3802_v9 = vmax.f32 %v3736_v40, 0.0 }
 0x3a0   : > { %4756 = vst [vmem:[#allocation4 + $0x4] sm:$0xf] %v4424_v49  ;;  %v3771_v59 = vadd.f32 %v13762_v52, %v3770_v3  ;;  %v4039_v42 = vmul.f32 %v3916_v56, %v3801_v39  ;;  %v4445_v3 = vshrl.u32 %v4381_v53, 16 }
 0x3a1   : > { %v9529_v34 = vld [vmem:[#allocation4] sm:$0xf]  ;;  %4757 = vst [vmem:[#allocation4 + $0x28] sm:$0xf] %v4433_v45  ;;  %v4040_v49 = vmul.f32 %v3921_v46, %v3802_v9  ;;  %v4859_v45 = vld [vmem:[#allocation3 + $0xc] sm:$0xf] }
 0x3a2   : > { %v4815_v30 = vld [vmem:[#allocation3 + $0x68] sm:$0xf]  ;;  %v4816_v60 = vld [vmem:[#allocation3 + $0x6c] sm:$0xf]  ;;  %v3816_v28 = vmax.f32 %v3771_v59, 0.0  ;;  %v4899_v61 = vshrl.u32 %v4859_v45, 16 }
 0x3a3   : > { %v10538_v19 = vld [vmem:[#allocation4 + $0x20] sm:$0xf0]  ;;  %v5294_v44 = vld [vmem:[#allocation3 + $0x68] sm:$0xf]  ;;  %v5295_v57 = vld [vmem:[#allocation3 + $0x6c] sm:$0xf] }
 0x3a4   : > { %v9530_v7 = vor.u32 %v10538_v19, %v9529_v34  ;;  %4849 = vst [vmem:[#allocation4 + $0x38c] sm:$0xf] %v4815_v30  ;;  %v4054_v21 = vmul.f32 %v3991_v32, %v3816_v28  ;;  %v5807_v18 = vld [vmem:[#allocation3 + $0x68] sm:$0xf]  ;;  %v5808_v31 = vld [vmem:[#allocation3 + $0x6c] sm:$0xf]  ;;  %v13951_v19 = vpop.permute.xlu2 %3995 }
 0x3a5   : > { %4850 = vst [vmem:[#allocation4 + $0x3b0] sm:$0xf] %v4816_v60  ;;  %v4801_v26 = vld [vmem:[#allocation3 + $0x30] sm:$0xf]  ;;  %v4802_v62 = vld [vmem:[#allocation3 + $0x34] sm:$0xf] }
 0x3a6   : > { %8082 = vmatmul.bf16.vlgmr.msra.gmra.mxu1 %v9530_v7  ;;  %5328 = vst [vmem:[#allocation4 + $0x34c] sm:$0xf] %v5294_v44  ;;  %v10839_v47 = vpack.c.bf16 %v4054_v21, %v4053_v8  ;;  %v5280_v43 = vld [vmem:[#allocation3 + $0x30] sm:$0xf]  ;;  %v5281_v22 = vld [vmem:[#allocation3 + $0x34] sm:$0xf]  ;;  %v10804_v7 = vpack.c.bf16 %v4040_v49, %v4039_v42 }
 0x3a7   : > { %v10534_v20 = vld [vmem:[#allocation4 + $0x4] sm:$0xf]  ;;  %5329 = vst [vmem:[#allocation4 + $0x370] sm:$0xf] %v5295_v57  ;;  %v5793_v0 = vld [vmem:[#allocation3 + $0x30] sm:$0xf] }
 0x3a8   : > { %v9531_v10 = vld [vmem:[#allocation4 + $0x24] sm:$0xf0]  ;;  %5841 = vst [vmem:[#allocation4 + $0x30c] sm:$0xf] %v5807_v18  ;;  %v5794_v2 = vld [vmem:[#allocation3 + $0x34] sm:$0xf] }
 0x3a9   : > { %v9534_v4 = vor.u32 %v10534_v20, %v9531_v10  ;;  %5842 = vst [vmem:[#allocation4 + $0x330] sm:$0xf] %v5808_v31  ;;  %v4436_v34 = vshrl.u32 %v4380_v41, 16  ;;  %v4908_v20 = vshrl.u32 %v4860_v48, 16  ;;  %v3738_v10 = vadd.f32 %v13762_v52, %v13785_v13  ;;  %v10734_v28 = vld [vmem:[%s16782_s3 + $0x178] sm:$0xff] }
 0x3aa   : > { %10953 = vst [vmem:[#allocation3 + $0x70] sm:$0xff] %v10839_v47   ;;  %v13957_v15 = vrot.slane %v4445_v3, 7  ;;  %v4901_v30 = vrot.slane %v4899_v61, 7  ;;  %v4448_v44 = vshll.u32 %v4381_v53, 16  ;;  %v4911_v13 = vshll.u32 %v4860_v48, 16  ;;  %8544 = vmatpush.bf16.msrb.mxu2 %v10734_v28 }
 0x3ab   : > { %8176 = vmatmul.bf16.vlgmr.msra.gmra.mxu2 %v9534_v4  ;;  %4835 = vst [vmem:[#allocation4 + $0x194] sm:$0xf] %v4801_v26  ;;  %v4438_v59 = vrot.slane %v4436_v34, 7  ;;  %v3741_v4 = vadd.f32 %v13762_v52, %v13808_v16  ;;  %v13959_v32 = vrot.slane %v4908_v20, 7  ;;  %v3803_v57 = vmax.f32 %v3738_v10, 0.0  ;;  %v3926_v16 = vpop.permute.xlu1 %3925 }
 0x3ac   : > { %4836 = vst [vmem:[#allocation4 + $0x1b8] sm:$0xf] %v4802_v62  ;;  %v4434_v31 = vrot.slane %v13929_v37, 4  ;;  %v4902_v27 = vshll.u32 %v4859_v45, 16  ;;  %v4450_v26 = vor.u32 %v4448_v44, %v13957_v15  ;;  %v4906_v40 = vrot.slane %v4901_v30, 4 }
 0x3ad   : > { %5314 = vst [vmem:[#allocation4 + $0x154] sm:$0xf] %v5280_v43  ;;  %v4441_v21 = vor.u32 %v4439_v51, %v4438_v59  ;;  %v3804_v47 = vmax.f32 %v3741_v4, 0.0  ;;  %v4443_v62 = vrot.slane %v4438_v59, 4  ;;  %v4913_v43 = vor.u32 %v4911_v13, %v13959_v32  ;;  %v10547_v56 = vld [vmem:[#allocation4 + $0x68] sm:$0xf0] }
 0x3ae   : > { %5315 = vst [vmem:[#allocation4 + $0x178] sm:$0xf] %v5281_v22  ;;  %v3931_v22 = vpop.permute.xlu2 %3930  ;;  %v4041_v9 = vmul.f32 %v3926_v16, %v3803_v57  ;;  %v4904_v37 = vor.u32 %v4902_v27, %v4901_v30  ;;  %v4858_v42 = vld [vmem:[#allocation3 + $0x8] sm:$0x8]  ;;  %v5339_v61 = vld [vmem:[#allocation3 + $0xc] sm:$0xf]  ;;  %v13977_v20 = vadd.f32 %v13762_v52, %v13814_v1  ;;  %v13988_v28 = vadd.f32 %v13762_v52, %v13833_v36 }
 0x3af   : > { %5827 = vst [vmem:[#allocation4 + $0x114] sm:$0xf] %v5793_v0  ;;  %v4442_v41 = vsel %vm11300_vm2, %v4434_v31, %v4441_v21  ;;  %v4042_v46 = vmul.f32 %v3931_v22, %v3804_v47  ;;  %v4451_v49 = vsel %vm11300_vm2, %v4443_v62, %v4450_v26  ;;  %v4894_v45 = vshrl.u32 %v4858_v42, 16  ;;  %v8954_v30 = vld [vmem:[%s16785_s6] sm:$0x3] }
 0x3b0   : > { %5828 = vst [vmem:[#allocation4 + $0x138] sm:$0xf] %v5794_v2  ;;  %v9565_v2 = vld [vmem:[#allocation4 + $0x48] sm:$0xf]  ;;  %v4914_v48 = vsel %vm11300_vm2, %v4906_v40, %v4913_v43  ;;  %v5375_v10 = vshrl.u32 %v5339_v61, 16  ;;  %v5378_v59 = vshll.u32 %v5339_v61, 16  ;;  %v13992_v1 = vadd.f32 %v13762_v52, %v13859_v17 }
 0x3b1   : > { %10946 = vst [vmem:[#allocation3 + $0x38] sm:$0xff] %v10804_v7   ;;  %v4817_v60 = vld [vmem:[#allocation3 + $0x70] sm:$0xf]  ;;  %v4818_v8 = vld [vmem:[#allocation3 + $0x74] sm:$0xf]  ;;  %v9566_v53 = vor.u32 %v10547_v56, %v9565_v2  ;;  %v9525_v34 = vrot.slane %v4894_v45, 11  ;;  %v10809_v7 = vpack.c.bf16 %v4042_v46, %v4041_v9  ;;  %v14003_v26 = vadd.f32 %v13762_v52, %v13869_v63 }
 0x3b2   : > { %v5296_v18 = vld [vmem:[#allocation3 + $0x70] sm:$0xf]  ;;  %v5297_v23 = vld [vmem:[#allocation3 + $0x74] sm:$0xf]  ;;  %4851 = vst [vmem:[#allocation4 + $0x3d4] sm:$0xf] %v4817_v60  ;;  %v13984_v60 = vadd.f32 %v13762_v52, %v13822_v35  ;;  %v14007_v62 = vadd.f32 %v13762_v52, %v13873_v38  ;;  %v14011_v40 = vadd.f32 %v13762_v52, %v13877_v58  ;;  %v14021_v2 = vadd.f32 %v13762_v52, %v13896_v29 }
 0x3b3   : > { %v5809_v0 = vld [vmem:[#allocation3 + $0x70] sm:$0xf]  ;;  %4852 = vst [vmem:[#allocation4 + $0x3f8] sm:$0xf] %v4818_v8  ;;  %v5810_v39 = vld [vmem:[#allocation3 + $0x74] sm:$0xf]  ;;  %v4905_v3 = vsel %vm11300_vm2, %v9525_v34, %v4904_v37 }
 0x3b4   : > { %5330 = vst [vmem:[#allocation4 + $0x394] sm:$0xf] %v5296_v18  ;;  %v13995_v18 = vsel %vm3692_vm0, %v8954_v30, 0  ;;  %v5377_v31 = vrot.slane %v5375_v10, 4  ;;  %v5380_v16 = vrot.slane %v5378_v59, 5  ;;  %v14038_v59 = vpop.permute.xlu0 %4000  ;;  %v4472_v17 = vshrl.u32 %v14064_v55, 16 }
 0x3b5   : > { %5331 = vst [vmem:[#allocation4 + $0x3b8] sm:$0xf] %v5297_v23  ;;  %v14013_v43 = vld [vmem:[#allocation3 + $0x14] sm:$0xf]  ;;  %v4383_v10 = vld [vmem:[#allocation3 + $0x18] sm:$0xf] }
 0x3b6   : > { %5843 = vst [vmem:[#allocation4 + $0x354] sm:$0xf] %v5809_v0  ;;  %8087 = vmatmul.bf16.gmra.mxu1 %v9566_v53  ;;  %v14015_v0 = vld [vmem:[#allocation3 + $0x14] sm:$0xf]  ;;  %v5381_v38 = vor.u32 %v5380_v16, %v5377_v31  ;;  %v4917_v56 = vshrl.u32 %v14013_v43, 16  ;;  %v4219_v16 = vrot.slane %v4217_v54, 4 }
 0x3b7   : > { %5844 = vst [vmem:[#allocation4 + $0x378] sm:$0xf] %v5810_v39  ;;  %v14017_v39 = vld [vmem:[#allocation3 + $0x18] sm:$0xf]  ;;  %v14023_v9 = vld [vmem:[#allocation3 + $0x14] sm:$0xf] }
 0x3b8   : > { %4758 = vst [vmem:[#allocation4 + $0x4c] sm:$0xf] %v4442_v41  ;;  %v4803_v13 = vld [vmem:[#allocation3 + $0x38] sm:$0xf]  ;;  %v4804_v47 = vld [vmem:[#allocation3 + $0x3c] sm:$0xf] }
 0x3b9   : > { %4759 = vst [vmem:[#allocation4 + $0x70] sm:$0xf] %v4451_v49  ;;  %v5282_v23 = vld [vmem:[#allocation3 + $0x38] sm:$0xf]  ;;  %v5283_v22 = vld [vmem:[#allocation3 + $0x3c] sm:$0xf] }
 0x3ba   : > { %5238 = vst [vmem:[#allocation4 + $0x30] sm:$0xf] %v4914_v48  ;;  %v5795_v63 = vld [vmem:[#allocation3 + $0x38] sm:$0xf]  ;;  %v5796_v37 = vld [vmem:[#allocation3 + $0x3c] sm:$0xf]  ;;  %v3772_v48 = vpop.f32.mrf.mxu0 }
 0x3bb   : > { %5237 = vst [vmem:[#allocation4 + $0xc] sm:$0xf] %v4905_v3  ;;  %v14027_v41 = vld [vmem:[#allocation3 + $0x1c] sm:$0xf]  ;;  %v5340_v53 = vld [vmem:[#allocation3 + $0x10] sm:$0xf]  ;;  %v14047_v31 = vadd.f32 %v13762_v52, %v3772_v48 }
 0x3bc   : > { %10947 = vst [vmem:[#allocation3 + $0x40] sm:$0xff] %v10809_v7   ;;  %v16791_v29 = vrot.slane %v14015_v0, 7  ;;  %v4454_v49 = vshrl.u32 %v14023_v9, 16  ;;  %v5341_v45 = vld [vmem:[#allocation3 + $0x14] sm:$0xf]  ;;  %v14034_v7 = vrot.slane %v5381_v38, 4 }
 0x3bd   : > { %16881 = vst [vmem:[#allocation13_spill] sm:$0xff] %v13995_v18  ;;  %v16790_v3 = vrot.slane %v14017_v39, 7  ;;  %v16788_v61 = vrot.slane %v14027_v41, 7  ;;  %v5388_v30 = vshrl.u32 %v5340_v53, 16  ;;  %v4920_v38 = vshll.u32 %v14013_v43, 16 }
 0x3be   : > { %4837 = vst [vmem:[#allocation4 + $0x1dc] sm:$0xf] %v4803_v13  ;;  %v5398_v13 = vshrl.u32 %v5341_v45, 16  ;;  %v5342_v48 = vld [vmem:[#allocation3 + $0x18] sm:$0xf]  ;;  %v4466_v46 = vshll.u32 %v4383_v10, 16 }
 0x3bf   : > { %v10543_v4 = vld [vmem:[#allocation4 + $0x4c] sm:$0xf]  ;;  %4838 = vst [vmem:[#allocation4 + $0x200] sm:$0xf] %v4804_v47  ;;  %v4222_v47 = vrot.slane %v16791_v29, 4  ;;  %v4452_v29 = vrot.slane %v13957_v15, 4 }
 0x3c0   : > { %v9567_v51 = vld [vmem:[#allocation4 + $0x6c] sm:$0xf0]  ;;  %5316 = vst [vmem:[#allocation4 + $0x19c] sm:$0xf] %v5282_v23  ;;  %v14053_v23 = vrot.slane %v4454_v49, 7 }
 0x3c1   : > { %v9570_v44 = vor.u32 %v10543_v4, %v9567_v51  ;;  %v9539_v8 = vld [vmem:[#allocation4 + $0x2c] sm:$0xf0]  ;;  %5317 = vst [vmem:[#allocation4 + $0x1c0] sm:$0xf] %v5283_v22  ;;  %v14040_v4 = vrot.slane %v4917_v56, 7  ;;  %v5384_v51 = vshll.u32 %v5340_v53, 16 }
 0x3c2   : > { %v10535_v57 = vld [vmem:[#allocation4 + $0xc] sm:$0xf]  ;;  %5829 = vst [vmem:[#allocation4 + $0x15c] sm:$0xf] %v5795_v63  ;;  %v4463_v22 = vshrl.u32 %v4383_v10, 16  ;;  %v3775_v63 = vpop.f32.mrf.mxu3  ;;  %v4461_v24 = vrot.slane %v14053_v23, 4 }
 0x3c3   : > { %8181 = vmatmul.bf16.gmra.mxu2 %v9570_v44  ;;  %v9542_v21 = vor.u32 %v10535_v57, %v9539_v8  ;;  %5830 = vst [vmem:[#allocation4 + $0x180] sm:$0xf] %v5796_v37  ;;  %v4862_v44 = vld [vmem:[#allocation3 + $0x18] sm:$0xf]  ;;  %v10726_v8 = vld [vmem:[%s16782_s3 + $0x138] sm:$0xff]  ;;  %v4457_v57 = vshll.u32 %v14023_v9, 16  ;;  %v3776_v58 = vadd.f32 %v13762_v52, %v3775_v63 }
 0x3c4   : > { %16882 = vst [vmem:[#allocation14_spill] sm:$0xff] %v14034_v7  ;;  %8450 = vmatpush.bf16.msrb.mxu1 %v10726_v8  ;;  %v14058_v9 = vrot.slane %v16790_v3, 4  ;;  %v14062_v37 = vrot.slane %v16788_v61, 4  ;;  %v4926_v54 = vshrl.u32 %v4862_v44, 16  ;;  %v14068_v49 = vrot.slane %v5384_v51, 5 }
 0x3c5   : > { %8364 = vmatmul.bf16.vlgmr.msrb.gmra.mxu0 %v9542_v21  ;;  %v5394_v21 = vshll.u32 %v5341_v45, 16  ;;  %v5390_v45 = vrot.slane %v5388_v30, 4  ;;  %v14072_v8 = vrot.slane %v5398_v13, 4  ;;  %v5343_v34 = vld [vmem:[#allocation3 + $0x1c] sm:$0xf]  ;;  %v14075_v42 = vrot.slane %v4463_v22, 7 }
 0x3c6   : > { %16883 = vst [vmem:[#allocation15_spill] sm:$0xff] %v14068_v49  ;;  %v14078_v27 = vld [vmem:[#allocation3 + $0x1c] sm:$0xf]  ;;  %v4805_v25 = vld [vmem:[#allocation3 + $0x40] sm:$0xf]  ;;  %v14080_v61 = vrot.slane %v4926_v54, 7  ;;  %v4459_v52 = vor.u32 %v4457_v57, %v14053_v23  ;;  %v14088_v54 = vpop.permute.xlu0 %4005 }
 0x3c7   : > { %v14070_v43 = vrot.slane %v5394_v21, 5  ;;  %v4929_v51 = vshll.u32 %v4862_v44, 16  ;;  %v5404_v30 = vshll.u32 %v5342_v48, 16  ;;  %v3817_v21 = vmax.f32 %v14047_v31, 0.0  ;;  %v4806_v12 = vld [vmem:[#allocation3 + $0x44] sm:$0xf] }
 0x3c8   : > { %v5408_v13 = vshrl.u32 %v5342_v48, 16  ;;  %v5414_v36 = vshll.u32 %v5343_v34, 16  ;;  %v14083_v10 = vld [vmem:[#allocation3 + $0x68] sm:$0xf]  ;;  %v5284_v35 = vld [vmem:[#allocation3 + $0x40] sm:$0xf]  ;;  %v4922_v44 = vor.u32 %v4920_v38, %v14040_v4  ;;  %v5391_v31 = vor.u32 %v5390_v45, %v14068_v49 }
 0x3c9   : > { %16884 = vst [vmem:[#allocation16_spill] sm:$0xff] %v14070_v43  ;;  %v5418_v22 = vshrl.u32 %v5343_v34, 16  ;;  %v14086_v63 = vld [vmem:[#allocation3 + $0x6c] sm:$0xf]  ;;  %v5285_v53 = vld [vmem:[#allocation3 + $0x44] sm:$0xf]  ;;  %v5401_v34 = vor.u32 %v14072_v8, %v14070_v43  ;;  %v4468_v57 = vor.u32 %v4466_v46, %v14075_v42  ;;  %v4931_v38 = vor.u32 %v4929_v51, %v14080_v61 }
 0x3ca   : > { %16885 = vst [vmem:[#allocation17_spill] sm:$0xff] %v14083_v10  ;;  %v3818_v56 = vmax.f32 %v3776_v58, 0.0  ;;  %v4935_v48 = vshrl.u32 %v14078_v27, 16  ;;  %v5797_v3 = vld [vmem:[#allocation3 + $0x40] sm:$0xf]  ;;  %v14100_v45 = vrot.slane %v5404_v30, 5 }
 0x3cb   : > { %4839 = vst [vmem:[#allocation4 + $0x224] sm:$0xf] %v4805_v25  ;;  %v16795_v25 = vrot.slane %v14083_v10, 7  ;;  %v5798_v58 = vld [vmem:[#allocation3 + $0x44] sm:$0xf]  ;;  %v5410_v18 = vrot.slane %v5408_v13, 4 }
 0x3cc   : > { %4840 = vst [vmem:[#allocation4 + $0x248] sm:$0xf] %v4806_v12  ;;  %v16887_v12 = vrot.slane %v14015_v0, 7  ;;  %v14106_v8 = vrot.slane %v5414_v36, 5  ;;  %v5420_v46 = vrot.slane %v5418_v22, 4  ;;  %v4056_v51 = vmul.f32 %v14038_v59, %v3818_v56 }
 0x3cd   : > { %5318 = vst [vmem:[#allocation4 + $0x1e4] sm:$0xf] %v5284_v35  ;;  %v14108_v43 = vld [vmem:[#allocation3 + $0x70] sm:$0xf]  ;;  %v16889_v35 = vrot.slane %v14017_v39, 7  ;;  %v14115_v30 = vrot.slane %v5391_v31, 4  ;;  %v4460_v36 = vsel %vm11300_vm2, %v4452_v29, %v4459_v52  ;;  %v4469_v59 = vsel %vm11300_vm2, %v4461_v24, %v4468_v57 }
 0x3ce   : > { %16886 = vst [vmem:[#allocation18_spill] sm:$0xff] %v14100_v45  ;;  %v4221_v15 = vsel %vm11490_vm11, %v4219_v16, %v16887_v12  ;;  %v4475_v0 = vshll.u32 %v14064_v55, 16  ;;  %v14121_v16 = vrot.slane %v4472_v17, 7  ;;  %v4285_v39 = vrot.slane %v16795_v25, 4  ;;  %v14130_v55 = vld [vmem:[#allocation3 + $0x20] sm:$0xf]  ;;  %v3941_v31 = vpop.permute.xlu0 %3940 }
 0x3cf   : > { %5319 = vst [vmem:[#allocation4 + $0x208] sm:$0xf] %v5285_v53  ;;  %v4224_v23 = vsel %vm11490_vm11, %v4222_v47, %v16889_v35  ;;  %v4286_v53 = vrot.slane %v14086_v63, 7  ;;  %v3936_v47 = vpop.permute.xlu2 %3935  ;;  %v14128_v56 = vrot.slane %v4935_v48, 7  ;;  %v16797_v13 = vrot.slane %v14108_v43, 7  ;;  %v14143_v63 = vpop.permute.xlu1 %4010 }
 0x3d0   : > { %16888 = vst [vmem:[#allocation19_spill] sm:$0xff] %v14106_v8  ;;  %v16891_v17 = vrot.slane %v13959_v32, 4  ;;  %v5411_v29 = vor.u32 %v5410_v18, %v14100_v45  ;;  %v16892_v52 = vrot.slane %v14040_v4, 4  ;;  %v14145_v48 = vrot.slane %v5401_v34, 4  ;;  %v14265_v10 = vld [vmem:[#allocation3 + $0x2c] sm:$0xf] }
 0x3d1   : > { %5831 = vst [vmem:[#allocation4 + $0x1a4] sm:$0xf] %v5797_v3  ;;  %v4055_v3 = vmul.f32 %v13951_v19, %v3817_v21  ;;  %v5421_v21 = vor.u32 %v5420_v46, %v14106_v8  ;;  %v4288_v32 = vrot.slane %v4286_v53, 4  ;;  %v16894_v57 = vmax.f32 %v13977_v20, 0.0  ;;  %v14247_v46 = vld [vmem:[#allocation3 + $0x28] sm:$0xf] }
 0x3d2   : > { %16890 = vst [vmem:[#allocation20_spill] sm:$0xff] %v14115_v30  ;;  %v4923_v19 = vsel %vm11300_vm2, %v16891_v17, %v4922_v44  ;;  %v4932_v24 = vsel %vm11300_vm2, %v16892_v52, %v4931_v38  ;;  %v16895_v18 = vmax.f32 %v13984_v60, 0.0  ;;  %v4477_v12 = vor.u32 %v4475_v0, %v14121_v16  ;;  %v5345_v17 = vld [vmem:[#allocation3 + $0x24] sm:$0xf] }
 0x3d3   : > { %5832 = vst [vmem:[#allocation4 + $0x1c8] sm:$0xf] %v5798_v58  ;;  %v10844_v22 = vpack.c.bf16 %v4056_v51, %v4055_v3  ;;  %v4043_v44 = vmul.f32 %v3936_v47, %v16894_v57  ;;  %v4229_v38 = vrot.slane %v14130_v55, 7  ;;  %v4287_v34 = vsel %vm11490_vm11, %v4285_v39, %v4286_v53  ;;  %v14179_v55 = vld [vmem:[#allocation3 + $0x20] sm:$0xf] }
 0x3d4   : > { %4347 = vst [vmem:[#allocation4 + $0x90] sm:$0xf] %v4221_v15  ;;  %v4044_v58 = vmul.f32 %v3941_v31, %v16895_v18  ;;  %v14153_v15 = vld [vmem:[#allocation3 + $0x24] sm:$0xf]  ;;  %v4290_v20 = vsel %vm11490_vm11, %v4288_v32, %v16797_v13  ;;  %v4470_v35 = vrot.slane %v14075_v42, 4  ;;  %v14165_v51 = vrot.slane %v5411_v29, 4 }
 0x3d5   : > { %4348 = vst [vmem:[#allocation4 + $0xb4] sm:$0xf] %v4224_v23  ;;  %v14167_v0 = vrot.slane %v5421_v21, 4  ;;  %v16898_v53 = vrot.slane %v13879_v6, 5  ;;  %v16796_v39 = vrot.slane %v14153_v15, 7  ;;  %v4230_v6 = vsel %vm11490_vm11, %v14062_v37, %v4229_v38 }
 0x3d6   : > { %4760 = vst [vmem:[#allocation4 + $0x94] sm:$0xf] %v4460_v36  ;;  %v10814_v60 = vpack.c.bf16 %v4044_v58, %v4043_v44  ;;  %v5344_v36 = vld [vmem:[#allocation3 + $0x20] sm:$0xf]  ;;  %v14190_v31 = vld [vmem:[#allocation3 + $0x24] sm:$0xf]  ;;  %v3946_v4 = vpop.permute.xlu0 %3945 }
 0x3d7   : > { %16893 = vst [vmem:[#allocation21_spill] sm:$0xff] %v14145_v48  ;;  %v14171_v3 = vrot.slane %v16898_v53, 4  ;;  %v5424_v29 = vshll.u32 %v5344_v36, 16  ;;  %v5428_v21 = vshrl.u32 %v5344_v36, 16  ;;  %v5857_v32 = vld [vmem:[#allocation3 + $0x20] sm:$0xf] }
 0x3d8   : > { %4761 = vst [vmem:[#allocation4 + $0xb8] sm:$0xf] %v4469_v59  ;;  %v16900_v59 = vrot.slane %v14027_v41, 7  ;;  %v4478_v41 = vsel %vm11300_vm2, %v4470_v35, %v4477_v12  ;;  %v5858_v44 = vld [vmem:[#allocation3 + $0x24] sm:$0xf]  ;;  %v5434_v58 = vshll.u32 %v5345_v17, 16  ;;  %v16902_v12 = vor.u32 %v13883_v33, %v13881_v11 }
 0x3d9   : > { %5239 = vst [vmem:[#allocation4 + $0x54] sm:$0xf] %v4923_v19  ;;  %v14199_v36 = vrot.slane %v4229_v38, 4  ;;  %v4944_v53 = vshrl.u32 %v14179_v55, 16  ;;  %v4953_v33 = vshrl.u32 %v14190_v31, 16  ;;  %v14209_v38 = vrot.slane %v5424_v29, 5 }
 0x3da   : > { %5240 = vst [vmem:[#allocation4 + $0x78] sm:$0xf] %v4932_v24  ;;  %v4227_v42 = vsel %vm11490_vm11, %v14058_v9, %v16900_v59  ;;  %v14188_v9 = vld [vmem:[#allocation3 + $0x24] sm:$0xf]  ;;  %v14197_v35 = vrot.slane %v16902_v12, 4  ;;  %v5919_v59 = vshll.u32 %v5857_v32, 16 }
 0x3db   : > { %16896 = vst [vmem:[#allocation22_spill] sm:$0xff] %v14165_v51  ;;  %v9601_v47 = vld [vmem:[#allocation4 + $0x90] sm:$0xf]  ;;  %v4490_v11 = vshrl.u32 %v14188_v9, 16  ;;  %v14224_v29 = vld [vmem:[#allocation3 + $0x28] sm:$0xf] }
 0x3dc   : > { %16897 = vst [vmem:[#allocation23_spill] sm:$0xff] %v14167_v0  ;;  %v10556_v19 = vld [vmem:[#allocation4 + $0xb0] sm:$0xf0]  ;;  %v14298_v51 = vld [vmem:[#allocation3 + $0x28] sm:$0xf] }
 0x3dd   : > { %10954 = vst [vmem:[#allocation3 + $0x78] sm:$0xff] %v10844_v22   ;;  %v9602_v52 = vor.u32 %v10556_v19, %v9601_v47  ;;  %v10552_v24 = vld [vmem:[#allocation4 + $0x94] sm:$0xf]  ;;  %v14186_v22 = vld [vmem:[#allocation3 + $0x20] sm:$0xf]  ;;  %v5929_v19 = vshll.u32 %v5858_v44, 16 }
 0x3de   : > { %16899 = vst [vmem:[#allocation24_spill] sm:$0xff] %v14171_v3  ;;  %v16912_v3 = vmax.f32 %v13988_v28, 0.0  ;;  %v5346_v28 = vld [vmem:[#allocation3 + $0x28] sm:$0xf] }
 0x3df   : > { %4369 = vst [vmem:[#allocation4 + $0x3a8] sm:$0xf] %v4287_v34  ;;  %v9603_v57 = vld [vmem:[#allocation4 + $0xb4] sm:$0xf0]  ;;  %8092 = vmatmul.bf16.gmra.mxu1 %v9602_v52  ;;  %v5438_v34 = vshrl.u32 %v5345_v17, 16  ;;  %v14204_v17 = vrot.slane %v16796_v39, 4 }
 0x3e0   : > { %4370 = vst [vmem:[#allocation4 + $0x3cc] sm:$0xf] %v4290_v20  ;;  %v9606_v37 = vor.u32 %v10552_v24, %v9603_v57  ;;  %v10544_v18 = vld [vmem:[#allocation4 + $0x54] sm:$0xf]  ;;  %v4481_v52 = vshrl.u32 %v14186_v22, 16  ;;  %v5430_v24 = vrot.slane %v5428_v21, 4 }
 0x3e1   : > { %10948 = vst [vmem:[#allocation3 + $0x48] sm:$0xff] %v10814_v60   ;;  %v9575_v20 = vld [vmem:[#allocation4 + $0x74] sm:$0xf0]  ;;  %v14192_v60 = vpop.permute.xlu1 %4015  ;;  %v5440_v57 = vrot.slane %v5438_v34, 4  ;;  %v14222_v25 = vrot.slane %v5929_v19, 5 }
 0x3e2   : > { %4349 = vst [vmem:[#allocation4 + $0xd8] sm:$0xf] %v4227_v42  ;;  %8186 = vmatmul.bf16.gmra.mxu2 %v9606_v37  ;;  %v9578_v47 = vor.u32 %v10544_v18, %v9575_v20  ;;  %v5923_v42 = vshrl.u32 %v5857_v32, 16  ;;  %v14216_v37 = vld [vmem:[#allocation3 + $0x20] sm:$0xf]  ;;  %v14220_v20 = vrot.slane %v5919_v59, 5  ;;  %v5431_v13 = vor.u32 %v5430_v24, %v14209_v38 }
 0x3e3   : > { %4350 = vst [vmem:[#allocation4 + $0xfc] sm:$0xf] %v4230_v6  ;;  %v5933_v6 = vshrl.u32 %v5858_v44, 16  ;;  %v14214_v44 = vrot.slane %v4944_v53, 7  ;;  %v14218_v18 = vld [vmem:[#allocation3 + $0x24] sm:$0xf] }
 0x3e4   : > { %16901 = vst [vmem:[#allocation25_spill] sm:$0xff] %v14192_v60  ;;  %8369 = vmatmul.bf16.gmra.mxu0 %v9578_v47  ;;  %v5925_v12 = vrot.slane %v5923_v42, 4  ;;  %v14226_v21 = vrot.slane %v4481_v52, 7  ;;  %v14231_v53 = vrot.slane %v4953_v33, 7  ;;  %v14237_v19 = vld [vmem:[#allocation3 + $0x2c] sm:$0xf] }
 0x3e5   : > { %4762 = vst [vmem:[#allocation4 + $0xdc] sm:$0xf] %v4478_v41  ;;  %v14211_v41 = vrot.slane %v5434_v58, 5  ;;  %v5935_v47 = vrot.slane %v5933_v6, 4  ;;  %v14228_v58 = vrot.slane %v4490_v11, 7  ;;  %v14253_v11 = vpop.permute.xlu2 %4020  ;;  %v16917_v52 = vrot.slane %v14218_v18, 5 }
 0x3e6   : > { %16903 = vst [vmem:[#allocation26_spill] sm:$0xff] %v14197_v35  ;;  %v14243_v33 = vld [vmem:[#allocation3 + $0x28] sm:$0xf]  ;;  %v5926_v23 = vor.u32 %v5925_v12, %v14220_v20  ;;  %v14251_v42 = vld [vmem:[#allocation3 + $0x2c] sm:$0xf]  ;;  %v4045_v12 = vmul.f32 %v3946_v4, %v16912_v3  ;;  %v14257_v35 = vrot.slane %v5431_v13, 4 }
 0x3e7   : > { %16904 = vst [vmem:[#allocation27_spill] sm:$0xff] %v14209_v38  ;;  %v5441_v59 = vor.u32 %v5440_v57, %v14211_v41  ;;  %v5936_v24 = vor.u32 %v5935_v47, %v14222_v25  ;;  %v9997_v57 = vld [vmem:[#allocation4 + $0x3a8] sm:$0xf]  ;;  %v10655_v39 = vld [vmem:[#allocation4 + $0x3c8] sm:$0xf0]  ;;  %v4962_v6 = vshrl.u32 %v14243_v33, 16 }
 0x3e8   : > { %16905 = vst [vmem:[#allocation28_spill] sm:$0xff] %v14211_v41  ;;  %v9998_v34 = vor.u32 %v10655_v39, %v9997_v57  ;;  %v14270_v41 = vrot.slane %v16917_v52, 4  ;;  %v4499_v39 = vshrl.u32 %v14247_v46, 16  ;;  %v5347_v4 = vld [vmem:[#allocation3 + $0x2c] sm:$0xf]  ;;  %v16919_v13 = vmax.f32 %v13992_v1, 0.0 }
 0x3e9   : > { %16906 = vst [vmem:[#allocation29_spill] sm:$0xff] %v14216_v37  ;;  %v3951_v32 = vpop.permute.xlu1 %3950  ;;  %v14259_v47 = vrot.slane %v5441_v59, 4  ;;  %v14275_v59 = vrot.slane %v5926_v23, 4  ;;  %v16922_v57 = vrot.slane %v14224_v29, 7  ;;  %v5859_v52 = vld [vmem:[#allocation3 + $0x28] sm:$0xf] }
 0x3ea   : > { %16907 = vst [vmem:[#allocation30_spill] sm:$0xff] %v14218_v18  ;;  %8147 = vmatmul.bf16.vlgmr.msrb.gmra.mxu3 %v9998_v34  ;;  %v4046_v3 = vmul.f32 %v3951_v32, %v16919_v13  ;;  %v4508_v18 = vshrl.u32 %v14251_v42, 16  ;;  %v4971_v1 = vshrl.u32 %v14265_v10, 16  ;;  %v14290_v23 = vrot.slane %v4962_v6, 7  ;;  %v5286_v7 = vld [vmem:[#allocation3 + $0x48] sm:$0xf] }
 0x3eb   : > { %16908 = vst [vmem:[#allocation31_spill] sm:$0xff] %v14220_v20  ;;  %v5448_v13 = vshrl.u32 %v5346_v28, 16  ;;  %v5939_v0 = vshll.u32 %v5859_v52, 16  ;;  %v5943_v34 = vshrl.u32 %v5859_v52, 16  ;;  %v14334_v60 = vld [vmem:[#allocation3 + $0x68] sm:$0xf] }
 0x3ec   : > { %16909 = vst [vmem:[#allocation32_spill] sm:$0xff] %v14222_v25  ;;  %v16915_v25 = vrot.slane %v14216_v37, 5  ;;  %v10819_v32 = vpack.c.bf16 %v4046_v3, %v4045_v12  ;;  %v14295_v38 = vrot.slane %v4508_v18, 7  ;;  %v14300_v6 = vrot.slane %v4971_v1, 7  ;;  %v4807_v12 = vld [vmem:[#allocation3 + $0x48] sm:$0xf] }
 0x3ed   : > { %16910 = vst [vmem:[#allocation33_spill] sm:$0xff] %v14237_v19  ;;  %v5450_v18 = vrot.slane %v5448_v13, 4  ;;  %v14312_v48 = vrot.slane %v5939_v0, 5  ;;  %v5945_v45 = vrot.slane %v5943_v34, 4  ;;  %v3961_v13 = vpop.permute.xlu0 %3960  ;;  %v10725_v34 = vld [vmem:[%s16782_s3 + $0x130] sm:$0xff] }
 0x3ee   : > { %16911 = vst [vmem:[#allocation34_spill] sm:$0xff] %v14253_v11  ;;  %v14263_v20 = vrot.slane %v16915_v25, 4  ;;  %v14277_v25 = vrot.slane %v5936_v24, 4  ;;  %v5444_v24 = vshll.u32 %v5346_v28, 16  ;;  %8451 = vmatpush.bf16.msrb.mxu1 %v10725_v34 }
 0x3ef   : > { %16913 = vst [vmem:[#allocation35_spill] sm:$0xff] %v14257_v35  ;;  %v5458_v35 = vshrl.u32 %v5347_v4, 16 }
 0x3f0   : > { %16914 = vst [vmem:[#allocation36_spill] sm:$0xff] %v14259_v47  ;;  %v14319_v47 = vld [vmem:[#allocation3 + $0x6c] sm:$0xf] }
 0x3f1   : > { %16916 = vst [vmem:[#allocation37_spill] sm:$0xff] %v14263_v20  ;;  %v14281_v20 = vrot.slane %v16922_v57, 4  ;;  %v14292_v57 = vrot.slane %v4499_v39, 7  ;;  %v14303_v39 = vld [vmem:[#allocation3 + $0x2c] sm:$0xf]  ;;  %v5460_v52 = vrot.slane %v5458_v35, 4 }
 0x3f2   : > { %16918 = vst [vmem:[#allocation38_spill] sm:$0xff] %v14270_v41  ;;  %v16924_v41 = vrot.slane %v14237_v19, 7  ;;  %v16933_v35 = vshll.u32 %v14186_v22, 16  ;;  %v5287_v22 = vld [vmem:[#allocation3 + $0x4c] sm:$0xf] }
 0x3f3   : > { %16920 = vst [vmem:[#allocation39_spill] sm:$0xff] %v14275_v59  ;;  %v5860_v59 = vld [vmem:[#allocation3 + $0x2c] sm:$0xf] }
 0x3f4   : > { %16921 = vst [vmem:[#allocation40_spill] sm:$0xff] %v14277_v25  ;;  %v14286_v37 = vrot.slane %v16924_v41, 4  ;;  %v5454_v25 = vshll.u32 %v5347_v4, 16  ;;  %v5949_v28 = vshll.u32 %v5860_v59, 16  ;;  %v5953_v3 = vshrl.u32 %v5860_v59, 16  ;;  %v10733_v59 = vld [vmem:[%s16782_s3 + $0x170] sm:$0xff] }
 0x3f5   : > { %16923 = vst [vmem:[#allocation41_spill] sm:$0xff] %v14281_v20  ;;  %v14306_v4 = vrot.slane %v5444_v24, 5  ;;  %v14310_v41 = vld [vmem:[#allocation3 + $0x68] sm:$0xf]  ;;  %v4486_v0 = vor.u32 %v16933_v35, %v14226_v21  ;;  %8545 = vmatpush.bf16.msrb.mxu2 %v10733_v59  ;;  %v16935_v24 = vshll.u32 %v14078_v27, 16  ;;  %v4652_v59 = vshrl.u32 %v14319_v47, 16 }
 0x3f6   : > { %16925 = vst [vmem:[#allocation42_spill] sm:$0xff] %v14286_v37  ;;  %v14308_v8 = vrot.slane %v5454_v25, 5  ;;  %v4808_v25 = vld [vmem:[#allocation3 + $0x4c] sm:$0xf]  ;;  %v14324_v30 = vrot.slane %v5949_v28, 5  ;;  %v5955_v1 = vrot.slane %v5953_v3, 4 }
 0x3f7   : > { %16926 = vst [vmem:[#allocation43_spill] sm:$0xff] %v14298_v51  ;;  %v4643_v50 = vshrl.u32 %v14310_v41, 16  ;;  %v4940_v49 = vor.u32 %v16935_v24, %v14128_v56  ;;  %v5451_v11 = vor.u32 %v5450_v18, %v14306_v4  ;;  %v16937_v28 = vshll.u32 %v14179_v55, 16  ;;  %v5799_v35 = vld [vmem:[#allocation3 + $0x48] sm:$0xf] }
 0x3f8   : > { %10949 = vst [vmem:[#allocation3 + $0x50] sm:$0xff] %v10819_v32   ;;  %v3956_v32 = vpop.permute.xlu2 %3955  ;;  %v4479_v37 = vrot.slane %v14121_v16, 4  ;;  %v16938_v27 = vmax.f32 %v14007_v62, 0.0  ;;  %v5461_v18 = vor.u32 %v5460_v52, %v14308_v8  ;;  %v5800_v20 = vld [vmem:[#allocation3 + $0x4c] sm:$0xf]  ;;  %v5956_v55 = vor.u32 %v5955_v1, %v14324_v30 }
 0x3f9   : > { %16927 = vst [vmem:[#allocation44_spill] sm:$0xff] %v14303_v39  ;;  %v4949_v3 = vor.u32 %v16937_v28, %v14214_v44  ;;  %v16940_v28 = vmax.f32 %v14003_v26, 0.0  ;;  %v10565_v16 = vld [vmem:[#allocation4 + $0xf8] sm:$0xf0]  ;;  %v14353_v52 = vrot.slane %v5451_v11, 4  ;;  %v16943_v26 = vrot.slane %v14298_v51, 5 }
 0x3fa   : > { %16928 = vst [vmem:[#allocation45_spill] sm:$0xff] %v14306_v4  ;;  %v4048_v24 = vmul.f32 %v3961_v13, %v16938_v27  ;;  %v14344_v4 = vld [vmem:[#allocation3 + $0x6c] sm:$0xf]  ;;  %v4487_v62 = vsel %vm11300_vm2, %v4479_v37, %v4486_v0  ;;  %v16945_v37 = vrot.slane %v14128_v56, 4 }
 0x3fb   : > { %16929 = vst [vmem:[#allocation46_spill] sm:$0xff] %v14308_v8  ;;  %v4047_v19 = vmul.f32 %v3956_v32, %v16940_v28  ;;  %v14361_v1 = vrot.slane %v16943_v26, 4  ;;  %v5106_v32 = vshrl.u32 %v14334_v60, 16  ;;  %v5115_v27 = vshrl.u32 %v14344_v4, 16 }
 0x3fc   : > { %16930 = vst [vmem:[#allocation47_spill] sm:$0xff] %v14310_v41  ;;  %v4950_v11 = vsel %vm11300_vm2, %v16945_v37, %v4949_v3  ;;  %v14382_v3 = vrot.slane %v4652_v59, 7  ;;  %v16955_v59 = vmax.f32 %v14021_v2, 0.0  ;;  %v10561_v2 = vld [vmem:[#allocation4 + $0xdc] sm:$0xf] }
 0x3fd   : > { %16931 = vst [vmem:[#allocation48_spill] sm:$0xff] %v14312_v48  ;;  %v10824_v0 = vpack.c.bf16 %v4048_v24, %v4047_v19 }
 0x3fe   : > { %16932 = vst [vmem:[#allocation49_spill] sm:$0xff] %v14319_v47 }
 0x3ff   : > { %16934 = vst [vmem:[#allocation50_spill] sm:$0xff] %v14324_v30 }
 0x400   : > { %16936 = vst [vmem:[#allocation51_spill] sm:$0xff] %v14334_v60  ;;  %v3971_v19 = vpop.permute.xlu2 %3970 }
 0x401   : > { %4841 = vst [vmem:[#allocation4 + $0x26c] sm:$0xf] %v4807_v12  ;;  %v5946_v12 = vor.u32 %v5945_v45, %v14312_v48  ;;  %v5862_v48 = vld [vmem:[#allocation3 + $0x34] sm:$0xf] }
 0x402   : > { %4842 = vst [vmem:[#allocation4 + $0x290] sm:$0xf] %v4808_v25  ;;  %v9637_v25 = vld [vmem:[#allocation4 + $0xd8] sm:$0xf] }
 0x403   : > { %16939 = vst [vmem:[#allocation52_spill] sm:$0xff] %v14344_v4  ;;  %v9638_v34 = vor.u32 %v10565_v16, %v9637_v25  ;;  %v14377_v28 = vrot.slane %v5946_v12, 4  ;;  %v14386_v25 = vrot.slane %v5106_v32, 7  ;;  %v5363_v16 = vld [vmem:[#allocation3 + $0x6c] sm:$0xf]  ;;  %v3966_v12 = vpop.permute.xlu1 %3965 }
 0x404   : > { %5320 = vst [vmem:[#allocation4 + $0x22c] sm:$0xf] %v5286_v7  ;;  %v16942_v7 = vrot.slane %v14080_v61, 4  ;;  %v16947_v61 = vrot.slane %v14303_v39, 5  ;;  %v5618_v56 = vshrl.u32 %v5363_v16, 16 }
 0x405   : > { %5321 = vst [vmem:[#allocation4 + $0x250] sm:$0xf] %v5287_v22  ;;  %v14368_v22 = vrot.slane %v5461_v18, 4  ;;  %8097 = vmatmul.bf16.gmra.mxu1 %v9638_v34  ;;  %v14389_v34 = vrot.slane %v5115_v27, 7  ;;  %v14397_v18 = vld [vmem:[#allocation3 + $0x6c] sm:$0xf] }
 0x406   : > { %16941 = vst [vmem:[#allocation53_spill] sm:$0xff] %v14353_v52  ;;  %v4941_v45 = vsel %vm11300_vm2, %v16942_v7, %v4940_v49  ;;  %v14374_v49 = vrot.slane %v4643_v50, 7  ;;  %v5362_v50 = vld [vmem:[#allocation3 + $0x68] sm:$0xf]  ;;  %v4050_v7 = vmul.f32 %v3971_v19, %v16955_v59  ;;  %v6113_v59 = vshrl.u32 %v14397_v18, 16 }
 0x407   : > { %5833 = vst [vmem:[#allocation4 + $0x1ec] sm:$0xf] %v5799_v35  ;;  %v14372_v35 = vrot.slane %v16947_v61, 4  ;;  %v5604_v32 = vshll.u32 %v5362_v50, 16  ;;  %v5608_v61 = vshrl.u32 %v5362_v50, 16 }
 0x408   : > { %16944 = vst [vmem:[#allocation54_spill] sm:$0xff] %v14361_v1  ;;  %v5349_v39 = vld [vmem:[#allocation3 + $0x34] sm:$0xf]  ;;  %v14438_v8 = vrot.slane %v6113_v59, 4 }
 0x409   : > { %5834 = vst [vmem:[#allocation4 + $0x210] sm:$0xf] %v5800_v20  ;;  %v14379_v20 = vrot.slane %v5956_v55, 4  ;;  %v14405_v37 = vrot.slane %v5604_v32, 5  ;;  %v5861_v32 = vld [vmem:[#allocation3 + $0x30] sm:$0xf] }
 0x40a   : > { %16946 = vst [vmem:[#allocation55_spill] sm:$0xff] %v14368_v22  ;;  %v5474_v51 = vshll.u32 %v5349_v39, 16 }
 0x40b   : > { %16948 = vst [vmem:[#allocation56_spill] sm:$0xff] %v14372_v35  ;;  %v5348_v35 = vld [vmem:[#allocation3 + $0x30] sm:$0xf] }
 0x40c   : > { %16949 = vst [vmem:[#allocation57_spill] sm:$0xff] %v14374_v49  ;;  %v14432_v22 = vrot.slane %v5474_v51, 5 }
 0x40d   : > { %4763 = vst [vmem:[#allocation4 + $0x100] sm:$0xf] %v4487_v62  ;;  %v5875_v62 = vld [vmem:[#allocation3 + $0x68] sm:$0xf] }
 0x40e   : > { %16950 = vst [vmem:[#allocation58_spill] sm:$0xff] %v14377_v28  ;;  %v6099_v24 = vshll.u32 %v5875_v62, 16  ;;  %v6103_v13 = vshrl.u32 %v5875_v62, 16  ;;  %v5620_v62 = vrot.slane %v5618_v56, 4  ;;  %v5468_v56 = vshrl.u32 %v5348_v35, 16 }
 0x40f   : > { %16951 = vst [vmem:[#allocation59_spill] sm:$0xff] %v14379_v20  ;;  %v14422_v20 = vld [vmem:[#allocation3 + $0x30] sm:$0xf] }
 0x410   : > { %16952 = vst [vmem:[#allocation60_spill] sm:$0xff] %v14382_v3  ;;  %v14409_v27 = vrot.slane %v6099_v24, 5  ;;  %v14411_v1 = vrot.slane %v6103_v13, 4  ;;  %v5288_v24 = vld [vmem:[#allocation3 + $0x50] sm:$0xf] }
 0x411   : > { %5241 = vst [vmem:[#allocation4 + $0x9c] sm:$0xf] %v4941_v45  ;;  %v16956_v45 = vmax.f32 %v14011_v40, 0.0  ;;  %v14418_v13 = vld [vmem:[#allocation3 + $0x34] sm:$0xf] }
 0x412   : > { %5242 = vst [vmem:[#allocation4 + $0xc0] sm:$0xf] %v4950_v11 }
 0x413   : > { %16953 = vst [vmem:[#allocation61_spill] sm:$0xff] %v14386_v25  ;;  %v4049_v26 = vmul.f32 %v3966_v12, %v16956_v45  ;;  %v6109_v12 = vshll.u32 %v14397_v18, 16  ;;  %v14403_v45 = vld [vmem:[#allocation3 + $0x30] sm:$0xf] }
 0x414   : > { %10950 = vst [vmem:[#allocation3 + $0x58] sm:$0xff] %v10824_v0   ;;  %v5614_v0 = vshll.u32 %v5363_v16, 16  ;;  %v9639_v19 = vld [vmem:[#allocation4 + $0xfc] sm:$0xf0]  ;;  %v5610_v16 = vrot.slane %v5608_v61, 4 }
 0x415   : > { %16954 = vst [vmem:[#allocation62_spill] sm:$0xff] %v14389_v34  ;;  %v10829_v55 = vpack.c.bf16 %v4050_v7, %v4049_v26  ;;  %v9642_v50 = vor.u32 %v10561_v2, %v9639_v19  ;;  %v4809_v2 = vld [vmem:[#allocation3 + $0x50] sm:$0xf]  ;;  %v4810_v61 = vld [vmem:[#allocation3 + $0x54] sm:$0xf] }
 0x416   : > { %16957 = vst [vmem:[#allocation63_spill] sm:$0xff] %v14405_v37  ;;  %v14407_v26 = vrot.slane %v5614_v0, 5  ;;  %v14416_v19 = vld [vmem:[#allocation3 + $0x34] sm:$0xf]  ;;  %v5464_v0 = vshll.u32 %v5348_v35, 16  ;;  %v5611_v28 = vor.u32 %v5610_v16, %v14405_v37  ;;  %v14436_v37 = vrot.slane %v6109_v12, 5 }
 0x417   : > { %10951 = vst [vmem:[#allocation3 + $0x60] sm:$0xff] %v10829_v55   ;;  %8191 = vmatmul.bf16.gmra.mxu2 %v9642_v50  ;;  %v14414_v55 = vld [vmem:[#allocation3 + $0x30] sm:$0xf]  ;;  %v5289_v50 = vld [vmem:[#allocation3 + $0x54] sm:$0xf]  ;;  %v5969_v12 = vshll.u32 %v5862_v48, 16 }
 0x418   : > { %v10553_v11 = vld [vmem:[#allocation4 + $0x9c] sm:$0xf]  ;;  %16958 = vst [vmem:[#allocation64_spill] sm:$0xff] %v14407_v26  ;;  %v5801_v18 = vld [vmem:[#allocation3 + $0x50] sm:$0xf]  ;;  %v5621_v30 = vor.u32 %v5620_v62, %v14407_v26  ;;  %v4517_v62 = vshrl.u32 %v14422_v20, 16 }
 0x419   : > { %v9611_v7 = vld [vmem:[#allocation4 + $0xbc] sm:$0xf0]  ;;  %16959 = vst [vmem:[#allocation65_spill] sm:$0xff] %v14409_v27  ;;  %v5478_v27 = vshrl.u32 %v5349_v39, 16  ;;  %v14425_v35 = vld [vmem:[#allocation3 + $0x34] sm:$0xf] }
 0x41a   : > { %v9614_v40 = vor.u32 %v10553_v11, %v9611_v7  ;;  %16960 = vst [vmem:[#allocation66_spill] sm:$0xff] %v14411_v1  ;;  %v5959_v11 = vshll.u32 %v5861_v32, 16  ;;  %v5963_v7 = vshrl.u32 %v5861_v32, 16  ;;  %v14420_v1 = vld [vmem:[#allocation3 + $0x68] sm:$0xf]  ;;  %v4980_v39 = vshrl.u32 %v14414_v55, 16 }
 0x41b   : > { %16961 = vst [vmem:[#allocation67_spill] sm:$0xff] %v14416_v19  ;;  %v14430_v32 = vrot.slane %v5464_v0, 5  ;;  %v5480_v52 = vrot.slane %v5478_v27, 4  ;;  %v14442_v0 = vrot.slane %v5611_v28, 4  ;;  %v4526_v51 = vshrl.u32 %v14425_v35, 16 }
 0x41c   : > { %8374 = vmatmul.bf16.gmra.mxu0 %v9614_v40  ;;  %4843 = vst [vmem:[#allocation4 + $0x2b4] sm:$0xf] %v4809_v2  ;;  %v5802_v40 = vld [vmem:[#allocation3 + $0x54] sm:$0xf]  ;;  %v4989_v2 = vshrl.u32 %v14416_v19, 16  ;;  %v5965_v16 = vrot.slane %v5963_v7, 4 }
 0x41d   : > { %4844 = vst [vmem:[#allocation4 + $0x2d8] sm:$0xf] %v4810_v61  ;;  %v5470_v61 = vrot.slane %v5468_v56, 4  ;;  %v5973_v7 = vshrl.u32 %v5862_v48, 16  ;;  %v14451_v59 = vrot.slane %v5621_v30, 4  ;;  %v5481_v28 = vor.u32 %v5480_v52, %v14432_v22 }
 0x41e   : > { %16962 = vst [vmem:[#allocation68_spill] sm:$0xff] %v14420_v1  ;;  %v14448_v27 = vrot.slane %v4989_v2, 7  ;;  %v16971_v1 = vrot.slane %v14418_v13, 7  ;;  %v14463_v2 = vrot.slane %v4517_v62, 7  ;;  %v14467_v30 = vrot.slane %v4526_v51, 7 }
 0x41f   : > { %5322 = vst [vmem:[#allocation4 + $0x274] sm:$0xf] %v5288_v24  ;;  %v14434_v24 = vrot.slane %v5959_v11, 5  ;;  %v5471_v11 = vor.u32 %v5470_v61, %v14430_v32  ;;  %v5975_v62 = vrot.slane %v5973_v7, 4  ;;  %v14481_v51 = vld [vmem:[#allocation3 + $0x74] sm:$0xf] }
 0x420   : > { %5323 = vst [vmem:[#allocation4 + $0x298] sm:$0xf] %v5289_v50  ;;  %v5365_v48 = vld [vmem:[#allocation3 + $0x74] sm:$0xf]  ;;  %v14483_v26 = vld [vmem:[#allocation3 + $0x70] sm:$0xf] }
 0x421   : > { %16963 = vst [vmem:[#allocation69_spill] sm:$0xff] %v14430_v32  ;;  %v5966_v56 = vor.u32 %v5965_v16, %v14434_v24  ;;  %v4812_v52 = vld [vmem:[#allocation3 + $0x5c] sm:$0xf]  ;;  %v14487_v16 = vld [vmem:[#allocation3 + $0x74] sm:$0xf]  ;;  %v5634_v7 = vshll.u32 %v5365_v48, 16 }
 0x422   : > { %5835 = vst [vmem:[#allocation4 + $0x234] sm:$0xf] %v5801_v18  ;;  %v14446_v18 = vrot.slane %v4980_v39, 7  ;;  %v14461_v39 = vrot.slane %v16971_v1, 4  ;;  %v14475_v1 = vrot.slane %v5969_v12, 5  ;;  %v4661_v41 = vshrl.u32 %v14483_v26, 16 }
 0x423   : > { %16964 = vst [vmem:[#allocation70_spill] sm:$0xff] %v14432_v22  ;;  %v14479_v61 = vrot.slane %v5966_v56, 4  ;;  %v14489_v56 = vld [vmem:[#allocation3 + $0x74] sm:$0xf]  ;;  %v5804_v60 = vld [vmem:[#allocation3 + $0x5c] sm:$0xf] }
 0x424   : > { %16965 = vst [vmem:[#allocation71_spill] sm:$0xff] %v14434_v24  ;;  %v5290_v24 = vld [vmem:[#allocation3 + $0x58] sm:$0xf]  ;;  %v5877_v25 = vld [vmem:[#allocation3 + $0x70] sm:$0xf]  ;;  %v14498_v49 = vrot.slane %v5634_v7, 5 }
 0x425   : > { %5836 = vst [vmem:[#allocation4 + $0x258] sm:$0xf] %v5802_v40  ;;  %v16970_v40 = vrot.slane %v14403_v45, 7  ;;  %v14502_v22 = vld [vmem:[#allocation3 + $0x38] sm:$0xf]  ;;  %v6119_v34 = vshll.u32 %v5877_v25, 16 }
 0x426   : > { %16966 = vst [vmem:[#allocation72_spill] sm:$0xff] %v14436_v37  ;;  %v14473_v37 = vrot.slane %v5471_v11, 4  ;;  %v14525_v47 = vrot.slane %v4661_v41, 7 }
 0x427   : > { %16967 = vst [vmem:[#allocation73_spill] sm:$0xff] %v14438_v8  ;;  %v14455_v50 = vrot.slane %v16970_v40, 4  ;;  %v4811_v8 = vld [vmem:[#allocation3 + $0x58] sm:$0xf]  ;;  %v14485_v40 = vld [vmem:[#allocation3 + $0x70] sm:$0xf] }
 0x428   : > { %16968 = vst [vmem:[#allocation74_spill] sm:$0xff] %v14442_v0  ;;  %v14477_v0 = vrot.slane %v5481_v28, 4  ;;  %v5291_v28 = vld [vmem:[#allocation3 + $0x5c] sm:$0xf]  ;;  %v5124_v32 = vshrl.u32 %v14485_v40, 16  ;;  %v14538_v41 = vrot.slane %v6119_v34, 5 }
 0x429   : > { %16969 = vst [vmem:[#allocation75_spill] sm:$0xff] %v14451_v59  ;;  %v5364_v59 = vld [vmem:[#allocation3 + $0x70] sm:$0xf]  ;;  %v14557_v34 = vld [vmem:[#allocation3 + $0x3c] sm:$0xf] }
 0x42a   : > { %16972 = vst [vmem:[#allocation76_spill] sm:$0xff] %v14473_v37  ;;  %v5624_v11 = vshll.u32 %v5364_v59, 16  ;;  %v5628_v12 = vshrl.u32 %v5364_v59, 16  ;;  %v5638_v37 = vshrl.u32 %v5365_v48, 16  ;;  %v5133_v59 = vshrl.u32 %v14487_v16, 16 }
 0x42b   : > { %16973 = vst [vmem:[#allocation77_spill] sm:$0xff] %v14475_v1 }
 0x42c   : > { %16974 = vst [vmem:[#allocation78_spill] sm:$0xff] %v14477_v0  ;;  %v5976_v0 = vor.u32 %v5975_v62, %v14475_v1  ;;  %v14496_v48 = vrot.slane %v5624_v11, 5  ;;  %v14500_v62 = vld [vmem:[#allocation3 + $0x74] sm:$0xf]  ;;  %v14511_v11 = vrot.slane %v5124_v32, 7  ;;  %v14519_v7 = vrot.slane %v5133_v59, 7  ;;  %v3777_v32 = vpop.f32.mrf.mxu3 }
 0x42d   : > { %16975 = vst [vmem:[#allocation79_spill] sm:$0xff] %v14479_v61  ;;  %v5803_v61 = vld [vmem:[#allocation3 + $0x58] sm:$0xf] }
 0x42e   : > { %16976 = vst [vmem:[#allocation80_spill] sm:$0xff] %v14483_v26  ;;  %v14504_v1 = vrot.slane %v5976_v0, 4  ;;  %v5350_v26 = vld [vmem:[#allocation3 + $0x38] sm:$0xf] }
 0x42f   : > { %16977 = vst [vmem:[#allocation81_spill] sm:$0xff] %v14485_v40  ;;  %v5805_v40 = vld [vmem:[#allocation3 + $0x60] sm:$0xf] }
 0x430   : > { %16978 = vst [vmem:[#allocation82_spill] sm:$0xff] %v14487_v16 }
 0x431   : > { %4845 = vst [vmem:[#allocation4 + $0x2fc] sm:$0xf] %v4811_v8  ;;  %v5630_v8 = vrot.slane %v5628_v12, 4  ;;  %v14513_v12 = vld [vmem:[#allocation3 + $0x3c] sm:$0xf] }
 0x432   : > { %16979 = vst [vmem:[#allocation83_spill] sm:$0xff] %v14489_v56  ;;  %v16995_v16 = vrot.slane %v14513_v12, 7 }
 0x433   : > { %4846 = vst [vmem:[#allocation4 + $0x320] sm:$0xf] %v4812_v52  ;;  %v5640_v52 = vrot.slane %v5638_v37, 4  ;;  %v16986_v37 = vrot.slane %v14481_v51, 7  ;;  %v5631_v0 = vor.u32 %v5630_v8, %v14496_v48  ;;  %v16994_v8 = vrot.slane %v14502_v22, 7 }
 0x434   : > { %5324 = vst [vmem:[#allocation4 + $0x2bc] sm:$0xf] %v5290_v24  ;;  %v16984_v24 = vrot.slane %v14108_v43, 7 }
 0x435   : > { %5325 = vst [vmem:[#allocation4 + $0x2e0] sm:$0xf] %v5291_v28  ;;  %v4670_v28 = vshrl.u32 %v14489_v56, 16  ;;  %v5641_v43 = vor.u32 %v5640_v52, %v14498_v49  ;;  %v14543_v3 = vrot.slane %v5631_v0, 4  ;;  %v4813_v52 = vld [vmem:[#allocation3 + $0x60] sm:$0xf] }
 0x436   : > { %16980 = vst [vmem:[#allocation84_spill] sm:$0xff] %v14496_v48  ;;  %v14508_v4 = vrot.slane %v16984_v24, 4  ;;  %v6129_v24 = vshll.u32 %v14500_v62, 16  ;;  %v14560_v0 = vld [vmem:[#allocation3 + $0x38] sm:$0xf] }
 0x437   : > { %16981 = vst [vmem:[#allocation85_spill] sm:$0xff] %v14498_v49  ;;  %v14530_v19 = vrot.slane %v4670_v28, 7  ;;  %v14535_v49 = vld [vmem:[#allocation3 + $0x38] sm:$0xf]  ;;  %v14545_v28 = vrot.slane %v5641_v43, 4 }
 0x438   : > { %5837 = vst [vmem:[#allocation4 + $0x27c] sm:$0xf] %v5803_v61  ;;  %v14517_v61 = vrot.slane %v16986_v37, 4  ;;  %v14547_v59 = vrot.slane %v6129_v24, 5  ;;  %v4814_v37 = vld [vmem:[#allocation3 + $0x64] sm:$0xf] }
 0x439   : > { %16982 = vst [vmem:[#allocation86_spill] sm:$0xff] %v14500_v62  ;;  %v14562_v43 = vld [vmem:[#allocation3 + $0x78] sm:$0xf]  ;;  %v5292_v24 = vld [vmem:[#allocation3 + $0x60] sm:$0xf] }
 0x43a   : > { %5838 = vst [vmem:[#allocation4 + $0x2a0] sm:$0xf] %v5804_v60  ;;  %v6123_v60 = vshrl.u32 %v5877_v25, 16  ;;  %v14551_v25 = vrot.slane %v16994_v8, 4  ;;  %v16996_v8 = vshll.u32 %v14188_v9, 16  ;;  %v16999_v9 = vshll.u32 %v14251_v42, 16 }
 0x43b   : > { %16983 = vst [vmem:[#allocation87_spill] sm:$0xff] %v14504_v1  ;;  %v14555_v1 = vrot.slane %v16995_v16, 4  ;;  %v16997_v16 = vshll.u32 %v14190_v31, 16  ;;  %v17000_v42 = vrot.slane %v14153_v15, 7  ;;  %v4488_v31 = vrot.slane %v14226_v21, 4 }
 0x43c   : > { %16985 = vst [vmem:[#allocation88_spill] sm:$0xff] %v14511_v11  ;;  %v14540_v48 = vrot.slane %v6123_v60, 4  ;;  %v4535_v60 = vshrl.u32 %v14535_v49, 16  ;;  %v3780_v11 = vpop.f32.mrf.mxu3 }
 0x43d   : > { %16987 = vst [vmem:[#allocation89_spill] sm:$0xff] %v14519_v7  ;;  %v4958_v62 = vor.u32 %v16997_v16, %v14231_v53  ;;  %v4544_v7 = vshrl.u32 %v14557_v34, 16  ;;  %v4998_v16 = vshrl.u32 %v14560_v0, 16 }
 0x43e   : > { %16988 = vst [vmem:[#allocation90_spill] sm:$0xff] %v14530_v19  ;;  %v14592_v56 = vrot.slane %v4535_v60, 7  ;;  %v4547_v19 = vshll.u32 %v14557_v34, 16  ;;  %v4533_v34 = vrot.slane %v14467_v30, 4 }
 0x43f   : > { %16989 = vst [vmem:[#allocation91_spill] sm:$0xff] %v14538_v41  ;;  %v4495_v41 = vor.u32 %v16996_v8, %v14228_v58  ;;  %v14582_v8 = vor.u32 %v16999_v9, %v14295_v38  ;;  %v4233_v9 = vsel %vm11490_vm11, %v14199_v36, %v17000_v42  ;;  %v5001_v36 = vshll.u32 %v14560_v0, 16 }
 0x440   : > { %16990 = vst [vmem:[#allocation92_spill] sm:$0xff] %v14540_v48  ;;  %v5293_v48 = vld [vmem:[#allocation3 + $0x64] sm:$0xf] }
 0x441   : > { %16991 = vst [vmem:[#allocation93_spill] sm:$0xff] %v14543_v3 }
 0x442   : > { %16992 = vst [vmem:[#allocation94_spill] sm:$0xff] %v14545_v28  ;;  %v16998_v28 = vshll.u32 %v14247_v46, 16  ;;  %v14589_v46 = vld [vmem:[%s16781_s2] ss:$0 sm:$0xff] }
 0x443   : > { %16993 = vst [vmem:[#allocation95_spill] sm:$0xff] %v14547_v59  ;;  %v14564_v59 = vld [vmem:[#allocation3 + $0x3c] sm:$0xf]  ;;  %v3781_v15 = vadd.f32 %v14589_v46, %v3780_v11  ;;  %v17004_v11 = vrot.slane %v14562_v43, 7 }
 0x444   : > { %4847 = vst [vmem:[#allocation4 + $0x344] sm:$0xf] %v4813_v52  ;;  %v4504_v3 = vor.u32 %v16998_v28, %v14292_v57  ;;  %v10732_v52 = vld [vmem:[%s16782_s3 + $0x168] sm:$0xff]  ;;  %v5007_v21 = vshrl.u32 %v14564_v59, 16 }
 0x445   : > { %4848 = vst [vmem:[#allocation4 + $0x368] sm:$0xf] %v4814_v37  ;;  %v3778_v37 = vadd.f32 %v14589_v46, %v3777_v32  ;;  %v5806_v28 = vld [vmem:[#allocation3 + $0x64] sm:$0xf]  ;;  %8546 = vmatpush.bf16.msrb.mxu2 %v10732_v52  ;;  %v17001_v32 = vrot.slane %v14224_v29, 7  ;;  %v17002_v52 = vrot.slane %v14481_v51, 7 }
 0x446   : > { %5326 = vst [vmem:[#allocation4 + $0x304] sm:$0xf] %v5292_v24  ;;  %v14609_v24 = vrot.slane %v4544_v7, 7  ;;  %v4296_v7 = vsel %vm11490_vm11, %v14517_v61, %v17004_v11  ;;  %v17005_v51 = vshll.u32 %v14265_v10, 16  ;;  %v14637_v61 = vrot.slane %v4998_v16, 7 }
 0x447   : > { %5327 = vst [vmem:[#allocation4 + $0x328] sm:$0xf] %v5293_v48  ;;  %v4236_v60 = vsel %vm11490_vm11, %v14204_v17, %v17001_v32  ;;  %v4497_v48 = vrot.slane %v14228_v58, 4  ;;  %v4293_v29 = vsel %vm11490_vm11, %v14508_v4, %v17002_v52  ;;  %v17003_v17 = vshll.u32 %v14243_v33, 16  ;;  %v5351_v58 = vld [vmem:[#allocation3 + $0x3c] sm:$0xf] }
 0x448   : > { %5839 = vst [vmem:[#allocation4 + $0x2c4] sm:$0xf] %v5805_v40  ;;  %v3819_v42 = vmax.f32 %v3778_v37, 0.0  ;;  %v4976_v32 = vor.u32 %v17005_v51, %v14300_v6  ;;  %v17006_v4 = vshll.u32 %v14422_v20, 16  ;;  %v5484_v33 = vshll.u32 %v5350_v26, 16 }
 0x449   : > { %5840 = vst [vmem:[#allocation4 + $0x2e8] sm:$0xf] %v5806_v28  ;;  %v4967_v40 = vor.u32 %v17003_v17, %v14290_v23  ;;  %v3820_v28 = vmax.f32 %v3781_v15, 0.0  ;;  %v5863_v17 = vld [vmem:[#allocation3 + $0x38] sm:$0xf]  ;;  %v4496_v37 = vsel %vm11300_vm2, %v4488_v31, %v4495_v41  ;;  %v5488_v15 = vshrl.u32 %v5350_v26, 16 }
 0x44a   : > { %4351 = vst [vmem:[#allocation4 + $0x120] sm:$0xf] %v4233_v9  ;;  %v4522_v52 = vor.u32 %v17006_v4, %v14463_v2  ;;  %v10724_v9 = vld [vmem:[%s16782_s3 + $0x128] sm:$0xff]  ;;  %v5864_v11 = vld [vmem:[#allocation3 + $0x3c] sm:$0xf]  ;;  %v4505_v10 = vsel %vm11300_vm2, %v4497_v48, %v4504_v3  ;;  %v14642_v51 = vrot.slane %v5007_v21, 7  ;;  %v4057_v26 = vmul.f32 %v14088_v54, %v3819_v42 }
 0x44b   : > { %4352 = vst [vmem:[#allocation4 + $0x144] sm:$0xf] %v4236_v60  ;;  %v4058_v20 = vmul.f32 %v14143_v63, %v3820_v28  ;;  %v5494_v60 = vshll.u32 %v5351_v58, 16  ;;  %v5498_v4 = vshrl.u32 %v5351_v58, 16  ;;  %v17007_v41 = vrot.slane %v14214_v44, 4  ;;  %8452 = vmatpush.bf16.msrb.mxu1 %v10724_v9  ;;  %v17009_v44 = vld [vmem:[#allocation33_spill] sm:$0xff] }
 0x44c   : > { %4371 = vst [vmem:[#allocation4 + $0x3f0] sm:$0xf] %v4293_v29  ;;  %v5979_v16 = vshll.u32 %v5863_v17, 16  ;;  %v17008_v29 = vrot.slane %v14231_v53, 4  ;;  %v4506_v3 = vrot.slane %v14292_v57, 4  ;;  %v14654_v48 = vrot.slane %v5484_v33, 5 }
 0x44d   : > { %4372 = vst [vmem:[#allocation4 + $0x414] sm:$0xf] %v4296_v7  ;;  %v4959_v31 = vsel %vm11300_vm2, %v17007_v41, %v4958_v62  ;;  %v5983_v21 = vshrl.u32 %v5863_v17, 16  ;;  %v5989_v58 = vshll.u32 %v5864_v11, 16  ;;  %v17010_v7 = vrot.slane %v17009_v44, 7  ;;  %v17011_v62 = vld [vmem:[#allocation41_spill] sm:$0xff] }
 0x44e   : > { %4764 = vst [vmem:[#allocation4 + $0x124] sm:$0xf] %v4496_v37  ;;  %v4968_v63 = vsel %vm11300_vm2, %v17008_v29, %v4967_v40  ;;  %v14661_v54 = vrot.slane %v5488_v15, 4  ;;  %v5993_v42 = vshrl.u32 %v5864_v11, 16  ;;  %v17012_v53 = vrot.slane %v14403_v45, 7  ;;  %v17013_v40 = vld [vmem:[#allocation42_spill] sm:$0xff] }
 0x44f   : > { %4765 = vst [vmem:[#allocation4 + $0x148] sm:$0xf] %v4505_v10  ;;  %v4239_v28 = vsel %vm11490_vm11, %v17011_v62, %v17010_v7  ;;  %v10849_v33 = vpack.c.bf16 %v4058_v20, %v4057_v26  ;;  %v17014_v17 = vshll.u32 %v14414_v55, 16  ;;  %v14671_v9 = vrot.slane %v5494_v60, 5  ;;  %v14697_v62 = vld [vmem:[#allocation3 + $0x40] sm:$0xf] }
 0x450   : > { %5243 = vst [vmem:[#allocation4 + $0xe4] sm:$0xf] %v4959_v31  ;;  %v4242_v57 = vsel %vm11490_vm11, %v17013_v40, %v17012_v53  ;;  %v4515_v15 = vrot.slane %v14295_v38, 4  ;;  %v5500_v41 = vrot.slane %v5498_v4, 4  ;;  %v14674_v11 = vrot.slane %v5979_v16, 5 }
 0x451   : > { %v4985_v37 = vor.u32 %v17014_v17, %v14446_v18  ;;  %v9673_v10 = vld [vmem:[#allocation4 + $0x120] sm:$0xf]  ;;  %5244 = vst [vmem:[#allocation4 + $0x108] sm:$0xf] %v4968_v63  ;;  %v4514_v45 = vsel %vm11300_vm2, %v4506_v3, %v14582_v8  ;;  %v5985_v20 = vrot.slane %v5983_v21, 4  ;;  %v14679_v26 = vrot.slane %v5989_v58, 5 }
 0x452   : > { %v10574_v31 = vld [vmem:[#allocation4 + $0x140] sm:$0xf0]  ;;  %4353 = vst [vmem:[#allocation4 + $0x168] sm:$0xf] %v4239_v28  ;;  %v4523_v60 = vsel %vm11300_vm2, %v4515_v15, %v4522_v52  ;;  %v5995_v29 = vrot.slane %v5993_v42, 4  ;;  %v17015_v16 = vrot.slane %v14290_v23, 4 }
 0x453   : > { %v9674_v55 = vor.u32 %v10574_v31, %v9673_v10  ;;  %4354 = vst [vmem:[#allocation4 + $0x18c] sm:$0xf] %v4242_v57  ;;  %v14683_v63 = vld [vmem:[#allocation3 + $0x40] sm:$0xf]  ;;  %v10033_v38 = vld [vmem:[#allocation4 + $0x3f0] sm:$0xf]  ;;  %v5986_v17 = vor.u32 %v5985_v20, %v14674_v11 }
 0x454   : > { %v10664_v4 = vld [vmem:[#allocation4 + $0x410] sm:$0xf0]  ;;  %10955 = vst [vmem:[#allocation3 + $0x80] sm:$0xff] %v10849_v33   ;;  %v4977_v44 = vsel %vm11300_vm2, %v17015_v16, %v4976_v32  ;;  %v14689_v8 = vld [vmem:[#allocation3 + $0x44] sm:$0xf]  ;;  %v17016_v52 = vrot.slane %v14300_v6, 4  ;;  %v5491_v33 = vor.u32 %v14661_v54, %v14654_v48 }
 0x455   : > { %v14691_v3 = vld [vmem:[#allocation3 + $0x40] sm:$0xf]  ;;  %8102 = vmatmul.bf16.gmra.mxu1 %v9674_v55  ;;  %v10034_v21 = vor.u32 %v10664_v4, %v10033_v38  ;;  %v10570_v58 = vld [vmem:[#allocation4 + $0x124] sm:$0xf]  ;;  %4766 = vst [vmem:[#allocation4 + $0x16c] sm:$0xf] %v4514_v45 }
 0x456   : > { %v4986_v7 = vsel %vm11300_vm2, %v17016_v52, %v4985_v37  ;;  %v9675_v28 = vld [vmem:[#allocation4 + $0x144] sm:$0xf0]  ;;  %4767 = vst [vmem:[#allocation4 + $0x190] sm:$0xf] %v4523_v60  ;;  %v17017_v23 = vrot.slane %v14418_v13, 7  ;;  %v17018_v6 = vrot.slane %v14502_v22, 7  ;;  %v5501_v13 = vor.u32 %v5500_v41, %v14671_v9 }
 0x457   : > { %v14704_v42 = vld [vmem:[#allocation3 + $0x44] sm:$0xf]  ;;  %8152 = vmatmul.bf16.gmra.mxu3 %v10034_v21  ;;  %v9678_v53 = vor.u32 %v10570_v58, %v9675_v28  ;;  %5245 = vst [vmem:[#allocation4 + $0x12c] sm:$0xf] %v4977_v44  ;;  %v5010_v15 = vshll.u32 %v14564_v59, 16  ;;  %v16855_v22 = vrot.slane %v14683_v63, 7 }
 0x458   : > { %v4245_v32 = vsel %vm11490_vm11, %v14455_v50, %v17017_v23  ;;  %v10562_v40 = vld [vmem:[#allocation4 + $0xe4] sm:$0xf]  ;;  %v4248_v57 = vsel %vm11490_vm11, %v14461_v39, %v17018_v6  ;;  %v5996_v50 = vor.u32 %v5995_v29, %v14679_v26  ;;  %v9647_v10 = vld [vmem:[#allocation4 + $0x104] sm:$0xf0]  ;;  %5246 = vst [vmem:[#allocation4 + $0x150] sm:$0xf] %v4986_v7 }
 0x459   : > { %v14716_v37 = vld [vmem:[#allocation3 + $0x44] sm:$0xf]  ;;  %v5016_v31 = vshrl.u32 %v14697_v62, 16  ;;  %8196 = vmatmul.bf16.gmra.mxu2 %v9678_v53  ;;  %v9650_v39 = vor.u32 %v10562_v40, %v9647_v10  ;;  %4355 = vst [vmem:[#allocation4 + $0x1b0] sm:$0xf] %v4245_v32  ;;  %v16854_v54 = vrot.slane %v14689_v8, 7 }
 0x45a   : > { %v4553_v41 = vshrl.u32 %v14691_v3, 16  ;;  %v5352_v45 = vld [vmem:[#allocation3 + $0x40] sm:$0xf]  ;;  %4356 = vst [vmem:[#allocation4 + $0x1d4] sm:$0xf] %v4248_v57  ;;  %v4562_v60 = vshrl.u32 %v14704_v42, 16 }
 0x45b   : > { %v5025_v59 = vshrl.u32 %v14716_v37, 16  ;;  %8379 = vmatmul.bf16.gmra.mxu0 %v9650_v39  ;;  %v14727_v29 = vrot.slane %v5491_v33, 4  ;;  %v14729_v38 = vrot.slane %v5501_v13, 4  ;;  %v14731_v4 = vrot.slane %v5986_v17, 4  ;;  %v5353_v44 = vld [vmem:[#allocation3 + $0x44] sm:$0xf] }
 0x45c   : > { %v14733_v16 = vrot.slane %v5996_v50, 4  ;;  %v14737_v21 = vrot.slane %v16855_v22, 4  ;;  %v14739_v58 = vrot.slane %v5016_v31, 7  ;;  %v5504_v52 = vshll.u32 %v5352_v45, 16  ;;  %v5865_v39 = vld [vmem:[#allocation3 + $0x40] sm:$0xf] }
 0x45d   : > { %v5508_v7 = vshrl.u32 %v5352_v45, 16  ;;  %v14743_v28 = vrot.slane %v16854_v54, 4  ;;  %v14745_v23 = vrot.slane %v4553_v41, 7  ;;  %v4556_v32 = vshll.u32 %v14691_v3, 16  ;;  %v10583_v3 = vld [vmem:[#allocation4 + $0x188] sm:$0xf0]  ;;  %v3782_v45 = vpop.f32.mrf.mxu3 }
 0x45e   : > { %17019 = vst [vmem:[#allocation33_spill] sm:$0xff] %v14733_v16  ;;  %v4565_v53 = vshll.u32 %v14704_v42, 16  ;;  %v14749_v40 = vrot.slane %v4562_v60, 7  ;;  %v14752_v57 = vrot.slane %v5025_v59, 7  ;;  %v5514_v33 = vshll.u32 %v5353_v44, 16  ;;  %v17022_v54 = vld [vmem:[#allocation67_spill] sm:$0xff] }
 0x45f   : > { %v17020_v13 = vshll.u32 %v14425_v35, 16  ;;  %v17021_v50 = vshll.u32 %v14535_v49, 16  ;;  %v5518_v31 = vshrl.u32 %v5353_v44, 16  ;;  %v4524_v42 = vrot.slane %v14463_v2, 4  ;;  %v14791_v55 = vld [vmem:[#allocation3 + $0x80] sm:$0xf] }
 0x460   : > { %v14763_v60 = vrot.slane %v5504_v52, 5  ;;  %v5510_v59 = vrot.slane %v5508_v7, 4  ;;  %v17023_v35 = vshll.u32 %v17022_v54, 16  ;;  %v14771_v49 = vor.u32 %v4547_v19, %v14609_v24  ;;  %v4167_v52 = vld [vmem:[#allocation3 + $0x7c] sm:$0xf] }
 0x461   : > { %v4531_v17 = vor.u32 %v17020_v13, %v14467_v30  ;;  %v4540_v10 = vor.u32 %v17021_v50, %v14592_v56  ;;  %v5003_v2 = vor.u32 %v5001_v36, %v14637_v61  ;;  %v14777_v44 = vor.u32 %v5010_v15, %v14642_v51  ;;  %v14779_v50 = vld [vmem:[#allocation3 + $0x44] sm:$0xf]  ;;  %v9709_v7 = vld [vmem:[#allocation4 + $0x168] sm:$0xf]  ;;  %v10731_v19 = vld [vmem:[%s16782_s3 + $0x160] sm:$0xff] }
 0x462   : > { %v4994_v13 = vor.u32 %v17023_v35, %v14448_v27  ;;  %v5999_v54 = vshll.u32 %v5865_v39, 16  ;;  %v9710_v35 = vor.u32 %v10583_v3, %v9709_v7  ;;  %v4558_v0 = vor.u32 %v4556_v32, %v14745_v23  ;;  %v9711_v20 = vld [vmem:[#allocation4 + $0x18c] sm:$0xf0]  ;;  %v14796_v6 = vld [vmem:[#allocation3 + $0x48] sm:$0xf]  ;;  %8547 = vmatpush.bf16.msrb.mxu2 %v10731_v19 }
 0x463   : > { %v14787_v36 = vrot.slane %v5514_v33, 5  ;;  %v14789_v15 = vrot.slane %v5518_v31, 4  ;;  %v4532_v41 = vsel %vm11300_vm2, %v4524_v42, %v4531_v17  ;;  %v6003_v3 = vshrl.u32 %v5865_v39, 16  ;;  %v10579_v22 = vld [vmem:[#allocation4 + $0x16c] sm:$0xf] }
 0x464   : > { %v6009_v7 = vshll.u32 %v14779_v50, 16  ;;  %v4298_v30 = vrot.slane %v4167_v52, 7  ;;  %v4541_v32 = vsel %vm11300_vm2, %v4533_v34, %v4540_v10  ;;  %v14801_v33 = vor.u32 %v4565_v53, %v14749_v40  ;;  %v9683_v16 = vld [vmem:[#allocation4 + $0x14c] sm:$0xf0]  ;;  %v10723_v10 = vld [vmem:[%s16782_s3 + $0x120] sm:$0xff] }
 0x465   : > { %8107 = vmatmul.bf16.gmra.mxu1 %v9710_v35  ;;  %v5511_v31 = vor.u32 %v5510_v59, %v14763_v60  ;;  %v17024_v17 = vrot.slane %v14446_v18, 4  ;;  %v17025_v42 = vrot.slane %v14562_v43, 7  ;;  %v14813_v35 = vrot.slane %v5999_v54, 5  ;;  %v14815_v53 = vld [vmem:[#allocation3 + $0x48] sm:$0xf] }
 0x466   : > { %v16856_v59 = vrot.slane %v14791_v55, 7  ;;  %v9714_v34 = vor.u32 %v10579_v22, %v9711_v20  ;;  %4768 = vst [vmem:[#allocation4 + $0x1b4] sm:$0xf] %v4532_v41  ;;  %v17026_v18 = vrot.slane %v14448_v27, 4  ;;  %v4571_v43 = vshrl.u32 %v14796_v6, 16  ;;  %8453 = vmatpush.bf16.msrb.mxu1 %v10723_v10 }
 0x467   : > { %v4995_v39 = vsel %vm11300_vm2, %v17024_v17, %v4994_v13  ;;  %v4297_v52 = vrot.slane %v17025_v42, 4  ;;  %v10571_v19 = vld [vmem:[#allocation4 + $0x12c] sm:$0xf]  ;;  %v3783_v17 = vadd.f32 %v14589_v46, %v3782_v45  ;;  %4769 = vst [vmem:[#allocation4 + $0x1d8] sm:$0xf] %v4541_v32  ;;  %v17027_v54 = vrot.slane %v14513_v12, 7 }
 0x468   : > { %v5004_v13 = vsel %vm11300_vm2, %v17026_v18, %v5003_v2  ;;  %v4542_v22 = vrot.slane %v14592_v56, 4  ;;  %v6005_v20 = vrot.slane %v6003_v3, 4  ;;  %v9686_v27 = vor.u32 %v10571_v19, %v9683_v16  ;;  %5247 = vst [vmem:[#allocation4 + $0x174] sm:$0xf] %v4995_v39  ;;  %v4154_v10 = vld [vmem:[#allocation3 + $0x48] sm:$0xf] }
 0x469   : > { %v4251_v42 = vsel %vm11490_vm11, %v14551_v25, %v17027_v54  ;;  %8201 = vmatmul.bf16.gmra.mxu2 %v9714_v34  ;;  %v17028_v41 = vrot.slane %v14683_v63, 7  ;;  %v4300_v2 = vrot.slane %v4298_v30, 4  ;;  %v17029_v12 = vshll.u32 %v14697_v62, 16  ;;  %5248 = vst [vmem:[#allocation4 + $0x198] sm:$0xf] %v5004_v13 }
 0x46a   : > { %v6013_v25 = vshrl.u32 %v14779_v50, 16  ;;  %v5034_v56 = vshrl.u32 %v14815_v53, 16  ;;  %v4299_v16 = vsel %vm11490_vm11, %v4297_v52, %v4298_v30  ;;  %v14842_v3 = vrot.slane %v5511_v31, 4  ;;  %4357 = vst [vmem:[#allocation4 + $0x1f8] sm:$0xf] %v4251_v42  ;;  %v3785_v50 = vpop.f32.mrf.mxu3 }
 0x46b   : > { %v4254_v45 = vsel %vm11490_vm11, %v14555_v1, %v17028_v41  ;;  %v5021_v32 = vor.u32 %v17029_v12, %v14739_v58  ;;  %v5521_v63 = vor.u32 %v14789_v15, %v14787_v36  ;;  %8384 = vmatmul.bf16.gmra.mxu0 %v9686_v27  ;;  %v4302_v1 = vsel %vm11490_vm11, %v4300_v2, %v16856_v59  ;;  %v17033_v41 = vld [vmem:[#allocation34_spill] sm:$0xff] }
 0x46c   : > { %v4551_v62 = vrot.slane %v14609_v24, 4  ;;  %v14851_v39 = vrot.slane %v4571_v43, 7  ;;  %v3821_v34 = vmax.f32 %v3783_v17, 0.0  ;;  %4358 = vst [vmem:[#allocation4 + $0x21c] sm:$0xf] %v4254_v45  ;;  %v4550_v30 = vsel %vm11300_vm2, %v4542_v22, %v14771_v49 }
 0x46d   : > { %v3786_v15 = vadd.f32 %v14589_v46, %v3785_v50  ;;  %v6006_v31 = vor.u32 %v6005_v20, %v14813_v35  ;;  %v14858_v52 = vrot.slane %v6009_v7, 5  ;;  %v4259_v18 = vrot.slane %v4154_v10, 7  ;;  %4373 = vst [vmem:[#allocation4 + $0x438] sm:$0xf] %v4299_v16  ;;  %v14878_v22 = vld [vmem:[#allocation3 + $0x78] sm:$0xf]  ;;  %v14897_v10 = vpop.f32.mrf.mxu1 }
 0x46e   : > { %v4559_v24 = vsel %vm11300_vm2, %v4551_v62, %v4558_v0  ;;  %v4574_v13 = vshll.u32 %v14796_v6, 16  ;;  %v14863_v43 = vrot.slane %v5034_v56, 7  ;;  %4374 = vst [vmem:[#allocation4 + $0x45c] sm:$0xf] %v4302_v1  ;;  %v17030_v19 = vrot.slane %v14637_v61, 4  ;;  %v17032_v20 = vld [vmem:[#allocation25_spill] sm:$0xff] }
 0x46f   : > { %v3822_v17 = vmax.f32 %v3786_v15, 0.0  ;;  %v14870_v54 = vrot.slane %v6013_v25, 4  ;;  %v5037_v7 = vshll.u32 %v14815_v53, 16  ;;  %4770 = vst [vmem:[#allocation4 + $0x1fc] sm:$0xf] %v4550_v30  ;;  %v17031_v42 = vrot.slane %v14642_v51, 4 }
 0x470   : > { %v5013_v49 = vsel %vm11300_vm2, %v17030_v19, %v14777_v44  ;;  %v4560_v0 = vrot.slane %v14745_v23, 4  ;;  %v4576_v61 = vor.u32 %v4574_v13, %v14851_v39  ;;  %v4059_v27 = vmul.f32 %v17032_v20, %v3821_v34  ;;  %v10592_v44 = vld [vmem:[#allocation4 + $0x1d0] sm:$0xf0]  ;;  %4771 = vst [vmem:[#allocation4 + $0x220] sm:$0xf] %v4559_v24 }
 0x471   : > { %v5022_v6 = vsel %vm11300_vm2, %v17031_v42, %v5021_v32  ;;  %v4060_v45 = vmul.f32 %v17033_v41, %v3822_v17  ;;  %v17034_v53 = vrot.slane %v14689_v8, 7  ;;  %v17035_v2 = vshll.u32 %v14716_v37, 16  ;;  %v14895_v25 = vld [vmem:[#allocation3 + $0x4c] sm:$0xf]  ;;  %5249 = vst [vmem:[#allocation4 + $0x1bc] sm:$0xf] %v5013_v49 }
 0x472   : > { %v14891_v12 = vrot.slane %v5521_v63, 4  ;;  %v14893_v32 = vrot.slane %v6006_v31, 4  ;;  %v5039_v56 = vor.u32 %v5037_v7, %v14863_v43  ;;  %v9745_v8 = vld [vmem:[#allocation4 + $0x1b0] sm:$0xf]  ;;  %5250 = vst [vmem:[#allocation4 + $0x1e0] sm:$0xf] %v5022_v6  ;;  %v4568_v34 = vsel %vm11300_vm2, %v4560_v0, %v14801_v33  ;;  %v3787_v13 = vpop.f32.mrf.mxu3 }
 0x473   : > { %v4257_v51 = vsel %vm11490_vm11, %v14737_v21, %v17034_v53  ;;  %v5030_v23 = vor.u32 %v17035_v2, %v14752_v57  ;;  %v10854_v16 = vpack.c.bf16 %v4060_v45, %v4059_v27  ;;  %v4260_v21 = vsel %vm11490_vm11, %v14743_v28, %v4259_v18  ;;  %v14905_v62 = vld [vmem:[#allocation3 + $0x4c] sm:$0xf]  ;;  %v14910_v30 = vld [vmem:[#allocation3 + $0x7c] sm:$0xf]  ;;  %v14913_v31 = vld [vmem:[#allocation3 + $0x50] sm:$0xf] }
 0x474   : > { %v4569_v37 = vrot.slane %v14749_v40, 4  ;;  %v4679_v63 = vshrl.u32 %v14878_v22, 16  ;;  %v4261_v1 = vrot.slane %v4259_v18, 4  ;;  %v9746_v50 = vor.u32 %v10592_v44, %v9745_v8  ;;  %4359 = vst [vmem:[#allocation4 + $0x240] sm:$0xf] %v4257_v51  ;;  %v4026_v8 = vpop.permute.xlu0 %4025 }
 0x475   : > { %v4262_v15 = vrot.slane %v14895_v25, 7  ;;  %v9747_v28 = vld [vmem:[#allocation4 + $0x1d4] sm:$0xf0]  ;;  %10956 = vst [vmem:[#allocation3 + $0x88] sm:$0xff] %v10854_v16   ;;  %v10673_v24 = vld [vmem:[#allocation4 + $0x458] sm:$0xf0]  ;;  %v6016_v49 = vor.u32 %v14870_v54, %v14858_v52  ;;  %v3788_v6 = vadd.f32 %v14589_v46, %v3787_v13 }
 0x476   : > { %v4577_v40 = vsel %vm11300_vm2, %v4569_v37, %v4576_v61  ;;  %8112 = vmatmul.bf16.gmra.mxu1 %v9746_v50  ;;  %v10069_v18 = vld [vmem:[#allocation4 + $0x438] sm:$0xf]  ;;  %4360 = vst [vmem:[#allocation4 + $0x264] sm:$0xf] %v4260_v21  ;;  %v17036_v19 = vrot.slane %v14739_v58, 4  ;;  %v17037_v0 = vrot.slane %v14752_v57, 4  ;;  %v14948_v50 = vpop.f32.mrf.mxu1 }
 0x477   : > { %v10588_v17 = vld [vmem:[#allocation4 + $0x1b4] sm:$0xf]  ;;  %v9719_v7 = vld [vmem:[#allocation4 + $0x194] sm:$0xf0]  ;;  %v10070_v42 = vor.u32 %v10673_v24, %v10069_v18  ;;  %4772 = vst [vmem:[#allocation4 + $0x244] sm:$0xf] %v4568_v34  ;;  %v4263_v54 = vsel %vm11490_vm11, %v4261_v1, %v4262_v15  ;;  %v8177_v34 = vpop.f32.mrf.mxu2 }
 0x478   : > { %v5031_v33 = vsel %vm11300_vm2, %v17036_v19, %v5030_v23  ;;  %v5040_v61 = vsel %vm11300_vm2, %v17037_v0, %v5039_v56  ;;  %v4875_v20 = vld [vmem:[#allocation3 + $0x4c] sm:$0xf]  ;;  %v14928_v27 = vld [vmem:[#allocation3 + $0x50] sm:$0xf]  ;;  %v9750_v58 = vor.u32 %v10588_v17, %v9747_v28  ;;  %4773 = vst [vmem:[#allocation4 + $0x268] sm:$0xf] %v4577_v40 }
 0x479   : > { %v4580_v44 = vshrl.u32 %v14905_v62, 16  ;;  %v10580_v41 = vld [vmem:[#allocation4 + $0x174] sm:$0xf]  ;;  %8157 = vmatmul.bf16.gmra.mxu3 %v10070_v42  ;;  %v3823_v46 = vmax.f32 %v3788_v6, 0.0  ;;  %5251 = vst [vmem:[#allocation4 + $0x204] sm:$0xf] %v5031_v33 }
 0x47a   : > { %v4688_v57 = vshrl.u32 %v14910_v30, 16  ;;  %v14936_v45 = vld [vmem:[#allocation3 + $0x78] sm:$0xf]  ;;  %v4589_v53 = vshrl.u32 %v14913_v31, 16  ;;  %8206 = vmatmul.bf16.gmra.mxu2 %v9750_v58  ;;  %v9722_v51 = vor.u32 %v10580_v41, %v9719_v7  ;;  %5252 = vst [vmem:[#allocation4 + $0x228] sm:$0xf] %v5040_v61 }
 0x47b   : > { %v14939_v2 = vrot.slane %v6016_v49, 4  ;;  %v14941_v23 = vld [vmem:[#allocation3 + $0x7c] sm:$0xf]  ;;  %v5043_v56 = vshrl.u32 %v4875_v20, 16  ;;  %4361 = vst [vmem:[#allocation4 + $0x288] sm:$0xf] %v4263_v54  ;;  %v4061_v13 = vmul.f32 %v4026_v8, %v3823_v46 }
 0x47c   : > { %v14943_v16 = vrot.slane %v4679_v63, 7  ;;  %v5052_v1 = vshrl.u32 %v14928_v27, 16  ;;  %8389 = vmatmul.bf16.gmra.mxu0 %v9722_v51  ;;  %17038 = vst [vmem:[#allocation41_spill] sm:$0xff] %v14948_v50  ;;  %v5142_v28 = vshrl.u32 %v14936_v45, 16  ;;  %v4582_v18 = vrot.slane %v4580_v44, 7  ;;  %v10730_v17 = vld [vmem:[%s16782_s3 + $0x158] sm:$0xff] }
 0x47d   : > { %v14952_v24 = vld [vmem:[#allocation3 + $0x50] sm:$0xf]  ;;  %v14954_v63 = vrot.slane %v4688_v57, 7  ;;  %v14957_v33 = vld [vmem:[#allocation3 + $0x78] sm:$0xf]  ;;  %v14959_v49 = vrot.slane %v4589_v53, 7  ;;  %8548 = vmatpush.bf16.msrb.mxu2 %v10730_v17  ;;  %v4101_v53 = vpack.c.bf16 %v4061_v13, %v4061_v13 }
 0x47e   : > { %v4583_v42 = vshll.u32 %v14905_v62, 16  ;;  %v5045_v6 = vrot.slane %v5043_v56, 7  ;;  %v5046_v0 = vshll.u32 %v4875_v20, 16  ;;  %v14969_v61 = vld [vmem:[%s16783_s4] ss:$0 sm:$0xff]  ;;  %v4265_v58 = vrot.slane %v14952_v24, 7  ;;  %v8088_v40 = vpop.f32.mrf.mxu1 }
 0x47f   : > { %v14972_v54 = vld [vmem:[#allocation3 + $0x54] sm:$0xf]  ;;  %v4592_v44 = vshll.u32 %v14913_v31, 16  ;;  %v14975_v41 = vrot.slane %v5052_v1, 7  ;;  %v10601_v20 = vld [vmem:[#allocation4 + $0x218] sm:$0xf0]  ;;  %v8084_v57 = vadd.f32 %v14969_v61, %v14897_v10  ;;  %v14993_v37 = vpop.f32.mrf.mxu2 }
 0x480   : > { %v10722_v62 = vld [vmem:[%s16782_s3 + $0x118] sm:$0xff]  ;;  %v4585_v46 = vor.u32 %v4583_v42, %v4582_v18  ;;  %v4578_v51 = vrot.slane %v14851_v39, 4  ;;  %v4264_v31 = vrot.slane %v4262_v15, 4  ;;  %v5055_v1 = vshll.u32 %v14928_v27, 16  ;;  %v14990_v7 = vld [vmem:[#allocation3 + $0x58] sm:$0xf] }
 0x481   : > { %v4594_v8 = vor.u32 %v4592_v44, %v14959_v49  ;;  %8454 = vmatpush.bf16.msrb.mxu1 %v10722_v62  ;;  %v5041_v24 = vrot.slane %v14863_v43, 4  ;;  %v5048_v17 = vor.u32 %v5046_v0, %v5045_v6  ;;  %v4598_v42 = vshrl.u32 %v14972_v54, 16  ;;  %v9781_v10 = vld [vmem:[#allocation4 + $0x1f8] sm:$0xf]  ;;  %17039 = vst [vmem:[#allocation42_spill] sm:$0xff] %v14993_v37 }
 0x482   : > { %v5057_v39 = vor.u32 %v5055_v1, %v14975_v41  ;;  %v9782_v13 = vor.u32 %v10601_v20, %v9781_v10  ;;  %v4266_v25 = vsel %vm11490_vm11, %v4264_v31, %v4265_v58  ;;  %v4587_v15 = vrot.slane %v4582_v18, 4  ;;  %v4877_v27 = vld [vmem:[#allocation3 + $0x54] sm:$0xf]  ;;  %v9783_v44 = vld [vmem:[#allocation4 + $0x21c] sm:$0xf0] }
 0x483   : > { %4135 = vst [vmem:[#allocation3 + $0x90] sm:$0xf] %v4101_v53  ;;  %v14997_v43 = vadd.f32 %v8177_v34, %v8084_v57  ;;  %v4586_v0 = vsel %vm11300_vm2, %v4578_v51, %v4585_v46  ;;  %v5050_v62 = vrot.slane %v5045_v6, 4  ;;  %v4157_v21 = vld [vmem:[#allocation3 + $0x54] sm:$0xf]  ;;  %v4607_v1 = vshrl.u32 %v14990_v7, 16 }
 0x484   : > { %v4878_v20 = vld [vmem:[#allocation3 + $0x58] sm:$0xf]  ;;  %v4595_v10 = vsel %vm11300_vm2, %v4587_v15, %v4594_v8  ;;  %v10597_v56 = vld [vmem:[#allocation4 + $0x1fc] sm:$0xf]  ;;  %v9755_v31 = vld [vmem:[#allocation4 + $0x1dc] sm:$0xf0]  ;;  %v5049_v18 = vsel %vm11300_vm2, %v5041_v24, %v5048_v17 }
 0x485   : > { %17040 = vst [vmem:[#allocation67_spill] sm:$0xff] %v14997_v43  ;;  %v15006_v34 = vrot.slane %v4598_v42, 7  ;;  %v5061_v57 = vshrl.u32 %v4877_v27, 16  ;;  %v4158_v53 = vld [vmem:[#allocation3 + $0x58] sm:$0xf]  ;;  %v9786_v46 = vor.u32 %v10597_v56, %v9783_v44  ;;  %v5058_v6 = vsel %vm11300_vm2, %v5050_v62, %v5057_v39  ;;  %v17042_v42 = vld [vmem:[#allocation49_spill] sm:$0xff] }
 0x486   : > { %8117 = vmatmul.bf16.gmra.mxu1 %v9782_v13  ;;  %4362 = vst [vmem:[#allocation4 + $0x2ac] sm:$0xf] %v4266_v25  ;;  %v4268_v51 = vrot.slane %v4157_v21, 7  ;;  %v5070_v13 = vshrl.u32 %v4878_v20, 16  ;;  %v10589_v59 = vld [vmem:[#allocation4 + $0x1bc] sm:$0xf] }
 0x487   : > { %4774 = vst [vmem:[#allocation4 + $0x28c] sm:$0xf] %v4586_v0  ;;  %v4267_v15 = vrot.slane %v4265_v58, 4  ;;  %v4601_v25 = vshll.u32 %v14972_v54, 16  ;;  %v9758_v24 = vor.u32 %v10589_v59, %v9755_v31  ;;  %v17041_v17 = vld [vmem:[#allocation60_spill] sm:$0xff]  ;;  %v17043_v19 = vshll.u32 %v17042_v42, 16  ;;  %v8182_v31 = vpop.f32.mrf.mxu2 }
 0x488   : > { %4775 = vst [vmem:[#allocation4 + $0x2b0] sm:$0xf] %v4595_v10  ;;  %v17044_v44 = vld [vmem:[#allocation80_spill] sm:$0xff]  ;;  %v4271_v0 = vrot.slane %v4158_v53, 7  ;;  %v15022_v62 = vrot.slane %v4607_v1, 7  ;;  %v15026_v58 = vrot.slane %v5142_v28, 7 }
 0x489   : > { %5253 = vst [vmem:[#allocation4 + $0x24c] sm:$0xf] %v5049_v18  ;;  %v15015_v56 = vor.u32 %v17043_v19, %v17041_v17  ;;  %v17045_v39 = vshll.u32 %v17044_v44, 16  ;;  %v4169_v10 = vld [vmem:[#allocation3 + $0x84] sm:$0xf]  ;;  %v4603_v59 = vor.u32 %v4601_v25, %v15006_v34  ;;  %v5063_v54 = vrot.slane %v5061_v57, 7  ;;  %v15029_v19 = vpop.f32.mrf.mxu1 }
 0x48a   : > { %8211 = vmatmul.bf16.gmra.mxu2 %v9786_v46  ;;  %5254 = vst [vmem:[#allocation4 + $0x270] sm:$0xf] %v5058_v6  ;;  %v4596_v18 = vrot.slane %v14959_v49, 4  ;;  %v17047_v46 = vshrl.u32 %v14941_v23, 16  ;;  %v4270_v1 = vrot.slane %v4268_v51, 4  ;;  %v4610_v6 = vshll.u32 %v14990_v7, 16 }
 0x48b   : > { %v15020_v21 = vor.u32 %v17045_v39, %v14525_v47  ;;  %17046 = vst [vmem:[#allocation25_spill] sm:$0xff] %v15029_v19  ;;  %v15037_v42 = vrot.slane %v5070_v13, 7  ;;  %v4170_v28 = vld [vmem:[#allocation3 + $0x88] sm:$0x7]  ;;  %v5064_v44 = vshll.u32 %v4877_v27, 16  ;;  %v4304_v39 = vrot.slane %v4169_v10, 7 }
 0x48c   : > { %8394 = vmatmul.bf16.gmra.mxu0 %v9758_v24  ;;  %v15034_v53 = vrot.slane %v17047_v46, 7  ;;  %v8089_v57 = vadd.f32 %v14969_v61, %v8088_v40  ;;  %v4269_v25 = vsel %vm11490_vm11, %v4267_v15, %v4268_v51  ;;  %v15042_v24 = vld [vmem:[#allocation3 + $0x7c] sm:$0xf]  ;;  %v5059_v49 = vrot.slane %v14975_v41, 4  ;;  %v17049_v51 = vld [vmem:[#allocation90_spill] sm:$0xff]  ;;  %v17050_v15 = vld [vmem:[#allocation83_spill] sm:$0xff] }
 0x48d   : > { %v15045_v8 = vld [vmem:[#allocation3 + $0x5c] sm:$0xf]  ;;  %v4612_v46 = vor.u32 %v4610_v6, %v15022_v62  ;;  %v5073_v19 = vshll.u32 %v4878_v20, 16  ;;  %v4272_v7 = vsel %vm11490_vm11, %v4270_v1, %v4271_v0  ;;  %v5066_v13 = vor.u32 %v5064_v44, %v5063_v54  ;;  %v10610_v43 = vld [vmem:[#allocation4 + $0x260] sm:$0xf0] }
 0x48e   : > { %v4307_v27 = vrot.slane %v4170_v28, 7  ;;  %v15050_v10 = vadd.f32 %v8182_v31, %v8089_v57  ;;  %v4604_v40 = vsel %vm11300_vm2, %v4596_v18, %v4603_v59  ;;  %v17051_v37 = vshll.u32 %v17050_v15, 16  ;;  %4363 = vst [vmem:[#allocation4 + $0x2d0] sm:$0xf] %v4269_v25  ;;  %v15073_v15 = vld [vmem:[#allocation3 + $0x60] sm:$0xf] }
 0x48f   : > { %v5075_v41 = vor.u32 %v5073_v19, %v15037_v42  ;;  %v17052_v6 = vrot.slane %v14791_v55, 7  ;;  %v4605_v1 = vrot.slane %v15006_v34, 4  ;;  %v17053_v28 = vshll.u32 %v14957_v33, 16  ;;  %4364 = vst [vmem:[#allocation4 + $0x2f4] sm:$0xf] %v4272_v7  ;;  %v17059_v44 = vld [vmem:[#allocation57_spill] sm:$0xff] }
 0x490   : > { %17048 = vst [vmem:[#allocation34_spill] sm:$0xff] %v15050_v10  ;;  %v4675_v50 = vor.u32 %v17051_v37, %v17049_v51  ;;  %v16857_v59 = vrot.slane %v15045_v8, 7  ;;  %v4306_v18 = vrot.slane %v4304_v39, 4  ;;  %v5068_v37 = vrot.slane %v5063_v54, 4  ;;  %v9817_v19 = vld [vmem:[#allocation4 + $0x240] sm:$0xf]  ;;  %v15077_v54 = vpop.f32.mrf.mxu2 }
 0x491   : > { %v4303_v20 = vrot.slane %v17052_v6, 4  ;;  %v15063_v31 = vrot.slane %v17053_v28, 5  ;;  %v4273_v57 = vrot.slane %v4271_v0, 4  ;;  %v4613_v25 = vsel %vm11300_vm2, %v4605_v1, %v4612_v46  ;;  %4776 = vst [vmem:[#allocation4 + $0x2d4] sm:$0xf] %v4604_v40  ;;  %v8093_v7 = vpop.f32.mrf.mxu1 }
 0x492   : > { %v15071_v34 = vld [vmem:[#allocation3 + $0x48] sm:$0xf]  ;;  %v9818_v6 = vor.u32 %v10610_v43, %v9817_v19  ;;  %v4308_v28 = vsel %vm11490_vm11, %v4306_v18, %v4307_v27  ;;  %17055 = vst [vmem:[#allocation49_spill] sm:$0xff] %v15077_v54  ;;  %v5067_v0 = vsel %vm11300_vm2, %v5059_v49, %v5066_v13  ;;  %v15084_v46 = vld [vmem:[#allocation3 + $0x5c] sm:$0xf]  ;;  %v5076_v43 = vsel %vm11300_vm2, %v5068_v37, %v5075_v41  ;;  %v17057_v18 = vld [vmem:[#allocation52_spill] sm:$0xff] }
 0x493   : > { %17054 = vst [vmem:[#allocation60_spill] sm:$0xff] %v15063_v31  ;;  %v4305_v55 = vsel %vm11490_vm11, %v4303_v20, %v4304_v39  ;;  %v4668_v39 = vrot.slane %v14525_v47, 4  ;;  %v15082_v20 = vld [vmem:[#allocation3 + $0x5c] sm:$0xf]  ;;  %v15086_v40 = vld [vmem:[#allocation3 + $0x60] sm:$0xf] }
 0x494   : > { %4375 = vst [vmem:[#allocation4 + $0x480] sm:$0xf] %v4305_v55  ;;  %v9819_v1 = vld [vmem:[#allocation4 + $0x264] sm:$0xf0]  ;;  %v17058_v19 = vshll.u32 %v17057_v18, 16  ;;  %v4276_v49 = vrot.slane %v16857_v59, 4 }
 0x495   : > { %4376 = vst [vmem:[#allocation4 + $0x4a4] sm:$0xf] %v4308_v28  ;;  %v17056_v27 = vld [vmem:[#allocation62_spill] sm:$0xff]  ;;  %v17060_v28 = vrot.slane %v17059_v44, 4  ;;  %v4677_v59 = vrot.slane %v17049_v51, 4  ;;  %v17064_v37 = vld [vmem:[#allocation88_spill] sm:$0xff] }
 0x496   : > { %v5120_v55 = vor.u32 %v17058_v19, %v17056_v27  ;;  %8122 = vmatmul.bf16.gmra.mxu1 %v9818_v6  ;;  %v10606_v47 = vld [vmem:[#allocation4 + $0x244] sm:$0xf]  ;;  %v10729_v13 = vld [vmem:[%s16782_s3 + $0x150] sm:$0xff]  ;;  %4777 = vst [vmem:[#allocation4 + $0x2f8] sm:$0xf] %v4613_v25  ;;  %v17061_v19 = vrot.slane %v17041_v17, 4 }
 0x497   : > { %v4658_v41 = vsel %vm11300_vm2, %v17060_v28, %v15015_v56  ;;  %v9791_v18 = vld [vmem:[#allocation4 + $0x224] sm:$0xf0]  ;;  %5255 = vst [vmem:[#allocation4 + $0x294] sm:$0xf] %v5067_v0  ;;  %v17062_v25 = vshll.u32 %v14878_v22, 16  ;;  %v9822_v10 = vor.u32 %v10606_v47, %v9819_v1  ;;  %8549 = vmatpush.bf16.msrb.mxu2 %v10729_v13  ;;  %v4676_v56 = vsel %vm11300_vm2, %v4668_v39, %v4675_v50  ;;  %v17069_v13 = vld [vmem:[#allocation89_spill] sm:$0xff] }
 0x498   : > { %v4667_v6 = vsel %vm11300_vm2, %v17061_v19, %v15020_v21  ;;  %5256 = vst [vmem:[#allocation4 + $0x2b8] sm:$0xf] %v5076_v43  ;;  %v4686_v0 = vrot.slane %v14943_v16, 4  ;;  %v17063_v17 = vshll.u32 %v14910_v30, 16  ;;  %v17065_v21 = vld [vmem:[#allocation81_spill] sm:$0xff]  ;;  %v17067_v31 = vshrl.u32 %v14957_v33, 16 }
 0x499   : > { %v4684_v54 = vor.u32 %v17062_v25, %v14943_v16  ;;  %v17066_v19 = vshll.u32 %v17065_v21, 16  ;;  %v10598_v43 = vld [vmem:[#allocation4 + $0x204] sm:$0xf]  ;;  %4782 = vst [vmem:[#allocation4 + $0x3ac] sm:$0xf] %v4658_v41  ;;  %v4616_v16 = vshrl.u32 %v15082_v20, 16  ;;  %v8094_v41 = vadd.f32 %v14969_v61, %v8093_v7 }
 0x49a   : > { %v4693_v28 = vor.u32 %v17063_v17, %v14954_v63  ;;  %v15124_v22 = vrot.slane %v17067_v31, 4  ;;  %v5079_v30 = vshrl.u32 %v15084_v46, 16  ;;  %v4625_v39 = vshrl.u32 %v15086_v40, 16  ;;  %8216 = vmatmul.bf16.gmra.mxu2 %v9822_v10  ;;  %4783 = vst [vmem:[#allocation4 + $0x3d0] sm:$0xf] %v4667_v6  ;;  %v17070_v33 = vld [vmem:[#allocation82_spill] sm:$0xff] }
 0x49b   : > { %v5129_v51 = vor.u32 %v17066_v19, %v17064_v37  ;;  %v4685_v50 = vsel %vm11300_vm2, %v4677_v59, %v4684_v54  ;;  %v9794_v47 = vor.u32 %v10598_v43, %v9791_v18  ;;  %v17071_v31 = vshll.u32 %v17070_v33, 16  ;;  %v15135_v17 = vld [vmem:[#allocation3 + $0x60] sm:$0xf]  ;;  %4784 = vst [vmem:[#allocation4 + $0x3f4] sm:$0xf] %v4676_v56  ;;  %v10721_v54 = vld [vmem:[%s16782_s3 + $0x110] sm:$0xff]  ;;  %v8187_v19 = vpop.f32.mrf.mxu2 }
 0x49c   : > { %17068 = vst [vmem:[#allocation80_spill] sm:$0xff] %v15124_v22  ;;  %v10105_v21 = vld [vmem:[#allocation4 + $0x480] sm:$0xf]  ;;  %v10682_v59 = vld [vmem:[#allocation4 + $0x4a0] sm:$0xf0]  ;;  %v10710_v10 = vld [vmem:[%s16782_s3 + $0xb8] sm:$0xff]  ;;  %v4694_v56 = vsel %vm11300_vm2, %v4686_v0, %v4693_v28  ;;  %v15169_v28 = vpop.f32.mrf.mxu1  ;;  %8455 = vmatpush.bf16.msrb.mxu1 %v10721_v54 }
 0x49d   : > { %v5138_v25 = vor.u32 %v17071_v31, %v17069_v13  ;;  %8399 = vmatmul.bf16.gmra.mxu0 %v9794_v47  ;;  %v17072_v18 = vrot.slane %v15045_v8, 7  ;;  %v17073_v43 = vrot.slane %v15073_v15, 7  ;;  %4785 = vst [vmem:[#allocation4 + $0x418] sm:$0xf] %v4685_v50  ;;  %v15155_v33 = vld [vmem:[#allocation3 + $0x64] sm:$0xf]  ;;  %v15157_v31 = vpop.f32.mrf.mxu0  ;;  %v10106_v1 = vor.u32 %v10682_v59, %v10105_v21  ;;  %8262 = vmatpush.bf16.msrb.mxu3 %v10710_v10 }
 0x49e   : > { %v15159_v8 = vadd.f32 %v8187_v19, %v8094_v41  ;;  %v4619_v50 = vshll.u32 %v15082_v20, 16  ;;  %v5088_v0 = vshrl.u32 %v15135_v17, 16  ;;  %17076 = vst [vmem:[#allocation90_spill] sm:$0xff] %v15169_v28  ;;  %v17077_v21 = vrot.slane %v17056_v27, 4  ;;  %v17078_v20 = vld [vmem:[#allocation15_spill] sm:$0xff]  ;;  %v17079_v19 = vld [vmem:[#allocation14_spill] sm:$0xff] }
 0x49f   : > { %v4275_v6 = vsel %vm11490_vm11, %v4273_v57, %v17072_v18  ;;  %v4278_v7 = vsel %vm11490_vm11, %v4276_v49, %v17073_v43  ;;  %v17074_v57 = vld [vmem:[#allocation61_spill] sm:$0xff]  ;;  %v15165_v49 = vrot.slane %v4616_v16, 7  ;;  %v15175_v59 = vrot.slane %v5079_v30, 7  ;;  %v15178_v16 = vld [vmem:[#allocation3 + $0x64] sm:$0xf]  ;;  %8162 = vmatmul.bf16.gmra.mxu3 %v10106_v1  ;;  %v17082_v30 = vld [vmem:[#allocation20_spill] sm:$0xff] }
 0x4a0   : > { %4365 = vst [vmem:[#allocation4 + $0x318] sm:$0xf] %v4275_v6  ;;  %v17075_v18 = vrot.slane %v17074_v57, 4  ;;  %v5130_v41 = vsel %vm11300_vm2, %v17077_v21, %v5129_v51  ;;  %v5387_v54 = vsel %vm11330_vm5, %v17079_v19, %v17078_v20  ;;  %v16859_v27 = vrot.slane %v15155_v33, 7  ;;  %v17081_v51 = vld [vmem:[#allocation16_spill] sm:$0xff]  ;;  %v17085_v19 = vld [vmem:[#allocation21_spill] sm:$0xff] }
 0x4a1   : > { %4366 = vst [vmem:[#allocation4 + $0x33c] sm:$0xf] %v4278_v7  ;;  %v15186_v43 = vrot.slane %v4625_v39, 7  ;;  %v15192_v7 = vld [vmem:[#allocation3 + $0x64] sm:$0xf]  ;;  %v4628_v21 = vshll.u32 %v15086_v40, 16 }
 0x4a2   : > { %v5121_v22 = vsel %vm11300_vm2, %v17075_v18, %v5120_v55  ;;  %v5082_v55 = vshll.u32 %v15084_v46, 16  ;;  %4786 = vst [vmem:[#allocation4 + $0x43c] sm:$0xf] %v4694_v56  ;;  %v5397_v46 = vsel %vm11330_vm5, %v17082_v30, %v17081_v51  ;;  %v10619_v1 = vld [vmem:[#allocation4 + $0x2a8] sm:$0xf0]  ;;  %v17083_v56 = vrot.slane %v17064_v37, 4 }
 0x4a3   : > { %5261 = vst [vmem:[#allocation4 + $0x36c] sm:$0xf] %v5121_v22  ;;  %v4634_v39 = vshrl.u32 %v15178_v16, 16  ;;  %v15200_v20 = vrot.slane %v5088_v0, 7  ;;  %v17084_v22 = vld [vmem:[#allocation18_spill] sm:$0xff]  ;;  %v4621_v30 = vor.u32 %v4619_v50, %v15165_v49  ;;  %v5091_v37 = vshll.u32 %v15135_v17, 16 }
 0x4a4   : > { %5262 = vst [vmem:[#allocation4 + $0x390] sm:$0xf] %v5130_v41  ;;  %v5139_v18 = vsel %vm11300_vm2, %v17083_v56, %v5138_v25  ;;  %v5407_v51 = vsel %vm11330_vm5, %v17085_v19, %v17084_v22  ;;  %v5086_v41 = vrot.slane %v15175_v59, 4  ;;  %v9853_v47 = vld [vmem:[#allocation4 + $0x288] sm:$0xf]  ;;  %v4630_v40 = vor.u32 %v4628_v21, %v15186_v43  ;;  %v15211_v56 = vpop.f32.mrf.mxu2  ;;  %v8098_v28 = vpop.f32.mrf.mxu1 }
 0x4a5   : > { %5752 = vst [vmem:[#allocation4 + $0x14] sm:$0xf] %v5387_v54  ;;  %v5097_v25 = vshrl.u32 %v15192_v7, 16  ;;  %v9854_v0 = vor.u32 %v10619_v1, %v9853_v47  ;;  %v17087_v54 = vld [vmem:[#allocation19_spill] sm:$0xff]  ;;  %v17088_v10 = vld [vmem:[#allocation22_spill] sm:$0xff]  ;;  %v5084_v50 = vor.u32 %v5082_v55, %v15175_v59  ;;  %v17089_v19 = vrot.slane %v15073_v15, 7 }
 0x4a6   : > { %5753 = vst [vmem:[#allocation4 + $0x38] sm:$0xf] %v5397_v46  ;;  %v5417_v22 = vsel %vm11330_vm5, %v17088_v10, %v17087_v54  ;;  %v15224_v46 = vrot.slane %v16859_v27, 4  ;;  %v9855_v21 = vld [vmem:[#allocation4 + $0x2ac] sm:$0xf0]  ;;  %v5093_v10 = vor.u32 %v5091_v37, %v15200_v20  ;;  %v10709_v15 = vld [vmem:[%s16782_s3 + $0xb0] sm:$0xff] }
 0x4a7   : > { %17086 = vst [vmem:[#allocation83_spill] sm:$0xff] %v15211_v56  ;;  %v15220_v17 = vrot.slane %v17089_v19, 4  ;;  %v17090_v47 = vld [vmem:[#allocation27_spill] sm:$0xff]  ;;  %v15230_v56 = vrot.slane %v4634_v39, 7  ;;  %8127 = vmatmul.bf16.gmra.mxu1 %v9854_v0  ;;  %v4614_v59 = vrot.slane %v15022_v62, 4  ;;  %v4623_v55 = vrot.slane %v15165_v49, 4  ;;  %v15243_v39 = vpop.f32.mrf.mxu0  ;;  %8263 = vmatpush.bf16.msrb.mxu3 %v10709_v15 }
 0x4a8   : > { %5263 = vst [vmem:[#allocation4 + $0x3b4] sm:$0xf] %v5139_v18  ;;  %v17091_v1 = vld [vmem:[#allocation23_spill] sm:$0xff]  ;;  %v15247_v0 = vrot.slane %v5097_v25, 7  ;;  %v5100_v25 = vshll.u32 %v15192_v7, 16  ;;  %v5094_v7 = vsel %vm11300_vm2, %v5086_v41, %v5093_v10 }
 0x4a9   : > { %5754 = vst [vmem:[#allocation4 + $0x5c] sm:$0xf] %v5407_v51  ;;  %v5427_v18 = vsel %vm11330_vm5, %v17091_v1, %v17090_v47  ;;  %v17092_v51 = vld [vmem:[#allocation47_spill] sm:$0xff]  ;;  %v4622_v62 = vsel %vm11300_vm2, %v4614_v59, %v4621_v30  ;;  %v4631_v49 = vsel %vm11300_vm2, %v4623_v55, %v4630_v40  ;;  %v4632_v40 = vrot.slane %v15186_v43, 4  ;;  %v17100_v43 = vld [vmem:[#allocation45_spill] sm:$0xff] }
 0x4aa   : > { %v17093_v54 = vshll.u32 %v17092_v51, 16  ;;  %v10615_v27 = vld [vmem:[#allocation4 + $0x28c] sm:$0xf]  ;;  %v9827_v47 = vld [vmem:[#allocation4 + $0x26c] sm:$0xf0]  ;;  %17094 = vst [vmem:[#allocation62_spill] sm:$0xff] %v15243_v39  ;;  %v5102_v41 = vor.u32 %v5100_v25, %v15247_v0 }
 0x4ab   : > { %5755 = vst [vmem:[#allocation4 + $0x80] sm:$0xf] %v5417_v22  ;;  %v15245_v37 = vld [vmem:[#allocation3 + $0x4c] sm:$0xf]  ;;  %v9858_v1 = vor.u32 %v10615_v27, %v9855_v21  ;;  %v15256_v39 = vld [vmem:[#allocation3 + $0x48] sm:$0xf] }
 0x4ac   : > { %v15241_v19 = vor.u32 %v17093_v54, %v17059_v44  ;;  %5756 = vst [vmem:[#allocation4 + $0xa4] sm:$0xf] %v5427_v18  ;;  %v17095_v44 = vld [vmem:[#allocation51_spill] sm:$0xff]  ;;  %v4637_v22 = vshll.u32 %v15178_v16, 16  ;;  %v17097_v21 = vld [vmem:[#allocation28_spill] sm:$0xff]  ;;  %v6019_v25 = vshll.u32 %v15256_v39, 16 }
 0x4ad   : > { %v17096_v51 = vshll.u32 %v17095_v44, 16  ;;  %v10607_v27 = vld [vmem:[#allocation4 + $0x24c] sm:$0xf]  ;;  %4778 = vst [vmem:[#allocation4 + $0x31c] sm:$0xf] %v4622_v62  ;;  %8221 = vmatmul.bf16.gmra.mxu2 %v9858_v1  ;;  %v4641_v62 = vrot.slane %v15230_v56, 4 }
 0x4ae   : > { %v17098_v15 = vld [vmem:[#allocation35_spill] sm:$0xff]  ;;  %v9830_v18 = vor.u32 %v10607_v27, %v9827_v47  ;;  %4779 = vst [vmem:[#allocation4 + $0x340] sm:$0xf] %v4631_v49  ;;  %v5095_v44 = vrot.slane %v15200_v20, 4  ;;  %v17101_v47 = vld [vmem:[#allocation36_spill] sm:$0xff]  ;;  %v4639_v49 = vor.u32 %v4637_v22, %v15230_v56  ;;  %v8192_v20 = vpop.f32.mrf.mxu2  ;;  %v5534_v27 = vshll.u32 %v15245_v37, 16 }
 0x4af   : > { %v5111_v54 = vor.u32 %v17096_v51, %v17074_v57  ;;  %v5437_v30 = vsel %vm11330_vm5, %v17098_v15, %v17097_v21  ;;  %v9999_v59 = vld [vmem:[#allocation4 + $0x3cc] sm:$0xf0]  ;;  %v17099_v57 = vrot.slane %v15037_v42, 4  ;;  %v5868_v55 = vld [vmem:[#allocation3 + $0x4c] sm:$0xf]  ;;  %v8099_v51 = vadd.f32 %v14969_v61, %v8098_v28  ;;  %v10708_v61 = vld [vmem:[%s16782_s3 + $0xa8] sm:$0xff] }
 0x4b0   : > { %v5447_v1 = vsel %vm11330_vm5, %v17101_v47, %v17100_v43  ;;  %v17102_v42 = vshll.u32 %v14936_v45, 16  ;;  %8404 = vmatmul.bf16.gmra.mxu0 %v9830_v18  ;;  %v10651_v10 = vld [vmem:[#allocation4 + $0x3ac] sm:$0xf]  ;;  %5258 = vst [vmem:[#allocation4 + $0x300] sm:$0xf] %v5094_v7  ;;  %v10728_v28 = vld [vmem:[%s16782_s3 + $0x148] sm:$0xff]  ;;  %8264 = vmatpush.bf16.msrb.mxu3 %v10708_v61  ;;  %v4640_v47 = vsel %vm11300_vm2, %v4632_v40, %v4639_v49 }
 0x4b1   : > { %v5085_v16 = vsel %vm11300_vm2, %v17099_v57, %v5084_v50  ;;  %v5104_v45 = vrot.slane %v15247_v0, 4  ;;  %v10002_v21 = vor.u32 %v10651_v10, %v9999_v59  ;;  %v15291_v56 = vadd.f32 %v8192_v20, %v8099_v51  ;;  %5757 = vst [vmem:[#allocation4 + $0xc8] sm:$0xf] %v5437_v30  ;;  %v5356_v15 = vld [vmem:[#allocation3 + $0x50] sm:$0xf]  ;;  %8550 = vmatpush.bf16.msrb.mxu2 %v10728_v28  ;;  %v10737_v6 = vld [vmem:[%s16782_s3 + $0x190] sm:$0xff] }
 0x4b2   : > { %5257 = vst [vmem:[#allocation4 + $0x2dc] sm:$0xf] %v5085_v16  ;;  %v5147_v50 = vor.u32 %v17102_v42, %v15026_v58  ;;  %v5538_v22 = vshrl.u32 %v15245_v37, 16  ;;  %v17103_v18 = vrot.slane %v15155_v33, 7  ;;  %v17104_v16 = vld [vmem:[#allocation17_spill] sm:$0xff]  ;;  %v17106_v37 = vshll.u32 %v15071_v34, 16 }
 0x4b3   : > { %v17105_v7 = vrot.slane %v17104_v16, 7  ;;  %5758 = vst [vmem:[#allocation4 + $0xec] sm:$0xf] %v5447_v1  ;;  %v17107_v59 = vshrl.u32 %v15071_v34, 16  ;;  %v6023_v33 = vshrl.u32 %v15256_v39, 16  ;;  %v6029_v43 = vshll.u32 %v5868_v55, 16  ;;  %8241 = vmatmul.bf16.vlgmr.msra.gmra.mxu3 %v10002_v21 }
 0x4b4   : > { %v4281_v57 = vsel %vm11490_vm11, %v15220_v17, %v17103_v18  ;;  %v15307_v30 = vrot.slane %v17106_v37, 5  ;;  %v6033_v17 = vshrl.u32 %v5868_v55, 16  ;;  %v4649_v5 = vsel %vm11300_vm2, %v4641_v62, %v15241_v19  ;;  %v10628_v10 = vld [vmem:[#allocation4 + $0x2f0] sm:$0xf0]  ;;  %v15324_v55 = vpop.f32.mrf.mxu0  ;;  %4780 = vst [vmem:[#allocation4 + $0x364] sm:$0xf] %v4640_v47 }
 0x4b5   : > { %v4284_v0 = vsel %vm11490_vm11, %v15224_v46, %v17105_v7  ;;  %v5530_v51 = vrot.slane %v17107_v59, 4  ;;  %4367 = vst [vmem:[#allocation4 + $0x360] sm:$0xf] %v4281_v57  ;;  %v5103_v46 = vsel %vm11300_vm2, %v5095_v44, %v5102_v41  ;;  %v17108_v34 = vshll.u32 %v14941_v23, 16  ;;  %v17109_v62 = vld [vmem:[#allocation46_spill] sm:$0xff]  ;;  %v17110_v44 = vld [vmem:[#allocation53_spill] sm:$0xff] }
 0x4b6   : > { %4368 = vst [vmem:[#allocation4 + $0x384] sm:$0xf] %v4284_v0  ;;  %v15322_v39 = vrot.slane %v5534_v27, 5  ;;  %v5544_v42 = vshll.u32 %v5356_v15, 16  ;;  %v5112_v40 = vsel %vm11300_vm2, %v5104_v45, %v5111_v54  ;;  %v5540_v49 = vrot.slane %v5538_v22, 4  ;;  %v17113_v7 = vld [vmem:[#allocation55_spill] sm:$0xff] }
 0x4b7   : > { %v5156_v1 = vor.u32 %v17108_v34, %v15034_v53  ;;  %v15328_v20 = vrot.slane %v6019_v25, 5  ;;  %v5548_v19 = vshrl.u32 %v5356_v15, 16  ;;  %4781 = vst [vmem:[#allocation4 + $0x388] sm:$0xf] %v4649_v5  ;;  %v5457_v23 = vsel %vm11330_vm5, %v17110_v44, %v17109_v62  ;;  %v9889_v61 = vld [vmem:[#allocation4 + $0x2d0] sm:$0xf] }
 0x4b8   : > { %v6025_v41 = vrot.slane %v6023_v33, 4  ;;  %5259 = vst [vmem:[#allocation4 + $0x324] sm:$0xf] %v5103_v46  ;;  %v5149_v28 = vrot.slane %v15026_v58, 4  ;;  %v5531_v27 = vor.u32 %v5530_v51, %v15307_v30  ;;  %v15336_v21 = vrot.slane %v6029_v43, 5  ;;  %v17112_v58 = vld [vmem:[#allocation69_spill] sm:$0xff] }
 0x4b9   : > { %v6035_v54 = vrot.slane %v6033_v17, 4  ;;  %v9890_v45 = vor.u32 %v10628_v10, %v9889_v61  ;;  %5260 = vst [vmem:[#allocation4 + $0x348] sm:$0xf] %v5112_v40  ;;  %v5357_v22 = vld [vmem:[#allocation3 + $0x54] sm:$0xf]  ;;  %v15338_v25 = vrot.slane %v5544_v42, 5  ;;  %v5467_v0 = vsel %vm11330_vm5, %v17113_v7, %v17112_v58 }
 0x4ba   : > { %v9891_v15 = vld [vmem:[#allocation4 + $0x2f4] sm:$0xf0]  ;;  %v17111_v18 = vrot.slane %v17069_v13, 4  ;;  %v5157_v16 = vsel %vm11300_vm2, %v5149_v28, %v5156_v1  ;;  %5759 = vst [vmem:[#allocation4 + $0x110] sm:$0xf] %v5457_v23  ;;  %v5550_v37 = vrot.slane %v5548_v19, 4  ;;  %v5541_v43 = vor.u32 %v5540_v49, %v15322_v39 }
 0x4bb   : > { %v15350_v59 = vld [vmem:[#allocation3 + $0x80] sm:$0xf]  ;;  %8132 = vmatmul.bf16.gmra.mxu1 %v9890_v45  ;;  %v17114_v51 = vld [vmem:[#allocation70_spill] sm:$0xff]  ;;  %v6026_v17 = vor.u32 %v6025_v41, %v15328_v20  ;;  %v10624_v47 = vld [vmem:[#allocation4 + $0x2d4] sm:$0xf]  ;;  %v17117_v1 = vshll.u32 %v15042_v24, 16  ;;  %v5497_v49 = vsel %vm11330_vm5, %v14727_v29, %v14671_v9  ;;  %v6036_v62 = vor.u32 %v6035_v54, %v15336_v21 }
 0x4bc   : > { %v5148_v57 = vsel %vm11300_vm2, %v17111_v18, %v5147_v50  ;;  %v10720_v13 = vld [vmem:[%s16782_s3 + $0x108] sm:$0xff]  ;;  %v17115_v50 = vld [vmem:[#allocation76_spill] sm:$0xff]  ;;  %5265 = vst [vmem:[#allocation4 + $0x3fc] sm:$0xf] %v5157_v16  ;;  %v15369_v10 = vrot.slane %v5531_v27, 4  ;;  %v9894_v19 = vor.u32 %v10624_v47, %v9891_v15  ;;  %v4697_v44 = vshrl.u32 %v15350_v59, 16  ;;  %v15393_v18 = vpop.f32.mrf.mxu0 }
 0x4bd   : > { %5264 = vst [vmem:[#allocation4 + $0x3d8] sm:$0xf] %v5148_v57  ;;  %v5477_v33 = vsel %vm11330_vm5, %v17115_v50, %v17114_v51  ;;  %v9863_v5 = vld [vmem:[#allocation4 + $0x2b4] sm:$0xf0]  ;;  %v17116_v46 = vld [vmem:[#allocation78_spill] sm:$0xff]  ;;  %v15367_v42 = vrot.slane %v17117_v1, 5  ;;  %8456 = vmatpush.bf16.msrb.mxu1 %v10720_v13  ;;  %v5507_v23 = vsel %vm11330_vm5, %v14729_v38, %v14763_v60  ;;  %v5517_v29 = vsel %vm11330_vm5, %v14842_v3, %v14787_v36 }
 0x4be   : > { %v5487_v34 = vsel %vm11330_vm5, %v17116_v46, %v14654_v48  ;;  %v5869_v40 = vld [vmem:[#allocation3 + $0x50] sm:$0xf]  ;;  %5760 = vst [vmem:[#allocation4 + $0x134] sm:$0xf] %v5467_v0  ;;  %v10616_v48 = vld [vmem:[#allocation4 + $0x294] sm:$0xf]  ;;  %8226 = vmatmul.bf16.gmra.mxu2 %v9894_v19  ;;  %v5551_v45 = vor.u32 %v5550_v37, %v15338_v25 }
 0x4bf   : > { %v10707_v24 = vld [vmem:[%s16782_s3 + $0xa0] sm:$0xff]  ;;  %5761 = vst [vmem:[#allocation4 + $0x158] sm:$0xf] %v5477_v33  ;;  %v5554_v41 = vshll.u32 %v5357_v22, 16  ;;  %v5558_v61 = vshrl.u32 %v5357_v22, 16  ;;  %v9866_v28 = vor.u32 %v10616_v48, %v9863_v5  ;;  %v15388_v27 = vrot.slane %v5541_v43, 4 }
 0x4c0   : > { %v10035_v9 = vld [vmem:[#allocation4 + $0x414] sm:$0xf0]  ;;  %5762 = vst [vmem:[#allocation4 + $0x17c] sm:$0xf] %v5487_v34  ;;  %v15390_v54 = vrot.slane %v6026_v17, 4  ;;  %8265 = vmatpush.bf16.msrb.mxu3 %v10707_v24  ;;  %v17118_v38 = vld [vmem:[#allocation31_spill] sm:$0xff] }
 0x4c1   : > { %v5870_v15 = vld [vmem:[#allocation3 + $0x54] sm:$0xf]  ;;  %5763 = vst [vmem:[#allocation4 + $0x1a0] sm:$0xf] %v5497_v49  ;;  %v17119_v60 = vld [vmem:[#allocation26_spill] sm:$0xff]  ;;  %v6039_v57 = vshll.u32 %v5869_v40, 16  ;;  %8409 = vmatmul.bf16.gmra.mxu0 %v9866_v28 }
 0x4c2   : > { %v5922_v22 = vsel %vm11330_vm5, %v17119_v60, %v17118_v38  ;;  %v6043_v16 = vshrl.u32 %v5869_v40, 16  ;;  %v10660_v36 = vld [vmem:[#allocation4 + $0x3f4] sm:$0xf]  ;;  %5764 = vst [vmem:[#allocation4 + $0x1c4] sm:$0xf] %v5507_v23  ;;  %v17121_v58 = vld [vmem:[#allocation39_spill] sm:$0xff] }
 0x4c3   : > { %v17120_v3 = vld [vmem:[#allocation32_spill] sm:$0xff]  ;;  %v15403_v0 = vrot.slane %v6036_v62, 4  ;;  %v15405_v37 = vrot.slane %v4697_v44, 7  ;;  %v10038_v13 = vor.u32 %v10660_v36, %v10035_v9  ;;  %5765 = vst [vmem:[#allocation4 + $0x1e8] sm:$0xf] %v5517_v29  ;;  %v15411_v43 = vrot.slane %v5554_v41, 5 }
 0x4c4   : > { %v5932_v7 = vsel %vm11330_vm5, %v17121_v58, %v17120_v3  ;;  %v17122_v51 = vld [vmem:[#allocation48_spill] sm:$0xff]  ;;  %v5560_v17 = vrot.slane %v5558_v61, 4  ;;  %v6049_v47 = vshll.u32 %v5870_v15, 16  ;;  %v6053_v5 = vshrl.u32 %v5870_v15, 16  ;;  %6269 = vst [vmem:[#allocation4 + $0x64] sm:$0xf] %v5922_v22 }
 0x4c5   : > { %v17123_v50 = vld [vmem:[#allocation40_spill] sm:$0xff]  ;;  %v15413_v46 = vrot.slane %v5551_v45, 4  ;;  %v4700_v1 = vshll.u32 %v15350_v59, 16  ;;  %8246 = vmatmul.bf16.gmra.mxu3 %v10038_v13  ;;  %6270 = vst [vmem:[#allocation4 + $0x88] sm:$0xf] %v5932_v7  ;;  %v17124_v40 = vld [vmem:[#allocation50_spill] sm:$0xff] }
 0x4c6   : > { %v5942_v33 = vsel %vm11330_vm5, %v17123_v50, %v17122_v51  ;;  %v5358_v34 = vld [vmem:[#allocation3 + $0x58] sm:$0xf]  ;;  %v17125_v19 = vld [vmem:[#allocation58_spill] sm:$0xff]  ;;  %v15420_v62 = vrot.slane %v6039_v57, 5  ;;  %v6045_v44 = vrot.slane %v6043_v16, 4  ;;  %v17126_v24 = vld [vmem:[#allocation71_spill] sm:$0xff]  ;;  %v5561_v7 = vor.u32 %v5560_v17, %v15411_v43 }
 0x4c7   : > { %v5952_v49 = vsel %vm11330_vm5, %v17125_v19, %v17124_v40  ;;  %v15422_v48 = vld [vmem:[#allocation3 + $0x5c] sm:$0xf]  ;;  %6271 = vst [vmem:[#allocation4 + $0xac] sm:$0xf] %v5942_v33  ;;  %v17127_v23 = vld [vmem:[#allocation59_spill] sm:$0xff]  ;;  %v4695_v28 = vrot.slane %v14954_v63, 4  ;;  %v4702_v9 = vor.u32 %v4700_v1, %v15405_v37 }
 0x4c8   : > { %v5962_v41 = vsel %vm11330_vm5, %v17127_v23, %v17126_v24  ;;  %v9925_v61 = vld [vmem:[#allocation4 + $0x318] sm:$0xf]  ;;  %v10637_v59 = vld [vmem:[#allocation4 + $0x338] sm:$0xf0]  ;;  %v10706_v29 = vld [vmem:[%s16782_s3 + $0x98] sm:$0xff]  ;;  %v15433_v45 = vrot.slane %v6049_v47, 5  ;;  %v5992_v47 = vsel %vm11330_vm5, %v14731_v4, %v14679_v26  ;;  %v6012_v26 = vsel %vm11330_vm5, %v14893_v32, %v14858_v52 }
 0x4c9   : > { %v5564_v15 = vshll.u32 %v5358_v34, 16  ;;  %v5568_v38 = vshrl.u32 %v5358_v34, 16  ;;  %6272 = vst [vmem:[#allocation4 + $0xd0] sm:$0xf] %v5952_v49  ;;  %v17128_v60 = vld [vmem:[#allocation77_spill] sm:$0xff]  ;;  %v17129_v22 = vld [vmem:[#allocation79_spill] sm:$0xff]  ;;  %v4703_v36 = vsel %vm11300_vm2, %v4695_v28, %v4702_v9  ;;  %8266 = vmatpush.bf16.msrb.mxu3 %v10706_v29  ;;  %v9926_v50 = vor.u32 %v10637_v59, %v9925_v61  ;;  %v15460_v34 = vpop.f32.mrf.mxu0 }
 0x4ca   : > { %v5972_v57 = vsel %vm11330_vm5, %v17129_v22, %v17128_v60  ;;  %v15439_v16 = vrot.slane %v6053_v5, 4  ;;  %v5574_v63 = vshll.u32 %v15422_v48, 16  ;;  %6273 = vst [vmem:[#allocation4 + $0xf4] sm:$0xf] %v5962_v41  ;;  %v17130_v3 = vld [vmem:[#allocation87_spill] sm:$0xff]  ;;  %v5578_v13 = vshrl.u32 %v15422_v48, 16  ;;  %v15490_v60 = vpop.f32.mrf.mxu1 }
 0x4cb   : > { %v5982_v58 = vsel %vm11330_vm5, %v17130_v3, %v14674_v11  ;;  %v15450_v51 = vld [vmem:[#allocation3 + $0x84] sm:$0xf]  ;;  %4787 = vst [vmem:[#allocation4 + $0x460] sm:$0xf] %v4703_v36  ;;  %v10719_v33 = vld [vmem:[%s16782_s3 + $0x100] sm:$0xff]  ;;  %v6046_v5 = vor.u32 %v6045_v44, %v15420_v62  ;;  %v15466_v49 = vrot.slane %v5564_v15, 5  ;;  %8137 = vmatmul.bf16.gmra.mxu1 %v9926_v50 }
 0x4cc   : > { %v5871_v11 = vld [vmem:[#allocation3 + $0x58] sm:$0xf]  ;;  %17131 = vst [vmem:[#allocation52_spill] sm:$0xff] %v15460_v34  ;;  %v10633_v17 = vld [vmem:[#allocation4 + $0x31c] sm:$0xf]  ;;  %v5570_v48 = vrot.slane %v5568_v38, 4  ;;  %8457 = vmatpush.bf16.msrb.mxu1 %v10719_v33 }
 0x4cd   : > { %v9927_v1 = vld [vmem:[#allocation4 + $0x33c] sm:$0xf0]  ;;  %6274 = vst [vmem:[#allocation4 + $0x118] sm:$0xf] %v5972_v57  ;;  %v15468_v24 = vld [vmem:[#allocation3 + $0x88] sm:$0xf] }
 0x4ce   : > { %v17132_v40 = vld [vmem:[#allocation33_spill] sm:$0xff]  ;;  %6275 = vst [vmem:[#allocation4 + $0x13c] sm:$0xf] %v5982_v58  ;;  %v17133_v23 = vld [vmem:[#allocation64_spill] sm:$0xff]  ;;  %v17134_v41 = vld [vmem:[#allocation74_spill] sm:$0xff]  ;;  %v15478_v61 = vrot.slane %v5561_v7, 4  ;;  %v9930_v9 = vor.u32 %v10633_v17, %v9927_v1  ;;  %v5571_v7 = vor.u32 %v5570_v48, %v15466_v49 }
 0x4cf   : > { %v6002_v19 = vsel %vm11330_vm5, %v17132_v40, %v14813_v35  ;;  %v10625_v4 = vld [vmem:[#allocation4 + $0x2dc] sm:$0xf]  ;;  %v9899_v44 = vld [vmem:[#allocation4 + $0x2fc] sm:$0xf0]  ;;  %6276 = vst [vmem:[#allocation4 + $0x160] sm:$0xf] %v5992_v47  ;;  %v5617_v35 = vsel %vm11330_vm5, %v17134_v41, %v17133_v23 }
 0x4d0   : > { %v15480_v59 = vld [vmem:[#allocation3 + $0x5c] sm:$0xf]  ;;  %v4706_v28 = vshrl.u32 %v15450_v51, 16  ;;  %6277 = vst [vmem:[#allocation4 + $0x184] sm:$0xf] %v6002_v19  ;;  %v17135_v29 = vld [vmem:[#allocation84_spill] sm:$0xff]  ;;  %8231 = vmatmul.bf16.gmra.mxu2 %v9930_v9  ;;  %v9902_v47 = vor.u32 %v10625_v4, %v9899_v44 }
 0x4d1   : > { %v17136_v15 = vld [vmem:[#allocation75_spill] sm:$0xff]  ;;  %v15487_v32 = vrot.slane %v6046_v5, 4  ;;  %v4715_v38 = vshrl.u32 %v15468_v24, 16  ;;  %17137 = vst [vmem:[#allocation57_spill] sm:$0xff] %v15490_v60  ;;  %v10727_v22 = vld [vmem:[%s16782_s3 + $0x140] sm:$0xff]  ;;  %v6059_v50 = vshll.u32 %v5871_v11, 16 }
 0x4d2   : > { %v5627_v52 = vsel %vm11330_vm5, %v17136_v15, %v17135_v29  ;;  %v10705_v57 = vld [vmem:[%s16782_s3 + $0x90] sm:$0xff]  ;;  %6278 = vst [vmem:[#allocation4 + $0x1a8] sm:$0xf] %v6012_v26  ;;  %v17138_v36 = vld [vmem:[#allocation85_spill] sm:$0xff]  ;;  %v6063_v33 = vshrl.u32 %v5871_v11, 16  ;;  %v15503_v17 = vrot.slane %v5574_v63, 5  ;;  %8551 = vmatpush.bf16.msrb.mxu2 %v10727_v22  ;;  %8414 = vmatmul.bf16.gmra.mxu0 %v9902_v47  ;;  %v5527_v63 = vsel %vm11330_vm5, %v14891_v12, %v15307_v30  ;;  %v15526_v30 = vpop.f32.mrf.mxu0 }
 0x4d3   : > { %v17139_v3 = vld [vmem:[#allocation93_spill] sm:$0xff]  ;;  %5775 = vst [vmem:[#allocation4 + $0x350] sm:$0xf] %v5617_v35  ;;  %v5298_v5 = vld [vmem:[#allocation3 + $0x78] sm:$0xf]  ;;  %v15505_v1 = vrot.slane %v5578_v13, 4  ;;  %8267 = vmatpush.bf16.msrb.mxu3 %v10705_v57  ;;  %v6022_v13 = vsel %vm11330_vm5, %v14939_v2, %v15328_v20 }
 0x4d4   : > { %v5637_v58 = vsel %vm11330_vm5, %v17139_v3, %v17138_v36  ;;  %v10071_v40 = vld [vmem:[#allocation4 + $0x45c] sm:$0xf0]  ;;  %5776 = vst [vmem:[#allocation4 + $0x374] sm:$0xf] %v5627_v52  ;;  %v6069_v19 = vshll.u32 %v15480_v59, 16  ;;  %v4708_v26 = vrot.slane %v4706_v28, 7 }
 0x4d5   : > { %v10669_v23 = vld [vmem:[#allocation4 + $0x43c] sm:$0xf]  ;;  %5777 = vst [vmem:[#allocation4 + $0x398] sm:$0xf] %v5637_v58  ;;  %v5360_v11 = vld [vmem:[#allocation3 + $0x60] sm:$0xf] }
 0x4d6   : > { %v17140_v48 = vld [vmem:[#allocation13_spill] sm:$0xff]  ;;  %v4717_v4 = vrot.slane %v4715_v38, 7  ;;  %v10074_v44 = vor.u32 %v10669_v23, %v10071_v40  ;;  %5332 = vst [vmem:[#allocation4 + $0x3dc] sm:$0xf] %v5298_v5  ;;  %v15517_v41 = vrot.slane %v5571_v7, 4  ;;  %v15519_v35 = vrot.slane %v6059_v50, 5 }
 0x4d7   : > { %9106 = vmatpush.bf16.msra.mxu2 %v17140_v48  ;;  %v15521_v28 = vrot.slane %v6063_v33, 4  ;;  %v6073_v9 = vshrl.u32 %v15480_v59, 16  ;;  %5766 = vst [vmem:[#allocation4 + $0x20c] sm:$0xf] %v5527_v63  ;;  %v5361_v29 = vld [vmem:[#allocation3 + $0x64] sm:$0xf]  ;;  %v5537_v5 = vsel %vm11330_vm5, %v15369_v10, %v15322_v39  ;;  %v6032_v39 = vsel %vm11330_vm5, %v15390_v54, %v15336_v21 }
 0x4d8   : > { %v4709_v15 = vshll.u32 %v15450_v51, 16  ;;  %v4718_v12 = vshll.u32 %v15468_v24, 16  ;;  %17141 = vst [vmem:[#allocation88_spill] sm:$0xff] %v15526_v30  ;;  %8251 = vmatmul.bf16.gmra.mxu3 %v10074_v44  ;;  %v17142_v2 = vld [vmem:[#allocation60_spill] sm:$0xff]  ;;  %v5584_v38 = vshll.u32 %v5360_v11, 16  ;;  %v5588_v22 = vshrl.u32 %v5360_v11, 16 }
 0x4d9   : > { %6279 = vst [vmem:[#allocation4 + $0x1cc] sm:$0xf] %v6022_v13  ;;  %v17143_v20 = vld [vmem:[#allocation80_spill] sm:$0xff]  ;;  %v15530_v57 = vld [vmem:[#allocation3 + $0x60] sm:$0xf]  ;;  %v4704_v59 = vrot.slane %v15405_v37, 4  ;;  %v8103_v37 = vpop.f32.mrf.mxu1  ;;  %v5547_v21 = vsel %vm11330_vm5, %v15388_v27, %v15338_v25  ;;  %v6042_v54 = vsel %vm11330_vm5, %v15403_v0, %v15420_v62 }
 0x4da   : > { %v5651_v52 = vor.u32 %v17143_v20, %v17142_v2  ;;  %v9961_v36 = vld [vmem:[#allocation4 + $0x360] sm:$0xf]  ;;  %v10646_v3 = vld [vmem:[#allocation4 + $0x380] sm:$0xf0]  ;;  %v4711_v58 = vor.u32 %v4709_v15, %v4708_v26  ;;  %v4713_v7 = vrot.slane %v4708_v26, 4  ;;  %v4720_v51 = vor.u32 %v4718_v12, %v4717_v4  ;;  %v15546_v26 = vpop.f32.mrf.mxu2  ;;  %v10703_v0 = vld [vmem:[%s16782_s3 + $0x80] sm:$0xff] }
 0x4db   : > { %v10704_v24 = vld [vmem:[%s16782_s3 + $0x88] sm:$0xff]  ;;  %v15536_v50 = vrot.slane %v6069_v19, 5  ;;  %v5594_v33 = vshll.u32 %v5361_v29, 16  ;;  %v5598_v47 = vshrl.u32 %v5361_v29, 16  ;;  %17144 = vst [vmem:[#allocation81_spill] sm:$0xff] %v15546_v26  ;;  %v15556_v10 = vrot.slane %v5584_v38, 5 }
 0x4dc   : > { %v15542_v40 = vld [vmem:[#allocation3 + $0x80] sm:$0xf]  ;;  %v15544_v23 = vld [vmem:[#allocation3 + $0x84] sm:$0xf]  ;;  %v4712_v48 = vsel %vm11300_vm2, %v4704_v59, %v4711_v58  ;;  %v4721_v19 = vsel %vm11300_vm2, %v4713_v7, %v4720_v51  ;;  %8268 = vmatpush.bf16.msrb.mxu3 %v10704_v24  ;;  %5767 = vst [vmem:[#allocation4 + $0x230] sm:$0xf] %v5537_v5  ;;  %v9962_v44 = vor.u32 %v10646_v3, %v9961_v36  ;;  %v15578_v24 = vpop.f32.mrf.mxu0 }
 0x4dd   : > { %v15558_v11 = vrot.slane %v5588_v22, 4  ;;  %v6079_v4 = vshll.u32 %v15530_v57, 16  ;;  %4788 = vst [vmem:[#allocation4 + $0x484] sm:$0xf] %v4712_v48  ;;  %v10642_v63 = vld [vmem:[#allocation4 + $0x364] sm:$0xf]  ;;  %v5581_v20 = vor.u32 %v15505_v1, %v15503_v17 }
 0x4de   : > { %v9963_v13 = vld [vmem:[#allocation4 + $0x384] sm:$0xf0]  ;;  %4789 = vst [vmem:[#allocation4 + $0x4a8] sm:$0xf] %v4721_v19  ;;  %v5874_v29 = vld [vmem:[#allocation3 + $0x64] sm:$0xf]  ;;  %8142 = vmatmul.bf16.gmra.mxu1 %v9962_v44 }
 0x4df   : > { %v5160_v15 = vshrl.u32 %v15542_v40, 16  ;;  %v5169_v12 = vshrl.u32 %v15544_v23, 16  ;;  %6280 = vst [vmem:[#allocation4 + $0x1f0] sm:$0xf] %v6032_v39  ;;  %v10634_v38 = vld [vmem:[#allocation4 + $0x324] sm:$0xf]  ;;  %v9966_v59 = vor.u32 %v10642_v63, %v9963_v13 }
 0x4e0   : > { %v9935_v22 = vld [vmem:[#allocation4 + $0x344] sm:$0xf0]  ;;  %5768 = vst [vmem:[#allocation4 + $0x254] sm:$0xf] %v5547_v21  ;;  %v15573_v36 = vrot.slane %v5594_v33, 5  ;;  %v5600_v3 = vrot.slane %v5598_v47, 4  ;;  %v5591_v47 = vor.u32 %v15558_v11, %v15556_v10  ;;  %8269 = vmatpush.bf16.msrb.mxu3 %v10703_v0 }
 0x4e1   : > { %6281 = vst [vmem:[#allocation4 + $0x214] sm:$0xf] %v6042_v54  ;;  %v5652_v58 = vrot.slane %v5651_v52, 4  ;;  %v15575_v7 = vrot.slane %v6073_v9, 4  ;;  %v6083_v25 = vshrl.u32 %v15530_v57, 16  ;;  %v6089_v27 = vshll.u32 %v5874_v29, 16  ;;  %8236 = vmatmul.bf16.gmra.mxu2 %v9966_v59  ;;  %v8105_v39 = vpop.f32.mrf.mxu1 }
 0x4e2   : > { %v6093_v51 = vshrl.u32 %v5874_v29, 16  ;;  %17145 = vst [vmem:[#allocation89_spill] sm:$0xff] %v15578_v24  ;;  %v5879_v62 = vld [vmem:[#allocation3 + $0x78] sm:$0xf]  ;;  %v9938_v1 = vor.u32 %v10634_v38, %v9935_v22  ;;  %v5557_v52 = vsel %vm11330_vm5, %v15413_v46, %v15411_v43  ;;  %v6052_v9 = vsel %vm11330_vm5, %v15487_v32, %v15433_v45  ;;  %v17146_v57 = vld [vmem:[#allocation94_spill] sm:$0xff]  ;;  %v8197_v13 = vpop.f32.mrf.mxu2 }
 0x4e3   : > { %v5647_v33 = vsel %vm11330_vm5, %v17146_v57, %v17142_v2  ;;  %v15597_v5 = vrot.slane %v6079_v4, 5  ;;  %v5162_v48 = vrot.slane %v5160_v15, 7  ;;  %v15599_v19 = vrot.slane %v5169_v12, 7  ;;  %5769 = vst [vmem:[#allocation4 + $0x278] sm:$0xf] %v5557_v52  ;;  %v17147_v38 = vld [vmem:[#allocation86_spill] sm:$0xff] }
 0x4e4   : > { %v5601_v43 = vor.u32 %v5600_v3, %v15573_v36  ;;  %v15605_v46 = vld [vmem:[%s16783_s4] ss:$0 sm:$0xff]  ;;  %8419 = vmatmul.bf16.gmra.mxu0 %v9938_v1  ;;  %v10678_v2 = vld [vmem:[#allocation4 + $0x484] sm:$0xf]  ;;  %6282 = vst [vmem:[#allocation4 + $0x238] sm:$0xf] %v6052_v9  ;;  %v5657_v4 = vsel %vm11330_vm5, %v5652_v58, %v15367_v42  ;;  %v5567_v15 = vsel %vm11330_vm5, %v15478_v61, %v15466_v49  ;;  %v15632_v52 = vpop.f32.mrf.mxu0 }
 0x4e5   : > { %v8104_v32 = vadd.f32 %v15605_v46, %v8103_v37  ;;  %v10107_v11 = vld [vmem:[#allocation4 + $0x4a4] sm:$0xf0]  ;;  %v6085_v44 = vrot.slane %v6083_v25, 4  ;;  %v15611_v63 = vrot.slane %v6089_v27, 5  ;;  %5778 = vst [vmem:[#allocation4 + $0x3bc] sm:$0xf] %v5647_v33  ;;  %v6066_v25 = vor.u32 %v15521_v28, %v15519_v35 }
 0x4e6   : > { %v10110_v29 = vor.u32 %v10678_v2, %v10107_v11  ;;  %v6095_v37 = vrot.slane %v6093_v51, 4  ;;  %v5163_v12 = vshll.u32 %v15542_v40, 16  ;;  %v5172_v21 = vshll.u32 %v15544_v23, 16  ;;  %5770 = vst [vmem:[#allocation4 + $0x29c] sm:$0xf] %v5567_v15  ;;  %v10742_v28 = vld [vmem:[%s16782_s3 + $0x1b8] sm:$0xff] }
 0x4e7   : > { %v15619_v54 = vadd.f32 %v8197_v13, %v8104_v32  ;;  %v17148_v22 = vshrl.u32 %v17147_v38, 16  ;;  %v6139_v59 = vshll.u32 %v5879_v62, 16  ;;  %v6143_v58 = vshrl.u32 %v5879_v62, 16  ;;  %5779 = vst [vmem:[#allocation4 + $0x3e0] sm:$0xf] %v5657_v4  ;;  %8638 = vmatpush.bf16.msra.mxu3 %v10742_v28  ;;  %v17155_v28 = vld [vmem:[#allocation91_spill] sm:$0xff] }
 0x4e8   : > { %8256 = vmatmul.bf16.gmra.mxu3 %v10110_v29  ;;  %v5582_v49 = vrot.slane %v5581_v20, 4  ;;  %v5592_v61 = vrot.slane %v5591_v47, 4  ;;  %v5165_v27 = vor.u32 %v5163_v12, %v5162_v48  ;;  %v5174_v40 = vor.u32 %v5172_v21, %v15599_v19  ;;  %v10540_v23 = vld [vmem:[#allocation4 + $0x30] sm:$0xf0]  ;;  %17149 = vst [vmem:[#allocation82_spill] sm:$0xff] %v15632_v52 }
 0x4e9   : > { %v15623_v3 = vrot.slane %v17148_v22, 4  ;;  %v6056_v51 = vor.u32 %v15439_v16, %v15433_v45  ;;  %v6076_v0 = vor.u32 %v15575_v7, %v15536_v50  ;;  %v5602_v1 = vrot.slane %v5601_v43, 4  ;;  %v4790_v62 = vld [vmem:[#allocation3 + $0x4] sm:$0xf]  ;;  %v4791_v9 = vld [vmem:[#allocation3 + $0x8] sm:$0xf]  ;;  %v8108_v2 = vpop.f32.mrf.mxu1 }
 0x4ea   : > { %v5577_v20 = vsel %vm11330_vm5, %v15517_v41, %v15503_v17  ;;  %v6086_v57 = vor.u32 %v6085_v44, %v15597_v5  ;;  %v6096_v45 = vor.u32 %v6095_v37, %v15611_v63  ;;  %v9545_v16 = vld [vmem:[#allocation4 + $0x10] sm:$0xf]  ;;  %4824 = vst [vmem:[#allocation4 + $0x8] sm:$0xf] %v4790_v62  ;;  %v5158_v7 = vrot.slane %v15034_v53, 4  ;;  %v17151_v44 = vld [vmem:[#allocation66_spill] sm:$0xff]  ;;  %v8199_v37 = vpop.f32.mrf.mxu2 }
 0x4eb   : > { %v5167_v33 = vrot.slane %v5162_v48, 4  ;;  %v15644_v47 = vrot.slane %v6139_v59, 5  ;;  %v15646_v43 = vrot.slane %v6143_v58, 4  ;;  %v6067_v32 = vrot.slane %v6066_v25, 4  ;;  %4825 = vst [vmem:[#allocation4 + $0x2c] sm:$0xf] %v4791_v9 }
 0x4ec   : > { %v9546_v11 = vor.u32 %v10540_v23, %v9545_v16  ;;  %v8106_v17 = vadd.f32 %v15605_v46, %v8105_v39  ;;  %v5166_v41 = vsel %vm11300_vm2, %v5158_v7, %v5165_v27  ;;  %5771 = vst [vmem:[#allocation4 + $0x2c0] sm:$0xf] %v5577_v20  ;;  %v5587_v53 = vsel %vm11330_vm5, %v5582_v49, %v15556_v10  ;;  %v17150_v48 = vld [vmem:[#allocation65_spill] sm:$0xff]  ;;  %v9547_v12 = vld [vmem:[#allocation4 + $0x34] sm:$0xf0]  ;;  %v17152_v10 = vld [vmem:[#allocation63_spill] sm:$0xff] }
 0x4ed   : > { %v5175_v4 = vsel %vm11300_vm2, %v5167_v33, %v5174_v40  ;;  %v6106_v13 = vor.u32 %v17151_v44, %v17150_v48  ;;  %v6057_v29 = vrot.slane %v6056_v51, 4  ;;  %v6077_v15 = vrot.slane %v6076_v0, 4  ;;  %5266 = vst [vmem:[#allocation4 + $0x420] sm:$0xf] %v5166_v41  ;;  %v15661_v21 = vld [vmem:[#allocation3 + $0x6c] sm:$0xf] }
 0x4ee   : > { %v5597_v39 = vsel %vm11330_vm5, %v5592_v61, %v15573_v36  ;;  %v6087_v38 = vrot.slane %v6086_v57, 4  ;;  %v6097_v22 = vrot.slane %v6096_v45, 4  ;;  %v15663_v59 = vadd.f32 %v8199_v37, %v8106_v17  ;;  %8458 = vmatmul.bf16.vlgmr.msrb.gmra.mxu1 %v9546_v11  ;;  %5267 = vst [vmem:[#allocation4 + $0x444] sm:$0xf] %v5175_v4  ;;  %v15668_v25 = vld [vmem:[#allocation3 + $0x88] sm:$0xf]  ;;  %v15680_v45 = vpop.f32.mrf.mxu0 }
 0x4ef   : > { %v5607_v58 = vsel %vm11330_vm5, %v5602_v1, %v17152_v10  ;;  %v9971_v49 = vld [vmem:[#allocation4 + $0x38c] sm:$0xf0]  ;;  %v10536_v27 = vld [vmem:[#allocation4 + $0x14] sm:$0xf]  ;;  %5772 = vst [vmem:[#allocation4 + $0x2e4] sm:$0xf] %v5587_v53  ;;  %v6062_v36 = vsel %vm11330_vm5, %v6057_v29, %v15519_v35  ;;  %v6072_v23 = vsel %vm11330_vm5, %v6067_v32, %v15536_v50  ;;  %v6082_v41 = vsel %vm11330_vm5, %v6077_v15, %v15597_v5  ;;  %v15705_v15 = vpop.f32.mrf.mxu3 }
 0x4f0   : > { %v10643_v61 = vld [vmem:[#allocation4 + $0x36c] sm:$0xf]  ;;  %v9550_v40 = vor.u32 %v10536_v27, %v9547_v12  ;;  %5773 = vst [vmem:[#allocation4 + $0x308] sm:$0xf] %v5597_v39  ;;  %v5299_v51 = vld [vmem:[#allocation3 + $0x7c] sm:$0xf]  ;;  %v6092_v12 = vsel %vm11330_vm5, %v6087_v38, %v15611_v63  ;;  %v6146_v39 = vor.u32 %v15646_v43, %v15644_v47  ;;  %v8109_v10 = vadd.f32 %v15605_v46, %v8108_v2 }
 0x4f1   : > { %v6107_v0 = vrot.slane %v6106_v13, 4  ;;  %v17153_v62 = vld [vmem:[#allocation72_spill] sm:$0xff]  ;;  %v17154_v1 = vld [vmem:[#allocation73_spill] sm:$0xff]  ;;  %17157 = vst [vmem:[#allocation61_spill] sm:$0xff] %v15680_v45  ;;  %v9537_v16 = vld [vmem:[#allocation4 + $0x8] sm:$0xf]  ;;  %v9974_v32 = vor.u32 %v10643_v61, %v9971_v49  ;;  %v8110_v29 = vpop.f32.mrf.mxu1 }
 0x4f2   : > { %v6116_v9 = vor.u32 %v17154_v1, %v17153_v62  ;;  %v17156_v20 = vld [vmem:[#allocation92_spill] sm:$0xff]  ;;  %5774 = vst [vmem:[#allocation4 + $0x32c] sm:$0xf] %v5607_v58  ;;  %v16860_v50 = vrot.slane %v15661_v21, 5  ;;  %8552 = vmatmul.bf16.vlgmr.msrb.gmra.mxu2 %v9550_v40  ;;  %v10539_v17 = vld [vmem:[#allocation4 + $0x28] sm:$0xf0]  ;;  %v6102_v58 = vsel %vm11330_vm5, %v6097_v22, %v17150_v48  ;;  %v8202_v49 = vpop.f32.mrf.mxu2 }
 0x4f3   : > { %v6126_v57 = vor.u32 %v17156_v20, %v17155_v28  ;;  %v10750_v35 = vld [vmem:[%s16782_s3 + $0x1f8] sm:$0xff]  ;;  %6283 = vst [vmem:[#allocation4 + $0x25c] sm:$0xf] %v6062_v36  ;;  %v15697_v13 = vld [vmem:[#allocation3 + $0x7c] sm:$0xf]  ;;  %v9538_v37 = vor.u32 %v10539_v17, %v9537_v16  ;;  %v5178_v5 = vshrl.u32 %v15668_v25, 16  ;;  %v6112_v2 = vsel %vm11330_vm5, %v6107_v0, %v17153_v62 }
 0x4f4   : > { %v17158_v7 = vld [vmem:[#allocation68_spill] sm:$0xff]  ;;  %v15693_v4 = vld [vmem:[#allocation3 + $0x30] sm:$0xf]  ;;  %8732 = vmatpush.bf16.msra.mxu0 %v10750_v35  ;;  %6284 = vst [vmem:[#allocation4 + $0x280] sm:$0xf] %v6072_v23  ;;  %v6117_v63 = vrot.slane %v6116_v9, 4  ;;  %v15721_v61 = vadd.f32 %v8202_v49, %v8109_v10  ;;  %v8111_v10 = vadd.f32 %v15605_v46, %v8110_v29 }
 0x4f5   : > { %v17159_v33 = vrot.slane %v17158_v7, 5  ;;  %v17160_v53 = vld [vmem:[#allocation95_spill] sm:$0xff]  ;;  %8424 = vmatmul.bf16.gmra.mxu0 %v9974_v32  ;;  %5333 = vst [vmem:[#allocation4 + $0x400] sm:$0xf] %v5299_v51  ;;  %v15714_v38 = vld [vmem:[#allocation3 + $0x34] sm:$0xf] }
 0x4f6   : > { %v6136_v44 = vor.u32 %v15623_v3, %v17160_v53  ;;  %v10758_v3 = vld [vmem:[%s16782_s3 + $0x238] sm:$0xff]  ;;  %v6127_v43 = vrot.slane %v6126_v57, 4  ;;  %6285 = vst [vmem:[#allocation4 + $0x2a4] sm:$0xf] %v6082_v41  ;;  %v6391_v27 = vrot.slane %v15693_v4, 5  ;;  %v6149_v36 = vshll.u32 %v15697_v13, 16  ;;  %v15728_v20 = vpop.f32.mrf.mxu0 }
 0x4f7   : > { %v15687_v11 = vrot.slane %v17159_v33, 4  ;;  %8826 = vmatpush.bf16.msra.mxu1 %v10758_v3  ;;  %6286 = vst [vmem:[#allocation4 + $0x2c8] sm:$0xf] %v6092_v12  ;;  %v4819_v40 = vld [vmem:[#allocation3 + $0x78] sm:$0xf]  ;;  %v15723_v1 = vrot.slane %v5178_v5, 7  ;;  %v6122_v0 = vsel %vm11330_vm5, %v6117_v63, %v17155_v28 }
 0x4f8   : > { %v6137_v48 = vrot.slane %v6136_v44, 4  ;;  %v11065_v22 = vld [vmem:[#allocation3 + $0x7c] sm:$0xf]  ;;  %v5368_v51 = vld [vmem:[#allocation3 + $0x80] sm:$0xf]  ;;  %8270 = vmatmul.bf16.vlgmr.msrb.gmra.mxu3 %v9538_v37  ;;  %v6147_v62 = vrot.slane %v6146_v39, 4  ;;  %v6132_v35 = vsel %vm11330_vm5, %v6127_v43, %v17160_v53 }
 0x4f9   : > { %v5658_v23 = vshrl.u32 %v11065_v22, 16  ;;  %6287 = vst [vmem:[#allocation4 + $0x2ec] sm:$0xf] %v6102_v58  ;;  %v9581_v9 = vld [vmem:[#allocation4 + $0x58] sm:$0xf]  ;;  %v16861_v33 = vrot.slane %v15714_v38, 5  ;;  %v8113_v12 = vpop.f32.mrf.mxu1 }
 0x4fa   : > { %6288 = vst [vmem:[#allocation4 + $0x310] sm:$0xf] %v6112_v2  ;;  %v10549_v57 = vld [vmem:[#allocation4 + $0x78] sm:$0xf0]  ;;  %v5300_v16 = vld [vmem:[#allocation3 + $0x80] sm:$0xf]  ;;  %v6142_v39 = vsel %vm11330_vm5, %v6137_v48, %v15644_v47 }
 0x4fb   : > { %17161 = vst [vmem:[#allocation15_spill] sm:$0xff] %v15728_v20  ;;  %v15734_v32 = vld [vmem:[#allocation3 + $0x38] sm:$0xf]  ;;  %v15736_v17 = vrot.slane %v6149_v36, 5  ;;  %v4820_v41 = vld [vmem:[#allocation3 + $0x7c] sm:$0xf]  ;;  %v9582_v3 = vor.u32 %v10549_v57, %v9581_v9 }
 0x4fc   : > { %4853 = vst [vmem:[#allocation4 + $0x41c] sm:$0xf] %v4819_v40  ;;  %v15738_v44 = vrot.slane %v5658_v23, 4  ;;  %v5664_v28 = vshll.u32 %v5368_v51, 16  ;;  %v5181_v37 = vshll.u32 %v15668_v25, 16  ;;  %v5668_v5 = vshrl.u32 %v5368_v51, 16  ;;  %v8204_v25 = vpop.f32.mrf.mxu2  ;;  %v15764_v51 = vpop.f32.mrf.mxu3 }
 0x4fd   : > { %5334 = vst [vmem:[#allocation4 + $0x424] sm:$0xf] %v5300_v16  ;;  %v15744_v53 = vld [vmem:[#allocation3 + $0x40] sm:$0xf]  ;;  %v6152_v58 = vsel %vm11330_vm5, %v6147_v62, %v15736_v17  ;;  %v10545_v43 = vld [vmem:[#allocation4 + $0x5c] sm:$0xf]  ;;  %v15766_v9 = vadd.f32 %v8204_v25, %v8111_v10 }
 0x4fe   : > { %6289 = vst [vmem:[#allocation4 + $0x334] sm:$0xf] %v6122_v0  ;;  %v5183_v63 = vor.u32 %v5181_v37, %v15723_v1  ;;  %v9583_v49 = vld [vmem:[#allocation4 + $0x7c] sm:$0xf0]  ;;  %v17164_v47 = vld [vmem:[#allocation24_spill] sm:$0xff]  ;;  %v15758_v29 = vrot.slane %v16860_v50, 4  ;;  %8463 = vmatmul.bf16.gmra.mxu1 %v9582_v3 }
 0x4ff   : > { %6290 = vst [vmem:[#allocation4 + $0x358] sm:$0xf] %v6132_v35  ;;  %v17162_v2 = vld [vmem:[#allocation29_spill] sm:$0xff]  ;;  %v6393_v22 = vrot.slane %v6391_v27, 4  ;;  %v17166_v0 = vld [vmem:[#allocation30_spill] sm:$0xff]  ;;  %v6397_v35 = vrot.slane %v15734_v32, 5  ;;  %v9586_v25 = vor.u32 %v10545_v43, %v9583_v49 }
 0x500   : > { %4854 = vst [vmem:[#allocation4 + $0x440] sm:$0xf] %v4820_v41  ;;  %v17163_v36 = vrot.slane %v17162_v2, 5  ;;  %v15762_v23 = vld [vmem:[#allocation3 + $0x3c] sm:$0xf]  ;;  %v17167_v62 = vrot.slane %v17166_v0, 5  ;;  %v15784_v0 = vpop.f32.mrf.mxu0 }
 0x501   : > { %6291 = vst [vmem:[#allocation4 + $0x37c] sm:$0xf] %v6142_v39  ;;  %v17168_v57 = vld [vmem:[#allocation37_spill] sm:$0xff]  ;;  %v10007_v41 = vld [vmem:[#allocation4 + $0x3d4] sm:$0xf0]  ;;  %v5176_v37 = vrot.slane %v15599_v19, 4  ;;  %v5661_v39 = vor.u32 %v15738_v44, %v15367_v42 }
 0x502   : > { %v6380_v48 = vsel %vm11371_vm8, %v17164_v47, %v17163_v36  ;;  %v6383_v16 = vsel %vm11371_vm8, %v17168_v57, %v17167_v62  ;;  %6292 = vst [vmem:[#allocation4 + $0x3a0] sm:$0xf] %v6152_v58  ;;  %v6396_v2 = vrot.slane %v16861_v33, 4  ;;  %v15780_v3 = vld [vmem:[#allocation3 + $0x84] sm:$0xf]  ;;  %v5666_v47 = vrot.slane %v5664_v28, 5  ;;  %8557 = vmatmul.bf16.gmra.mxu2 %v9586_v25 }
 0x503   : > { %6510 = vst [vmem:[#allocation4 + $0x68] sm:$0xf] %v6380_v48  ;;  %v15782_v36 = vld [vmem:[#allocation3 + $0x70] sm:$0xf]  ;;  %v5670_v32 = vrot.slane %v5668_v5, 4  ;;  %v5184_v58 = vsel %vm11300_vm2, %v5176_v37, %v5183_v63  ;;  %v17172_v50 = vld [vmem:[#allocation38_spill] sm:$0xff] }
 0x504   : > { %17169 = vst [vmem:[#allocation14_spill] sm:$0xff] %v15784_v0  ;;  %v10652_v19 = vld [vmem:[#allocation4 + $0x3b4] sm:$0xf]  ;;  %v17170_v62 = vld [vmem:[#allocation43_spill] sm:$0xff]  ;;  %v5301_v49 = vld [vmem:[#allocation3 + $0x84] sm:$0xf] }
 0x505   : > { %6511 = vst [vmem:[#allocation4 + $0x8c] sm:$0xf] %v6383_v16  ;;  %v17171_v57 = vrot.slane %v17170_v62, 5  ;;  %v10010_v44 = vor.u32 %v10652_v19, %v10007_v41  ;;  %v10548_v43 = vld [vmem:[#allocation4 + $0x70] sm:$0xf0]  ;;  %v17175_v48 = vld [vmem:[#allocation54_spill] sm:$0xff]  ;;  %v8115_v16 = vpop.f32.mrf.mxu1 }
 0x506   : > { %5268 = vst [vmem:[#allocation4 + $0x468] sm:$0xf] %v5184_v58  ;;  %v17173_v28 = vld [vmem:[#allocation44_spill] sm:$0xff]  ;;  %v6399_v33 = vrot.slane %v6397_v35, 4  ;;  %v6400_v63 = vrot.slane %v15762_v23, 5  ;;  %v8114_v58 = vadd.f32 %v15605_v46, %v8113_v12  ;;  %v17177_v62 = vrot.slane %v15714_v38, 5 }
 0x507   : > { %v6386_v42 = vsel %vm11371_vm8, %v17172_v50, %v17171_v57  ;;  %v17174_v5 = vrot.slane %v17173_v28, 5  ;;  %v9573_v37 = vld [vmem:[#allocation4 + $0x50] sm:$0xf]  ;;  %5335 = vst [vmem:[#allocation4 + $0x448] sm:$0xf] %v5301_v49  ;;  %v17176_v50 = vld [vmem:[#allocation56_spill] sm:$0xff]  ;;  %8429 = vmatmul.bf16.gmra.mxu0 %v10010_v44  ;;  %v5671_v49 = vor.u32 %v5670_v32, %v5666_v47  ;;  %v8207_v28 = vpop.f32.mrf.mxu2  ;;  %v15819_v44 = vpop.f32.mrf.mxu3 }
 0x508   : > { %v6392_v41 = vsel %vm11371_vm8, %v17176_v50, %v6391_v27  ;;  %v15804_v25 = vld [vmem:[#allocation3 + $0x8c] sm:$0xf]  ;;  %v15806_v19 = vld [vmem:[#allocation3 + $0x90] sm:$0xf]  ;;  %6512 = vst [vmem:[#allocation4 + $0xb0] sm:$0xf] %v6386_v42  ;;  %v6395_v23 = vsel %vm11371_vm8, %v6393_v22, %v17177_v62  ;;  %v15821_v38 = vadd.f32 %v8207_v28, %v8114_v58  ;;  %v15837_v28 = vpop.f32.mrf.mxu0 }
 0x509   : > { %v6389_v10 = vsel %vm11371_vm8, %v17175_v48, %v17174_v5  ;;  %v6313_v57 = vld [vmem:[#allocation3 + $0x44] sm:$0xf]  ;;  %v5674_v4 = vshll.u32 %v15780_v3, 16  ;;  %v9574_v5 = vor.u32 %v10548_v43, %v9573_v37  ;;  %v5662_v27 = vrot.slane %v5661_v39, 4  ;;  %v15814_v48 = vld [vmem:[#allocation3 + $0x74] sm:$0xf] }
 0x50a   : > { %6513 = vst [vmem:[#allocation4 + $0xd4] sm:$0xf] %v6389_v10  ;;  %v6439_v50 = vrot.slane %v15782_v36, 5  ;;  %v17178_v12 = vrot.slane %v15744_v53, 5  ;;  %v15823_v22 = vld [vmem:[#allocation3 + $0x48] sm:$0xf]  ;;  %v6398_v39 = vsel %vm11371_vm8, %v6396_v2, %v6397_v35 }
 0x50b   : > { %6514 = vst [vmem:[#allocation4 + $0xf8] sm:$0xf] %v6392_v41  ;;  %v5187_v32 = vshrl.u32 %v15804_v25, 16  ;;  %v5196_v43 = vshrl.u32 %v15806_v19, 16  ;;  %8275 = vmatmul.bf16.gmra.mxu3 %v9574_v5  ;;  %v5667_v10 = vsel %vm11330_vm5, %v5662_v27, %v5666_v47  ;;  %v6402_v36 = vrot.slane %v6400_v63, 4  ;;  %v10749_v47 = vld [vmem:[%s16782_s3 + $0x1f0] sm:$0xff] }
 0x50c   : > { %v6405_v42 = vrot.slane %v17178_v12, 4  ;;  %6515 = vst [vmem:[#allocation4 + $0x11c] sm:$0xf] %v6395_v23  ;;  %v6406_v37 = vrot.slane %v6313_v57, 5  ;;  %v15831_v62 = vld [vmem:[#allocation3 + $0x78] sm:$0xf]  ;;  %v6401_v41 = vsel %vm11371_vm8, %v6399_v33, %v6400_v63  ;;  %v17180_v63 = vmov %v17178_v12  ;;  %8733 = vmatpush.bf16.msra.mxu0 %v10749_v47 }
 0x50d   : > { %5780 = vst [vmem:[#allocation4 + $0x404] sm:$0xf] %v5667_v10  ;;  %v15835_v58 = vrot.slane %v5674_v4, 5  ;;  %v10558_v5 = vld [vmem:[#allocation4 + $0xc0] sm:$0xf0]  ;;  %v10741_v35 = vld [vmem:[%s16782_s3 + $0x1b0] sm:$0xff]  ;;  %v6404_v4 = vsel %vm11371_vm8, %v6402_v36, %v17180_v63  ;;  %v8118_v10 = vpop.f32.mrf.mxu1  ;;  %v8116_v57 = vadd.f32 %v15605_v46, %v8115_v16  ;;  %v6440_v16 = vsel %vm11371_vm8, %v15758_v29, %v6439_v50 }
 0x50e   : > { %17179 = vst [vmem:[#allocation16_spill] sm:$0xff] %v15837_v28  ;;  %v5672_v2 = vrot.slane %v5671_v49, 4  ;;  %v15845_v23 = vrot.slane %v6439_v50, 4  ;;  %v6409_v33 = vrot.slane %v15823_v22, 5  ;;  %v5189_v27 = vrot.slane %v5187_v32, 7  ;;  %8639 = vmatpush.bf16.msra.mxu3 %v10741_v35  ;;  %v10748_v32 = vld [vmem:[%s16782_s3 + $0x1e8] sm:$0xff] }
 0x50f   : > { %6516 = vst [vmem:[#allocation4 + $0x140] sm:$0xf] %v6398_v39  ;;  %v5198_v12 = vrot.slane %v5196_v43, 7  ;;  %v9617_v28 = vld [vmem:[#allocation4 + $0xa0] sm:$0xf]  ;;  %v6407_v22 = vsel %vm11371_vm8, %v6405_v42, %v6406_v37  ;;  %v6445_v39 = vrot.slane %v15831_v62, 5  ;;  %v8209_v35 = vpop.f32.mrf.mxu2  ;;  %v15881_v50 = vpop.f32.mrf.mxu3 }
 0x510   : > { %v5677_v49 = vsel %vm11330_vm5, %v5672_v2, %v15835_v58  ;;  %6517 = vst [vmem:[#allocation4 + $0x164] sm:$0xf] %v6401_v41  ;;  %v6315_v53 = vld [vmem:[#allocation3 + $0x4c] sm:$0xf]  ;;  %v9618_v36 = vor.u32 %v10558_v5, %v9617_v28  ;;  %v17181_v43 = vrot.slane %v15661_v21, 5  ;;  %v5190_v47 = vshll.u32 %v15804_v25, 16  ;;  %8734 = vmatpush.bf16.msra.mxu0 %v10748_v32 }
 0x511   : > { %5781 = vst [vmem:[#allocation4 + $0x428] sm:$0xf] %v5677_v49  ;;  %v5199_v42 = vshll.u32 %v15806_v19, 16  ;;  %v9619_v2 = vld [vmem:[#allocation4 + $0xc4] sm:$0xf0]  ;;  %v6408_v28 = vrot.slane %v6406_v37, 4  ;;  %v15875_v21 = vadd.f32 %v8209_v35, %v8116_v57 }
 0x512   : > { %v6437_v41 = vsel %vm11371_vm8, %v15687_v11, %v17181_v43  ;;  %6518 = vst [vmem:[#allocation4 + $0x188] sm:$0xf] %v6404_v4  ;;  %v6411_v5 = vrot.slane %v6409_v33, 4  ;;  %v15873_v63 = vld [vmem:[#allocation3 + $0x50] sm:$0xf]  ;;  %8468 = vmatmul.bf16.gmra.mxu1 %v9618_v36  ;;  %v5192_v11 = vor.u32 %v5190_v47, %v5189_v27  ;;  %v6447_v4 = vrot.slane %v6445_v39, 4  ;;  %v15890_v47 = vpop.f32.mrf.mxu0 }
 0x513   : > { %6519 = vst [vmem:[#allocation4 + $0x1ac] sm:$0xf] %v6407_v22  ;;  %v5201_v49 = vor.u32 %v5199_v42, %v5198_v12  ;;  %v10043_v25 = vld [vmem:[#allocation4 + $0x41c] sm:$0xf0]  ;;  %v10554_v43 = vld [vmem:[#allocation4 + $0xa4] sm:$0xf] }
 0x514   : > { %6529 = vst [vmem:[#allocation4 + $0x314] sm:$0xf] %v6437_v41  ;;  %v15877_v19 = vld [vmem:[#allocation3 + $0x7c] sm:$0xf]  ;;  %v6412_v29 = vrot.slane %v6315_v53, 5  ;;  %v9622_v37 = vor.u32 %v10554_v43, %v9619_v2  ;;  %v6415_v57 = vrot.slane %v15873_v63, 5  ;;  %v6410_v41 = vsel %vm11371_vm8, %v6408_v28, %v6409_v33 }
 0x515   : > { %6530 = vst [vmem:[#allocation4 + $0x338] sm:$0xf] %v6440_v16  ;;  %v10661_v36 = vld [vmem:[#allocation4 + $0x3fc] sm:$0xf]  ;;  %v5185_v22 = vrot.slane %v15723_v1, 4  ;;  %v5194_v32 = vrot.slane %v5189_v27, 4  ;;  %v8120_v63 = vpop.f32.mrf.mxu1  ;;  %v8119_v28 = vadd.f32 %v15605_v46, %v8118_v10 }
 0x516   : > { %v10747_v12 = vld [vmem:[%s16782_s3 + $0x1e0] sm:$0xff]  ;;  %17182 = vst [vmem:[#allocation20_spill] sm:$0xff] %v15890_v47  ;;  %v10046_v53 = vor.u32 %v10661_v36, %v10043_v25  ;;  %8562 = vmatmul.bf16.gmra.mxu2 %v9622_v37  ;;  %v17183_v2 = vrot.slane %v15814_v48, 5  ;;  %v6413_v33 = vsel %vm11371_vm8, %v6411_v5, %v6412_v29  ;;  %v16862_v27 = vrot.slane %v15877_v19, 5  ;;  %v10746_v25 = vld [vmem:[%s16782_s3 + $0x1d8] sm:$0xff]  ;;  %v10753_v40 = vld [vmem:[%s16782_s3 + $0x210] sm:$0xff] }
 0x517   : > { %v9609_v42 = vld [vmem:[#allocation4 + $0x98] sm:$0xf]  ;;  %v10557_v35 = vld [vmem:[#allocation4 + $0xb8] sm:$0xf0]  ;;  %6520 = vst [vmem:[#allocation4 + $0x1d0] sm:$0xf] %v6410_v41  ;;  %8735 = vmatpush.bf16.msra.mxu0 %v10747_v12  ;;  %v5193_v43 = vsel %vm11300_vm2, %v5185_v22, %v5192_v11  ;;  %v5202_v1 = vsel %vm11300_vm2, %v5194_v32, %v5201_v49  ;;  %v8212_v10 = vpop.f32.mrf.mxu2 }
 0x518   : > { %v6444_v16 = vrot.slane %v17183_v2, 4  ;;  %8434 = vmatmul.bf16.gmra.mxu0 %v10046_v53  ;;  %5269 = vst [vmem:[#allocation4 + $0x48c] sm:$0xf] %v5193_v43  ;;  %v10757_v11 = vld [vmem:[%s16782_s3 + $0x230] sm:$0xff]  ;;  %v17184_v14 = vmov %v17183_v2  ;;  %v6414_v49 = vrot.slane %v6412_v29, 4  ;;  %v6417_v36 = vrot.slane %v6415_v57, 4 }
 0x519   : > { %v6443_v5 = vsel %vm11371_vm8, %v15845_v23, %v17184_v14  ;;  %v6317_v37 = vld [vmem:[#allocation3 + $0x54] sm:$0xf]  ;;  %v9610_v12 = vor.u32 %v10557_v35, %v9609_v42  ;;  %5270 = vst [vmem:[#allocation4 + $0x4b0] sm:$0xf] %v5202_v1  ;;  %v6318_v32 = vld [vmem:[#allocation3 + $0x58] sm:$0xf]  ;;  %v15921_v48 = vadd.f32 %v8212_v10, %v8119_v28  ;;  %8827 = vmatpush.bf16.msra.mxu1 %v10757_v11 }
 0x51a   : > { %v6446_v22 = vsel %vm11371_vm8, %v6444_v16, %v6445_v39  ;;  %v15917_v41 = vld [vmem:[#allocation3 + $0x5c] sm:$0xf]  ;;  %v15919_v53 = vld [vmem:[#allocation3 + $0x60] sm:$0xf]  ;;  %6521 = vst [vmem:[#allocation4 + $0x1f4] sm:$0xf] %v6413_v33  ;;  %v6449_v23 = vsel %vm11371_vm8, %v6447_v4, %v16862_v27  ;;  %v15929_v39 = vpop.f32.mrf.mxu3  ;;  %v6416_v4 = vsel %vm11371_vm8, %v6414_v49, %v6415_v57  ;;  %v8121_v14 = vadd.f32 %v15605_v46, %v8120_v63 }
 0x51b   : > { %v15927_v29 = vld [vmem:[#allocation3 + $0x64] sm:$0xf]  ;;  %8280 = vmatmul.bf16.gmra.mxu3 %v9610_v12  ;;  %8736 = vmatpush.bf16.msra.mxu0 %v10746_v25  ;;  %6531 = vst [vmem:[#allocation4 + $0x35c] sm:$0xf] %v6443_v5  ;;  %v5811_v62 = vld [vmem:[#allocation3 + $0x78] sm:$0xf]  ;;  %v15940_v5 = vpop.f32.mrf.mxu0 }
 0x51c   : > { %v9653_v42 = vld [vmem:[#allocation4 + $0xe8] sm:$0xf]  ;;  %v10567_v35 = vld [vmem:[#allocation4 + $0x108] sm:$0xf0]  ;;  %6532 = vst [vmem:[#allocation4 + $0x380] sm:$0xf] %v6446_v22 }
 0x51d   : > { %v10745_v2 = vld [vmem:[%s16782_s3 + $0x1d0] sm:$0xff]  ;;  %6533 = vst [vmem:[#allocation4 + $0x3a4] sm:$0xf] %v6449_v23  ;;  %v5812_v16 = vld [vmem:[#allocation3 + $0x7c] sm:$0xf]  ;;  %v6418_v43 = vrot.slane %v6317_v37, 5  ;;  %v8123_v25 = vpop.f32.mrf.mxu1  ;;  %v9654_v10 = vor.u32 %v10567_v35, %v9653_v42 }
 0x51e   : > { %5845 = vst [vmem:[#allocation4 + $0x39c] sm:$0xf] %v5811_v62  ;;  %v6421_v1 = vrot.slane %v6318_v32, 5  ;;  %v6424_v33 = vrot.slane %v15917_v41, 5  ;;  %v6427_v28 = vrot.slane %v15919_v53, 5  ;;  %v6430_v11 = vrot.slane %v15927_v29, 5 }
 0x51f   : > { %8737 = vmatpush.bf16.msra.mxu0 %v10745_v2  ;;  %6522 = vst [vmem:[#allocation4 + $0x218] sm:$0xf] %v6416_v4  ;;  %v10744_v57 = vld [vmem:[%s16782_s3 + $0x1c8] sm:$0xff]  ;;  %v6419_v49 = vsel %vm11371_vm8, %v6417_v36, %v6418_v43  ;;  %v8214_v37 = vpop.f32.mrf.mxu2  ;;  %v10563_v12 = vld [vmem:[#allocation4 + $0xec] sm:$0xf]  ;;  %v6420_v32 = vrot.slane %v6418_v43, 4 }
 0x520   : > { %17185 = vst [vmem:[#allocation18_spill] sm:$0xff] %v15940_v5  ;;  %v9655_v22 = vld [vmem:[#allocation4 + $0x10c] sm:$0xf0]  ;;  %v15947_v41 = vadd.f32 %v8214_v37, %v8121_v14  ;;  %v4821_v63 = vld [vmem:[#allocation3 + $0x80] sm:$0xf]  ;;  %v6423_v23 = vrot.slane %v6421_v1, 4 }
 0x521   : > { %5846 = vst [vmem:[#allocation4 + $0x3c0] sm:$0xf] %v5812_v16  ;;  %v4822_v53 = vld [vmem:[#allocation3 + $0x84] sm:$0xf]  ;;  %v6426_v29 = vrot.slane %v6424_v33, 4  ;;  %v6429_v42 = vrot.slane %v6427_v28, 4  ;;  %v9658_v2 = vor.u32 %v10563_v12, %v9655_v22  ;;  %v6422_v4 = vsel %vm11371_vm8, %v6420_v32, %v6421_v1 }
 0x522   : > { %6523 = vst [vmem:[#allocation4 + $0x23c] sm:$0xf] %v6419_v49  ;;  %8473 = vmatmul.bf16.gmra.mxu1 %v9654_v10  ;;  %v10079_v62 = vld [vmem:[#allocation4 + $0x464] sm:$0xf0]  ;;  %v6432_v35 = vrot.slane %v6430_v11, 4  ;;  %v5678_v36 = vshrl.u32 %v15780_v3, 16  ;;  %v15955_v10 = vpop.f32.mrf.mxu3  ;;  %v6425_v3 = vsel %vm11371_vm8, %v6423_v23, %v6424_v33  ;;  %v8124_v22 = vadd.f32 %v15605_v46, %v8123_v25 }
 0x523   : > { %8738 = vmatpush.bf16.msra.mxu0 %v10744_v57  ;;  %4855 = vst [vmem:[#allocation4 + $0x464] sm:$0xf] %v4821_v63  ;;  %v10670_v16 = vld [vmem:[#allocation4 + $0x444] sm:$0xf]  ;;  %v10743_v43 = vld [vmem:[%s16782_s3 + $0x1c0] sm:$0xff]  ;;  %v6428_v12 = vsel %vm11371_vm8, %v6426_v29, %v6427_v28  ;;  %v6431_v1 = vsel %vm11371_vm8, %v6429_v42, %v6430_v11  ;;  %v17186_v32 = vrot.slane %v17158_v7, 5  ;;  %v15968_v28 = vpop.f32.mrf.mxu0 }
 0x524   : > { %4856 = vst [vmem:[#allocation4 + $0x488] sm:$0xf] %v4822_v53  ;;  %v5370_v14 = vld [vmem:[#allocation3 + $0x88] sm:$0xf]  ;;  %v10082_v49 = vor.u32 %v10670_v16, %v10079_v62  ;;  %v10566_v57 = vld [vmem:[#allocation4 + $0x100] sm:$0xf0] }
 0x525   : > { %6524 = vst [vmem:[#allocation4 + $0x260] sm:$0xf] %v6422_v4  ;;  %v8125_v37 = vpop.f32.mrf.mxu1  ;;  %v9645_v63 = vld [vmem:[#allocation4 + $0xe0] sm:$0xf]  ;;  %v6434_v53 = vsel %vm11371_vm8, %v6432_v35, %v17186_v32  ;;  %v5680_v62 = vrot.slane %v5678_v36, 4  ;;  %v5688_v16 = vshrl.u32 %v5370_v14, 16 }
 0x526   : > { %8567 = vmatmul.bf16.gmra.mxu2 %v9658_v2  ;;  %6525 = vst [vmem:[#allocation4 + $0x284] sm:$0xf] %v6425_v3  ;;  %v5684_v2 = vshll.u32 %v5370_v14, 16  ;;  %v9646_v23 = vor.u32 %v10566_v57, %v9645_v63  ;;  %v10576_v42 = vld [vmem:[#allocation4 + $0x150] sm:$0xf0]  ;;  %v8126_v57 = vadd.f32 %v15605_v46, %v8125_v37  ;;  %vm9044_vm2 = vcmask 31744  }
 0x527   : > { %8739 = vmatpush.bf16.msra.mxu0 %v10743_v43  ;;  %v8217_v33 = vpop.f32.mrf.mxu2  ;;  %6526 = vst [vmem:[#allocation4 + $0x2a8] sm:$0xf] %v6428_v12  ;;  %v5681_v11 = vor.u32 %v5680_v62, %v15835_v58  ;;  %v5690_v7 = vrot.slane %v5688_v16, 4  ;;  %v15973_v43 = vld [vmem:[#allocation3 + $0x8c] sm:$0xf]  ;;  %v10740_v58 = vld [vmem:[%s16782_s3 + $0x1a8] sm:$0xff] }
 0x528   : > { %8439 = vmatmul.bf16.gmra.mxu0 %v10082_v49  ;;  %17187 = vst [vmem:[#allocation21_spill] sm:$0xff] %v15968_v28  ;;  %v15970_v25 = vadd.f32 %v8217_v33, %v8124_v22  ;;  %v5686_v29 = vrot.slane %v5684_v2, 5  ;;  %v5302_v36 = vld [vmem:[#allocation3 + $0x88] sm:$0xf]  ;;  %v9689_v14 = vld [vmem:[#allocation4 + $0x130] sm:$0xf]  ;;  %8640 = vmatpush.bf16.msra.mxu3 %v10740_v58 }
 0x529   : > { %6527 = vst [vmem:[#allocation4 + $0x2cc] sm:$0xf] %v6431_v1  ;;  %v6153_v49 = vshrl.u32 %v15697_v13, 16  ;;  %v9690_v3 = vor.u32 %v10576_v42, %v9689_v14  ;;  %v5881_v12 = vld [vmem:[#allocation3 + $0x80] sm:$0xf]  ;;  %v5694_v63 = vshll.u32 %v15973_v43, 16 }
 0x52a   : > { %6528 = vst [vmem:[#allocation4 + $0x2f0] sm:$0xf] %v6434_v53  ;;  %v15975_v35 = vpop.f32.mrf.mxu3  ;;  %v5691_v22 = vor.u32 %v5690_v7, %v5686_v29  ;;  %v9691_v32 = vld [vmem:[#allocation4 + $0x154] sm:$0xf0]  ;;  %v5682_v53 = vrot.slane %v5681_v11, 4  ;;  %v6159_v33 = vshll.u32 %v5881_v12, 16 }
 0x52b   : > { %8285 = vmatmul.bf16.gmra.mxu3 %v9646_v23  ;;  %5336 = vst [vmem:[#allocation4 + $0x46c] sm:$0xf] %v5302_v36  ;;  %v10115_v2 = vld [vmem:[#allocation4 + $0x4ac] sm:$0xf0]  ;;  %v10572_v13 = vld [vmem:[#allocation4 + $0x134] sm:$0xf]  ;;  %v15987_v42 = vpop.f32.mrf.mxu0 }
 0x52c   : > { %v5687_v37 = vsel %vm11330_vm5, %v5682_v53, %v5686_v29  ;;  %v6155_v16 = vrot.slane %v6153_v49, 4  ;;  %v6163_v23 = vshrl.u32 %v5881_v12, 16  ;;  %17188 = vst [vmem:[#allocation19_spill] sm:$0xff] %v15987_v42  ;;  %v9694_v7 = vor.u32 %v10572_v13, %v9691_v32  ;;  %v10679_v14 = vld [vmem:[#allocation4 + $0x48c] sm:$0xf] }
 0x52d   : > { %v8128_v4 = vpop.f32.mrf.mxu1  ;;  %5782 = vst [vmem:[#allocation4 + $0x44c] sm:$0xf] %v5687_v37  ;;  %v15989_v36 = vrot.slane %v5694_v63, 5  ;;  %v5692_v11 = vrot.slane %v5691_v22, 4  ;;  %v9681_v58 = vld [vmem:[#allocation4 + $0x128] sm:$0xf] }
 0x52e   : > { %v6156_v49 = vor.u32 %v6155_v16, %v15736_v17  ;;  %v6161_v12 = vrot.slane %v6159_v33, 5  ;;  %v6165_v32 = vrot.slane %v6163_v23, 4  ;;  %v6328_v53 = vld [vmem:[#allocation3 + $0x80] sm:$0xf]  ;;  %v8129_v63 = vadd.f32 %v15605_v46, %v8128_v4  ;;  %v15998_v22 = vld [vmem:[#allocation3 + $0x84] sm:$0xf] }
 0x52f   : > { %v8219_v1 = vpop.f32.mrf.mxu2  ;;  %v5697_v29 = vsel %vm11330_vm5, %v5692_v11, %v15989_v36  ;;  %v6169_v16 = vshll.u32 %v15998_v22, 16  ;;  %v8149_v4 = vadd.f32 %v15605_v46, %v15705_v15  ;;  %v10585_v23 = vld [vmem:[#allocation4 + $0x198] sm:$0xf0]  ;;  %v16008_v11 = vld [vmem:[#allocation3 + $0x84] sm:$0xf] }
 0x530   : > { %v15983_v62 = vadd.f32 %v8219_v1, %v8126_v57  ;;  %v10118_v57 = vor.u32 %v10679_v14, %v10115_v2  ;;  %v10575_v1 = vld [vmem:[#allocation4 + $0x148] sm:$0xf0]  ;;  %5783 = vst [vmem:[#allocation4 + $0x470] sm:$0xf] %v5697_v29  ;;  %v6451_v14 = vrot.slane %v6328_v53, 5  ;;  %v6166_v17 = vor.u32 %v6165_v32, %v6161_v12 }
 0x531   : > { %v9682_v13 = vor.u32 %v10575_v1, %v9681_v58  ;;  %v6157_v33 = vrot.slane %v6156_v49, 4  ;;  %v5813_v29 = vld [vmem:[#allocation3 + $0x80] sm:$0xf]  ;;  %v5814_v53 = vld [vmem:[#allocation3 + $0x84] sm:$0xf]  ;;  %v17190_v32 = vrot.slane %v15877_v19, 5 }
 0x532   : > { %8478 = vmatmul.bf16.gmra.mxu1 %v9690_v3  ;;  %v15991_v3 = vpop.f32.mrf.mxu3  ;;  %v9725_v49 = vld [vmem:[#allocation4 + $0x178] sm:$0xf]  ;;  %v16018_v15 = vrot.slane %v6169_v16, 5  ;;  %v6167_v28 = vrot.slane %v6166_v17, 4  ;;  %5847 = vst [vmem:[#allocation4 + $0x3e4] sm:$0xf] %v5813_v29 }
 0x533   : > { %v6162_v1 = vsel %vm11330_vm5, %v6157_v33, %v6161_v12  ;;  %v16863_v12 = vrot.slane %v16008_v11, 5  ;;  %v9727_v5 = vld [vmem:[#allocation4 + $0x19c] sm:$0xf0]  ;;  %5848 = vst [vmem:[#allocation4 + $0x408] sm:$0xf] %v5814_v53 }
 0x534   : > { %6293 = vst [vmem:[#allocation4 + $0x3c4] sm:$0xf] %v6162_v1  ;;  %v6172_v16 = vsel %vm11330_vm5, %v6167_v28, %v16018_v15  ;;  %v9555_v17 = vld [vmem:[#allocation4 + $0x3c] sm:$0xf0]  ;;  %v9717_v53 = vld [vmem:[#allocation4 + $0x170] sm:$0xf] }
 0x535   : > { %v8130_v27 = vpop.f32.mrf.mxu1  ;;  %6294 = vst [vmem:[#allocation4 + $0x3e8] sm:$0xf] %v6172_v16  ;;  %v4823_v16 = vld [vmem:[#allocation3 + $0x88] sm:$0xf]  ;;  %v10599_v26 = vld [vmem:[#allocation4 + $0x20c] sm:$0xf] }
 0x536   : > { %8572 = vmatmul.bf16.gmra.mxu2 %v9694_v7  ;;  %v10756_v7 = vld [vmem:[%s16782_s3 + $0x228] sm:$0xff]  ;;  %v8131_v42 = vadd.f32 %v15605_v46, %v8130_v27  ;;  %v10581_v27 = vld [vmem:[#allocation4 + $0x17c] sm:$0xf]  ;;  %4857 = vst [vmem:[#allocation4 + $0x4ac] sm:$0xf] %v4823_v16 }
 0x537   : > { %v8222_v2 = vpop.f32.mrf.mxu2  ;;  %8828 = vmatpush.bf16.msra.mxu1 %v10756_v7  ;;  %v10739_v16 = vld [vmem:[%s16782_s3 + $0x1a0] sm:$0xff]  ;;  %v6331_v24 = vld [vmem:[#allocation3 + $0x8c] sm:$0xf] }
 0x538   : > { %8444 = vmatmul.bf16.gmra.mxu0 %v10118_v57  ;;  %v16000_v37 = vadd.f32 %v8222_v2, %v8129_v63  ;;  %v16010_v57 = vpop.f32.mrf.mxu0  ;;  %v6450_v63 = vrot.slane %v17190_v32, 4  ;;  %v6453_v2 = vrot.slane %v6451_v14, 4  ;;  %8641 = vmatpush.bf16.msra.mxu3 %v10739_v16 }
 0x539   : > { %17189 = vst [vmem:[#allocation22_spill] sm:$0xff] %v16010_v57  ;;  %v9726_v57 = vor.u32 %v10585_v23, %v9725_v49 }
 0x53a   : > { %v8242_v58 = vpop.f32.mrf.mxu3  ;;  %v6452_v19 = vsel %vm11371_vm8, %v6450_v63, %v6451_v14  ;;  %v6455_v23 = vsel %vm11371_vm8, %v6453_v2, %v16863_v12  ;;  %v5698_v63 = vshrl.u32 %v15973_v43, 16  ;;  %v9761_v43 = vld [vmem:[#allocation4 + $0x1c0] sm:$0xf] }
 0x53b   : > { %8290 = vmatmul.bf16.gmra.mxu3 %v9682_v13  ;;  %v16016_v7 = vadd.f32 %v8242_v58, %v8149_v4  ;;  %v10537_v4 = vld [vmem:[#allocation4 + $0x1c] sm:$0xf]  ;;  %6534 = vst [vmem:[#allocation4 + $0x3c8] sm:$0xf] %v6452_v19  ;;  %v9730_v58 = vor.u32 %v10581_v27, %v9727_v5  ;;  %v5372_v19 = vld [vmem:[#allocation3 + $0x90] sm:$0xf] }
 0x53c   : > { %6535 = vst [vmem:[#allocation4 + $0x3ec] sm:$0xf] %v6455_v23  ;;  %v5303_v5 = vld [vmem:[#allocation3 + $0x8c] sm:$0xf]  ;;  %v5704_v27 = vshll.u32 %v5372_v19, 16 }
 0x53d   : > { %v8133_v13 = vpop.f32.mrf.mxu1  ;;  %5337 = vst [vmem:[#allocation4 + $0x490] sm:$0xf] %v5303_v5  ;;  %v10594_v23 = vld [vmem:[#allocation4 + $0x1e0] sm:$0xf0] }
 0x53e   : > { %v8134_v28 = vadd.f32 %v15605_v46, %v8133_v13  ;;  %v8154_v13 = vadd.f32 %v15605_v46, %v15819_v44  ;;  %v9763_v46 = vld [vmem:[#allocation4 + $0x1e4] sm:$0xf0] }
 0x53f   : > { %v8224_v33 = vpop.f32.mrf.mxu2 }
 0x540   : > { %v16024_v32 = vadd.f32 %v8224_v33, %v8131_v42  ;;  %v9558_v42 = vor.u32 %v10537_v4, %v9555_v17  ;;  %v16035_v29 = vpop.f32.mrf.mxu0  ;;  %v5700_v4 = vrot.slane %v5698_v63, 4  ;;  %v5708_v17 = vshrl.u32 %v5372_v19, 16 }
 0x541   : > { %17191 = vst [vmem:[#allocation27_spill] sm:$0xff] %v16035_v29  ;;  %v9591_v29 = vld [vmem:[#allocation4 + $0x84] sm:$0xf0] }
 0x542   : > { %8483 = vmatmul.bf16.gmra.mxu1 %v9726_v57  ;;  %v16033_v14 = vpop.f32.mrf.mxu3  ;;  %v10584_v57 = vld [vmem:[#allocation4 + $0x190] sm:$0xf0]  ;;  %v5701_v63 = vor.u32 %v5700_v4, %v15989_v36  ;;  %v10546_v4 = vld [vmem:[#allocation4 + $0x64] sm:$0xf] }
 0x543   : > { %v9718_v33 = vor.u32 %v10584_v57, %v9717_v53  ;;  %v16048_v57 = vld [vmem:[%s16783_s4] ss:$0 sm:$0xff]  ;;  %v9762_v53 = vor.u32 %v10594_v23, %v9761_v43  ;;  %v10593_v43 = vld [vmem:[#allocation4 + $0x1d8] sm:$0xf0] }
 0x545   : > { %v8135_v1 = vpop.f32.mrf.mxu1 }
 0x546   : > { %8577 = vmatmul.bf16.gmra.mxu2 %v9730_v58 }
 0x547   : > { %v8227_v49 = vpop.f32.mrf.mxu2 }
 0x548   : > { %8740 = vmatmul.bf16.vlgmr.msra.gmra.mxu0 %v9558_v42  ;;  %v16039_v2 = vadd.f32 %v8227_v49, %v8134_v28  ;;  %v8136_v28 = vadd.f32 %v16048_v57, %v8135_v1  ;;  %v5706_v49 = vrot.slane %v5704_v27, 5  ;;  %v16052_v44 = vpop.f32.mrf.mxu0  ;;  %v5702_v27 = vrot.slane %v5701_v63, 4 }
 0x549   : > { %17192 = vst [vmem:[#allocation23_spill] sm:$0xff] %v16052_v44 }
 0x54a   : > { %v8247_v58 = vpop.f32.mrf.mxu3 }
 0x54b   : > { %8295 = vmatmul.bf16.gmra.mxu3 %v9718_v33  ;;  %v16043_v12 = vadd.f32 %v8247_v58, %v8154_v13  ;;  %v5710_v33 = vrot.slane %v5708_v17, 4  ;;  %v5304_v13 = vld [vmem:[#allocation3 + $0x90] sm:$0xf]  ;;  %v10590_v58 = vld [vmem:[#allocation4 + $0x1c4] sm:$0xf]  ;;  %v9594_v17 = vor.u32 %v10546_v4, %v9591_v29 }
 0x54c   : > { %5338 = vst [vmem:[#allocation4 + $0x4b4] sm:$0xf] %v5304_v13  ;;  %v9766_v1 = vor.u32 %v10590_v58, %v9763_v46  ;;  %v9753_v13 = vld [vmem:[#allocation4 + $0x1b8] sm:$0xf] }
 0x54d   : > { %v8138_v42 = vpop.f32.mrf.mxu1  ;;  %v5711_v36 = vor.u32 %v5710_v33, %v5706_v49  ;;  %v6173_v33 = vshrl.u32 %v15998_v22, 16  ;;  %v9754_v63 = vor.u32 %v10593_v43, %v9753_v13  ;;  %v10603_v22 = vld [vmem:[#allocation4 + $0x228] sm:$0xf0]  ;;  %v9797_v13 = vld [vmem:[#allocation4 + $0x208] sm:$0xf] }
 0x54e   : > { %v8139_v47 = vadd.f32 %v16048_v57, %v8138_v42 }
 0x54f   : > { %v8229_v19 = vpop.f32.mrf.mxu2  ;;  %v5712_v16 = vrot.slane %v5711_v36, 4  ;;  %v6175_v42 = vrot.slane %v6173_v33, 4 }
 0x550   : > { %v16054_v5 = vadd.f32 %v8229_v19, %v8136_v28  ;;  %v5373_v28 = vld [vmem:[#allocation3 + $0x94] sm:$0x1]  ;;  %v5707_v19 = vsel %vm11330_vm5, %v5702_v27, %v5706_v49  ;;  %v16069_v49 = vpop.f32.mrf.mxu0  ;;  %v5884_v27 = vld [vmem:[#allocation3 + $0x8c] sm:$0xf] }
 0x551   : > { %v5714_v44 = vshll.u32 %v5373_v28, 16  ;;  %5784 = vst [vmem:[#allocation4 + $0x494] sm:$0xf] %v5707_v19  ;;  %v6330_v28 = vld [vmem:[#allocation3 + $0x88] sm:$0xf] }
 0x552   : > { %8488 = vmatmul.bf16.gmra.mxu1 %v9762_v53  ;;  %v16059_v23 = vpop.f32.mrf.mxu3  ;;  %17193 = vst [vmem:[#allocation47_spill] sm:$0xff] %v16069_v49  ;;  %v9799_v49 = vld [vmem:[#allocation4 + $0x22c] sm:$0xf0]  ;;  %v6457_v45 = vrot.slane %v6330_v28, 5 }
 0x553   : > { %v5716_v29 = vrot.slane %v5714_v44, 5  ;;  %v10755_v44 = vld [vmem:[%s16782_s3 + $0x220] sm:$0xff]  ;;  %v9802_v60 = vor.u32 %v10599_v26, %v9799_v49  ;;  %v6460_v49 = vrot.slane %v6331_v24, 5 }
 0x554   : > { %8829 = vmatpush.bf16.msra.mxu1 %v10755_v44  ;;  %v6459_v34 = vrot.slane %v6457_v45, 4 }
 0x555   : > { %v8140_v53 = vpop.f32.mrf.mxu1  ;;  %v5717_v4 = vsel %vm11330_vm5, %v5712_v16, %v5716_v29  ;;  %v9798_v16 = vor.u32 %v10603_v22, %v9797_v13  ;;  %v6193_v29 = vshrl.u32 %v5884_v27, 16  ;;  %v6332_v13 = vld [vmem:[#allocation3 + $0x90] sm:$0xf] }
 0x556   : > { %8582 = vmatmul.bf16.gmra.mxu2 %v9766_v1  ;;  %v5883_v1 = vld [vmem:[#allocation3 + $0x88] sm:$0xf]  ;;  %5785 = vst [vmem:[#allocation4 + $0x4b8] sm:$0xf] %v5717_v4  ;;  %v8141_v33 = vadd.f32 %v16048_v57, %v8140_v53 }
 0x557   : > { %v8232_v46 = vpop.f32.mrf.mxu2  ;;  %v6183_v36 = vshrl.u32 %v5883_v1, 16  ;;  %v6195_v53 = vrot.slane %v6193_v29, 4 }
 0x558   : > { %8745 = vmatmul.bf16.gmra.mxu0 %v9594_v17  ;;  %v16065_v58 = vadd.f32 %v8232_v46, %v8139_v47  ;;  %v8159_v17 = vadd.f32 %v16048_v57, %v15929_v39  ;;  %v6179_v47 = vshll.u32 %v5883_v1, 16  ;;  %v6176_v39 = vor.u32 %v6175_v42, %v16018_v15  ;;  %v5885_v1 = vld [vmem:[#allocation3 + $0x90] sm:$0xf]  ;;  %v10602_v15 = vld [vmem:[#allocation4 + $0x220] sm:$0xf0]  ;;  %v16082_v30 = vpop.f32.mrf.mxu0 }
 0x559   : > { %v6185_v20 = vrot.slane %v6183_v36, 4  ;;  %v6199_v22 = vshll.u32 %v5885_v1, 16  ;;  %17194 = vst [vmem:[#allocation51_spill] sm:$0xff] %v16082_v30 }
 0x55a   : > { %v6181_v0 = vrot.slane %v6179_v47, 5  ;;  %v6177_v28 = vrot.slane %v6176_v39, 4 }
 0x55b   : > { %8300 = vmatmul.bf16.gmra.mxu3 %v9754_v63  ;;  %v8252_v43 = vpop.f32.mrf.mxu3  ;;  %v6189_v63 = vshll.u32 %v5884_v27, 16  ;;  %v6203_v27 = vshrl.u32 %v5885_v1, 16 }
 0x55c   : > { %v16076_v46 = vadd.f32 %v8252_v43, %v8159_v17  ;;  %v10555_v17 = vld [vmem:[#allocation4 + $0xac] sm:$0xf]  ;;  %v9627_v43 = vld [vmem:[#allocation4 + $0xcc] sm:$0xf0]  ;;  %v6186_v42 = vor.u32 %v6185_v20, %v6181_v0  ;;  %v9789_v20 = vld [vmem:[#allocation4 + $0x200] sm:$0xf] }
 0x55d   : > { %v8143_v19 = vpop.f32.mrf.mxu1  ;;  %v6191_v44 = vrot.slane %v6189_v63, 5  ;;  %v9630_v47 = vor.u32 %v10555_v17, %v9627_v43  ;;  %v6463_v17 = vrot.slane %v6332_v13, 5  ;;  %v9790_v43 = vor.u32 %v10602_v15, %v9789_v20  ;;  %v10612_v13 = vld [vmem:[#allocation4 + $0x270] sm:$0xf0] }
 0x55e   : > { %v8144_v29 = vadd.f32 %v16048_v57, %v8143_v19  ;;  %v6205_v30 = vrot.slane %v6203_v27, 4  ;;  %v6187_v24 = vrot.slane %v6186_v42, 4  ;;  %v6461_v19 = vsel %vm11371_vm8, %v6459_v34, %v6460_v49  ;;  %v5817_v42 = vld [vmem:[#allocation3 + $0x90] sm:$0xf]  ;;  %v5886_v34 = vld [vmem:[#allocation3 + $0x94] sm:$0xf] }
 0x55f   : > { %v8234_v4 = vpop.f32.mrf.mxu2  ;;  %v6196_v1 = vor.u32 %v6195_v53, %v6191_v44  ;;  %6537 = vst [vmem:[#allocation4 + $0x434] sm:$0xf] %v6461_v19  ;;  %v8164_v53 = vadd.f32 %v16048_v57, %v15975_v35  ;;  %v6465_v15 = vrot.slane %v6463_v17, 4  ;;  %v16110_v20 = vld [vmem:[#allocation3 + $0x94] sm:$0xf] }
 0x560   : > { %v16080_v52 = vadd.f32 %v8234_v4, %v8141_v33  ;;  %v5815_v33 = vld [vmem:[#allocation3 + $0x88] sm:$0xf]  ;;  %v17195_v4 = vrot.slane %v16008_v11, 5  ;;  %5851 = vst [vmem:[#allocation4 + $0x474] sm:$0xf] %v5817_v42 }
 0x561   : > { %5849 = vst [vmem:[#allocation4 + $0x42c] sm:$0xf] %v5815_v33  ;;  %v10608_v19 = vld [vmem:[#allocation4 + $0x254] sm:$0xf]  ;;  %v10611_v42 = vld [vmem:[#allocation4 + $0x268] sm:$0xf0] }
 0x562   : > { %8493 = vmatmul.bf16.gmra.mxu1 %v9798_v16  ;;  %v5816_v16 = vld [vmem:[#allocation3 + $0x8c] sm:$0xf]  ;;  %v6456_v63 = vrot.slane %v17195_v4, 4  ;;  %v6201_v4 = vrot.slane %v6199_v22, 5  ;;  %17197 = vst [vmem:[#allocation35_spill] sm:$0xff] %v16110_v20 }
 0x563   : > { %v16084_v36 = vpop.f32.mrf.mxu3  ;;  %5850 = vst [vmem:[#allocation4 + $0x450] sm:$0xf] %v5816_v16  ;;  %v9833_v16 = vld [vmem:[#allocation4 + $0x250] sm:$0xf] }
 0x564   : > { %v6458_v11 = vsel %vm11371_vm8, %v6456_v63, %v6457_v45  ;;  %v6462_v45 = vrot.slane %v6460_v49, 4  ;;  %v6206_v22 = vor.u32 %v6205_v30, %v6201_v4  ;;  %v9834_v35 = vor.u32 %v10612_v13, %v9833_v16 }
 0x565   : > { %v8145_v26 = vpop.f32.mrf.mxu1  ;;  %6536 = vst [vmem:[#allocation4 + $0x410] sm:$0xf] %v6458_v11  ;;  %v6209_v30 = vshll.u32 %v5886_v34, 16  ;;  %v8166_v13 = vadd.f32 %v16048_v57, %v15991_v3  ;;  %v9825_v34 = vld [vmem:[#allocation4 + $0x248] sm:$0xf] }
 0x566   : > { %8587 = vmatmul.bf16.gmra.mxu2 %v9802_v60  ;;  %v6182_v60 = vsel %vm11330_vm5, %v6177_v28, %v6181_v0  ;;  %v6192_v0 = vsel %vm11330_vm5, %v6187_v24, %v6191_v44  ;;  %v16105_v44 = vpop.f32.mrf.mxu0  ;;  %v6207_v24 = vrot.slane %v6206_v22, 4  ;;  %v10738_v22 = vld [vmem:[%s16782_s3 + $0x198] sm:$0xff]  ;;  %v9826_v3 = vor.u32 %v10611_v42, %v9825_v34 }
 0x567   : > { %v8237_v39 = vpop.f32.mrf.mxu2  ;;  %6295 = vst [vmem:[#allocation4 + $0x40c] sm:$0xf] %v6182_v60  ;;  %8642 = vmatpush.bf16.msra.mxu3 %v10738_v22  ;;  %v10620_v34 = vld [vmem:[#allocation4 + $0x2b0] sm:$0xf0] }
 0x568   : > { %8750 = vmatmul.bf16.gmra.mxu0 %v9630_v47  ;;  %v16093_v33 = vadd.f32 %v8237_v39, %v8144_v29  ;;  %6296 = vst [vmem:[#allocation4 + $0x430] sm:$0xf] %v6192_v0  ;;  %v6197_v47 = vrot.slane %v6196_v1, 4  ;;  %v8146_v29 = vadd.f32 %v16048_v57, %v8145_v26  ;;  %v9835_v1 = vld [vmem:[#allocation4 + $0x274] sm:$0xf0]  ;;  %v6464_v39 = vsel %vm11371_vm8, %v6462_v45, %v6463_v17 }
 0x569   : > { %17196 = vst [vmem:[#allocation28_spill] sm:$0xff] %v16105_v44  ;;  %v16117_v26 = vrot.slane %v6209_v30, 5  ;;  %v10564_v45 = vld [vmem:[#allocation4 + $0xf4] sm:$0xf] }
 0x56a   : > { %v6202_v49 = vsel %vm11330_vm5, %v6197_v47, %v6201_v4  ;;  %6538 = vst [vmem:[#allocation4 + $0x458] sm:$0xf] %v6464_v39  ;;  %v9663_v4 = vld [vmem:[#allocation4 + $0x114] sm:$0xf0]  ;;  %v10754_v30 = vld [vmem:[%s16782_s3 + $0x218] sm:$0xff] }
 0x56b   : > { %8305 = vmatmul.bf16.gmra.mxu3 %v9790_v43  ;;  %v8257_v27 = vpop.f32.mrf.mxu3  ;;  %6297 = vst [vmem:[#allocation4 + $0x454] sm:$0xf] %v6202_v49  ;;  %v16864_v43 = vrot.slane %v16110_v20, 5  ;;  %v6212_v17 = vsel %vm11330_vm5, %v6207_v24, %v16117_v26  ;;  %v10621_v49 = vld [vmem:[#allocation4 + $0x2b8] sm:$0xf0]  ;;  %v17200_v24 = vld [vmem:[#allocation67_spill] sm:$0xff]  ;;  %8830 = vmatpush.bf16.msra.mxu1 %v10754_v30 }
 0x56c   : > { %v16103_v63 = vadd.f32 %v8257_v27, %v8164_v53  ;;  %17198 = vst [vmem:[#allocation45_spill] sm:$0xff] %v16117_v26  ;;  %v9838_v53 = vor.u32 %v10608_v19, %v9835_v1  ;;  %v9666_v27 = vor.u32 %v10564_v45, %v9663_v4  ;;  %v9869_v39 = vld [vmem:[#allocation4 + $0x298] sm:$0xf]  ;;  %v9861_v30 = vld [vmem:[#allocation4 + $0x290] sm:$0xf]  ;;  %8643 = vmatpush.bf16.msra.mxu3 %v10737_v6 }
 0x56d   : > { %v16101_v28 = vpop.f32.mrf.mxu1  ;;  %v6467_v0 = vsel %vm11371_vm8, %v6465_v15, %v16864_v43  ;;  %6298 = vst [vmem:[#allocation4 + $0x478] sm:$0xf] %v6212_v17  ;;  %v9870_v4 = vor.u32 %v10621_v49, %v9869_v39  ;;  %v10617_v17 = vld [vmem:[#allocation4 + $0x29c] sm:$0xf]  ;;  %v9905_v39 = vld [vmem:[#allocation4 + $0x2e0] sm:$0xf] }
 0x56e   : > { %6539 = vst [vmem:[#allocation4 + $0x47c] sm:$0xf] %v6467_v0  ;;  %v10635_v6 = vld [vmem:[#allocation4 + $0x32c] sm:$0xf] }
 0x56f   : > { %v8239_v60 = vpop.f32.mrf.mxu2  ;;  %8831 = vmatpush.bf16.msra.mxu1 %v10753_v40  ;;  %v10591_v20 = vld [vmem:[#allocation4 + $0x1cc] sm:$0xf] }
 0x570   : > { %v16115_v11 = vadd.f32 %v8239_v60, %v8146_v29 }
 0x572   : > { %8498 = vmatmul.bf16.gmra.mxu1 %v9834_v35  ;;  %v16137_v35 = vpop.f32.mrf.mxu0 }
 0x573   : > { %v8259_v47 = vpop.f32.mrf.mxu3  ;;  %17199 = vst [vmem:[#allocation36_spill] sm:$0xff] %v16137_v35  ;;  %v9735_v35 = vld [vmem:[#allocation4 + $0x1a4] sm:$0xf0] }
 0x574   : > { %v16133_v16 = vadd.f32 %v8259_v47, %v8166_v13  ;;  %v9699_v13 = vld [vmem:[#allocation4 + $0x15c] sm:$0xf0] }
 0x575   : > { %v16131_v15 = vpop.f32.mrf.mxu1 }
 0x576   : > { %8592 = vmatmul.bf16.gmra.mxu2 %v9838_v53  ;;  %v9871_v53 = vld [vmem:[#allocation4 + $0x2bc] sm:$0xf0] }
 0x577   : > { %v16135_v29 = vpop.f32.mrf.mxu2  ;;  %v9874_v22 = vor.u32 %v10617_v17, %v9871_v53  ;;  %v17204_v17 = vld [vmem:[#allocation34_spill] sm:$0xff] }
 0x578   : > { %8755 = vmatmul.bf16.gmra.mxu0 %v9666_v27  ;;  %v10573_v27 = vld [vmem:[#allocation4 + $0x13c] sm:$0xf] }
 0x579   : > { %v9702_v47 = vor.u32 %v10573_v27, %v9699_v13 }
 0x57a   : > { %v16149_v45 = vpop.f32.mrf.mxu0 }
 0x57b   : > { %8310 = vmatmul.bf16.gmra.mxu3 %v9826_v3  ;;  %v8271_v60 = vpop.f32.mrf.mxu3  ;;  %17201 = vst [vmem:[#allocation17_spill] sm:$0xff] %v16149_v45  ;;  %v10626_v45 = vld [vmem:[#allocation4 + $0x2e4] sm:$0xf] }
 0x57c   : > { %v16145_v19 = vadd.f32 %v8271_v60, %v17200_v24  ;;  %v9862_v60 = vor.u32 %v10620_v34, %v9861_v30  ;;  %v10630_v24 = vld [vmem:[#allocation4 + $0x300] sm:$0xf0] }
 0x57d   : > { %v16142_v1 = vpop.f32.mrf.mxu1  ;;  %v10582_v34 = vld [vmem:[#allocation4 + $0x184] sm:$0xf] }
 0x57e   : > { %v9738_v30 = vor.u32 %v10582_v34, %v9735_v35 }
 0x57f   : > { %v16147_v0 = vpop.f32.mrf.mxu2 }
 0x582   : > { %8503 = vmatmul.bf16.gmra.mxu1 %v9870_v4  ;;  %v16157_v4 = vpop.f32.mrf.mxu0 }
 0x583   : > { %v16151_v42 = vpop.f32.mrf.mxu3  ;;  %17202 = vst [vmem:[#allocation46_spill] sm:$0xff] %v16157_v4  ;;  %v10629_v4 = vld [vmem:[#allocation4 + $0x2f8] sm:$0xf0] }
 0x585   : > { %v16153_v3 = vpop.f32.mrf.mxu1 }
 0x586   : > { %8597 = vmatmul.bf16.gmra.mxu2 %v9874_v22  ;;  %v9906_v22 = vor.u32 %v10630_v24, %v9905_v39  ;;  %v9897_v24 = vld [vmem:[#allocation4 + $0x2d8] sm:$0xf] }
 0x587   : > { %v16155_v49 = vpop.f32.mrf.mxu2 }
 0x588   : > { %8760 = vmatmul.bf16.gmra.mxu0 %v9702_v47  ;;  %v9907_v47 = vld [vmem:[#allocation4 + $0x304] sm:$0xf0] }
 0x589   : > { %v9910_v44 = vor.u32 %v10626_v45, %v9907_v47  ;;  %v9898_v45 = vor.u32 %v10629_v4, %v9897_v24  ;;  %v10639_v47 = vld [vmem:[#allocation4 + $0x348] sm:$0xf0]  ;;  %v9943_v4 = vld [vmem:[#allocation4 + $0x34c] sm:$0xf0] }
 0x58a   : > { %v16173_v39 = vpop.f32.mrf.mxu0  ;;  %v9771_v24 = vld [vmem:[#allocation4 + $0x1ec] sm:$0xf0] }
 0x58b   : > { %8315 = vmatmul.bf16.gmra.mxu3 %v9862_v60  ;;  %17206 = vst [vmem:[#allocation55_spill] sm:$0xff] %v16173_v39 }
 0x58e   : > { %v8276_v43 = vpop.f32.mrf.mxu3 }
 0x58f   : > { %v16159_v53 = vpop.f32.mrf.mxu1  ;;  %v16162_v13 = vadd.f32 %v8276_v43, %v17204_v17  ;;  %v16164_v27 = vpop.f32.mrf.mxu2 }
 0x590   : > { %17203 = vst [vmem:[#allocation53_spill] sm:$0xff] %v16159_v53 }
 0x592   : > { %8508 = vmatmul.bf16.gmra.mxu1 %v9906_v22  ;;  %v16187_v26 = vpop.f32.mrf.mxu0 }
 0x593   : > { %17210 = vst [vmem:[#allocation31_spill] sm:$0xff] %v16187_v26 }
 0x596   : > { %8602 = vmatmul.bf16.gmra.mxu2 %v9910_v44  ;;  %v16166_v60 = vpop.f32.mrf.mxu3  ;;  %v9941_v44 = vld [vmem:[#allocation4 + $0x328] sm:$0xf] }
 0x597   : > { %v16171_v43 = vpop.f32.mrf.mxu1  ;;  %v9942_v39 = vor.u32 %v10639_v47, %v9941_v44 }
 0x598   : > { %17205 = vst [vmem:[#allocation69_spill] sm:$0xff] %v16171_v43  ;;  %8765 = vmatmul.bf16.gmra.mxu0 %v9738_v30  ;;  %v10638_v43 = vld [vmem:[#allocation4 + $0x340] sm:$0xf0] }
 0x599   : > { %v16175_v17 = vpop.f32.mrf.mxu2 }
 0x59a   : > { %17207 = vst [vmem:[#allocation70_spill] sm:$0xff] %v16175_v17  ;;  %v16195_v40 = vpop.f32.mrf.mxu0 }
 0x59b   : > { %8320 = vmatmul.bf16.gmra.mxu3 %v9898_v45  ;;  %v9946_v45 = vor.u32 %v10635_v6, %v9943_v4  ;;  %17213 = vst [vmem:[#allocation39_spill] sm:$0xff] %v16195_v40  ;;  %v9977_v6 = vld [vmem:[#allocation4 + $0x370] sm:$0xf] }
 0x59e   : > { %v8281_v35 = vpop.f32.mrf.mxu3 }
 0x59f   : > { %v16177_v22 = vpop.f32.mrf.mxu1  ;;  %v16180_v34 = vadd.f32 %v8281_v35, %v15159_v8  ;;  %v9933_v35 = vld [vmem:[#allocation4 + $0x320] sm:$0xf] }
 0x5a0   : > { %17208 = vst [vmem:[#allocation76_spill] sm:$0xff] %v16177_v22  ;;  %v9774_v22 = vor.u32 %v10591_v20, %v9771_v24  ;;  %v9934_v47 = vor.u32 %v10638_v43, %v9933_v35  ;;  %v10600_v43 = vld [vmem:[#allocation4 + $0x214] sm:$0xf] }
 0x5a1   : > { %v16185_v30 = vpop.f32.mrf.mxu2 }
 0x5a2   : > { %17209 = vst [vmem:[#allocation78_spill] sm:$0xff] %v16185_v30  ;;  %8513 = vmatmul.bf16.gmra.mxu1 %v9942_v39  ;;  %v10648_v39 = vld [vmem:[#allocation4 + $0x390] sm:$0xf0]  ;;  %v16204_v35 = vpop.f32.mrf.mxu0 }
 0x5a3   : > { %v9978_v4 = vor.u32 %v10648_v39, %v9977_v6  ;;  %17216 = vst [vmem:[#allocation50_spill] sm:$0xff] %v16204_v35 }
 0x5a6   : > { %8607 = vmatmul.bf16.gmra.mxu2 %v9946_v45  ;;  %v16189_v8 = vpop.f32.mrf.mxu3  ;;  %v9979_v45 = vld [vmem:[#allocation4 + $0x394] sm:$0xf0] }
 0x5a7   : > { %v16191_v17 = vpop.f32.mrf.mxu1 }
 0x5a8   : > { %17211 = vst [vmem:[#allocation26_spill] sm:$0xff] %v16191_v17  ;;  %8770 = vmatmul.bf16.gmra.mxu0 %v9774_v22  ;;  %v10644_v22 = vld [vmem:[#allocation4 + $0x374] sm:$0xf]  ;;  %v9807_v17 = vld [vmem:[#allocation4 + $0x234] sm:$0xf0] }
 0x5a9   : > { %v16193_v44 = vpop.f32.mrf.mxu2 }
 0x5aa   : > { %17212 = vst [vmem:[#allocation32_spill] sm:$0xff] %v16193_v44  ;;  %v9982_v44 = vor.u32 %v10644_v22, %v9979_v45 }
 0x5ab   : > { %8325 = vmatmul.bf16.gmra.mxu3 %v9934_v47  ;;  %v9810_v47 = vor.u32 %v10600_v43, %v9807_v17  ;;  %v10013_v17 = vld [vmem:[#allocation4 + $0x3b8] sm:$0xf]  ;;  %v16220_v43 = vpop.f32.mrf.mxu0 }
 0x5ac   : > { %17220 = vst [vmem:[#allocation77_spill] sm:$0xff] %v16220_v43 }
 0x5ae   : > { %v8286_v26 = vpop.f32.mrf.mxu3 }
 0x5af   : > { %v16197_v30 = vpop.f32.mrf.mxu1  ;;  %v16200_v20 = vadd.f32 %v8286_v26, %v15291_v56  ;;  %v10647_v56 = vld [vmem:[#allocation4 + $0x388] sm:$0xf0]  ;;  %v10736_v26 = vld [vmem:[%s16782_s3 + $0x188] sm:$0xff] }
 0x5b0   : > { %17214 = vst [vmem:[#allocation48_spill] sm:$0xff] %v16197_v30  ;;  %v9969_v30 = vld [vmem:[#allocation4 + $0x368] sm:$0xf]  ;;  %8644 = vmatpush.bf16.msra.mxu3 %v10736_v26  ;;  %v9843_v26 = vld [vmem:[#allocation4 + $0x27c] sm:$0xf0] }
 0x5b1   : > { %v16202_v24 = vpop.f32.mrf.mxu2  ;;  %v9970_v6 = vor.u32 %v10647_v56, %v9969_v30  ;;  %v10752_v30 = vld [vmem:[%s16782_s3 + $0x208] sm:$0xff]  ;;  %v10653_v56 = vld [vmem:[#allocation4 + $0x3bc] sm:$0xf] }
 0x5b2   : > { %17215 = vst [vmem:[#allocation40_spill] sm:$0xff] %v16202_v24  ;;  %8518 = vmatmul.bf16.gmra.mxu1 %v9978_v4  ;;  %v10657_v4 = vld [vmem:[#allocation4 + $0x3d8] sm:$0xf0] }
 0x5b3   : > { %8832 = vmatpush.bf16.msra.mxu1 %v10752_v30 }
 0x5b6   : > { %8612 = vmatmul.bf16.gmra.mxu2 %v9982_v44  ;;  %v16206_v40 = vpop.f32.mrf.mxu3 }
 0x5b7   : > { %v16208_v53 = vpop.f32.mrf.mxu1 }
 0x5b8   : > { %17217 = vst [vmem:[#allocation58_spill] sm:$0xff] %v16208_v53  ;;  %8775 = vmatmul.bf16.gmra.mxu0 %v9810_v47  ;;  %v10014_v47 = vor.u32 %v10657_v4, %v10013_v17  ;;  %v10015_v53 = vld [vmem:[#allocation4 + $0x3dc] sm:$0xf0]  ;;  %v10005_v17 = vld [vmem:[#allocation4 + $0x3b0] sm:$0xf] }
 0x5b9   : > { %v16213_v39 = vpop.f32.mrf.mxu2 }
 0x5ba   : > { %17218 = vst [vmem:[#allocation71_spill] sm:$0xff] %v16213_v39 }
 0x5bb   : > { %8330 = vmatmul.bf16.gmra.mxu3 %v9970_v6  ;;  %v10018_v6 = vor.u32 %v10653_v56, %v10015_v53  ;;  %v10666_v53 = vld [vmem:[#allocation4 + $0x420] sm:$0xf0] }
 0x5be   : > { %v8291_v45 = vpop.f32.mrf.mxu3 }
 0x5bf   : > { %v16215_v44 = vpop.f32.mrf.mxu1  ;;  %v16218_v22 = vadd.f32 %v8291_v45, %v15619_v54  ;;  %v10656_v45 = vld [vmem:[#allocation4 + $0x3d0] sm:$0xf0] }
 0x5c0   : > { %17219 = vst [vmem:[#allocation59_spill] sm:$0xff] %v16215_v44  ;;  %v10609_v44 = vld [vmem:[#allocation4 + $0x25c] sm:$0xf]  ;;  %v10006_v43 = vor.u32 %v10656_v45, %v10005_v17 }
 0x5c1   : > { %v16222_v35 = vpop.f32.mrf.mxu2  ;;  %v9846_v39 = vor.u32 %v10609_v44, %v9843_v26  ;;  %v10049_v44 = vld [vmem:[#allocation4 + $0x400] sm:$0xf] }
 0x5c2   : > { %17221 = vst [vmem:[#allocation79_spill] sm:$0xff] %v16222_v35  ;;  %8523 = vmatmul.bf16.gmra.mxu1 %v10014_v47  ;;  %v16234_v35 = vpop.f32.mrf.mxu0 }
 0x5c3   : > { %17225 = vst [vmem:[#allocation74_spill] sm:$0xff] %v16234_v35 }
 0x5c6   : > { %8617 = vmatmul.bf16.gmra.mxu2 %v10018_v6  ;;  %v8293_v54 = vpop.f32.mrf.mxu3  ;;  %v10050_v6 = vor.u32 %v10666_v53, %v10049_v44  ;;  %v10041_v53 = vld [vmem:[#allocation4 + $0x3f8] sm:$0xf] }
 0x5c7   : > { %v16227_v24 = vpop.f32.mrf.mxu1  ;;  %v16230_v4 = vadd.f32 %v8293_v54, %v15663_v59  ;;  %v10051_v59 = vld [vmem:[#allocation4 + $0x424] sm:$0xf0]  ;;  %v10618_v54 = vld [vmem:[#allocation4 + $0x2a4] sm:$0xf] }
 0x5c8   : > { %17222 = vst [vmem:[#allocation87_spill] sm:$0xff] %v16227_v24  ;;  %8780 = vmatmul.bf16.gmra.mxu0 %v9846_v39  ;;  %v10662_v39 = vld [vmem:[#allocation4 + $0x404] sm:$0xf] }
 0x5c9   : > { %17223 = vst [vmem:[#allocation33_spill] sm:$0xff] %v16230_v4  ;;  %v16232_v47 = vpop.f32.mrf.mxu2  ;;  %v10054_v17 = vor.u32 %v10662_v39, %v10051_v59  ;;  %v10665_v4 = vld [vmem:[#allocation4 + $0x418] sm:$0xf0]  ;;  %v10675_v59 = vld [vmem:[#allocation4 + $0x468] sm:$0xf0] }
 0x5ca   : > { %17224 = vst [vmem:[#allocation64_spill] sm:$0xff] %v16232_v47  ;;  %v9879_v47 = vld [vmem:[#allocation4 + $0x2c4] sm:$0xf0]  ;;  %v16243_v45 = vpop.f32.mrf.mxu0  ;;  %v10042_v44 = vor.u32 %v10665_v4, %v10041_v53  ;;  %v10087_v53 = vld [vmem:[#allocation4 + $0x46c] sm:$0xf0] }
 0x5cb   : > { %8335 = vmatmul.bf16.gmra.mxu3 %v10006_v43  ;;  %17228 = vst [vmem:[#allocation85_spill] sm:$0xff] %v16243_v45  ;;  %v9882_v43 = vor.u32 %v10618_v54, %v9879_v47  ;;  %v9915_v45 = vld [vmem:[#allocation4 + $0x30c] sm:$0xf0] }
 0x5ce   : > { %v8296_v30 = vpop.f32.mrf.mxu3 }
 0x5cf   : > { %v16236_v56 = vpop.f32.mrf.mxu1  ;;  %v16239_v26 = vadd.f32 %v8296_v30, %v15721_v61 }
 0x5d0   : > { %17226 = vst [vmem:[#allocation84_spill] sm:$0xff] %v16236_v56 }
 0x5d1   : > { %v16241_v24 = vpop.f32.mrf.mxu2 }
 0x5d2   : > { %17227 = vst [vmem:[#allocation75_spill] sm:$0xff] %v16241_v24  ;;  %8528 = vmatmul.bf16.gmra.mxu1 %v10050_v6  ;;  %v10735_v6 = vld [vmem:[%s16782_s3 + $0x180] sm:$0xff]  ;;  %v16255_v47 = vpop.f32.mrf.mxu0 }
 0x5d3   : > { %8645 = vmatpush.bf16.msra.mxu3 %v10735_v6  ;;  %17231 = vst [vmem:[#allocation60_spill] sm:$0xff] %v16255_v47  ;;  %v10627_v6 = vld [vmem:[#allocation4 + $0x2ec] sm:$0xf] }
 0x5d6   : > { %8622 = vmatmul.bf16.gmra.mxu2 %v10054_v17  ;;  %v8298_v35 = vpop.f32.mrf.mxu3  ;;  %v10085_v17 = vld [vmem:[#allocation4 + $0x448] sm:$0xf] }
 0x5d7   : > { %v16245_v56 = vpop.f32.mrf.mxu1  ;;  %v16248_v61 = vadd.f32 %v8298_v35, %v15766_v9  ;;  %v10751_v35 = vld [vmem:[%s16782_s3 + $0x200] sm:$0xff]  ;;  %v10086_v4 = vor.u32 %v10675_v59, %v10085_v17  ;;  %v10077_v59 = vld [vmem:[#allocation4 + $0x440] sm:$0xf] }
 0x5d8   : > { %17229 = vst [vmem:[#allocation93_spill] sm:$0xff] %v16245_v56  ;;  %8785 = vmatmul.bf16.gmra.mxu0 %v9882_v43  ;;  %8833 = vmatpush.bf16.msra.mxu1 %v10751_v35 }
 0x5d9   : > { %v16250_v30 = vpop.f32.mrf.mxu2 }
 0x5da   : > { %17230 = vst [vmem:[#allocation13_spill] sm:$0xff] %v16250_v30  ;;  %v10674_v30 = vld [vmem:[#allocation4 + $0x460] sm:$0xf0]  ;;  %v16272_v24 = vpop.f32.mrf.mxu0 }
 0x5db   : > { %8340 = vmatmul.bf16.gmra.mxu3 %v10042_v44  ;;  %v10671_v44 = vld [vmem:[#allocation4 + $0x44c] sm:$0xf]  ;;  %17235 = vst [vmem:[#allocation65_spill] sm:$0xff] %v16272_v24  ;;  %v10078_v35 = vor.u32 %v10674_v30, %v10077_v59  ;;  %v9951_v24 = vld [vmem:[#allocation4 + $0x354] sm:$0xf0] }
 0x5dc   : > { %v10090_v47 = vor.u32 %v10671_v44, %v10087_v53  ;;  %v10636_v30 = vld [vmem:[#allocation4 + $0x334] sm:$0xf] }
 0x5dd   : > { %v9954_v59 = vor.u32 %v10636_v30, %v9951_v24  ;;  %v9561_v24 = vld [vmem:[#allocation4 + $0x20] sm:$0xf] }
 0x5de   : > { %v8301_v39 = vpop.f32.mrf.mxu3 }
 0x5df   : > { %v16257_v54 = vpop.f32.mrf.mxu1  ;;  %v16260_v9 = vadd.f32 %v8301_v39, %v15821_v38 }
 0x5e0   : > { %17232 = vst [vmem:[#allocation80_spill] sm:$0xff] %v16257_v54  ;;  %v9918_v54 = vor.u32 %v10627_v6, %v9915_v45  ;;  %v10121_v45 = vld [vmem:[#allocation4 + $0x490] sm:$0xf] }
 0x5e1   : > { %v16265_v43 = vpop.f32.mrf.mxu2 }
 0x5e2   : > { %17233 = vst [vmem:[#allocation94_spill] sm:$0xff] %v16265_v43  ;;  %8533 = vmatmul.bf16.gmra.mxu1 %v10086_v4  ;;  %v10684_v4 = vld [vmem:[#allocation4 + $0x4b0] sm:$0xf0]  ;;  %v10683_v43 = vld [vmem:[#allocation4 + $0x4a8] sm:$0xf0] }
 0x5e3   : > { %v10122_v6 = vor.u32 %v10684_v4, %v10121_v45  ;;  %v10113_v4 = vld [vmem:[#allocation4 + $0x488] sm:$0xf] }
 0x5e4   : > { %v10114_v45 = vor.u32 %v10683_v43, %v10113_v4 }
 0x5e6   : > { %8627 = vmatmul.bf16.gmra.mxu2 %v10090_v47  ;;  %v8303_v56 = vpop.f32.mrf.mxu3 }
 0x5e7   : > { %v16267_v38 = vpop.f32.mrf.mxu1  ;;  %v16270_v39 = vadd.f32 %v8303_v56, %v15875_v21  ;;  %v10123_v21 = vld [vmem:[#allocation4 + $0x4b4] sm:$0xf0]  ;;  %v16283_v56 = vpop.f32.mrf.mxu0 }
 0x5e8   : > { %17234 = vst [vmem:[#allocation86_spill] sm:$0xff] %v16267_v38  ;;  %8790 = vmatmul.bf16.gmra.mxu0 %v9918_v54  ;;  %v10680_v54 = vld [vmem:[#allocation4 + $0x494] sm:$0xf] }
 0x5e9   : > { %v16274_v17 = vpop.f32.mrf.mxu2 }
 0x5ea   : > { %17236 = vst [vmem:[#allocation66_spill] sm:$0xff] %v16274_v17  ;;  %v10126_v17 = vor.u32 %v10680_v54, %v10123_v21  ;;  %v10542_v21 = vld [vmem:[#allocation4 + $0x40] sm:$0xf0] }
 0x5eb   : > { %8345 = vmatmul.bf16.gmra.mxu3 %v10078_v35 }
 0x5ee   : > { %v8306_v53 = vpop.f32.mrf.mxu3 }
 0x5ef   : > { %v16276_v44 = vpop.f32.mrf.mxu1  ;;  %v16279_v47 = vadd.f32 %v8306_v53, %v15921_v48 }
 0x5f0   : > { %17237 = vst [vmem:[#allocation63_spill] sm:$0xff] %v16276_v44 }
 0x5f1   : > { %v16281_v38 = vpop.f32.mrf.mxu2 }
 0x5f2   : > { %17238 = vst [vmem:[#allocation72_spill] sm:$0xff] %v16281_v38  ;;  %8538 = vmatmul.bf16.gmra.mxu1 %v10122_v6  ;;  %v16292_v6 = vpop.f32.mrf.mxu0 }
 0x5f6   : > { %8632 = vmatmul.bf16.gmra.mxu2 %v10126_v17  ;;  %v8308_v35 = vpop.f32.mrf.mxu3 }
 0x5f7   : > { %v16285_v44 = vpop.f32.mrf.mxu1  ;;  %v16288_v48 = vadd.f32 %v8308_v35, %v15947_v41  ;;  %v10759_v41 = vld [vmem:[%s11289_s12 + $0xc] sm:$0xff]  ;;  %v10645_v35 = vld [vmem:[#allocation4 + $0x37c] sm:$0xf] }
 0x5f8   : > { %17239 = vst [vmem:[#allocation73_spill] sm:$0xff] %v16285_v44  ;;  %8795 = vmatmul.bf16.gmra.mxu0 %v9954_v59  ;;  %v9562_v44 = vor.u32 %v10542_v21, %v9561_v24  ;;  %v9987_v59 = vld [vmem:[#allocation4 + $0x39c] sm:$0xf0] }
 0x5f9   : > { %17240 = vst [vmem:[#allocation91_spill] sm:$0xff] %v16288_v48  ;;  %v16290_v53 = vpop.f32.mrf.mxu2  ;;  %v9990_v4 = vor.u32 %v10645_v35, %v9987_v59  ;;  %v9597_v59 = vld [vmem:[#allocation4 + $0x68] sm:$0xf] }
 0x5fa   : > { %17241 = vst [vmem:[#allocation92_spill] sm:$0xff] %v16290_v53  ;;  %v16302_v43 = vpop.f32.mrf.mxu0  ;;  %v9553_v53 = vld [vmem:[#allocation4 + $0x18] sm:$0xf] }
 0x5fb   : > { %8350 = vmatmul.bf16.gmra.mxu3 %v10114_v45 }
 0x5fe   : > { %v8311_v54 = vpop.f32.mrf.mxu3 }
 0x5ff   : > { %v16294_v17 = vpop.f32.mrf.mxu1  ;;  %v16297_v30 = vadd.f32 %v8311_v54, %v15970_v25  ;;  %v10551_v54 = vld [vmem:[#allocation4 + $0x88] sm:$0xf0] }
 0x600   : > { %17242 = vst [vmem:[#allocation68_spill] sm:$0xff] %v16294_v17  ;;  %v10541_v17 = vld [vmem:[#allocation4 + $0x38] sm:$0xf0] }
 0x601   : > { %17243 = vst [vmem:[#allocation95_spill] sm:$0xff] %v16297_v30  ;;  %v16299_v38 = vpop.f32.mrf.mxu2  ;;  %v9554_v21 = vor.u32 %v10541_v17, %v9553_v53  ;;  %v9598_v30 = vor.u32 %v10551_v54, %v9597_v59  ;;  %v10550_v17 = vld [vmem:[#allocation4 + $0x80] sm:$0xf0] }
 0x602   : > { %17244 = vst [vmem:[#allocation29_spill] sm:$0xff] %v16299_v38  ;;  %8834 = vmatmul.bf16.vlgmr.msra.gmra.mxu1 %v9562_v44  ;;  %v16317_v35 = vpop.f32.mrf.mxu0 }
 0x606   : > { %v8313_v45 = vpop.f32.mrf.mxu3  ;;  %10495 = vmatmul.msk.bf16.vlgmr.msra.gmra.mxu2 %vm9044_vm2, %v10759_v41 }
 0x607   : > { %v16305_v48 = vpop.f32.mrf.mxu1  ;;  %v16308_v25 = vadd.f32 %v8313_v45, %v15983_v62  ;;  %v10760_v62 = vld [vmem:[%s11289_s12 + $0x14] sm:$0xff]  ;;  %v10654_v45 = vld [vmem:[#allocation4 + $0x3c4] sm:$0xf] }
 0x608   : > { %17245 = vst [vmem:[#allocation24_spill] sm:$0xff] %v16305_v48  ;;  %8800 = vmatmul.bf16.gmra.mxu0 %v9990_v4  ;;  %v10023_v4 = vld [vmem:[#allocation4 + $0x3e4] sm:$0xf0] }
 0x609   : > { %v16310_v44 = vpop.f32.mrf.mxu2 }
 0x60a   : > { %17246 = vst [vmem:[#allocation30_spill] sm:$0xff] %v16310_v44  ;;  %v10026_v44 = vor.u32 %v10654_v45, %v10023_v4  ;;  %v10560_v4 = vld [vmem:[#allocation4 + $0xd0] sm:$0xf0] }
 0x60b   : > { %8646 = vmatmul.bf16.vlgmr.msra.gmra.mxu3 %v9554_v21 }
 0x60e   : > { %v8316_v24 = vpop.f32.mrf.mxu3 }
 0x60f   : > { %v16312_v38 = vpop.f32.mrf.mxu1  ;;  %v16315_v41 = vadd.f32 %v8316_v24, %v16000_v37  ;;  %v9589_v24 = vld [vmem:[#allocation4 + $0x60] sm:$0xf] }
 0x610   : > { %17247 = vst [vmem:[#allocation37_spill] sm:$0xff] %v16312_v38  ;;  %v9590_v59 = vor.u32 %v10550_v17, %v9589_v24  ;;  %v9633_v38 = vld [vmem:[#allocation4 + $0xb0] sm:$0xf]  ;;  %v10663_v17 = vld [vmem:[#allocation4 + $0x40c] sm:$0xf] }
 0x611   : > { %17248 = vst [vmem:[#allocation43_spill] sm:$0xff] %v16315_v41  ;;  %v16319_v48 = vpop.f32.mrf.mxu2 }
 0x612   : > { %17249 = vst [vmem:[#allocation38_spill] sm:$0xff] %v16319_v48  ;;  %8839 = vmatmul.bf16.gmra.mxu1 %v9598_v30  ;;  %v16330_v30 = vpop.f32.mrf.mxu0 }
 0x616   : > { %v8318_v53 = vpop.f32.mrf.mxu3  ;;  %10496 = vmatmul.msk.bf16.gmra.mxu2 %vm9044_vm2, %v10760_v62 }
 0x617   : > { %v16323_v21 = vpop.f32.mrf.mxu1  ;;  %v16326_v37 = vadd.f32 %v8318_v53, %v16024_v32  ;;  %v10761_v32 = vld [vmem:[%s11289_s12 + $0x1c] sm:$0xff] }
 0x618   : > { %17250 = vst [vmem:[#allocation44_spill] sm:$0xff] %v16323_v21  ;;  %8805 = vmatmul.bf16.gmra.mxu0 %v10026_v44  ;;  %v9634_v21 = vor.u32 %v10560_v4, %v9633_v38  ;;  %v10059_v44 = vld [vmem:[#allocation4 + $0x42c] sm:$0xf0]  ;;  %v10569_v4 = vld [vmem:[#allocation4 + $0x118] sm:$0xf0] }
 0x619   : > { %17251 = vst [vmem:[#allocation54_spill] sm:$0xff] %v16326_v37  ;;  %v16328_v54 = vpop.f32.mrf.mxu2  ;;  %v10062_v24 = vor.u32 %v10663_v17, %v10059_v44  ;;  %v10559_v37 = vld [vmem:[#allocation4 + $0xc8] sm:$0xf0] }
 0x61a   : > { %17252 = vst [vmem:[#allocation56_spill] sm:$0xff] %v16328_v54  ;;  %v16340_v53 = vpop.f32.mrf.mxu0 }
 0x61b   : > { %8651 = vmatmul.bf16.gmra.mxu3 %v9590_v59  ;;  %v9625_v59 = vld [vmem:[#allocation4 + $0xa8] sm:$0xf] }
 0x61e   : > { %v8321_v45 = vpop.f32.mrf.mxu3 }
 0x61f   : > { %v16332_v48 = vpop.f32.mrf.mxu1  ;;  %v16335_v62 = vadd.f32 %v8321_v45, %v16039_v2 }
 0x620   : > { %17253 = vst [vmem:[#allocation67_spill] sm:$0xff] %v16332_v48 }
 0x621   : > { %17254 = vst [vmem:[#allocation34_spill] sm:$0xff] %v16335_v62  ;;  %v16337_v41 = vpop.f32.mrf.mxu2 }
 0x622   : > { %17255 = vst [vmem:[#allocation96_spill] sm:$0xff] %v16337_v41  ;;  %8844 = vmatmul.bf16.gmra.mxu1 %v9634_v21  ;;  %v9626_v21 = vor.u32 %v10559_v37, %v9625_v59  ;;  %v16350_v45 = vpop.f32.mrf.mxu0  ;;  %v10568_v59 = vld [vmem:[#allocation4 + $0x110] sm:$0xf0] }
 0x626   : > { %v8323_v54 = vpop.f32.mrf.mxu3  ;;  %10497 = vmatmul.msk.bf16.gmra.mxu2 %vm9044_vm2, %v10761_v32  ;;  %v9669_v32 = vld [vmem:[#allocation4 + $0xf8] sm:$0xf] }
 0x627   : > { %v16343_v48 = vpop.f32.mrf.mxu1  ;;  %v16346_v2 = vadd.f32 %v8323_v54, %v16054_v5  ;;  %v9670_v62 = vor.u32 %v10569_v4, %v9669_v32  ;;  %v10762_v5 = vld [vmem:[%s11289_s12 + $0x24] sm:$0xff]  ;;  %v10095_v54 = vld [vmem:[#allocation4 + $0x474] sm:$0xf0]  ;;  %v9661_v4 = vld [vmem:[#allocation4 + $0xf0] sm:$0xf] }
 0x628   : > { %17256 = vst [vmem:[#allocation97_spill] sm:$0xff] %v16343_v48  ;;  %8810 = vmatmul.bf16.gmra.mxu0 %v10062_v24  ;;  %v10672_v24 = vld [vmem:[#allocation4 + $0x454] sm:$0xf]  ;;  %v10578_v32 = vld [vmem:[#allocation4 + $0x160] sm:$0xf0] }
 0x629   : > { %v16348_v38 = vpop.f32.mrf.mxu2 }
 0x62a   : > { %17257 = vst [vmem:[#allocation98_spill] sm:$0xff] %v16348_v38  ;;  %v10098_v38 = vor.u32 %v10672_v24, %v10095_v54 }
 0x62b   : > { %8656 = vmatmul.bf16.gmra.mxu3 %v9626_v21 }
 0x62e   : > { %v8326_v44 = vpop.f32.mrf.mxu3 }
 0x62f   : > { %v16352_v17 = vpop.f32.mrf.mxu1  ;;  %v16355_v41 = vadd.f32 %v8326_v44, %v16065_v58  ;;  %v16366_v58 = vpop.f32.mrf.mxu0 }
 0x630   : > { %17258 = vst [vmem:[#allocation99_spill] sm:$0xff] %v16352_v17 }
 0x631   : > { %17259 = vst [vmem:[#allocation100_spill] sm:$0xff] %v16355_v41  ;;  %v16357_v48 = vpop.f32.mrf.mxu2 }
 0x632   : > { %17260 = vst [vmem:[#allocation101_spill] sm:$0xff] %v16357_v48  ;;  %8849 = vmatmul.bf16.gmra.mxu1 %v9670_v62  ;;  %v9662_v62 = vor.u32 %v10568_v59, %v9661_v4 }
 0x636   : > { %v8328_v37 = vpop.f32.mrf.mxu3  ;;  %10498 = vmatmul.msk.bf16.gmra.mxu2 %vm9044_vm2, %v10762_v5  ;;  %v9705_v5 = vld [vmem:[#allocation4 + $0x140] sm:$0xf] }
 0x637   : > { %v16361_v21 = vpop.f32.mrf.mxu1  ;;  %v16364_v17 = vadd.f32 %v8328_v37, %v16080_v52  ;;  %v10763_v52 = vld [vmem:[%s11289_s12 + $0x2c] sm:$0xff] }
 0x638   : > { %17261 = vst [vmem:[#allocation102_spill] sm:$0xff] %v16361_v21  ;;  %8815 = vmatmul.bf16.gmra.mxu0 %v10098_v38  ;;  %v9706_v21 = vor.u32 %v10578_v32, %v9705_v5  ;;  %v10577_v38 = vld [vmem:[#allocation4 + $0x158] sm:$0xf0]  ;;  %v10587_v32 = vld [vmem:[#allocation4 + $0x1a8] sm:$0xf0] }
 0x639   : > { %v16368_v44 = vpop.f32.mrf.mxu2 }
 0x63a   : > { %17262 = vst [vmem:[#allocation103_spill] sm:$0xff] %v16368_v44 }
 0x63b   : > { %8661 = vmatmul.bf16.gmra.mxu3 %v9662_v62  ;;  %v9697_v62 = vld [vmem:[#allocation4 + $0x138] sm:$0xf] }
 0x63e   : > { %v8331_v54 = vpop.f32.mrf.mxu3 }
 0x63f   : > { %v16370_v24 = vpop.f32.mrf.mxu1  ;;  %v16373_v48 = vadd.f32 %v8331_v54, %v16093_v33  ;;  %v9698_v33 = vor.u32 %v10577_v38, %v9697_v62  ;;  %v10586_v62 = vld [vmem:[#allocation4 + $0x1a0] sm:$0xf0] }
 0x640   : > { %17263 = vst [vmem:[#allocation104_spill] sm:$0xff] %v16370_v24 }
 0x641   : > { %v16375_v41 = vpop.f32.mrf.mxu2 }
 0x642   : > { %17264 = vst [vmem:[#allocation105_spill] sm:$0xff] %v16375_v41  ;;  %8854 = vmatmul.bf16.gmra.mxu1 %v9706_v21  ;;  %v9741_v21 = vld [vmem:[#allocation4 + $0x188] sm:$0xf] }
 0x646   : > { %v8333_v37 = vpop.f32.mrf.mxu3  ;;  %10499 = vmatmul.msk.bf16.gmra.mxu2 %vm9044_vm2, %v10763_v52  ;;  %v9742_v52 = vor.u32 %v10587_v32, %v9741_v21  ;;  %v10596_v21 = vld [vmem:[#allocation4 + $0x1f0] sm:$0xf0] }
 0x647   : > { %v16379_v59 = vpop.f32.mrf.mxu1  ;;  %v16382_v4 = vadd.f32 %v8333_v37, %v16115_v11  ;;  %v8151_v11 = vadd.f32 %v16048_v57, %v15764_v51  ;;  %v9777_v51 = vld [vmem:[#allocation4 + $0x1d0] sm:$0xf] }
 0x648   : > { %17265 = vst [vmem:[#allocation106_spill] sm:$0xff] %v16379_v59  ;;  %v10764_v59 = vld [vmem:[%s11289_s12 + $0x34] sm:$0xff]  ;;  %v9778_v57 = vor.u32 %v10596_v21, %v9777_v51 }
 0x649   : > { %v16384_v24 = vpop.f32.mrf.mxu2  ;;  %v8245_v37 = vadd.f32 %v16033_v14, %v8151_v11  ;;  %v10765_v11 = vld [vmem:[%s11289_s12 + $0x3c] sm:$0xff] }
 0x64b   : > { %8666 = vmatmul.bf16.gmra.mxu3 %v9698_v33 }
 0x64e   : > { %v8336_v54 = vpop.f32.mrf.mxu3 }
 0x64f   : > { %v16386_v5 = vpop.f32.mrf.mxu1  ;;  %v16389_v41 = vadd.f32 %v8336_v54, %v16016_v7  ;;  %v9733_v7 = vld [vmem:[#allocation4 + $0x180] sm:$0xf] }
 0x650   : > { %17266 = vst [vmem:[#allocation107_spill] sm:$0xff] %v16386_v5  ;;  %v9734_v54 = vor.u32 %v10586_v62, %v9733_v7 }
 0x651   : > { %v16391_v44 = vpop.f32.mrf.mxu2 }
 0x652   : > { %17267 = vst [vmem:[#allocation108_spill] sm:$0xff] %v16391_v44  ;;  %8859 = vmatmul.bf16.gmra.mxu1 %v9742_v52 }
 0x656   : > { %v8338_v38 = vpop.f32.mrf.mxu3  ;;  %10500 = vmatmul.msk.bf16.gmra.mxu2 %vm9044_vm2, %v10764_v59 }
 0x657   : > { %v16398_v33 = vpop.f32.mrf.mxu1  ;;  %v16400_v5 = vadd.f32 %v8338_v38, %v8245_v37  ;;  %v16415_v37 = vld [vmem:[%s16783_s4] ss:$0 sm:$0xff] }
 0x658   : > { %17268 = vst [vmem:[#allocation109_spill] sm:$0xff] %v16398_v33  ;;  %v8156_v38 = vadd.f32 %v16415_v37, %v15881_v50  ;;  %v9813_v50 = vld [vmem:[#allocation4 + $0x218] sm:$0xf] }
 0x659   : > { %v16402_v32 = vpop.f32.mrf.mxu2 }
 0x65a   : > { %v8250_v62 = vadd.f32 %v16059_v23, %v8156_v38 }
 0x65b   : > { %8671 = vmatmul.bf16.gmra.mxu3 %v9734_v54 }
 0x65e   : > { %v8341_v52 = vpop.f32.mrf.mxu3 }
 0x65f   : > { %v16404_v44 = vpop.f32.mrf.mxu1  ;;  %v16407_v14 = vadd.f32 %v8341_v52, %v16043_v12  ;;  %v10595_v12 = vld [vmem:[#allocation4 + $0x1e8] sm:$0xf0]  ;;  %v9769_v52 = vld [vmem:[#allocation4 + $0x1c8] sm:$0xf] }
 0x660   : > { %17269 = vst [vmem:[#allocation110_spill] sm:$0xff] %v16404_v44  ;;  %v10605_v44 = vld [vmem:[#allocation4 + $0x238] sm:$0xf0] }
 0x661   : > { %v16409_v59 = vpop.f32.mrf.mxu2 }
 0x662   : > { %17270 = vst [vmem:[#allocation111_spill] sm:$0xff] %v16409_v59  ;;  %8864 = vmatmul.bf16.gmra.mxu1 %v9778_v57  ;;  %v9770_v57 = vor.u32 %v10595_v12, %v9769_v52  ;;  %v10604_v52 = vld [vmem:[#allocation4 + $0x230] sm:$0xf0] }
 0x666   : > { %v8343_v7 = vpop.f32.mrf.mxu3  ;;  %10501 = vmatmul.msk.bf16.gmra.mxu2 %vm9044_vm2, %v10765_v11  ;;  %v9814_v11 = vor.u32 %v10605_v44, %v9813_v50  ;;  %v10614_v50 = vld [vmem:[#allocation4 + $0x280] sm:$0xf0] }
 0x667   : > { %v16421_v54 = vpop.f32.mrf.mxu1  ;;  %v16423_v21 = vadd.f32 %v8343_v7, %v8250_v62  ;;  %v8161_v62 = vadd.f32 %v16415_v37, %v15955_v10  ;;  %v9849_v10 = vld [vmem:[#allocation4 + $0x260] sm:$0xf] }
 0x668   : > { %17271 = vst [vmem:[#allocation112_spill] sm:$0xff] %v16421_v54  ;;  %v10766_v54 = vld [vmem:[%s11289_s12 + $0x44] sm:$0xff] }
 0x669   : > { %v16425_v51 = vpop.f32.mrf.mxu2  ;;  %v8255_v7 = vadd.f32 %v16084_v36, %v8161_v62  ;;  %v9850_v62 = vor.u32 %v10614_v50, %v9849_v10  ;;  %v9841_v50 = vld [vmem:[#allocation4 + $0x258] sm:$0xf] }
 0x66a   : > { %17272 = vst [vmem:[#allocation113_spill] sm:$0xff] %v16425_v51  ;;  %v10767_v51 = vld [vmem:[%s11289_s12 + $0x4c] sm:$0xff] }
 0x66b   : > { %8676 = vmatmul.bf16.gmra.mxu3 %v9770_v57 }
 0x66e   : > { %v8346_v59 = vpop.f32.mrf.mxu3 }
 0x66f   : > { %v16427_v33 = vpop.f32.mrf.mxu1  ;;  %v16430_v23 = vadd.f32 %v8346_v59, %v16076_v46  ;;  %v9805_v46 = vld [vmem:[#allocation4 + $0x210] sm:$0xf] }
 0x670   : > { %17273 = vst [vmem:[#allocation114_spill] sm:$0xff] %v16427_v33  ;;  %v9806_v59 = vor.u32 %v10604_v52, %v9805_v46  ;;  %v10613_v46 = vld [vmem:[#allocation4 + $0x278] sm:$0xf0] }
 0x671   : > { %17274 = vst [vmem:[#allocation115_spill] sm:$0xff] %v16430_v23  ;;  %v16432_v38 = vpop.f32.mrf.mxu2 }
 0x672   : > { %17275 = vst [vmem:[#allocation116_spill] sm:$0xff] %v16432_v38  ;;  %8869 = vmatmul.bf16.gmra.mxu1 %v9814_v11 }
 0x676   : > { %v8348_v12 = vpop.f32.mrf.mxu3  ;;  %10502 = vmatmul.msk.bf16.gmra.mxu2 %vm9044_vm2, %v10766_v54 }
 0x677   : > { %v16439_v57 = vpop.f32.mrf.mxu1  ;;  %v16441_v33 = vadd.f32 %v8348_v12, %v8255_v7  ;;  %v8366_v12 = vadd.f32 %v15157_v31, %v16145_v19  ;;  %v17284_v31 = vld [vmem:[#allocation62_spill] sm:$0xff] }
 0x678   : > { %17276 = vst [vmem:[#allocation117_spill] sm:$0xff] %v16439_v57  ;;  %v17281_v57 = vld [vmem:[#allocation41_spill] sm:$0xff] }
 0x679   : > { %17277 = vst [vmem:[#allocation118_spill] sm:$0xff] %v16441_v33  ;;  %v16443_v44 = vpop.f32.mrf.mxu2  ;;  %v8086_v7 = vadd.f32 %v16415_v37, %v17281_v57  ;;  %v8460_v57 = vadd.f32 %v16101_v28, %v8366_v12  ;;  %v16469_v28 = vld [vmem:[%s16786_s7] ss:$0 sm:$0xff]  ;;  %v17285_v12 = vld [vmem:[#allocation25_spill] sm:$0xff] }
 0x67a   : > { %17278 = vst [vmem:[#allocation119_spill] sm:$0xff] %v16443_v44 }
 0x67b   : > { %8681 = vmatmul.bf16.gmra.mxu3 %v9806_v59  ;;  %v17282_v59 = vld [vmem:[#allocation42_spill] sm:$0xff] }
 0x67c   : > { %v8180_v44 = vadd.f32 %v17282_v59, %v8086_v7 }
 0x67e   : > { %v8351_v11 = vpop.f32.mrf.mxu3 }
 0x67f   : > { %v8835_v38 = vpop.f32.mrf.mxu1  ;;  %v16446_v36 = vadd.f32 %v8351_v11, %v16103_v63  ;;  %v8274_v11 = vadd.f32 %v16151_v42, %v8180_v44  ;;  %v10768_v42 = vld [vmem:[%s11289_s12 + $0x54] sm:$0xff] }
 0x681   : > { %17279 = vst [vmem:[#allocation120_spill] sm:$0xff] %v16446_v36  ;;  %v16448_v54 = vpop.f32.mrf.mxu2  ;;  %v8368_v19 = vadd.f32 %v17284_v31, %v8274_v11  ;;  %v8554_v36 = vadd.f32 %v16135_v29, %v8460_v57  ;;  %v8091_v29 = vadd.f32 %v16415_v37, %v17285_v12  ;;  %v17286_v11 = vld [vmem:[#allocation49_spill] sm:$0xff] }
 0x682   : > { %17280 = vst [vmem:[#allocation121_spill] sm:$0xff] %v16448_v54  ;;  %8874 = vmatmul.bf16.gmra.mxu1 %v9850_v62  ;;  %v9842_v62 = vor.u32 %v10613_v46, %v9841_v50  ;;  %v9885_v54 = vld [vmem:[#allocation4 + $0x2a8] sm:$0xf]  ;;  %v10622_v50 = vld [vmem:[#allocation4 + $0x2c0] sm:$0xf0] }
 0x686   : > { %v8353_v52 = vpop.f32.mrf.mxu3  ;;  %10503 = vmatmul.msk.bf16.gmra.mxu2 %vm9044_vm2, %v10767_v51  ;;  %v10623_v51 = vld [vmem:[#allocation4 + $0x2c8] sm:$0xf0] }
 0x687   : > { %v8837_v33 = vpop.f32.mrf.mxu1  ;;  %v16458_v63 = vadd.f32 %v8353_v52, %v16133_v16  ;;  %v9886_v16 = vor.u32 %v10623_v51, %v9885_v54 }
 0x689   : > { %17283 = vst [vmem:[#allocation41_spill] sm:$0xff] %v16458_v63  ;;  %v9108_v10 = vpop.f32.mrf.mxu2  ;;  %v8462_v63 = vadd.f32 %v16131_v15, %v8368_v19  ;;  %v9877_v15 = vld [vmem:[#allocation4 + $0x2a0] sm:$0xf] }
 0x68a   : > { %v9109_v31 = vadd.f32 %v16469_v28, %v9108_v10 }
 0x68b   : > { %8686 = vmatmul.bf16.gmra.mxu3 %v9842_v62  ;;  %v8556_v54 = vadd.f32 %v16147_v0, %v8462_v63  ;;  %v8185_v62 = vadd.f32 %v17286_v11, %v8091_v29  ;;  %v9878_v0 = vor.u32 %v10622_v50, %v9877_v15  ;;  %v17287_v50 = vld [vmem:[#allocation90_spill] sm:$0xff] }
 0x68c   : > { %v8096_v11 = vadd.f32 %v16415_v37, %v17287_v50 }
 0x68d   : > { %v8279_v19 = vadd.f32 %v16166_v60, %v8185_v62  ;;  %v17288_v62 = vld [vmem:[#allocation52_spill] sm:$0xff] }
 0x68e   : > { %v8647_v7 = vpop.f32.mrf.mxu3 }
 0x68f   : > { %v8840_v59 = vpop.f32.mrf.mxu1  ;;  %v8648_v23 = vadd.f32 %v8647_v7, %v8554_v36  ;;  %v8371_v36 = vadd.f32 %v15324_v55, %v16162_v13  ;;  %v8373_v10 = vadd.f32 %v15393_v18, %v8279_v19  ;;  %v10769_v18 = vld [vmem:[%s11289_s12 + $0x5c] sm:$0xff]  ;;  %v17289_v19 = vld [vmem:[#allocation83_spill] sm:$0xff] }
 0x691   : > { %v9110_v52 = vpop.f32.mrf.mxu2  ;;  %v8742_v44 = vadd.f32 %v16283_v56, %v8648_v23  ;;  %v8465_v63 = vadd.f32 %v16142_v1, %v8371_v36  ;;  %v10632_v1 = vld [vmem:[#allocation4 + $0x310] sm:$0xf0]  ;;  %v8467_v15 = vadd.f32 %v16153_v3, %v8373_v10  ;;  %v9913_v3 = vld [vmem:[#allocation4 + $0x2e8] sm:$0xf] }
 0x692   : > { %8879 = vmatmul.bf16.gmra.mxu1 %v9886_v16  ;;  %v9111_v7 = vadd.f32 %v16469_v28, %v9110_v52 }
 0x693   : > { %v8836_v56 = vadd.f32 %v8835_v38, %v8742_v44  ;;  %v9921_v38 = vld [vmem:[#allocation4 + $0x2f0] sm:$0xf]  ;;  %v8559_v60 = vadd.f32 %v16155_v49, %v8465_v63 }
 0x695   : > { %v9193_v51 = vadd.f32 %v9109_v31, %v8836_v56  ;;  %v8376_v31 = vadd.f32 %v17288_v62, %v16180_v34  ;;  %v8561_v56 = vadd.f32 %v16164_v27, %v8467_v15 }
 0x696   : > { %v8649_v46 = vpop.f32.mrf.mxu3  ;;  %10504 = vmatmul.msk.bf16.gmra.mxu2 %vm9044_vm2, %v10768_v42 }
 0x697   : > { %v8842_v57 = vpop.f32.mrf.mxu1  ;;  %v8650_v23 = vadd.f32 %v8649_v46, %v8556_v54  ;;  %v9227_v12 = vmax.f32 %v9193_v51, 0.0 }
 0x699   : > { %v8744_v55 = vadd.f32 %v16292_v6, %v8650_v23  ;;  %v9113_v13 = vpop.f32.mrf.mxu2  ;;  %v16489_v6 = vpop.f32.mrf.mxu0 }
 0x69a   : > { %v9114_v63 = vadd.f32 %v16469_v28, %v9113_v13  ;;  %v10641_v13 = vld [vmem:[#allocation4 + $0x358] sm:$0xf0] }
 0x69b   : > { %v8838_v16 = vadd.f32 %v8837_v33, %v8744_v55  ;;  %8691 = vmatmul.bf16.gmra.mxu3 %v9878_v0  ;;  %v9922_v33 = vor.u32 %v10632_v1, %v9921_v38  ;;  %v8190_v55 = vadd.f32 %v17289_v19, %v8096_v11  ;;  %v17294_v19 = vld [vmem:[#allocation57_spill] sm:$0xff] }
 0x69d   : > { %v9194_v42 = vadd.f32 %v9111_v7, %v8838_v16  ;;  %v8284_v16 = vadd.f32 %v16189_v8, %v8190_v55  ;;  %v17292_v8 = vld [vmem:[#allocation70_spill] sm:$0xff]  ;;  %v8101_v55 = vadd.f32 %v16415_v37, %v17294_v19 }
 0x69e   : > { %v8652_v44 = vpop.f32.mrf.mxu3  ;;  %v17301_v19 = vld [vmem:[#allocation26_spill] sm:$0xff] }
 0x69f   : > { %v16491_v29 = vpop.f32.mrf.mxu1  ;;  %v9228_v36 = vmax.f32 %v9194_v42, 0.0  ;;  %v8653_v52 = vadd.f32 %v8652_v44, %v8559_v60  ;;  %v17290_v42 = vld [vmem:[#allocation53_spill] sm:$0xff] }
 0x6a0   : > { %v8470_v60 = vadd.f32 %v17290_v42, %v8376_v31 }
 0x6a1   : > { %v10859_v54 = vpack.c.bf16 %v9228_v36, %v9227_v12  ;;  %v9115_v46 = vpop.f32.mrf.mxu2  ;;  %v8747_v49 = vadd.f32 %v16302_v43, %v8653_v52  ;;  %v10631_v43 = vld [vmem:[#allocation4 + $0x308] sm:$0xf0]  ;;  %v16508_v10 = vpop.f32.mrf.mxu0  ;;  %v17291_v36 = vld [vmem:[#allocation88_spill] sm:$0xff] }
 0x6a2   : > { %8884 = vmatmul.bf16.gmra.mxu1 %v9922_v33  ;;  %v9914_v27 = vor.u32 %v10631_v43, %v9913_v3  ;;  %v9116_v12 = vadd.f32 %v16469_v28, %v9115_v46  ;;  %v8564_v33 = vadd.f32 %v17292_v8, %v8470_v60  ;;  %v17293_v46 = vld [vmem:[#allocation69_spill] sm:$0xff] }
 0x6a3   : > { %10860 = vst [vmem:[%s16495_s23] sm:$0xff] %v10859_v54   ;;  %v8841_v51 = vadd.f32 %v8840_v59, %v8747_v49  ;;  %v8378_v59 = vadd.f32 %v17291_v36, %v8284_v16 }
 0x6a5   : > { %v9195_v44 = vadd.f32 %v9114_v63, %v8841_v51  ;;  %v17295_v63 = vld [vmem:[#allocation89_spill] sm:$0xff] }
 0x6a6   : > { %v8654_v23 = vpop.f32.mrf.mxu3  ;;  %10505 = vmatmul.msk.bf16.gmra.mxu2 %vm9044_vm2, %v10769_v18  ;;  %v9957_v18 = vld [vmem:[#allocation4 + $0x338] sm:$0xf]  ;;  %v8381_v51 = vadd.f32 %v17295_v63, %v16200_v20  ;;  %v10771_v63 = vld [vmem:[%s11289_s12 + $0x6c] sm:$0xff] }
 0x6a7   : > { %v8847_v0 = vpop.f32.mrf.mxu1  ;;  %v8655_v7 = vadd.f32 %v8654_v23, %v8561_v56  ;;  %v9229_v15 = vmax.f32 %v9195_v44, 0.0  ;;  %v9958_v11 = vor.u32 %v10641_v13, %v9957_v18  ;;  %v10770_v56 = vld [vmem:[%s11289_s12 + $0x64] sm:$0xff]  ;;  %v17298_v13 = vld [vmem:[#allocation76_spill] sm:$0xff] }
 0x6a9   : > { %v8749_v34 = vadd.f32 %v16317_v35, %v8655_v7  ;;  %v9118_v38 = vpop.f32.mrf.mxu2  ;;  %v16517_v23 = vpop.f32.mrf.mxu0  ;;  %v17296_v7 = vld [vmem:[#allocation78_spill] sm:$0xff] }
 0x6aa   : > { %v9119_v44 = vadd.f32 %v16469_v28, %v9118_v38 }
 0x6ab   : > { %v8843_v1 = vadd.f32 %v8842_v57, %v8749_v34  ;;  %8696 = vmatmul.bf16.gmra.mxu3 %v9914_v27  ;;  %v8472_v57 = vadd.f32 %v17293_v46, %v8378_v59  ;;  %v10640_v34 = vld [vmem:[#allocation4 + $0x350] sm:$0xf0]  ;;  %v17297_v27 = vld [vmem:[#allocation81_spill] sm:$0xff] }
 0x6ac   : > { %v8195_v42 = vadd.f32 %v17297_v27, %v8101_v55  ;;  %v9993_v46 = vld [vmem:[#allocation4 + $0x380] sm:$0xf] }
 0x6ad   : > { %v9196_v52 = vadd.f32 %v9116_v12, %v8843_v1  ;;  %v8566_v43 = vadd.f32 %v17296_v7, %v8472_v57  ;;  %v9949_v1 = vld [vmem:[#allocation4 + $0x330] sm:$0xf]  ;;  %v17302_v7 = vld [vmem:[#allocation61_spill] sm:$0xff] }
 0x6ae   : > { %v8657_v54 = vpop.f32.mrf.mxu3  ;;  %v8289_v37 = vadd.f32 %v16206_v40, %v8195_v42  ;;  %v9950_v59 = vor.u32 %v10640_v34, %v9949_v1  ;;  %v17300_v40 = vld [vmem:[#allocation32_spill] sm:$0xff]  ;;  %v10649_v42 = vld [vmem:[#allocation4 + $0x398] sm:$0xf0] }
 0x6af   : > { %v8850_v35 = vpop.f32.mrf.mxu1  ;;  %v9230_v49 = vmax.f32 %v9196_v52, 0.0  ;;  %v8658_v50 = vadd.f32 %v8657_v54, %v8564_v33  ;;  %v8475_v52 = vadd.f32 %v17298_v13, %v8381_v51 }
 0x6b1   : > { %v10864_v62 = vpack.c.bf16 %v9230_v49, %v9229_v15  ;;  %v9120_v31 = vpop.f32.mrf.mxu2  ;;  %v8752_v3 = vadd.f32 %v16330_v30, %v8658_v50  ;;  %v17299_v15 = vld [vmem:[#allocation82_spill] sm:$0xff]  ;;  %v16535_v38 = vpop.f32.mrf.mxu0  ;;  %v8569_v50 = vadd.f32 %v17300_v40, %v8475_v52  ;;  %v17304_v52 = vld [vmem:[#allocation48_spill] sm:$0xff] }
 0x6b2   : > { %8889 = vmatmul.bf16.gmra.mxu1 %v9958_v11  ;;  %v9121_v33 = vadd.f32 %v16469_v28, %v9120_v31  ;;  %v8383_v18 = vadd.f32 %v17299_v15, %v8289_v37  ;;  %v17305_v15 = vld [vmem:[#allocation33_spill] sm:$0xff] }
 0x6b3   : > { %10957 = vst [vmem:[%s16495_s23 + $0x8] sm:$0xff] %v10864_v62   ;;  %v8846_v12 = vadd.f32 %v16491_v29, %v8752_v3  ;;  %v10650_v29 = vld [vmem:[#allocation4 + $0x3a0] sm:$0xf0] }
 0x6b4   : > { %v9994_v3 = vor.u32 %v10650_v29, %v9993_v46  ;;  %v8477_v55 = vadd.f32 %v17301_v19, %v8383_v18  ;;  %v17306_v18 = vld [vmem:[#allocation15_spill] sm:$0xff] }
 0x6b5   : > { %v9197_v8 = vadd.f32 %v9119_v44, %v8846_v12  ;;  %v8388_v29 = vadd.f32 %v17306_v18, %v17305_v15  ;;  %v17312_v15 = vld [vmem:[#allocation16_spill] sm:$0xff] }
 0x6b6   : > { %v8659_v16 = vpop.f32.mrf.mxu3  ;;  %10506 = vmatmul.msk.bf16.gmra.mxu2 %vm9044_vm2, %v10770_v56 }
 0x6b7   : > { %v8852_v60 = vpop.f32.mrf.mxu1  ;;  %v8660_v30 = vadd.f32 %v8659_v16, %v8566_v43  ;;  %v9231_v11 = vmax.f32 %v9197_v8, 0.0  ;;  %v8386_v43 = vadd.f32 %v17302_v7, %v16218_v22  ;;  %v17303_v16 = vld [vmem:[#allocation40_spill] sm:$0xff] }
 0x6b8   : > { %v8571_v34 = vadd.f32 %v17303_v16, %v8477_v55  ;;  %v10772_v55 = vld [vmem:[%s11289_s12 + $0x74] sm:$0xff] }
 0x6b9   : > { %v8754_v36 = vadd.f32 %v16340_v53, %v8660_v30  ;;  %v9123_v20 = vpop.f32.mrf.mxu2  ;;  %v16546_v44 = vpop.f32.mrf.mxu0  ;;  %v8480_v22 = vadd.f32 %v17304_v52, %v8386_v43  ;;  %v17310_v43 = vld [vmem:[#allocation79_spill] sm:$0xff] }
 0x6ba   : > { %v9124_v30 = vadd.f32 %v16469_v28, %v9123_v20  ;;  %v17307_v20 = vld [vmem:[#allocation71_spill] sm:$0xff] }
 0x6bb   : > { %v8848_v54 = vadd.f32 %v8847_v0, %v8754_v36  ;;  %8701 = vmatmul.bf16.gmra.mxu3 %v9950_v59  ;;  %v9985_v36 = vld [vmem:[#allocation4 + $0x378] sm:$0xf]  ;;  %v8574_v40 = vadd.f32 %v17307_v20, %v8480_v22 }
 0x6bc   : > { %v9986_v13 = vor.u32 %v10649_v42, %v9985_v36  ;;  %v10021_v36 = vld [vmem:[#allocation4 + $0x3c0] sm:$0xf] }
 0x6bd   : > { %v9198_v49 = vadd.f32 %v9121_v33, %v8848_v54 }
 0x6be   : > { %v8662_v53 = vpop.f32.mrf.mxu3 }
 0x6bf   : > { %v8855_v62 = vpop.f32.mrf.mxu1  ;;  %v9232_v57 = vmax.f32 %v9198_v49, 0.0  ;;  %v8663_v56 = vadd.f32 %v8662_v53, %v8569_v50  ;;  %v10659_v49 = vld [vmem:[#allocation4 + $0x3e8] sm:$0xf0] }
 0x6c1   : > { %v10869_v31 = vpack.c.bf16 %v9232_v57, %v9231_v11  ;;  %v9125_v0 = vpop.f32.mrf.mxu2  ;;  %v8757_v51 = vadd.f32 %v16350_v45, %v8663_v56  ;;  %v10029_v11 = vld [vmem:[#allocation4 + $0x3c8] sm:$0xf] }
 0x6c2   : > { %8894 = vmatmul.bf16.gmra.mxu1 %v9994_v3  ;;  %v9126_v33 = vadd.f32 %v16469_v28, %v9125_v0  ;;  %v10030_v56 = vor.u32 %v10659_v49, %v10029_v11  ;;  %v16555_v3 = vpop.f32.mrf.mxu0  ;;  %v17308_v0 = vld [vmem:[#allocation58_spill] sm:$0xff] }
 0x6c3   : > { %10958 = vst [vmem:[%s16495_s23 + $0x10] sm:$0xff] %v10869_v31   ;;  %v8851_v1 = vadd.f32 %v8850_v35, %v8757_v51  ;;  %v8482_v19 = vadd.f32 %v17308_v0, %v8388_v29  ;;  %v17309_v51 = vld [vmem:[#allocation14_spill] sm:$0xff]  ;;  %v17313_v29 = vld [vmem:[#allocation64_spill] sm:$0xff] }
 0x6c4   : > { %v8391_v7 = vadd.f32 %v17309_v51, %v16239_v26 }
 0x6c5   : > { %v9199_v8 = vadd.f32 %v9124_v30, %v8851_v1  ;;  %v8576_v16 = vadd.f32 %v17310_v43, %v8482_v19 }
 0x6c6   : > { %v8664_v27 = vpop.f32.mrf.mxu3  ;;  %10507 = vmatmul.msk.bf16.gmra.mxu2 %vm9044_vm2, %v10771_v63 }
 0x6c7   : > { %v8857_v12 = vpop.f32.mrf.mxu1  ;;  %v8665_v37 = vadd.f32 %v8664_v27, %v8571_v34  ;;  %v10658_v27 = vld [vmem:[#allocation4 + $0x3e0] sm:$0xf0] }
 0x6c8   : > { %v10022_v52 = vor.u32 %v10658_v27, %v10021_v36 }
 0x6c9   : > { %v8759_v59 = vadd.f32 %v16366_v58, %v8665_v37  ;;  %v9128_v45 = vpop.f32.mrf.mxu2  ;;  %v9233_v58 = vmax.f32 %v9199_v8, 0.0 }
 0x6ca   : > { %v9129_v30 = vadd.f32 %v16469_v28, %v9128_v45  ;;  %v16568_v8 = vpop.f32.mrf.mxu0  ;;  %v8393_v45 = vadd.f32 %v17312_v15, %v16248_v61 }
 0x6cb   : > { %v8853_v54 = vadd.f32 %v8852_v60, %v8759_v59  ;;  %8706 = vmatmul.bf16.gmra.mxu3 %v9986_v13 }
 0x6cd   : > { %v9200_v35 = vadd.f32 %v9126_v33, %v8853_v54 }
 0x6ce   : > { %v8667_v50 = vpop.f32.mrf.mxu3 }
 0x6cf   : > { %v8860_v53 = vpop.f32.mrf.mxu1  ;;  %v9234_v46 = vmax.f32 %v9200_v35, 0.0  ;;  %v8668_v57 = vadd.f32 %v8667_v50, %v8574_v40  ;;  %v10065_v40 = vld [vmem:[#allocation4 + $0x410] sm:$0xf] }
 0x6d1   : > { %v10874_v60 = vpack.c.bf16 %v9234_v46, %v9233_v58  ;;  %v9130_v31 = vpop.f32.mrf.mxu2  ;;  %v8762_v63 = vadd.f32 %v16489_v6, %v8668_v57  ;;  %v17311_v6 = vld [vmem:[#allocation59_spill] sm:$0xff] }
 0x6d2   : > { %8899 = vmatmul.bf16.gmra.mxu1 %v10030_v56  ;;  %v8485_v22 = vadd.f32 %v17311_v6, %v8391_v7  ;;  %v9131_v33 = vadd.f32 %v16469_v28, %v9130_v31  ;;  %v17315_v31 = vld [vmem:[#allocation20_spill] sm:$0xff]  ;;  %v16580_v19 = vpop.f32.mrf.mxu0  ;;  %v10667_v7 = vld [vmem:[#allocation4 + $0x428] sm:$0xf0] }
 0x6d3   : > { %10959 = vst [vmem:[%s16495_s23 + $0x18] sm:$0xff] %v10874_v60   ;;  %v8856_v1 = vadd.f32 %v8855_v62, %v8762_v63  ;;  %v10668_v62 = vld [vmem:[#allocation4 + $0x430] sm:$0xf0]  ;;  %v8396_v0 = vadd.f32 %v17315_v31, %v16260_v9 }
 0x6d4   : > { %v10066_v11 = vor.u32 %v10668_v62, %v10065_v40  ;;  %v10773_v60 = vld [vmem:[%s11289_s12 + $0x7c] sm:$0xff]  ;;  %v17320_v40 = vld [vmem:[#allocation93_spill] sm:$0xff] }
 0x6d5   : > { %v9201_v26 = vadd.f32 %v9129_v30, %v8856_v1  ;;  %v10057_v30 = vld [vmem:[#allocation4 + $0x408] sm:$0xf]  ;;  %v17317_v9 = vld [vmem:[#allocation84_spill] sm:$0xff] }
 0x6d6   : > { %v8669_v34 = vpop.f32.mrf.mxu3  ;;  %10508 = vmatmul.msk.bf16.gmra.mxu2 %vm9044_vm2, %v10772_v55  ;;  %v17316_v55 = vld [vmem:[#allocation75_spill] sm:$0xff]  ;;  %v8490_v36 = vadd.f32 %v17317_v9, %v8396_v0 }
 0x6d7   : > { %v8862_v42 = vpop.f32.mrf.mxu1  ;;  %v8670_v37 = vadd.f32 %v8669_v34, %v8576_v16  ;;  %v9235_v35 = vmax.f32 %v9201_v26, 0.0 }
 0x6d9   : > { %v8764_v59 = vadd.f32 %v16508_v10, %v8670_v37  ;;  %v9133_v13 = vpop.f32.mrf.mxu2  ;;  %v8579_v10 = vadd.f32 %v17313_v29, %v8485_v22  ;;  %v10058_v37 = vor.u32 %v10667_v7, %v10057_v30  ;;  %v17318_v22 = vld [vmem:[#allocation18_spill] sm:$0xff]  ;;  %v5818_v7 = vld [vmem:[#allocation3 + $0x94] sm:$0xf]  ;;  %v5887_v30 = vld [vmem:[#allocation3 + $0x98] sm:$0xf] }
 0x6da   : > { %v9134_v16 = vadd.f32 %v16469_v28, %v9133_v13  ;;  %v8398_v26 = vadd.f32 %v17318_v22, %v16270_v39  ;;  %5852 = vst [vmem:[#allocation4 + $0x498] sm:$0xf] %v5818_v7 }
 0x6db   : > { %v8858_v54 = vadd.f32 %v8857_v12, %v8764_v59  ;;  %8711 = vmatmul.bf16.gmra.mxu3 %v10022_v52  ;;  %v17314_v12 = vld [vmem:[#allocation87_spill] sm:$0xff] }
 0x6dc   : > { %v8487_v56 = vadd.f32 %v17314_v12, %v8393_v45  ;;  %v8492_v39 = vadd.f32 %v17320_v40, %v8398_v26  ;;  %v6334_v26 = vld [vmem:[#allocation3 + $0x98] sm:$0xf]  ;;  %v17329_v40 = vld [vmem:[#allocation66_spill] sm:$0xff] }
 0x6dd   : > { %v9202_v18 = vadd.f32 %v9131_v33, %v8858_v54  ;;  %v10677_v33 = vld [vmem:[#allocation4 + $0x478] sm:$0xf0] }
 0x6de   : > { %v8672_v49 = vpop.f32.mrf.mxu3  ;;  %v8581_v63 = vadd.f32 %v17316_v55, %v8487_v56  ;;  %v17322_v56 = vld [vmem:[#allocation94_spill] sm:$0xff] }
 0x6df   : > { %v8865_v20 = vpop.f32.mrf.mxu1  ;;  %v9236_v50 = vmax.f32 %v9202_v18, 0.0  ;;  %v8673_v58 = vadd.f32 %v8672_v49, %v8579_v10  ;;  %v10101_v18 = vld [vmem:[#allocation4 + $0x458] sm:$0xf] }
 0x6e1   : > { %v10879_v46 = vpack.c.bf16 %v9236_v50, %v9235_v35  ;;  %v9135_v57 = vpop.f32.mrf.mxu2  ;;  %v8767_v61 = vadd.f32 %v16517_v23, %v8673_v58  ;;  %v10774_v58 = vld [vmem:[%s11289_s12 + $0x84] sm:$0xff] }
 0x6e2   : > { %8904 = vmatmul.bf16.gmra.mxu1 %v10066_v11  ;;  %v9136_v52 = vadd.f32 %v16469_v28, %v9135_v57  ;;  %v17321_v11 = vld [vmem:[#allocation21_spill] sm:$0xff]  ;;  %v11068_v57 = vld [vmem:[#allocation3 + $0x94] sm:$0xf] }
 0x6e3   : > { %10960 = vst [vmem:[%s16495_s23 + $0x20] sm:$0xff] %v10879_v46   ;;  %v8861_v34 = vadd.f32 %v8860_v53, %v8767_v61  ;;  %v17319_v53 = vld [vmem:[#allocation13_spill] sm:$0xff]  ;;  %v8401_v46 = vadd.f32 %v17321_v11, %v16279_v47  ;;  %v6213_v12 = vshrl.u32 %v11068_v57, 16  ;;  %v10676_v61 = vld [vmem:[#allocation4 + $0x470] sm:$0xf0] }
 0x6e4   : > { %v8584_v54 = vadd.f32 %v17319_v53, %v8490_v36  ;;  %v6219_v36 = vshll.u32 %v5887_v30, 16 }
 0x6e5   : > { %v9203_v59 = vadd.f32 %v9134_v16, %v8861_v34  ;;  %v5819_v16 = vld [vmem:[#allocation3 + $0x98] sm:$0xf]  ;;  %v6215_v9 = vrot.slane %v6213_v12, 4 }
 0x6e6   : > { %v8674_v51 = vpop.f32.mrf.mxu3  ;;  %10509 = vmatmul.msk.bf16.gmra.mxu2 %vm9044_vm2, %v10773_v60  ;;  %v8586_v60 = vadd.f32 %v17322_v56, %v8492_v39  ;;  %5853 = vst [vmem:[#allocation4 + $0x4bc] sm:$0xf] %v5819_v16 }
 0x6e7   : > { %v16584_v43 = vpop.f32.mrf.mxu1  ;;  %v8675_v27 = vadd.f32 %v8674_v51, %v8581_v63  ;;  %v9237_v45 = vmax.f32 %v9203_v59, 0.0  ;;  %v6223_v59 = vshrl.u32 %v5887_v30, 16 }
 0x6e9   : > { %v8769_v23 = vadd.f32 %v16535_v38, %v8675_v27  ;;  %v9138_v1 = vpop.f32.mrf.mxu2  ;;  %v16593_v38 = vpop.f32.mrf.mxu0  ;;  %v17323_v27 = vld [vmem:[#allocation80_spill] sm:$0xff] }
 0x6ea   : > { %v9139_v31 = vadd.f32 %v16469_v28, %v9138_v1  ;;  %v8495_v47 = vadd.f32 %v17323_v27, %v8401_v46 }
 0x6eb   : > { %v8863_v6 = vadd.f32 %v8862_v42, %v8769_v23  ;;  %8716 = vmatmul.bf16.gmra.mxu3 %v10058_v37  ;;  %v10102_v42 = vor.u32 %v10677_v33, %v10101_v18  ;;  %v5888_v23 = vld [vmem:[#allocation3 + $0x9c] sm:$0x1] }
 0x6ec   : > { %v6229_v22 = vshll.u32 %v5888_v23, 16  ;;  %v6335_v33 = vld [vmem:[#allocation3 + $0x9c] sm:$0x1]  ;;  %v8589_v39 = vadd.f32 %v17329_v40, %v8495_v47  ;;  %v17332_v47 = vld [vmem:[#allocation86_spill] sm:$0xff] }
 0x6ed   : > { %v9204_v13 = vadd.f32 %v9136_v52, %v8863_v6 }
 0x6ee   : > { %v8677_v15 = vpop.f32.mrf.mxu3  ;;  %v6231_v57 = vrot.slane %v6229_v22, 5  ;;  %v17334_v22 = vld [vmem:[#allocation22_spill] sm:$0xff] }
 0x6ef   : > { %v16595_v62 = vpop.f32.mrf.mxu1  ;;  %v9238_v29 = vmax.f32 %v9204_v13, 0.0  ;;  %v8678_v10 = vadd.f32 %v8677_v15, %v8584_v54  ;;  %v17324_v13 = vld [vmem:[#allocation35_spill] sm:$0xff] }
 0x6f0   : > { %v17325_v53 = vrot.slane %v17324_v13, 5 }
 0x6f1   : > { %v10884_v49 = vpack.c.bf16 %v9238_v29, %v9237_v45  ;;  %v9140_v35 = vpop.f32.mrf.mxu2  ;;  %v8772_v50 = vadd.f32 %v16546_v44, %v8678_v10  ;;  %v10093_v44 = vld [vmem:[#allocation4 + $0x450] sm:$0xf]  ;;  %v16609_v37 = vpop.f32.mrf.mxu0  ;;  %v17326_v45 = vld [vmem:[#allocation45_spill] sm:$0xff]  ;;  %v6225_v29 = vrot.slane %v6223_v59, 4  ;;  %v10129_v59 = vld [vmem:[#allocation4 + $0x498] sm:$0xf] }
 0x6f2   : > { %8909 = vmatmul.bf16.gmra.mxu1 %v10102_v42  ;;  %v10094_v34 = vor.u32 %v10676_v61, %v10093_v44  ;;  %v9141_v6 = vadd.f32 %v16469_v28, %v9140_v35  ;;  %v6468_v54 = vrot.slane %v17325_v53, 4  ;;  %v6216_v18 = vor.u32 %v6215_v9, %v17326_v45  ;;  %v17327_v10 = vld [vmem:[#allocation91_spill] sm:$0xff] }
 0x6f3   : > { %10961 = vst [vmem:[%s16495_s23 + $0x28] sm:$0xff] %v10884_v49   ;;  %v8866_v0 = vadd.f32 %v8865_v20, %v8772_v50  ;;  %v17328_v42 = vld [vmem:[#allocation19_spill] sm:$0xff]  ;;  %v6469_v50 = vrot.slane %v6334_v26, 5  ;;  %v6472_v35 = vrot.slane %v6335_v33, 5  ;;  %v17335_v33 = vld [vmem:[#allocation72_spill] sm:$0xff] }
 0x6f4   : > { %v8403_v49 = vadd.f32 %v17328_v42, %v17327_v10  ;;  %v6217_v11 = vrot.slane %v6216_v18, 4 }
 0x6f5   : > { %v9205_v52 = vadd.f32 %v9139_v31, %v8866_v0  ;;  %v6471_v61 = vrot.slane %v6469_v50, 4 }
 0x6f6   : > { %v8679_v55 = vpop.f32.mrf.mxu3  ;;  %10510 = vmatmul.msk.bf16.gmra.mxu2 %vm9044_vm2, %v10774_v58  ;;  %v8497_v30 = vadd.f32 %v17332_v47, %v8403_v49  ;;  %v17341_v47 = vld [vmem:[#allocation23_spill] sm:$0xff] }
 0x6f7   : > { %v16606_v63 = vpop.f32.mrf.mxu1  ;;  %v8680_v51 = vadd.f32 %v8679_v55, %v8586_v60  ;;  %v9239_v12 = vmax.f32 %v9205_v52, 0.0  ;;  %v6473_v16 = vsel %vm11371_vm8, %v6471_v61, %v6472_v35  ;;  %v10685_v52 = vld [vmem:[#allocation4 + $0x4b8] sm:$0xf0] }
 0x6f8   : > { %6541 = vst [vmem:[#allocation4 + $0x4c4] sm:$0xf] %v6473_v16  ;;  %v8591_v13 = vadd.f32 %v17335_v33, %v8497_v30  ;;  %v17339_v16 = vld [vmem:[#allocation73_spill] sm:$0xff] }
 0x6f9   : > { %v8774_v1 = vadd.f32 %v16555_v3, %v8680_v51  ;;  %v9143_v20 = vpop.f32.mrf.mxu2  ;;  %v6221_v3 = vrot.slane %v6219_v36, 5  ;;  %v16632_v9 = vpop.f32.mrf.mxu0 }
 0x6fa   : > { %v9144_v45 = vadd.f32 %v16469_v28, %v9143_v20 }
 0x6fb   : > { %v8868_v15 = vadd.f32 %v16584_v43, %v8774_v1  ;;  %8721 = vmatmul.bf16.gmra.mxu3 %v10094_v34  ;;  %v6226_v46 = vor.u32 %v6225_v29, %v6221_v3  ;;  %v6470_v43 = vsel %vm11371_vm8, %v6468_v54, %v6469_v50  ;;  %v6222_v44 = vsel %vm11330_vm5, %v6217_v11, %v6221_v3  ;;  %v10775_v1 = vld [vmem:[%s11289_s12 + $0x8c] sm:$0xff]  ;;  %v17336_v50 = vld [vmem:[#allocation63_spill] sm:$0xff] }
 0x6fc   : > { %6540 = vst [vmem:[#allocation4 + $0x4a0] sm:$0xf] %v6470_v43  ;;  %v10130_v29 = vor.u32 %v10685_v52, %v10129_v59 }
 0x6fd   : > { %v9206_v58 = vadd.f32 %v9141_v6, %v8868_v15  ;;  %v6227_v7 = vrot.slane %v6226_v46, 4  ;;  %6299 = vst [vmem:[#allocation4 + $0x49c] sm:$0xf] %v6222_v44  ;;  %v17333_v6 = vld [vmem:[#allocation95_spill] sm:$0xff] }
 0x6fe   : > { %v8682_v56 = vpop.f32.mrf.mxu3  ;;  %v8406_v26 = vadd.f32 %v17334_v22, %v17333_v6 }
 0x6ff   : > { %v16622_v31 = vpop.f32.mrf.mxu1  ;;  %v9240_v0 = vmax.f32 %v9206_v58, 0.0  ;;  %v8683_v55 = vadd.f32 %v8682_v56, %v8589_v39  ;;  %v6232_v23 = vsel %vm11330_vm5, %v6227_v7, %v6231_v57  ;;  %v17338_v56 = vld [vmem:[#allocation92_spill] sm:$0xff] }
 0x700   : > { %6300 = vst [vmem:[#allocation4 + $0x4c0] sm:$0xf] %v6232_v23  ;;  %v8500_v35 = vadd.f32 %v17336_v50, %v8406_v26 }
 0x701   : > { %v10889_v34 = vpack.c.bf16 %v9240_v0, %v9239_v12  ;;  %v9145_v27 = vpop.f32.mrf.mxu2  ;;  %v8777_v36 = vadd.f32 %v16568_v8, %v8683_v55  ;;  %v10686_v8 = vld [vmem:[#allocation4 + $0x4c0] sm:$0xf0]  ;;  %v8788_v12 = vpop.f32.mrf.mxu0 }
 0x702   : > { %v9146_v46 = vadd.f32 %v16469_v28, %v9145_v27  ;;  %v8594_v60 = vadd.f32 %v17338_v56, %v8500_v35  ;;  %v17340_v27 = vld [vmem:[#allocation43_spill] sm:$0xff] }
 0x703   : > { %10962 = vst [vmem:[%s16495_s23 + $0x30] sm:$0xff] %v10889_v34   ;;  %v10137_v54 = vld [vmem:[#allocation4 + $0x4a0] sm:$0xf]  ;;  %v8871_v18 = vadd.f32 %v16595_v62, %v8777_v36  ;;  %v17337_v62 = vld [vmem:[#allocation27_spill] sm:$0xff]  ;;  %v8411_v30 = vadd.f32 %v17341_v47, %v17340_v27 }
 0x704   : > { %v10681_v10 = vld [vmem:[#allocation4 + $0x49c] sm:$0xf]  ;;  %v10138_v39 = vor.u32 %v10686_v8, %v10137_v54  ;;  %v8408_v20 = vadd.f32 %v17337_v62, %v16308_v25  ;;  %v17346_v8 = vld [vmem:[#allocation30_spill] sm:$0xff]  ;;  %v17349_v62 = vld [vmem:[#allocation51_spill] sm:$0xff] }
 0x705   : > { %v9207_v11 = vadd.f32 %v9144_v45, %v8871_v18  ;;  %v17342_v25 = vld [vmem:[#allocation29_spill] sm:$0xff]  ;;  %v17344_v18 = vld [vmem:[#allocation54_spill] sm:$0xff] }
 0x706   : > { %v8684_v53 = vpop.f32.mrf.mxu3  ;;  %10511 = vmatmul.msk.bf16.gmra.mxu2 %vm9044_vm2, %v10775_v1  ;;  %8914 = vmatmul.bf16.gmra.mxu1 %v10138_v39 }
 0x707   : > { %v8877_v15 = vpop.f32.mrf.mxu1  ;;  %v8685_v3 = vadd.f32 %v8684_v53, %v8591_v13  ;;  %v10131_v40 = vld [vmem:[#allocation4 + $0x4bc] sm:$0xf0]  ;;  %v9241_v61 = vmax.f32 %v9207_v11, 0.0  ;;  %v17343_v13 = vld [vmem:[#allocation68_spill] sm:$0xff] }
 0x708   : > { %v10134_v58 = vor.u32 %v10681_v10, %v10131_v40  ;;  %v8505_v53 = vadd.f32 %v17343_v13, %v8411_v30  ;;  %v17347_v11 = vld [vmem:[#allocation24_spill] sm:$0xff] }
 0x709   : > { %v8779_v42 = vadd.f32 %v16580_v19, %v8685_v3  ;;  %v9148_v49 = vpop.f32.mrf.mxu2  ;;  %v8791_v36 = vpop.f32.mrf.mxu0  ;;  %v17345_v3 = vld [vmem:[#allocation47_spill] sm:$0xff]  ;;  %v17352_v30 = vld [vmem:[#allocation28_spill] sm:$0xff] }
 0x70a   : > { %8820 = vmatmul.bf16.gmra.mxu0 %v10134_v58  ;;  %v9149_v52 = vadd.f32 %v16469_v28, %v9148_v49 }
 0x70b   : > { %v8873_v57 = vadd.f32 %v16606_v63, %v8779_v42  ;;  %8726 = vmatmul.bf16.gmra.mxu3 %v10130_v29  ;;  %v8502_v63 = vadd.f32 %v17339_v16, %v8408_v20  ;;  %v8413_v29 = vadd.f32 %v17345_v3, %v17344_v18  ;;  %v8599_v42 = vadd.f32 %v17346_v8, %v8505_v53  ;;  %v17351_v16 = vld [vmem:[#allocation37_spill] sm:$0xff]  ;;  %v17354_v53 = vld [vmem:[#allocation44_spill] sm:$0xff] }
 0x70c   : > { %v17356_v18 = vld [vmem:[#allocation36_spill] sm:$0xff] }
 0x70d   : > { %v9208_v19 = vadd.f32 %v9146_v46, %v8873_v57  ;;  %v8596_v23 = vadd.f32 %v17342_v25, %v8502_v63  ;;  %v8507_v46 = vadd.f32 %v17347_v11, %v8413_v29  ;;  %v8418_v25 = vadd.f32 %v17352_v30, %v16346_v2  ;;  %v17357_v29 = vld [vmem:[#allocation96_spill] sm:$0xff] }
 0x70e   : > { %v8687_v43 = vpop.f32.mrf.mxu3 }
 0x70f   : > { %v8880_v0 = vpop.f32.mrf.mxu1  ;;  %v9242_v55 = vmax.f32 %v9208_v19, 0.0  ;;  %v8688_v51 = vadd.f32 %v8687_v43, %v8594_v60  ;;  %v17350_v19 = vld [vmem:[#allocation38_spill] sm:$0xff] }
 0x710   : > { %v8601_v56 = vadd.f32 %v17350_v19, %v8507_v46 }
 0x711   : > { %v10894_v44 = vpack.c.bf16 %v9242_v55, %v9241_v61  ;;  %v9150_v7 = vpop.f32.mrf.mxu2  ;;  %v8782_v34 = vadd.f32 %v16593_v38, %v8688_v51 }
 0x712   : > { %v9151_v54 = vadd.f32 %v16469_v28, %v9150_v7 }
 0x713   : > { %10963 = vst [vmem:[%s16495_s23 + $0x38] sm:$0xff] %v10894_v44   ;;  %v8876_v6 = vadd.f32 %v16622_v31, %v8782_v34 }
 0x715   : > { %v9209_v38 = vadd.f32 %v9149_v52, %v8876_v6 }
 0x716   : > { %v8689_v1 = vpop.f32.mrf.mxu3 }
 0x717   : > { %v8882_v59 = vpop.f32.mrf.mxu1  ;;  %v8690_v22 = vadd.f32 %v8689_v1, %v8596_v23  ;;  %v9243_v40 = vmax.f32 %v9209_v38, 0.0  ;;  %v17353_v1 = vld [vmem:[#allocation56_spill] sm:$0xff]  ;;  %v8512_v38 = vadd.f32 %v17354_v53, %v8418_v25 }
 0x719   : > { %v8784_v26 = vadd.f32 %v16609_v37, %v8690_v22  ;;  %v9153_v33 = vpop.f32.mrf.mxu2  ;;  %v8793_v37 = vpop.f32.mrf.mxu0  ;;  %v8606_v2 = vadd.f32 %v17357_v29, %v8512_v38 }
 0x71a   : > { %v9154_v61 = vadd.f32 %v16469_v28, %v9153_v33 }
 0x71b   : > { %v8878_v45 = vadd.f32 %v8877_v15, %v8784_v26  ;;  %v17348_v15 = vld [vmem:[#allocation34_spill] sm:$0xff] }
 0x71c   : > { %v8416_v20 = vadd.f32 %v17349_v62, %v17348_v15 }
 0x71d   : > { %v9210_v10 = vadd.f32 %v9151_v54, %v8878_v45  ;;  %v17355_v45 = vld [vmem:[#allocation100_spill] sm:$0xff] }
 0x71e   : > { %v8692_v49 = vpop.f32.mrf.mxu3  ;;  %v8510_v63 = vadd.f32 %v17351_v16, %v8416_v20  ;;  %v17360_v20 = vld [vmem:[#allocation98_spill] sm:$0xff] }
 0x71f   : > { %v8885_v31 = vpop.f32.mrf.mxu1  ;;  %v9244_v39 = vmax.f32 %v9210_v10, 0.0  ;;  %v8693_v50 = vadd.f32 %v8692_v49, %v8599_v42 }
 0x720   : > { %v8604_v52 = vadd.f32 %v17353_v1, %v8510_v63 }
 0x721   : > { %v10899_v35 = vpack.c.bf16 %v9244_v39, %v9243_v40  ;;  %v9155_v58 = vpop.f32.mrf.mxu2  ;;  %v8787_v57 = vadd.f32 %v16632_v9, %v8693_v50  ;;  %v8796_v34 = vpop.f32.mrf.mxu0 }
 0x722   : > { %v9156_v9 = vadd.f32 %v16469_v28, %v9155_v58 }
 0x723   : > { %10964 = vst [vmem:[%s16495_s23 + $0x40] sm:$0xff] %v10899_v35   ;;  %v8881_v55 = vadd.f32 %v8880_v0, %v8787_v57  ;;  %v17358_v35 = vld [vmem:[#allocation67_spill] sm:$0xff]  ;;  %v17359_v57 = vld [vmem:[#allocation17_spill] sm:$0xff] }
 0x724   : > { %v8423_v15 = vadd.f32 %v17359_v57, %v16364_v17 }
 0x725   : > { %v9211_v27 = vadd.f32 %v9154_v61, %v8881_v55 }
 0x726   : > { %v8694_v60 = vpop.f32.mrf.mxu3 }
 0x727   : > { %v8887_v43 = vpop.f32.mrf.mxu1  ;;  %v8695_v51 = vadd.f32 %v8694_v60, %v8601_v56  ;;  %v9245_v22 = vmax.f32 %v9211_v27, 0.0 }
 0x729   : > { %v8789_v44 = vadd.f32 %v8788_v12, %v8695_v51  ;;  %v9158_v7 = vpop.f32.mrf.mxu2  ;;  %v8798_v3 = vpop.f32.mrf.mxu0 }
 0x72a   : > { %v9159_v8 = vadd.f32 %v16469_v28, %v9158_v7 }
 0x72b   : > { %v8883_v47 = vadd.f32 %v8882_v59, %v8789_v44  ;;  %v8421_v59 = vadd.f32 %v17356_v18, %v17355_v45  ;;  %v17361_v44 = vld [vmem:[#allocation97_spill] sm:$0xff] }
 0x72c   : > { %v8517_v7 = vadd.f32 %v17361_v44, %v8423_v15 }
 0x72d   : > { %v9212_v23 = vadd.f32 %v9156_v9, %v8883_v47  ;;  %v8515_v58 = vadd.f32 %v17358_v35, %v8421_v59  ;;  %v17363_v9 = vld [vmem:[#allocation101_spill] sm:$0xff] }
 0x72e   : > { %v8697_v6 = vpop.f32.mrf.mxu3  ;;  %v8611_v17 = vadd.f32 %v17363_v9, %v8517_v7  ;;  %v17372_v9 = vld [vmem:[#allocation106_spill] sm:$0xff] }
 0x72f   : > { %v8890_v0 = vpop.f32.mrf.mxu1  ;;  %v9246_v26 = vmax.f32 %v9212_v23, 0.0  ;;  %v8698_v12 = vadd.f32 %v8697_v6, %v8604_v52  ;;  %v8609_v19 = vadd.f32 %v17360_v20, %v8515_v58 }
 0x731   : > { %v10904_v33 = vpack.c.bf16 %v9246_v26, %v9245_v22  ;;  %v9160_v13 = vpop.f32.mrf.mxu2  ;;  %v8792_v54 = vadd.f32 %v8791_v36, %v8698_v12  ;;  %v8801_v60 = vpop.f32.mrf.mxu0  ;;  %v17364_v22 = vld [vmem:[#allocation99_spill] sm:$0xff] }
 0x732   : > { %v9161_v36 = vadd.f32 %v16469_v28, %v9160_v13 }
 0x733   : > { %10965 = vst [vmem:[%s16495_s23 + $0x48] sm:$0xff] %v10904_v33   ;;  %v8886_v42 = vadd.f32 %v8885_v31, %v8792_v54  ;;  %v17366_v54 = vld [vmem:[#allocation103_spill] sm:$0xff] }
 0x735   : > { %v9213_v11 = vadd.f32 %v9159_v8, %v8886_v42 }
 0x736   : > { %v8699_v10 = vpop.f32.mrf.mxu3 }
 0x737   : > { %v8700_v49 = vadd.f32 %v8699_v10, %v8606_v2  ;;  %v8892_v40 = vpop.f32.mrf.mxu1  ;;  %v9247_v31 = vmax.f32 %v9213_v11, 0.0  ;;  %v17367_v10 = vld [vmem:[#allocation102_spill] sm:$0xff] }
 0x739   : > { %v8794_v39 = vadd.f32 %v8793_v37, %v8700_v49  ;;  %v9163_v50 = vpop.f32.mrf.mxu2  ;;  %v8803_v1 = vpop.f32.mrf.mxu0 }
 0x73a   : > { %v9164_v30 = vadd.f32 %v16469_v28, %v9163_v50  ;;  %v17369_v50 = vld [vmem:[#allocation105_spill] sm:$0xff] }
 0x73b   : > { %v8888_v46 = vadd.f32 %v8887_v43, %v8794_v39  ;;  %v17362_v43 = vld [vmem:[#allocation46_spill] sm:$0xff] }
 0x73c   : > { %v8426_v27 = vadd.f32 %v17362_v43, %v16373_v48  ;;  %v17365_v48 = vld [vmem:[#allocation55_spill] sm:$0xff] }
 0x73d   : > { %v9214_v62 = vadd.f32 %v9161_v36, %v8888_v46  ;;  %v8428_v53 = vadd.f32 %v17365_v48, %v16382_v4 }
 0x73e   : > { %v8702_v56 = vpop.f32.mrf.mxu3  ;;  %v8520_v26 = vadd.f32 %v17364_v22, %v8426_v27 }
 0x73f   : > { %v9248_v61 = vmax.f32 %v9214_v62, 0.0  ;;  %v8703_v55 = vadd.f32 %v8702_v56, %v8609_v19  ;;  %v8895_v16 = vpop.f32.mrf.mxu1  ;;  %v8522_v8 = vadd.f32 %v17367_v10, %v8428_v53  ;;  %v17370_v62 = vld [vmem:[#allocation104_spill] sm:$0xff] }
 0x740   : > { %v8614_v45 = vadd.f32 %v17366_v54, %v8520_v26 }
 0x741   : > { %v10909_v37 = vpack.c.bf16 %v9248_v61, %v9247_v31  ;;  %v9165_v51 = vpop.f32.mrf.mxu2  ;;  %v8797_v63 = vadd.f32 %v8796_v34, %v8703_v55  ;;  %v8806_v42 = vpop.f32.mrf.mxu0  ;;  %v8616_v35 = vadd.f32 %v17369_v50, %v8522_v8  ;;  %v17371_v31 = vld [vmem:[#allocation39_spill] sm:$0xff]  ;;  %v17379_v50 = vld [vmem:[#allocation74_spill] sm:$0xff] }
 0x742   : > { %v9166_v33 = vadd.f32 %v16469_v28, %v9165_v51 }
 0x743   : > { %10966 = vst [vmem:[%s16495_s23 + $0x50] sm:$0xff] %v10909_v37   ;;  %v8891_v25 = vadd.f32 %v8890_v0, %v8797_v63 }
 0x745   : > { %v9215_v12 = vadd.f32 %v9164_v30, %v8891_v25  ;;  %v17373_v30 = vld [vmem:[#allocation50_spill] sm:$0xff] }
 0x746   : > { %v8704_v47 = vpop.f32.mrf.mxu3  ;;  %v8436_v25 = vadd.f32 %v17373_v30, %v16407_v14  ;;  %v17376_v14 = vld [vmem:[#allocation77_spill] sm:$0xff] }
 0x747   : > { %v8705_v23 = vadd.f32 %v8704_v47, %v8611_v17  ;;  %v8897_v13 = vpop.f32.mrf.mxu1  ;;  %v9249_v0 = vmax.f32 %v9215_v12, 0.0  ;;  %v8438_v54 = vadd.f32 %v17376_v14, %v16423_v21 }
 0x749   : > { %v8799_v52 = vadd.f32 %v8798_v3, %v8705_v23  ;;  %v9168_v6 = vpop.f32.mrf.mxu2  ;;  %v8808_v61 = vpop.f32.mrf.mxu0  ;;  %v17374_v23 = vld [vmem:[#allocation108_spill] sm:$0xff] }
 0x74a   : > { %v9169_v11 = vadd.f32 %v16469_v28, %v9168_v6 }
 0x74b   : > { %v8893_v34 = vadd.f32 %v8892_v40, %v8799_v52  ;;  %v17368_v40 = vld [vmem:[#allocation31_spill] sm:$0xff] }
 0x74c   : > { %v8431_v39 = vadd.f32 %v17368_v40, %v16389_v41  ;;  %v8433_v41 = vadd.f32 %v17371_v31, %v16400_v5 }
 0x74d   : > { %v9216_v38 = vadd.f32 %v9166_v33, %v8893_v34  ;;  %v17375_v33 = vld [vmem:[#allocation107_spill] sm:$0xff] }
 0x74e   : > { %v8707_v18 = vpop.f32.mrf.mxu3  ;;  %v8525_v20 = vadd.f32 %v17370_v62, %v8431_v39  ;;  %v8527_v17 = vadd.f32 %v17372_v9, %v8433_v41  ;;  %v8530_v34 = vadd.f32 %v17375_v33, %v8436_v25  ;;  %v17382_v41 = vld [vmem:[#allocation118_spill] sm:$0xff] }
 0x74f   : > { %v9250_v59 = vmax.f32 %v9216_v38, 0.0  ;;  %v8708_v29 = vadd.f32 %v8707_v18, %v8614_v45  ;;  %v8900_v4 = vpop.f32.mrf.mxu1 }
 0x750   : > { %v8619_v37 = vadd.f32 %v16384_v24, %v8525_v20  ;;  %v8621_v5 = vadd.f32 %v17374_v23, %v8527_v17  ;;  %v8624_v18 = vadd.f32 %v16402_v32, %v8530_v34  ;;  %v11069_v32 = vld [vmem:[%s16786_s7] ss:$0 sm:$0xff] }
 0x751   : > { %v10914_v3 = vpack.c.bf16 %v9250_v59, %v9249_v0  ;;  %v9170_v2 = vpop.f32.mrf.mxu2  ;;  %v8802_v49 = vadd.f32 %v8801_v60, %v8708_v29  ;;  %v8811_v52 = vpop.f32.mrf.mxu0  ;;  %v17385_v17 = vld [vmem:[#allocation112_spill] sm:$0xff] }
 0x752   : > { %v9171_v56 = vadd.f32 %v16469_v28, %v9170_v2  ;;  %v17386_v23 = vld [vmem:[#allocation120_spill] sm:$0xff] }
 0x753   : > { %10967 = vst [vmem:[%s16495_s23 + $0x58] sm:$0xff] %v10914_v3   ;;  %v8896_v36 = vadd.f32 %v8895_v16, %v8802_v49 }
 0x755   : > { %v9217_v19 = vadd.f32 %v9169_v11, %v8896_v36 }
 0x756   : > { %v8709_v58 = vpop.f32.mrf.mxu3 }
 0x757   : > { %v8710_v46 = vadd.f32 %v8709_v58, %v8616_v35  ;;  %v9251_v44 = vmax.f32 %v9217_v19, 0.0  ;;  %v8902_v63 = vpop.f32.mrf.mxu1 }
 0x759   : > { %v8804_v57 = vadd.f32 %v8803_v1, %v8710_v46  ;;  %v9173_v15 = vpop.f32.mrf.mxu2  ;;  %v8813_v2 = vpop.f32.mrf.mxu0 }
 0x75a   : > { %v9174_v24 = vadd.f32 %v16469_v28, %v9173_v15  ;;  %v17381_v15 = vld [vmem:[#allocation110_spill] sm:$0xff] }
 0x75b   : > { %v8898_v60 = vadd.f32 %v8897_v13, %v8804_v57 }
 0x75d   : > { %v9218_v55 = vadd.f32 %v9171_v56, %v8898_v60 }
 0x75e   : > { %v8712_v51 = vpop.f32.mrf.mxu3 }
 0x75f   : > { %v9252_v7 = vmax.f32 %v9218_v55, 0.0  ;;  %v8713_v16 = vadd.f32 %v8712_v51, %v8619_v37  ;;  %v8905_v13 = vpop.f32.mrf.mxu1  ;;  %v17384_v51 = vld [vmem:[#allocation113_spill] sm:$0xff] }
 0x761   : > { %v10919_v43 = vpack.c.bf16 %v9252_v7, %v9251_v44  ;;  %v9175_v27 = vpop.f32.mrf.mxu2  ;;  %v8807_v47 = vadd.f32 %v8806_v42, %v8713_v16  ;;  %v17377_v42 = vld [vmem:[#allocation109_spill] sm:$0xff]  ;;  %v8816_v19 = vpop.f32.mrf.mxu0 }
 0x762   : > { %v9176_v53 = vadd.f32 %v16469_v28, %v9175_v27  ;;  %v8532_v49 = vadd.f32 %v17377_v42, %v8438_v54  ;;  %v17378_v28 = vld [vmem:[#allocation115_spill] sm:$0xff] }
 0x763   : > { %10968 = vst [vmem:[%s16495_s23 + $0x60] sm:$0xff] %v10919_v43   ;;  %v8901_v6 = vadd.f32 %v8900_v4, %v8807_v47  ;;  %v8441_v35 = vadd.f32 %v17379_v50, %v17378_v28  ;;  %v17380_v4 = vld [vmem:[#allocation111_spill] sm:$0xff]  ;;  %v17393_v50 = vld [vmem:[#allocation117_spill] sm:$0xff] }
 0x764   : > { %v8626_v21 = vadd.f32 %v17380_v4, %v8532_v49 }
 0x765   : > { %v9219_v48 = vadd.f32 %v9174_v24, %v8901_v6  ;;  %v8535_v62 = vadd.f32 %v17381_v15, %v8441_v35  ;;  %v17388_v24 = vld [vmem:[#allocation116_spill] sm:$0xff] }
 0x766   : > { %v8714_v1 = vpop.f32.mrf.mxu3 }
 0x767   : > { %v8715_v22 = vadd.f32 %v8714_v1, %v8621_v5  ;;  %v9253_v59 = vmax.f32 %v9219_v48, 0.0  ;;  %v8907_v39 = vpop.f32.mrf.mxu1  ;;  %v8629_v44 = vadd.f32 %v17384_v51, %v8535_v62  ;;  %v17387_v5 = vld [vmem:[#allocation60_spill] sm:$0xff]  ;;  %v17389_v48 = vld [vmem:[#allocation114_spill] sm:$0xff] }
 0x768   : > { %v8446_v1 = vadd.f32 %v17387_v5, %v17386_v23 }
 0x769   : > { %v8809_v26 = vadd.f32 %v8808_v61, %v8715_v22  ;;  %v9178_v12 = vpop.f32.mrf.mxu2  ;;  %v17383_v61 = vld [vmem:[#allocation85_spill] sm:$0xff] }
 0x76a   : > { %v9179_v11 = vadd.f32 %v11069_v32, %v9178_v12  ;;  %v8443_v55 = vadd.f32 %v17383_v61, %v17382_v41 }
 0x76b   : > { %v8903_v38 = vadd.f32 %v8902_v63, %v8809_v26 }
 0x76c   : > { %v8537_v47 = vadd.f32 %v17385_v17, %v8443_v55 }
 0x76d   : > { %v9220_v45 = vadd.f32 %v9176_v53, %v8903_v38  ;;  %v8540_v53 = vadd.f32 %v17389_v48, %v8446_v1 }
 0x76e   : > { %v8717_v0 = vpop.f32.mrf.mxu3  ;;  %v8631_v6 = vadd.f32 %v17388_v24, %v8537_v47 }
 0x76f   : > { %v9254_v29 = vmax.f32 %v9220_v45, 0.0  ;;  %v8718_v3 = vadd.f32 %v8717_v0, %v8624_v18  ;;  %v8910_v7 = vpop.f32.mrf.mxu1  ;;  %v17390_v45 = vld [vmem:[#allocation41_spill] sm:$0xff] }
 0x770   : > { %v17391_v18 = vld [vmem:[#allocation65_spill] sm:$0xff] }
 0x771   : > { %v10924_v10 = vpack.c.bf16 %v9254_v29, %v9253_v59  ;;  %v9180_v8 = vpop.f32.mrf.mxu2  ;;  %v8812_v40 = vadd.f32 %v8811_v52, %v8718_v3  ;;  %v8818_v52 = vpop.f32.mrf.mxu0  ;;  %v8448_v0 = vadd.f32 %v17391_v18, %v17390_v45  ;;  %v17392_v3 = vld [vmem:[#allocation119_spill] sm:$0xff] }
 0x772   : > { %v9181_v60 = vadd.f32 %v11069_v32, %v9180_v8 }
 0x773   : > { %10969 = vst [vmem:[%s16495_s23 + $0x68] sm:$0xff] %v10924_v10   ;;  %v8906_v36 = vadd.f32 %v8905_v13, %v8812_v40  ;;  %v8542_v35 = vadd.f32 %v17393_v50, %v8448_v0 }
 0x775   : > { %v9221_v56 = vadd.f32 %v9179_v11, %v8906_v36 }
 0x776   : > { %v8719_v58 = vpop.f32.mrf.mxu3 }
 0x777   : > { %v8720_v46 = vadd.f32 %v8719_v58, %v8626_v21  ;;  %v9255_v63 = vmax.f32 %v9221_v56, 0.0  ;;  %v8912_v34 = vpop.f32.mrf.mxu1  ;;  %v17394_v21 = vld [vmem:[#allocation121_spill] sm:$0xff] }
 0x778   : > { %v8636_v58 = vadd.f32 %v17394_v21, %v8542_v35 }
 0x779   : > { %v8814_v57 = vadd.f32 %v8813_v2, %v8720_v46  ;;  %v9183_v20 = vpop.f32.mrf.mxu2  ;;  %v8634_v2 = vadd.f32 %v17392_v3, %v8540_v53 }
 0x77a   : > { %v9184_v26 = vadd.f32 %v11069_v32, %v9183_v20 }
 0x77b   : > { %v8908_v31 = vadd.f32 %v8907_v39, %v8814_v57 }
 0x77d   : > { %v9222_v37 = vadd.f32 %v9181_v60, %v8908_v31 }
 0x77e   : > { %v8722_v16 = vpop.f32.mrf.mxu3 }
 0x77f   : > { %v9256_v43 = vmax.f32 %v9222_v37, 0.0  ;;  %v8723_v27 = vadd.f32 %v8722_v16, %v8629_v44 }
 0x781   : > { %v10929_v9 = vpack.c.bf16 %v9256_v43, %v9255_v63  ;;  %v8817_v30 = vadd.f32 %v8816_v19, %v8723_v27  ;;  %v9185_v25 = vpop.f32.mrf.mxu2 }
 0x782   : > { %v9186_v14 = vadd.f32 %v11069_v32, %v9185_v25 }
 0x783   : > { %10970 = vst [vmem:[%s16495_s23 + $0x70] sm:$0xff] %v10929_v9   ;;  %v8911_v12 = vadd.f32 %v8910_v7, %v8817_v30  ;;  %v8915_v39 = vpop.f32.mrf.mxu1 }
 0x785   : > { %v9223_v38 = vadd.f32 %v9184_v26, %v8911_v12 }
 0x786   : > { %v8724_v22 = vpop.f32.mrf.mxu3 }
 0x787   : > { %v8725_v33 = vadd.f32 %v8724_v22, %v8631_v6  ;;  %v8821_v29 = vpop.f32.mrf.mxu0  ;;  %v9257_v42 = vmax.f32 %v9223_v38, 0.0 }
 0x789   : > { %v8819_v13 = vadd.f32 %v8818_v52, %v8725_v33  ;;  %v9188_v10 = vpop.f32.mrf.mxu2 }
 0x78a   : > { %v9189_v36 = vadd.f32 %v11069_v32, %v9188_v10 }
 0x78b   : > { %v8913_v54 = vadd.f32 %v8912_v34, %v8819_v13  ;;  %v8917_v19 = vpop.f32.mrf.mxu1 }
 0x78d   : > { %v9224_v59 = vadd.f32 %v9186_v14, %v8913_v54 }
 0x78e   : > { %v8727_v8 = vpop.f32.mrf.mxu3 }
 0x78f   : > { %v9258_v49 = vmax.f32 %v9224_v59, 0.0  ;;  %v8728_v40 = vadd.f32 %v8727_v8, %v8634_v2  ;;  %v8823_v15 = vpop.f32.mrf.mxu0 }
 0x791   : > { %v10934_v28 = vpack.c.bf16 %v9258_v49, %v9257_v42  ;;  %v8822_v4 = vadd.f32 %v8821_v29, %v8728_v40  ;;  %v9190_v62 = vpop.f32.mrf.mxu2 }
 0x792   : > { %v9191_v60 = vadd.f32 %v11069_v32, %v9190_v62 }
 0x793   : > { %10971 = vst [vmem:[%s16495_s23 + $0x78] sm:$0xff] %v10934_v28   ;;  %v8916_v46 = vadd.f32 %v8915_v39, %v8822_v4 }
 0x795   : > { %v9225_v56 = vadd.f32 %v9189_v36, %v8916_v46 }
 0x796   : > { %v8729_v11 = vpop.f32.mrf.mxu3 }
 0x797   : > { %v8730_v57 = vadd.f32 %v8729_v11, %v8636_v58  ;;  %v9259_v61 = vmax.f32 %v9225_v56, 0.0 }
 0x799   : > { %v8824_v20 = vadd.f32 %v8823_v15, %v8730_v57 }
 0x79b   : > { %v8918_v31 = vadd.f32 %v8917_v19, %v8824_v20 }
 0x79d   : > { %v9226_v41 = vadd.f32 %v9191_v60, %v8918_v31 }
 0x79f   : > { %v9260_v55 = vmax.f32 %v9226_v41, 0.0 }
 0x7a1   : > { %v10939_v37 = vpack.c.bf16 %v9260_v55, %v9259_v61 }
 0x7a3   : > { %10972 = vst [vmem:[%s16495_s23 + $0x80] sm:$0xff] %v10939_v37  }
 0x7a4   : > { %11127 = shalt.err (!%p11124_p8)
}
 0x7a5   : > { %s11180_s21 = smov 64  }
 0x7a6   : > { %10999 = dma.vmem_to_hbm [thread:$0]  (%p11264_p5), %s9343_s17, 2176, %s9345_s19, %s9330_s9, %s11180_s21, %s11180_s21, %s11173_s18  }
 0x7a7 PF: > { %p11011_p9 = scmp.ge.s32.totalorder %s11166_s30, 2  ;;  %s9359_s23 = sand.u32 1, %s11154_s27  }
 0x7a8   : > { %s9360_s13 = scalar_lea.sflag [#allocation7], %s9359_s23 }
 0x7a9   : > { %p11006_p10 = pnand %p11011_p9, %p11268_p6 }
 0x7ab   : > { %p11007_p11 = pneg %p11006_p10 }
 0x7ad   : > { %11149 = dma.done.wait (%p11007_p11), %s9360_s13, 2176  }
 0x7ae   : > { %11151 = vsyncadd (%p11007_p11), %s9360_s13, 4294965120  ;;  %p19_p12 = scmp.ge.s32.totalorder %s11251_s11, 4   ;;  %s17395_s27 = smov %s11158_s28 }
 0x7af   : > { %s17396_s28 = smov %s11162_s29  ;;  %s17397_s29 = smov %s11262_s14 }
 0x7b0   : > { %s17398_s30 = smov %s11251_s11  ;;  %21 = sbr.rel (!%p19_p12) target bundleno = 4 (0x4), region = 92 }
 0x7b5   :  { %9366 = vsyncpa [#allocation6], 1 }
 0x7b6   :  { %9368 = vsyncpa [#allocation6 + $0x1], 1 }
 0x7b7   :  { %9369 = vsyncpa [#allocation7], 1 }
 0x7b8   :  { %9371 = vsyncpa [#allocation7 + $0x1], 1 }

</bundles_post_ra>
